<compile_context>
chip_gen: v5e
topology: v5e:2x2
jax: 0.10.0
libtpu: 0.0.40
codegen_flags: <defaults>
</compile_context>

<pallas_src>
import math

import jax
import jax.numpy as jnp
from jax import lax
from jax.experimental import pallas as pl
from jax.experimental.pallas import tpu as pltpu

# ---------------------------------------------------------------------------
# Model hyper-parameters (small, deterministic, consistent with the module).
# ---------------------------------------------------------------------------
D_MODEL = 32
NUM_TOKENS = 16
NUM_HEADS = 1          # module is constructed with num_heads = 1
DIM_FF = 2048          # PyTorch TransformerEncoder/DecoderLayer default dim_feedforward
ENC_STEPS = 2          # encoding_max_timestep
DEC_STEPS = 3          # decoding_max_timestep
HALT_THRESH = 0.8
LN_EPS = 1e-5
FF_CHUNK = 512         # stream the 2048-wide FF hidden in 4 aligned chunks


# ---------------------------------------------------------------------------
# In-kernel math helpers (operate on loaded jnp values inside the Pallas kernel).
# ---------------------------------------------------------------------------
def _gelu(x):
    # exact (erf-based) GELU, matching nn.GELU() default
    return 0.5 * x * (1.0 + lax.erf(x * (1.0 / math.sqrt(2.0))))


def _layernorm(x, g, b):
    mu = jnp.mean(x, axis=-1, keepdims=True)
    var = jnp.mean(jnp.square(x - mu), axis=-1, keepdims=True)
    return (x - mu) * lax.rsqrt(var + LN_EPS) * g + b


def _attn_core(q, k, v, mask, wo, bo, scale):
    """Flat single-head attention core: q (M,D), k/v (N,D), mask (M,N) additive."""
    s = lax.dot_general(q, k, (((1,), (1,)), ((), ())),       # q @ k^T, transpose folded in
                        preferred_element_type=jnp.float32) * scale + mask
    m = jnp.max(s, axis=-1, keepdims=True)
    e = jnp.exp(s - m)
    # exact divide (not approx reciprocal): ACT halting thresholds are decision-sensitive
    p = e / jnp.sum(e, axis=-1, keepdims=True)
    ctx = jnp.dot(p, v, preferred_element_type=jnp.float32)
    return jnp.dot(ctx, wo, preferred_element_type=jnp.float32) + bo


def _self_attn(x, mask, wq, bq, wk, bk, wv, bv, wo, bo, scale):
    q = jnp.dot(x, wq, preferred_element_type=jnp.float32) + bq
    k = jnp.dot(x, wk, preferred_element_type=jnp.float32) + bk
    v = jnp.dot(x, wv, preferred_element_type=jnp.float32) + bv
    return _attn_core(q, k, v, mask, wo, bo, scale)


def _ff_chunked(x, w1_ref, c1_ref, w2_ref, c2_ref):
    """linear1 -> GELU -> linear2, streamed over the FF hidden in FF_CHUNK slices.

    w1/w2 are bf16 refs (halves HBM DMA + MXU weight feed); accumulation is f32.
    The live hidden intermediate is capped at (M, FF_CHUNK) instead of (M, DIM_FF).
    """
    xb = x.astype(jnp.bfloat16)
    c1 = c1_ref[0]                                              # (FF,) f32 bias
    acc = jnp.zeros((x.shape[0], D_MODEL), jnp.float32)
    for c0 in range(0, DIM_FF, FF_CHUNK):                       # static, 128-aligned slices
        h = jnp.dot(xb, w1_ref[:, c0:c0 + FF_CHUNK],
                    preferred_element_type=jnp.float32)
        h = _gelu(h + c1[c0:c0 + FF_CHUNK])
        acc = acc + jnp.dot(h.astype(jnp.bfloat16), w2_ref[c0:c0 + FF_CHUNK, :],
                            preferred_element_type=jnp.float32)
    return acc + c2_ref[0]


# ---------------------------------------------------------------------------
# ONE fused Pallas kernel: UT_encode (2 steps) + UT_decode (3 ACT steps) + out proj.
# All activations are flattened (B*S, D); batch separation in attention is enforced by
# precomputed additive block-diagonal masks (cross-batch entries = -inf).
# ---------------------------------------------------------------------------
def ut_fused_kernel(
        # activations / masks / signals
        src_ref, tgt_ref, enc_mask_ref, sa_mask_ref, ca_mask_ref, sig_ref,
        # encoder weights (order = _ENC_KEYS)
        e_wq, e_bq, e_wk, e_bk, e_wv, e_bv, e_wo, e_bo,
        e_ln1_g, e_ln1_b, e_w1, e_c1, e_w2, e_c2, e_ln2_g, e_ln2_b,
        # decoder weights (order = _DEC_KEYS)
        d_sa_wq, d_sa_bq, d_sa_wk, d_sa_bk, d_sa_wv, d_sa_bv, d_sa_wo, d_sa_bo,
        d_ln1_g, d_ln1_b,
        d_ca_wq, d_ca_bq, d_ca_wk, d_ca_bk, d_ca_wv, d_ca_bv, d_ca_wo, d_ca_bo,
        d_ln2_g, d_ln2_b,
        d_w1, d_c1, d_w2, d_c2, d_ln3_g, d_ln3_b,
        # halting + output projection
        wh_ref, bh_ref, out_w_ref, out_b_ref,
        # output
        logits_ref):
    scale = 1.0 / math.sqrt(D_MODEL)

    # --------------------------- hoisted loads (once) ----------------------
    enc_mask = enc_mask_ref[...]
    sa_mask = sa_mask_ref[...]
    ca_mask = ca_mask_ref[...]

    ewq, ebq = e_wq[...], e_bq[0]
    ewk, ebk = e_wk[...], e_bk[0]
    ewv, ebv = e_wv[...], e_bv[0]
    ewo, ebo = e_wo[...], e_bo[0]
    eg1, eb1 = e_ln1_g[0], e_ln1_b[0]
    eg2, eb2 = e_ln2_g[0], e_ln2_b[0]

    # ------------------------------ UT_encode ------------------------------
    src0 = src_ref[...]                                          # (B*Ss, D)

    def enc_step(_, carry):
        new_src, source = carry
        sa = _self_attn(new_src, enc_mask, ewq, ebq, ewk, ebk, ewv, ebv, ewo, ebo, scale)
        x1 = _layernorm(new_src + sa, eg1, eb1)
        ff = _ff_chunked(x1, e_w1, e_c1, e_w2, e_c2)
        new_src = _layernorm(x1 + ff, eg2, eb2)
        return new_src, new_src + source

    _, memory = lax.fori_loop(0, ENC_STEPS, enc_step, (src0, src0))

    # ------------------------------ UT_decode ------------------------------
    swq, sbq = d_sa_wq[...], d_sa_bq[0]
    swk, sbk = d_sa_wk[...], d_sa_bk[0]
    swv, sbv = d_sa_wv[...], d_sa_bv[0]
    swo, sbo = d_sa_wo[...], d_sa_bo[0]
    cwq, cbq = d_ca_wq[...], d_ca_bq[0]
    cwo, cbo = d_ca_wo[...], d_ca_bo[0]
    dg1, db1 = d_ln1_g[0], d_ln1_b[0]
    dg2, db2 = d_ln2_g[0], d_ln2_b[0]
    dg3, db3 = d_ln3_g[0], d_ln3_b[0]
    wh_row = wh_ref[0]                                           # (D,) halting weights
    bh = bh_ref[...]                                             # (1, 1)

    # cross-attention K/V of `memory` are step-invariant -> hoist out of the ACT loop
    mem_k = jnp.dot(memory, d_ca_wk[...], preferred_element_type=jnp.float32) + d_ca_bk[0]
    mem_v = jnp.dot(memory, d_ca_wv[...], preferred_element_type=jnp.float32) + d_ca_bv[0]

    tgt0 = tgt_ref[...]                                          # (B*St, D)
    halt0 = jnp.zeros((tgt0.shape[0], 1), jnp.float32)

    def dec_step(t, carry):
        new_target, target, halting, remainders = carry
        # timing + per-step position signal (precomputed host-side per flat row)
        new_target = new_target + sig_ref[t]

        # ---- ACT halting bookkeeping (no sigmoid; matches the reference module) ----
        still_running = jnp.where(halting < HALT_THRESH, 1.0, 0.0)
        p = jnp.sum(new_target * wh_row[None, :], axis=-1, keepdims=True) + bh
        combined = halting + p * still_running
        new_halted = jnp.where(combined > HALT_THRESH, 1.0, 0.0)
        still_running = jnp.where(combined <= HALT_THRESH, 1.0, 0.0)
        halting = halting + p * still_running
        remainders = remainders + new_halted * (1.0 - halting)
        halting = halting + new_halted * remainders
        update_weights = p * still_running + new_halted * remainders

        # ---- TransformerDecoderLayer (post-norm, GELU, eval-mode dropout) ----
        sa = _self_attn(new_target, sa_mask,
                        swq, sbq, swk, sbk, swv, sbv, swo, sbo, scale)
        x1 = _layernorm(new_target + sa, dg1, db1)
        q = jnp.dot(x1, cwq, preferred_element_type=jnp.float32) + cbq
        ca = _attn_core(q, mem_k, mem_v, ca_mask, cwo, cbo, scale)
        x2 = _layernorm(x1 + ca, dg2, db2)
        ff = _ff_chunked(x2, d_w1, d_c1, d_w2, d_c2)
        new_target = _layernorm(x2 + ff, dg3, db3)

        target = new_target * update_weights + target * (1.0 - update_weights)
        return new_target, target, halting, remainders

    _, target, _, _ = lax.fori_loop(0, DEC_STEPS, dec_step, (tgt0, tgt0, halt0, halt0))

    # ------------------ fused final output projection (self.out) -----------
    logits_ref[...] = (jnp.dot(target, out_w_ref[...], preferred_element_type=jnp.float32)
                       + out_b_ref[0])


# ---------------------------------------------------------------------------
# pallas_call wrapper: single gridless invocation, every operand fully VMEM-resident.
# ---------------------------------------------------------------------------
_ENC_KEYS = ('wq', 'bq', 'wk', 'bk', 'wv', 'bv', 'wo', 'bo',
             'ln1_g', 'ln1_b', 'w1', 'c1', 'w2', 'c2', 'ln2_g', 'ln2_b')

_DEC_KEYS = ('sa_wq', 'sa_bq', 'sa_wk', 'sa_bk', 'sa_wv', 'sa_bv', 'sa_wo', 'sa_bo',
             'ln1_g', 'ln1_b',
             'ca_wq', 'ca_bq', 'ca_wk', 'ca_bk', 'ca_wv', 'ca_bv', 'ca_wo', 'ca_bo',
             'ln2_g', 'ln2_b',
             'w1', 'c1', 'w2', 'c2',
             'ln3_g', 'ln3_b')


def run_universal_transformer(src, tgt, tgt_mask, step_sig, params):
    """src/tgt: (B, S, D) embedded inputs. Returns logits (B, St, V)."""
    B, Ss, D = src.shape
    _, St, _ = tgt.shape
    V = params['out_w'].shape[1]

    # flatten on the host (free) so the kernel never reshapes
    src_flat = src.reshape(B * Ss, D)
    tgt_flat = tgt.reshape(B * St, D)

    # additive masks for the flattened attention (cross-batch = -inf)
    enc_mask = make_block_diag_mask(B, Ss, Ss)
    ca_mask = make_block_diag_mask(B, St, Ss)
    sa_mask = make_decoder_self_mask(tgt_mask, B)

    ins = ([src_flat, tgt_flat, enc_mask, sa_mask, ca_mask, step_sig]
           + [params['enc'][k] for k in _ENC_KEYS]
           + [params['dec'][k] for k in _DEC_KEYS]
           + [params['dec_halt_w'], params['dec_halt_b'],
              params['out_w'], params['out_b']])

    vspec = pl.BlockSpec(memory_space=pltpu.MemorySpace.VMEM)
    logits_flat = pl.pallas_call(
        ut_fused_kernel,
        out_shape=jax.ShapeDtypeStruct((B * St, V), jnp.float32),
        in_specs=[vspec] * len(ins),
        out_specs=vspec,
    )(*ins)
    return logits_flat.reshape(B, St, V)


# ---------------------------------------------------------------------------
# Signals, masks, parameters (deterministic, in-script; host-side JAX glue)
# ---------------------------------------------------------------------------
def gen_timing_signal(length, channels, min_timescale=1.0, max_timescale=10000.0):
    position = jnp.arange(length, dtype=jnp.float32)
    num_timescales = channels // 2
    log_timescale_increment = math.log(max_timescale / min_timescale) / (num_timescales - 1)
    inv_timescales = min_timescale * jnp.exp(
        jnp.arange(num_timescales, dtype=jnp.float32) * -log_timescale_increment)
    scaled_time = position[:, None] * inv_timescales[None, :]
    signal = jnp.concatenate([jnp.sin(scaled_time), jnp.cos(scaled_time)], axis=1)
    if channels % 2:
        signal = jnp.pad(signal, ((0, 0), (0, channels % 2)))
    return signal.reshape(1, length, channels).astype(jnp.float32)


def get_tgt_mask(size):
    idx = jnp.arange(size)
    tril = idx[None, :] <= idx[:, None]
    return jnp.where(tril, 0.0, -jnp.inf).astype(jnp.float32)


def make_block_diag_mask(B, Sq, Sk):
    """(B*Sq, B*Sk) additive mask: 0 within the same batch, -inf across batches."""
    bq = jnp.repeat(jnp.arange(B), Sq)
    bk = jnp.repeat(jnp.arange(B), Sk)
    same = bq[:, None] == bk[None, :]
    return jnp.where(same, 0.0, -jnp.inf).astype(jnp.float32)


def make_decoder_self_mask(tgt_mask, B):
    """(B*St, B*St): causal tgt_mask within each batch block, -inf across batches."""
    St = tgt_mask.shape[0]
    b = jnp.repeat(jnp.arange(B), St)
    same = b[:, None] == b[None, :]
    tiled = jnp.tile(tgt_mask, (B, B))
    return jnp.where(same, tiled, -jnp.inf).astype(jnp.float32)


def make_decoder_step_signals(timing, dec_pos, B, St):
    """timing[:St] + dec_position_signal[t] per flat (b, s) row: (DEC_STEPS, B*St, D)."""
    base = timing[0, :St, :]                                   # (St, D)
    sigs = base[None, :, :] + dec_pos[0, :, None, :]           # (DEC_STEPS, St, D)
    sigs = jnp.broadcast_to(sigs[:, None, :, :], (DEC_STEPS, B, St, D_MODEL))
    return sigs.reshape(DEC_STEPS, B * St, D_MODEL)


def init_params(key):
    ks = iter(jax.random.split(key, 64))

    def linear(fan_in, fan_out):
        bound = 1.0 / math.sqrt(fan_in)
        w = jax.random.uniform(next(ks), (fan_in, fan_out), jnp.float32, -bound, bound)
        b = jax.random.uniform(next(ks), (1, fan_out), jnp.float32, -bound, bound)
        return w, b

    D, FF, V = D_MODEL, DIM_FF, NUM_TOKENS
    embedding = jax.random.normal(next(ks), (V, D), jnp.float32)
    ones = jnp.ones((1, D), jnp.float32)
    zeros = jnp.zeros((1, D), jnp.float32)

    def attn_block(prefix):
        # Pre-split the in-projection into Q/K/V on the host (no unaligned lane slices
        # of a (D, 3D) weight inside the kernel).
        w_in, b_in = linear(D, 3 * D)
        w_out, b_out = linear(D, D)
        return {
            prefix + 'wq': w_in[:, :D],         prefix + 'bq': b_in[:, :D],
            prefix + 'wk': w_in[:, D:2 * D],    prefix + 'bk': b_in[:, D:2 * D],
            prefix + 'wv': w_in[:, 2 * D:],     prefix + 'bv': b_in[:, 2 * D:],
            prefix + 'wo': w_out,               prefix + 'bo': b_out,
        }

    enc = {}
    enc.update(attn_block(''))
    e_w1, e_c1 = linear(D, FF)
    e_w2, e_c2 = linear(FF, D)
    enc.update(dict(ln1_g=ones, ln1_b=zeros,
                    w1=e_w1.astype(jnp.bfloat16), c1=e_c1,        # bf16 weights, f32 bias
                    w2=e_w2.astype(jnp.bfloat16), c2=e_c2,
                    ln2_g=ones, ln2_b=zeros))

    dec = {}
    dec.update(attn_block('sa_'))
    dec.update(attn_block('ca_'))
    d_w1, d_c1 = linear(D, FF)
    d_w2, d_c2 = linear(FF, D)
    dec.update(dict(ln1_g=ones, ln1_b=zeros, ln2_g=ones, ln2_b=zeros,
                    w1=d_w1.astype(jnp.bfloat16), c1=d_c1,
                    w2=d_w2.astype(jnp.bfloat16), c2=d_c2,
                    ln3_g=ones, ln3_b=zeros))

    dh_w, dh_b = linear(D, 1)          # dec_halting_layer (enc halting layer unused in forward)
    out_w, out_b = linear(D, V)
    return dict(embedding=embedding, enc=enc, dec=dec,
                dec_halt_w=dh_w.T,     # stored (1, D) so the kernel reads a lane-vector
                dec_halt_b=dh_b,       # (1, 1)
                out_w=out_w, out_b=out_b)


# ---------------------------------------------------------------------------
# Universal Transformer forward (embedding gather + signal/mask prep stay in JAX glue)
# ---------------------------------------------------------------------------
@jax.jit
def universal_transformer_forward(src_tokens, tgt_tokens, params, signals, tgt_mask):
    scale = math.sqrt(D_MODEL)
    src = params['embedding'][src_tokens] * scale      # (B, S_src, D)
    tgt = params['embedding'][tgt_tokens] * scale      # (B, S_tgt, D)

    B, St = tgt_tokens.shape
    step_sig = make_decoder_step_signals(signals['timing'], signals['dec_pos'], B, St)
    # ONE fused kernel: UT_encode + UT_decode (ACT) + output projection
    return run_universal_transformer(src, tgt, tgt_mask, step_sig, params)


# ---------------------------------------------------------------------------
if __name__ == "__main__":
    B, S_SRC, S_TGT = 2, 8, 8

    key = jax.random.PRNGKey(0)
    k_src, k_tgt, k_param = jax.random.split(key, 3)
    src_tokens = jax.random.randint(k_src, (B, S_SRC), 0, NUM_TOKENS, dtype=jnp.int32)
    tgt_tokens = jax.random.randint(k_tgt, (B, S_TGT), 0, NUM_TOKENS, dtype=jnp.int32)

    params = init_params(k_param)
    signals = {
        'timing': gen_timing_signal(20, D_MODEL),
        'enc_pos': gen_timing_signal(ENC_STEPS, D_MODEL),   # created as in __init__ (unused in forward)
        'dec_pos': gen_timing_signal(DEC_STEPS, D_MODEL),
    }
    tgt_mask = get_tgt_mask(S_TGT)

    logits = universal_transformer_forward(src_tokens, tgt_tokens, params, signals, tgt_mask)
    jax.block_until_ready(logits)
    assert logits.shape == (B, S_TGT, NUM_TOKENS)
    print("KERNEL_OK")
</pallas_src>

<mosaic_0001>
module attributes {stable_mosaic.version = 11 : i64} {
  func.func @ut_fused_kernel(%arg0: memref<16x32xf32, #tpu.memory_space<vmem>>, %arg1: memref<16x32xf32, #tpu.memory_space<vmem>>, %arg2: memref<16x16xf32, #tpu.memory_space<vmem>>, %arg3: memref<16x16xf32, #tpu.memory_space<vmem>>, %arg4: memref<16x16xf32, #tpu.memory_space<vmem>>, %arg5: memref<3x16x32xf32, #tpu.memory_space<vmem>>, %arg6: memref<32x32xf32, #tpu.memory_space<vmem>>, %arg7: memref<1x32xf32, #tpu.memory_space<vmem>>, %arg8: memref<32x32xf32, #tpu.memory_space<vmem>>, %arg9: memref<1x32xf32, #tpu.memory_space<vmem>>, %arg10: memref<32x32xf32, #tpu.memory_space<vmem>>, %arg11: memref<1x32xf32, #tpu.memory_space<vmem>>, %arg12: memref<32x32xf32, #tpu.memory_space<vmem>>, %arg13: memref<1x32xf32, #tpu.memory_space<vmem>>, %arg14: memref<1x32xf32, #tpu.memory_space<vmem>>, %arg15: memref<1x32xf32, #tpu.memory_space<vmem>>, %arg16: memref<32x2048xbf16, #tpu.memory_space<vmem>>, %arg17: memref<1x2048xf32, #tpu.memory_space<vmem>>, %arg18: memref<2048x32xbf16, #tpu.memory_space<vmem>>, %arg19: memref<1x32xf32, #tpu.memory_space<vmem>>, %arg20: memref<1x32xf32, #tpu.memory_space<vmem>>, %arg21: memref<1x32xf32, #tpu.memory_space<vmem>>, %arg22: memref<32x32xf32, #tpu.memory_space<vmem>>, %arg23: memref<1x32xf32, #tpu.memory_space<vmem>>, %arg24: memref<32x32xf32, #tpu.memory_space<vmem>>, %arg25: memref<1x32xf32, #tpu.memory_space<vmem>>, %arg26: memref<32x32xf32, #tpu.memory_space<vmem>>, %arg27: memref<1x32xf32, #tpu.memory_space<vmem>>, %arg28: memref<32x32xf32, #tpu.memory_space<vmem>>, %arg29: memref<1x32xf32, #tpu.memory_space<vmem>>, %arg30: memref<1x32xf32, #tpu.memory_space<vmem>>, %arg31: memref<1x32xf32, #tpu.memory_space<vmem>>, %arg32: memref<32x32xf32, #tpu.memory_space<vmem>>, %arg33: memref<1x32xf32, #tpu.memory_space<vmem>>, %arg34: memref<32x32xf32, #tpu.memory_space<vmem>>, %arg35: memref<1x32xf32, #tpu.memory_space<vmem>>, %arg36: memref<32x32xf32, #tpu.memory_space<vmem>>, %arg37: memref<1x32xf32, #tpu.memory_space<vmem>>, %arg38: memref<32x32xf32, #tpu.memory_space<vmem>>, %arg39: memref<1x32xf32, #tpu.memory_space<vmem>>, %arg40: memref<1x32xf32, #tpu.memory_space<vmem>>, %arg41: memref<1x32xf32, #tpu.memory_space<vmem>>, %arg42: memref<32x2048xbf16, #tpu.memory_space<vmem>>, %arg43: memref<1x2048xf32, #tpu.memory_space<vmem>>, %arg44: memref<2048x32xbf16, #tpu.memory_space<vmem>>, %arg45: memref<1x32xf32, #tpu.memory_space<vmem>>, %arg46: memref<1x32xf32, #tpu.memory_space<vmem>>, %arg47: memref<1x32xf32, #tpu.memory_space<vmem>>, %arg48: memref<1x32xf32, #tpu.memory_space<vmem>>, %arg49: memref<1x1xf32, #tpu.memory_space<vmem>>, %arg50: memref<32x16xf32, #tpu.memory_space<vmem>>, %arg51: memref<1x16xf32, #tpu.memory_space<vmem>>, %arg52: memref<16x16xf32, #tpu.memory_space<vmem>>) attributes {dimension_semantics = [], scalar_prefetch = 0 : i64, scratch_operands = 0 : i64, tpu.core_type = #tpu.core_type<tc>} {
    %c0 = arith.constant 0 : index
    %c0_0 = arith.constant 0 : index
    %0 = vector.load %arg2[%c0, %c0_0] : memref<16x16xf32, #tpu.memory_space<vmem>>, vector<16x16xf32>
    %c0_1 = arith.constant 0 : index
    %c0_2 = arith.constant 0 : index
    %1 = vector.load %arg3[%c0_1, %c0_2] : memref<16x16xf32, #tpu.memory_space<vmem>>, vector<16x16xf32>
    %c0_3 = arith.constant 0 : index
    %c0_4 = arith.constant 0 : index
    %2 = vector.load %arg4[%c0_3, %c0_4] : memref<16x16xf32, #tpu.memory_space<vmem>>, vector<16x16xf32>
    %c0_5 = arith.constant 0 : index
    %c0_6 = arith.constant 0 : index
    %3 = vector.load %arg6[%c0_5, %c0_6] : memref<32x32xf32, #tpu.memory_space<vmem>>, vector<32x32xf32>
    %c0_7 = arith.constant 0 : index
    %c0_8 = arith.constant 0 : index
    %4 = vector.load %arg7[%c0_7, %c0_8] : memref<1x32xf32, #tpu.memory_space<vmem>>, vector<1x32xf32>
    %5 = vector.shape_cast %4 : vector<1x32xf32> to vector<32xf32>
    %c0_9 = arith.constant 0 : index
    %c0_10 = arith.constant 0 : index
    %6 = vector.load %arg8[%c0_9, %c0_10] : memref<32x32xf32, #tpu.memory_space<vmem>>, vector<32x32xf32>
    %c0_11 = arith.constant 0 : index
    %c0_12 = arith.constant 0 : index
    %7 = vector.load %arg9[%c0_11, %c0_12] : memref<1x32xf32, #tpu.memory_space<vmem>>, vector<1x32xf32>
    %8 = vector.shape_cast %7 : vector<1x32xf32> to vector<32xf32>
    %c0_13 = arith.constant 0 : index
    %c0_14 = arith.constant 0 : index
    %9 = vector.load %arg10[%c0_13, %c0_14] : memref<32x32xf32, #tpu.memory_space<vmem>>, vector<32x32xf32>
    %c0_15 = arith.constant 0 : index
    %c0_16 = arith.constant 0 : index
    %10 = vector.load %arg11[%c0_15, %c0_16] : memref<1x32xf32, #tpu.memory_space<vmem>>, vector<1x32xf32>
    %11 = vector.shape_cast %10 : vector<1x32xf32> to vector<32xf32>
    %c0_17 = arith.constant 0 : index
    %c0_18 = arith.constant 0 : index
    %12 = vector.load %arg12[%c0_17, %c0_18] : memref<32x32xf32, #tpu.memory_space<vmem>>, vector<32x32xf32>
    %c0_19 = arith.constant 0 : index
    %c0_20 = arith.constant 0 : index
    %13 = vector.load %arg13[%c0_19, %c0_20] : memref<1x32xf32, #tpu.memory_space<vmem>>, vector<1x32xf32>
    %14 = vector.shape_cast %13 : vector<1x32xf32> to vector<32xf32>
    %c0_21 = arith.constant 0 : index
    %c0_22 = arith.constant 0 : index
    %15 = vector.load %arg14[%c0_21, %c0_22] : memref<1x32xf32, #tpu.memory_space<vmem>>, vector<1x32xf32>
    %16 = vector.shape_cast %15 : vector<1x32xf32> to vector<32xf32>
    %c0_23 = arith.constant 0 : index
    %c0_24 = arith.constant 0 : index
    %17 = vector.load %arg15[%c0_23, %c0_24] : memref<1x32xf32, #tpu.memory_space<vmem>>, vector<1x32xf32>
    %18 = vector.shape_cast %17 : vector<1x32xf32> to vector<32xf32>
    %c0_25 = arith.constant 0 : index
    %c0_26 = arith.constant 0 : index
    %19 = vector.load %arg20[%c0_25, %c0_26] : memref<1x32xf32, #tpu.memory_space<vmem>>, vector<1x32xf32>
    %20 = vector.shape_cast %19 : vector<1x32xf32> to vector<32xf32>
    %c0_27 = arith.constant 0 : index
    %c0_28 = arith.constant 0 : index
    %21 = vector.load %arg21[%c0_27, %c0_28] : memref<1x32xf32, #tpu.memory_space<vmem>>, vector<1x32xf32>
    %22 = vector.shape_cast %21 : vector<1x32xf32> to vector<32xf32>
    %c0_29 = arith.constant 0 : index
    %c0_30 = arith.constant 0 : index
    %23 = vector.load %arg0[%c0_29, %c0_30] : memref<16x32xf32, #tpu.memory_space<vmem>>, vector<16x32xf32>
    %c0_i32 = arith.constant 0 : i32
    %c2_i32 = arith.constant 2 : i32
    %24 = arith.addi %c0_i32, %c2_i32 : i32
    %c1_i32 = arith.constant 1 : i32
    %25:2 = scf.for %arg53 = %c0_i32 to %24 step %c1_i32 iter_args(%arg54 = %23, %arg55 = %23) -> (vector<16x32xf32>, vector<16x32xf32>)  : i32 {
      %cst_93 = arith.constant dense<0.000000e+00> : vector<16x32xf32>
      %85 = tpu.matmul %arg54, %3, %cst_93 {dimension_numbers = #tpu.dot_dimension_numbers<[1], [0], [0], [1], [0, 0, 1, 1], [], []>} : vector<16x32xf32>, vector<32x32xf32>, vector<16x32xf32> -> vector<16x32xf32>
      %86 = vector.shape_cast %5 : vector<32xf32> to vector<1x32xf32>
      %87 = vector.broadcast %86 : vector<1x32xf32> to vector<16x32xf32>
      %88 = arith.addf %85, %87 : vector<16x32xf32>
      %cst_94 = arith.constant dense<0.000000e+00> : vector<16x32xf32>
      %89 = tpu.matmul %arg54, %6, %cst_94 {dimension_numbers = #tpu.dot_dimension_numbers<[1], [0], [0], [1], [0, 0, 1, 1], [], []>} : vector<16x32xf32>, vector<32x32xf32>, vector<16x32xf32> -> vector<16x32xf32>
      %90 = vector.shape_cast %8 : vector<32xf32> to vector<1x32xf32>
      %91 = vector.broadcast %90 : vector<1x32xf32> to vector<16x32xf32>
      %92 = arith.addf %89, %91 : vector<16x32xf32>
      %cst_95 = arith.constant dense<0.000000e+00> : vector<16x32xf32>
      %93 = tpu.matmul %arg54, %9, %cst_95 {dimension_numbers = #tpu.dot_dimension_numbers<[1], [0], [0], [1], [0, 0, 1, 1], [], []>} : vector<16x32xf32>, vector<32x32xf32>, vector<16x32xf32> -> vector<16x32xf32>
      %94 = vector.shape_cast %11 : vector<32xf32> to vector<1x32xf32>
      %95 = vector.broadcast %94 : vector<1x32xf32> to vector<16x32xf32>
      %96 = arith.addf %93, %95 : vector<16x32xf32>
      %cst_96 = arith.constant dense<0.000000e+00> : vector<16x16xf32>
      %97 = tpu.matmul %88, %92, %cst_96 {dimension_numbers = #tpu.dot_dimension_numbers<[1], [1], [0], [0], [0, 0, 1, 0], [], []>} : vector<16x32xf32>, vector<16x32xf32>, vector<16x16xf32> -> vector<16x16xf32>
      %cst_97 = arith.constant 0.176776692 : f32
      %98 = vector.broadcast %cst_97 : f32 to vector<16x16xf32>
      %99 = arith.mulf %97, %98 : vector<16x16xf32>
      %100 = arith.addf %99, %0 : vector<16x16xf32>
      %cst_98 = arith.constant dense<0xFF800000> : vector<16xf32>
      %101 = vector.multi_reduction <maximumf>, %100, %cst_98 [1] : vector<16x16xf32> to vector<16xf32>
      %102 = vector.shape_cast %101 : vector<16xf32> to vector<16x1xf32>
      %103 = vector.broadcast %102 : vector<16x1xf32> to vector<16x16xf32>
      %104 = arith.subf %100, %103 : vector<16x16xf32>
      %105 = math.exp %104 : vector<16x16xf32>
      %cst_99 = arith.constant dense<0.000000e+00> : vector<16xf32>
      %106 = vector.multi_reduction <add>, %105, %cst_99 [1] : vector<16x16xf32> to vector<16xf32>
      %107 = vector.shape_cast %106 : vector<16xf32> to vector<16x1xf32>
      %108 = vector.broadcast %107 : vector<16x1xf32> to vector<16x16xf32>
      %109 = arith.divf %105, %108 : vector<16x16xf32>
      %cst_100 = arith.constant dense<0.000000e+00> : vector<16x32xf32>
      %110 = tpu.matmul %109, %96, %cst_100 {dimension_numbers = #tpu.dot_dimension_numbers<[1], [0], [0], [1], [0, 0, 1, 1], [], []>} : vector<16x16xf32>, vector<16x32xf32>, vector<16x32xf32> -> vector<16x32xf32>
      %cst_101 = arith.constant dense<0.000000e+00> : vector<16x32xf32>
      %111 = tpu.matmul %110, %12, %cst_101 {dimension_numbers = #tpu.dot_dimension_numbers<[1], [0], [0], [1], [0, 0, 1, 1], [], []>} : vector<16x32xf32>, vector<32x32xf32>, vector<16x32xf32> -> vector<16x32xf32>
      %112 = vector.shape_cast %14 : vector<32xf32> to vector<1x32xf32>
      %113 = vector.broadcast %112 : vector<1x32xf32> to vector<16x32xf32>
      %114 = arith.addf %111, %113 : vector<16x32xf32>
      %115 = arith.addf %arg54, %114 : vector<16x32xf32>
      %cst_102 = arith.constant dense<0.000000e+00> : vector<16xf32>
      %116 = vector.multi_reduction <add>, %115, %cst_102 [1] : vector<16x32xf32> to vector<16xf32>
      %117 = vector.shape_cast %116 : vector<16xf32> to vector<16x1xf32>
      %cst_103 = arith.constant 3.200000e+01 : f32
      %118 = vector.broadcast %cst_103 : f32 to vector<16x1xf32>
      %119 = arith.divf %117, %118 : vector<16x1xf32>
      %120 = vector.broadcast %119 : vector<16x1xf32> to vector<16x32xf32>
      %121 = arith.subf %115, %120 : vector<16x32xf32>
      %122 = arith.mulf %121, %121 : vector<16x32xf32>
      %cst_104 = arith.constant dense<0.000000e+00> : vector<16xf32>
      %123 = vector.multi_reduction <add>, %122, %cst_104 [1] : vector<16x32xf32> to vector<16xf32>
      %124 = vector.shape_cast %123 : vector<16xf32> to vector<16x1xf32>
      %cst_105 = arith.constant 3.200000e+01 : f32
      %125 = vector.broadcast %cst_105 : f32 to vector<16x1xf32>
      %126 = arith.divf %124, %125 : vector<16x1xf32>
      %127 = vector.broadcast %119 : vector<16x1xf32> to vector<16x32xf32>
      %128 = arith.subf %115, %127 : vector<16x32xf32>
      %cst_106 = arith.constant 9.99999974E-6 : f32
      %129 = vector.broadcast %cst_106 : f32 to vector<16x1xf32>
      %130 = arith.addf %126, %129 : vector<16x1xf32>
      %131 = math.rsqrt %130 : vector<16x1xf32>
      %132 = vector.broadcast %131 : vector<16x1xf32> to vector<16x32xf32>
      %133 = arith.mulf %128, %132 : vector<16x32xf32>
      %134 = vector.shape_cast %16 : vector<32xf32> to vector<1x32xf32>
      %135 = vector.broadcast %134 : vector<1x32xf32> to vector<16x32xf32>
      %136 = arith.mulf %133, %135 : vector<16x32xf32>
      %137 = vector.shape_cast %18 : vector<32xf32> to vector<1x32xf32>
      %138 = vector.broadcast %137 : vector<1x32xf32> to vector<16x32xf32>
      %139 = arith.addf %136, %138 : vector<16x32xf32>
      %140 = arith.truncf %139 : vector<16x32xf32> to vector<16x32xbf16>
      %c0_107 = arith.constant 0 : index
      %c0_108 = arith.constant 0 : index
      %141 = vector.load %arg17[%c0_107, %c0_108] : memref<1x2048xf32, #tpu.memory_space<vmem>>, vector<1x2048xf32>
      %142 = vector.shape_cast %141 : vector<1x2048xf32> to vector<2048xf32>
      %cst_109 = arith.constant 0.000000e+00 : f32
      %143 = vector.broadcast %cst_109 : f32 to vector<16x32xf32>
      %c0_110 = arith.constant 0 : index
      %c0_111 = arith.constant 0 : index
      %144 = vector.load %arg16[%c0_110, %c0_111] : memref<32x2048xbf16, #tpu.memory_space<vmem>>, vector<32x512xbf16>
      %cst_112 = arith.constant dense<0.000000e+00> : vector<16x512xf32>
      %145 = tpu.matmul %140, %144, %cst_112 {dimension_numbers = #tpu.dot_dimension_numbers<[1], [0], [0], [1], [0, 0, 1, 1], [], []>} : vector<16x32xbf16>, vector<32x512xbf16>, vector<16x512xf32> -> vector<16x512xf32>
      %146 = vector.extract_strided_slice %142 {offsets = [0], sizes = [512], strides = [1]} : vector<2048xf32> to vector<512xf32>
      %147 = vector.shape_cast %146 : vector<512xf32> to vector<1x512xf32>
      %148 = vector.broadcast %147 : vector<1x512xf32> to vector<16x512xf32>
      %149 = arith.addf %145, %148 : vector<16x512xf32>
      %cst_113 = arith.constant 5.000000e-01 : f32
      %150 = vector.broadcast %cst_113 : f32 to vector<16x512xf32>
      %151 = arith.mulf %150, %149 : vector<16x512xf32>
      %cst_114 = arith.constant 0.707106769 : f32
      %152 = vector.broadcast %cst_114 : f32 to vector<16x512xf32>
      %153 = arith.mulf %149, %152 : vector<16x512xf32>
      %154 = math.erf %153 : vector<16x512xf32>
      %cst_115 = arith.constant 1.000000e+00 : f32
      %155 = vector.broadcast %cst_115 : f32 to vector<16x512xf32>
      %156 = arith.addf %155, %154 : vector<16x512xf32>
      %157 = arith.mulf %151, %156 : vector<16x512xf32>
      %158 = arith.truncf %157 : vector<16x512xf32> to vector<16x512xbf16>
      %c0_116 = arith.constant 0 : index
      %c0_117 = arith.constant 0 : index
      %159 = vector.load %arg18[%c0_116, %c0_117] : memref<2048x32xbf16, #tpu.memory_space<vmem>>, vector<512x32xbf16>
      %cst_118 = arith.constant dense<0.000000e+00> : vector<16x32xf32>
      %160 = tpu.matmul %158, %159, %cst_118 {dimension_numbers = #tpu.dot_dimension_numbers<[1], [0], [0], [1], [0, 0, 1, 1], [], []>} : vector<16x512xbf16>, vector<512x32xbf16>, vector<16x32xf32> -> vector<16x32xf32>
      %161 = arith.addf %143, %160 : vector<16x32xf32>
      %c0_119 = arith.constant 0 : index
      %c512 = arith.constant 512 : index
      %162 = vector.load %arg16[%c0_119, %c512] : memref<32x2048xbf16, #tpu.memory_space<vmem>>, vector<32x512xbf16>
      %cst_120 = arith.constant dense<0.000000e+00> : vector<16x512xf32>
      %163 = tpu.matmul %140, %162, %cst_120 {dimension_numbers = #tpu.dot_dimension_numbers<[1], [0], [0], [1], [0, 0, 1, 1], [], []>} : vector<16x32xbf16>, vector<32x512xbf16>, vector<16x512xf32> -> vector<16x512xf32>
      %164 = vector.extract_strided_slice %142 {offsets = [512], sizes = [512], strides = [1]} : vector<2048xf32> to vector<512xf32>
      %165 = vector.shape_cast %164 : vector<512xf32> to vector<1x512xf32>
      %166 = vector.broadcast %165 : vector<1x512xf32> to vector<16x512xf32>
      %167 = arith.addf %163, %166 : vector<16x512xf32>
      %cst_121 = arith.constant 5.000000e-01 : f32
      %168 = vector.broadcast %cst_121 : f32 to vector<16x512xf32>
      %169 = arith.mulf %168, %167 : vector<16x512xf32>
      %cst_122 = arith.constant 0.707106769 : f32
      %170 = vector.broadcast %cst_122 : f32 to vector<16x512xf32>
      %171 = arith.mulf %167, %170 : vector<16x512xf32>
      %172 = math.erf %171 : vector<16x512xf32>
      %cst_123 = arith.constant 1.000000e+00 : f32
      %173 = vector.broadcast %cst_123 : f32 to vector<16x512xf32>
      %174 = arith.addf %173, %172 : vector<16x512xf32>
      %175 = arith.mulf %169, %174 : vector<16x512xf32>
      %176 = arith.truncf %175 : vector<16x512xf32> to vector<16x512xbf16>
      %c512_124 = arith.constant 512 : index
      %c0_125 = arith.constant 0 : index
      %177 = vector.load %arg18[%c512_124, %c0_125] : memref<2048x32xbf16, #tpu.memory_space<vmem>>, vector<512x32xbf16>
      %cst_126 = arith.constant dense<0.000000e+00> : vector<16x32xf32>
      %178 = tpu.matmul %176, %177, %cst_126 {dimension_numbers = #tpu.dot_dimension_numbers<[1], [0], [0], [1], [0, 0, 1, 1], [], []>} : vector<16x512xbf16>, vector<512x32xbf16>, vector<16x32xf32> -> vector<16x32xf32>
      %179 = arith.addf %161, %178 : vector<16x32xf32>
      %c0_127 = arith.constant 0 : index
      %c1024 = arith.constant 1024 : index
      %180 = vector.load %arg16[%c0_127, %c1024] : memref<32x2048xbf16, #tpu.memory_space<vmem>>, vector<32x512xbf16>
      %cst_128 = arith.constant dense<0.000000e+00> : vector<16x512xf32>
      %181 = tpu.matmul %140, %180, %cst_128 {dimension_numbers = #tpu.dot_dimension_numbers<[1], [0], [0], [1], [0, 0, 1, 1], [], []>} : vector<16x32xbf16>, vector<32x512xbf16>, vector<16x512xf32> -> vector<16x512xf32>
      %182 = vector.extract_strided_slice %142 {offsets = [1024], sizes = [512], strides = [1]} : vector<2048xf32> to vector<512xf32>
      %183 = vector.shape_cast %182 : vector<512xf32> to vector<1x512xf32>
      %184 = vector.broadcast %183 : vector<1x512xf32> to vector<16x512xf32>
      %185 = arith.addf %181, %184 : vector<16x512xf32>
      %cst_129 = arith.constant 5.000000e-01 : f32
      %186 = vector.broadcast %cst_129 : f32 to vector<16x512xf32>
      %187 = arith.mulf %186, %185 : vector<16x512xf32>
      %cst_130 = arith.constant 0.707106769 : f32
      %188 = vector.broadcast %cst_130 : f32 to vector<16x512xf32>
      %189 = arith.mulf %185, %188 : vector<16x512xf32>
      %190 = math.erf %189 : vector<16x512xf32>
      %cst_131 = arith.constant 1.000000e+00 : f32
      %191 = vector.broadcast %cst_131 : f32 to vector<16x512xf32>
      %192 = arith.addf %191, %190 : vector<16x512xf32>
      %193 = arith.mulf %187, %192 : vector<16x512xf32>
      %194 = arith.truncf %193 : vector<16x512xf32> to vector<16x512xbf16>
      %c1024_132 = arith.constant 1024 : index
      %c0_133 = arith.constant 0 : index
      %195 = vector.load %arg18[%c1024_132, %c0_133] : memref<2048x32xbf16, #tpu.memory_space<vmem>>, vector<512x32xbf16>
      %cst_134 = arith.constant dense<0.000000e+00> : vector<16x32xf32>
      %196 = tpu.matmul %194, %195, %cst_134 {dimension_numbers = #tpu.dot_dimension_numbers<[1], [0], [0], [1], [0, 0, 1, 1], [], []>} : vector<16x512xbf16>, vector<512x32xbf16>, vector<16x32xf32> -> vector<16x32xf32>
      %197 = arith.addf %179, %196 : vector<16x32xf32>
      %c0_135 = arith.constant 0 : index
      %c1536 = arith.constant 1536 : index
      %198 = vector.load %arg16[%c0_135, %c1536] : memref<32x2048xbf16, #tpu.memory_space<vmem>>, vector<32x512xbf16>
      %cst_136 = arith.constant dense<0.000000e+00> : vector<16x512xf32>
      %199 = tpu.matmul %140, %198, %cst_136 {dimension_numbers = #tpu.dot_dimension_numbers<[1], [0], [0], [1], [0, 0, 1, 1], [], []>} : vector<16x32xbf16>, vector<32x512xbf16>, vector<16x512xf32> -> vector<16x512xf32>
      %200 = vector.extract_strided_slice %142 {offsets = [1536], sizes = [512], strides = [1]} : vector<2048xf32> to vector<512xf32>
      %201 = vector.shape_cast %200 : vector<512xf32> to vector<1x512xf32>
      %202 = vector.broadcast %201 : vector<1x512xf32> to vector<16x512xf32>
      %203 = arith.addf %199, %202 : vector<16x512xf32>
      %cst_137 = arith.constant 5.000000e-01 : f32
      %204 = vector.broadcast %cst_137 : f32 to vector<16x512xf32>
      %205 = arith.mulf %204, %203 : vector<16x512xf32>
      %cst_138 = arith.constant 0.707106769 : f32
      %206 = vector.broadcast %cst_138 : f32 to vector<16x512xf32>
      %207 = arith.mulf %203, %206 : vector<16x512xf32>
      %208 = math.erf %207 : vector<16x512xf32>
      %cst_139 = arith.constant 1.000000e+00 : f32
      %209 = vector.broadcast %cst_139 : f32 to vector<16x512xf32>
      %210 = arith.addf %209, %208 : vector<16x512xf32>
      %211 = arith.mulf %205, %210 : vector<16x512xf32>
      %212 = arith.truncf %211 : vector<16x512xf32> to vector<16x512xbf16>
      %c1536_140 = arith.constant 1536 : index
      %c0_141 = arith.constant 0 : index
      %213 = vector.load %arg18[%c1536_140, %c0_141] : memref<2048x32xbf16, #tpu.memory_space<vmem>>, vector<512x32xbf16>
      %cst_142 = arith.constant dense<0.000000e+00> : vector<16x32xf32>
      %214 = tpu.matmul %212, %213, %cst_142 {dimension_numbers = #tpu.dot_dimension_numbers<[1], [0], [0], [1], [0, 0, 1, 1], [], []>} : vector<16x512xbf16>, vector<512x32xbf16>, vector<16x32xf32> -> vector<16x32xf32>
      %215 = arith.addf %197, %214 : vector<16x32xf32>
      %c0_143 = arith.constant 0 : index
      %c0_144 = arith.constant 0 : index
      %216 = vector.load %arg19[%c0_143, %c0_144] : memref<1x32xf32, #tpu.memory_space<vmem>>, vector<1x32xf32>
      %217 = vector.shape_cast %216 : vector<1x32xf32> to vector<32xf32>
      %218 = vector.shape_cast %217 : vector<32xf32> to vector<1x32xf32>
      %219 = vector.broadcast %218 : vector<1x32xf32> to vector<16x32xf32>
      %220 = arith.addf %215, %219 : vector<16x32xf32>
      %221 = arith.addf %139, %220 : vector<16x32xf32>
      %cst_145 = arith.constant dense<0.000000e+00> : vector<16xf32>
      %222 = vector.multi_reduction <add>, %221, %cst_145 [1] : vector<16x32xf32> to vector<16xf32>
      %223 = vector.shape_cast %222 : vector<16xf32> to vector<16x1xf32>
      %cst_146 = arith.constant 3.200000e+01 : f32
      %224 = vector.broadcast %cst_146 : f32 to vector<16x1xf32>
      %225 = arith.divf %223, %224 : vector<16x1xf32>
      %226 = vector.broadcast %225 : vector<16x1xf32> to vector<16x32xf32>
      %227 = arith.subf %221, %226 : vector<16x32xf32>
      %228 = arith.mulf %227, %227 : vector<16x32xf32>
      %cst_147 = arith.constant dense<0.000000e+00> : vector<16xf32>
      %229 = vector.multi_reduction <add>, %228, %cst_147 [1] : vector<16x32xf32> to vector<16xf32>
      %230 = vector.shape_cast %229 : vector<16xf32> to vector<16x1xf32>
      %cst_148 = arith.constant 3.200000e+01 : f32
      %231 = vector.broadcast %cst_148 : f32 to vector<16x1xf32>
      %232 = arith.divf %230, %231 : vector<16x1xf32>
      %233 = vector.broadcast %225 : vector<16x1xf32> to vector<16x32xf32>
      %234 = arith.subf %221, %233 : vector<16x32xf32>
      %cst_149 = arith.constant 9.99999974E-6 : f32
      %235 = vector.broadcast %cst_149 : f32 to vector<16x1xf32>
      %236 = arith.addf %232, %235 : vector<16x1xf32>
      %237 = math.rsqrt %236 : vector<16x1xf32>
      %238 = vector.broadcast %237 : vector<16x1xf32> to vector<16x32xf32>
      %239 = arith.mulf %234, %238 : vector<16x32xf32>
      %240 = vector.shape_cast %20 : vector<32xf32> to vector<1x32xf32>
      %241 = vector.broadcast %240 : vector<1x32xf32> to vector<16x32xf32>
      %242 = arith.mulf %239, %241 : vector<16x32xf32>
      %243 = vector.shape_cast %22 : vector<32xf32> to vector<1x32xf32>
      %244 = vector.broadcast %243 : vector<1x32xf32> to vector<16x32xf32>
      %245 = arith.addf %242, %244 : vector<16x32xf32>
      %246 = arith.addf %245, %arg55 : vector<16x32xf32>
      scf.yield %245, %246 : vector<16x32xf32>, vector<16x32xf32>
    }
    %c0_31 = arith.constant 0 : index
    %c0_32 = arith.constant 0 : index
    %26 = vector.load %arg22[%c0_31, %c0_32] : memref<32x32xf32, #tpu.memory_space<vmem>>, vector<32x32xf32>
    %c0_33 = arith.constant 0 : index
    %c0_34 = arith.constant 0 : index
    %27 = vector.load %arg23[%c0_33, %c0_34] : memref<1x32xf32, #tpu.memory_space<vmem>>, vector<1x32xf32>
    %28 = vector.shape_cast %27 : vector<1x32xf32> to vector<32xf32>
    %c0_35 = arith.constant 0 : index
    %c0_36 = arith.constant 0 : index
    %29 = vector.load %arg24[%c0_35, %c0_36] : memref<32x32xf32, #tpu.memory_space<vmem>>, vector<32x32xf32>
    %c0_37 = arith.constant 0 : index
    %c0_38 = arith.constant 0 : index
    %30 = vector.load %arg25[%c0_37, %c0_38] : memref<1x32xf32, #tpu.memory_space<vmem>>, vector<1x32xf32>
    %31 = vector.shape_cast %30 : vector<1x32xf32> to vector<32xf32>
    %c0_39 = arith.constant 0 : index
    %c0_40 = arith.constant 0 : index
    %32 = vector.load %arg26[%c0_39, %c0_40] : memref<32x32xf32, #tpu.memory_space<vmem>>, vector<32x32xf32>
    %c0_41 = arith.constant 0 : index
    %c0_42 = arith.constant 0 : index
    %33 = vector.load %arg27[%c0_41, %c0_42] : memref<1x32xf32, #tpu.memory_space<vmem>>, vector<1x32xf32>
    %34 = vector.shape_cast %33 : vector<1x32xf32> to vector<32xf32>
    %c0_43 = arith.constant 0 : index
    %c0_44 = arith.constant 0 : index
    %35 = vector.load %arg28[%c0_43, %c0_44] : memref<32x32xf32, #tpu.memory_space<vmem>>, vector<32x32xf32>
    %c0_45 = arith.constant 0 : index
    %c0_46 = arith.constant 0 : index
    %36 = vector.load %arg29[%c0_45, %c0_46] : memref<1x32xf32, #tpu.memory_space<vmem>>, vector<1x32xf32>
    %37 = vector.shape_cast %36 : vector<1x32xf32> to vector<32xf32>
    %c0_47 = arith.constant 0 : index
    %c0_48 = arith.constant 0 : index
    %38 = vector.load %arg32[%c0_47, %c0_48] : memref<32x32xf32, #tpu.memory_space<vmem>>, vector<32x32xf32>
    %c0_49 = arith.constant 0 : index
    %c0_50 = arith.constant 0 : index
    %39 = vector.load %arg33[%c0_49, %c0_50] : memref<1x32xf32, #tpu.memory_space<vmem>>, vector<1x32xf32>
    %40 = vector.shape_cast %39 : vector<1x32xf32> to vector<32xf32>
    %c0_51 = arith.constant 0 : index
    %c0_52 = arith.constant 0 : index
    %41 = vector.load %arg38[%c0_51, %c0_52] : memref<32x32xf32, #tpu.memory_space<vmem>>, vector<32x32xf32>
    %c0_53 = arith.constant 0 : index
    %c0_54 = arith.constant 0 : index
    %42 = vector.load %arg39[%c0_53, %c0_54] : memref<1x32xf32, #tpu.memory_space<vmem>>, vector<1x32xf32>
    %43 = vector.shape_cast %42 : vector<1x32xf32> to vector<32xf32>
    %c0_55 = arith.constant 0 : index
    %c0_56 = arith.constant 0 : index
    %44 = vector.load %arg30[%c0_55, %c0_56] : memref<1x32xf32, #tpu.memory_space<vmem>>, vector<1x32xf32>
    %45 = vector.shape_cast %44 : vector<1x32xf32> to vector<32xf32>
    %c0_57 = arith.constant 0 : index
    %c0_58 = arith.constant 0 : index
    %46 = vector.load %arg31[%c0_57, %c0_58] : memref<1x32xf32, #tpu.memory_space<vmem>>, vector<1x32xf32>
    %47 = vector.shape_cast %46 : vector<1x32xf32> to vector<32xf32>
    %c0_59 = arith.constant 0 : index
    %c0_60 = arith.constant 0 : index
    %48 = vector.load %arg40[%c0_59, %c0_60] : memref<1x32xf32, #tpu.memory_space<vmem>>, vector<1x32xf32>
    %49 = vector.shape_cast %48 : vector<1x32xf32> to vector<32xf32>
    %c0_61 = arith.constant 0 : index
    %c0_62 = arith.constant 0 : index
    %50 = vector.load %arg41[%c0_61, %c0_62] : memref<1x32xf32, #tpu.memory_space<vmem>>, vector<1x32xf32>
    %51 = vector.shape_cast %50 : vector<1x32xf32> to vector<32xf32>
    %c0_63 = arith.constant 0 : index
    %c0_64 = arith.constant 0 : index
    %52 = vector.load %arg46[%c0_63, %c0_64] : memref<1x32xf32, #tpu.memory_space<vmem>>, vector<1x32xf32>
    %53 = vector.shape_cast %52 : vector<1x32xf32> to vector<32xf32>
    %c0_65 = arith.constant 0 : index
    %c0_66 = arith.constant 0 : index
    %54 = vector.load %arg47[%c0_65, %c0_66] : memref<1x32xf32, #tpu.memory_space<vmem>>, vector<1x32xf32>
    %55 = vector.shape_cast %54 : vector<1x32xf32> to vector<32xf32>
    %c0_67 = arith.constant 0 : index
    %c0_68 = arith.constant 0 : index
    %56 = vector.load %arg48[%c0_67, %c0_68] : memref<1x32xf32, #tpu.memory_space<vmem>>, vector<1x32xf32>
    %57 = vector.shape_cast %56 : vector<1x32xf32> to vector<32xf32>
    %c0_69 = arith.constant 0 : index
    %c0_70 = arith.constant 0 : index
    %58 = vector.load %arg49[%c0_69, %c0_70] : memref<1x1xf32, #tpu.memory_space<vmem>>, vector<1x1xf32>
    %c0_71 = arith.constant 0 : index
    %c0_72 = arith.constant 0 : index
    %59 = vector.load %arg34[%c0_71, %c0_72] : memref<32x32xf32, #tpu.memory_space<vmem>>, vector<32x32xf32>
    %cst = arith.constant dense<0.000000e+00> : vector<16x32xf32>
    %60 = tpu.matmul %25#1, %59, %cst {dimension_numbers = #tpu.dot_dimension_numbers<[1], [0], [0], [1], [0, 0, 1, 1], [], []>} : vector<16x32xf32>, vector<32x32xf32>, vector<16x32xf32> -> vector<16x32xf32>
    %c0_73 = arith.constant 0 : index
    %c0_74 = arith.constant 0 : index
    %61 = vector.load %arg35[%c0_73, %c0_74] : memref<1x32xf32, #tpu.memory_space<vmem>>, vector<1x32xf32>
    %62 = vector.shape_cast %61 : vector<1x32xf32> to vector<32xf32>
    %63 = vector.shape_cast %62 : vector<32xf32> to vector<1x32xf32>
    %64 = vector.broadcast %63 : vector<1x32xf32> to vector<16x32xf32>
    %65 = arith.addf %60, %64 : vector<16x32xf32>
    %c0_75 = arith.constant 0 : index
    %c0_76 = arith.constant 0 : index
    %66 = vector.load %arg36[%c0_75, %c0_76] : memref<32x32xf32, #tpu.memory_space<vmem>>, vector<32x32xf32>
    %cst_77 = arith.constant dense<0.000000e+00> : vector<16x32xf32>
    %67 = tpu.matmul %25#1, %66, %cst_77 {dimension_numbers = #tpu.dot_dimension_numbers<[1], [0], [0], [1], [0, 0, 1, 1], [], []>} : vector<16x32xf32>, vector<32x32xf32>, vector<16x32xf32> -> vector<16x32xf32>
    %c0_78 = arith.constant 0 : index
    %c0_79 = arith.constant 0 : index
    %68 = vector.load %arg37[%c0_78, %c0_79] : memref<1x32xf32, #tpu.memory_space<vmem>>, vector<1x32xf32>
    %69 = vector.shape_cast %68 : vector<1x32xf32> to vector<32xf32>
    %70 = vector.shape_cast %69 : vector<32xf32> to vector<1x32xf32>
    %71 = vector.broadcast %70 : vector<1x32xf32> to vector<16x32xf32>
    %72 = arith.addf %67, %71 : vector<16x32xf32>
    %c0_80 = arith.constant 0 : index
    %c0_81 = arith.constant 0 : index
    %73 = vector.load %arg1[%c0_80, %c0_81] : memref<16x32xf32, #tpu.memory_space<vmem>>, vector<16x32xf32>
    %cst_82 = arith.constant 0.000000e+00 : f32
    %74 = vector.broadcast %cst_82 : f32 to vector<16x1xf32>
    %c0_i32_83 = arith.constant 0 : i32
    %c3_i32 = arith.constant 3 : i32
    %75 = arith.addi %c0_i32_83, %c3_i32 : i32
    %c1_i32_84 = arith.constant 1 : i32
    %76:4 = scf.for %arg53 = %c0_i32_83 to %75 step %c1_i32_84 iter_args(%arg54 = %73, %arg55 = %73, %arg56 = %74, %arg57 = %74) -> (vector<16x32xf32>, vector<16x32xf32>, vector<16x1xf32>, vector<16x1xf32>)  : i32 {
      %85 = arith.index_cast %arg53 : i32 to index
      %c0_93 = arith.constant 0 : index
      %c0_94 = arith.constant 0 : index
      %86 = vector.load %arg5[%85, %c0_93, %c0_94] : memref<3x16x32xf32, #tpu.memory_space<vmem>>, vector<1x16x32xf32>
      %87 = vector.shape_cast %86 : vector<1x16x32xf32> to vector<16x32xf32>
      %88 = arith.addf %arg54, %87 : vector<16x32xf32>
      %cst_95 = arith.constant 8.000000e-01 : f32
      %89 = vector.broadcast %cst_95 : f32 to vector<16x1xf32>
      %90 = arith.cmpf olt, %arg56, %89 : vector<16x1xf32>
      %cst_96 = arith.constant 1.000000e+00 : f32
      %cst_97 = arith.constant 0.000000e+00 : f32
      %91 = vector.broadcast %cst_96 : f32 to vector<16x1xf32>
      %92 = vector.broadcast %cst_97 : f32 to vector<16x1xf32>
      %93 = arith.select %90, %91, %92 : vector<16x1xi1>, vector<16x1xf32>
      %94 = vector.shape_cast %57 : vector<32xf32> to vector<1x32xf32>
      %95 = vector.broadcast %94 : vector<1x32xf32> to vector<16x32xf32>
      %96 = arith.mulf %88, %95 : vector<16x32xf32>
      %cst_98 = arith.constant dense<0.000000e+00> : vector<16xf32>
      %97 = vector.multi_reduction <add>, %96, %cst_98 [1] : vector<16x32xf32> to vector<16xf32>
      %98 = vector.shape_cast %97 : vector<16xf32> to vector<16x1xf32>
      %99 = vector.broadcast %58 : vector<1x1xf32> to vector<16x1xf32>
      %100 = arith.addf %98, %99 : vector<16x1xf32>
      %101 = arith.mulf %100, %93 : vector<16x1xf32>
      %102 = arith.addf %arg56, %101 : vector<16x1xf32>
      %cst_99 = arith.constant 8.000000e-01 : f32
      %103 = vector.broadcast %cst_99 : f32 to vector<16x1xf32>
      %104 = arith.cmpf ogt, %102, %103 : vector<16x1xf32>
      %cst_100 = arith.constant 1.000000e+00 : f32
      %cst_101 = arith.constant 0.000000e+00 : f32
      %105 = vector.broadcast %cst_100 : f32 to vector<16x1xf32>
      %106 = vector.broadcast %cst_101 : f32 to vector<16x1xf32>
      %107 = arith.select %104, %105, %106 : vector<16x1xi1>, vector<16x1xf32>
      %cst_102 = arith.constant 8.000000e-01 : f32
      %108 = vector.broadcast %cst_102 : f32 to vector<16x1xf32>
      %109 = arith.cmpf ole, %102, %108 : vector<16x1xf32>
      %cst_103 = arith.constant 1.000000e+00 : f32
      %cst_104 = arith.constant 0.000000e+00 : f32
      %110 = vector.broadcast %cst_103 : f32 to vector<16x1xf32>
      %111 = vector.broadcast %cst_104 : f32 to vector<16x1xf32>
      %112 = arith.select %109, %110, %111 : vector<16x1xi1>, vector<16x1xf32>
      %113 = arith.mulf %100, %112 : vector<16x1xf32>
      %114 = arith.addf %arg56, %113 : vector<16x1xf32>
      %cst_105 = arith.constant 1.000000e+00 : f32
      %115 = vector.broadcast %cst_105 : f32 to vector<16x1xf32>
      %116 = arith.subf %115, %114 : vector<16x1xf32>
      %117 = arith.mulf %107, %116 : vector<16x1xf32>
      %118 = arith.addf %arg57, %117 : vector<16x1xf32>
      %119 = arith.mulf %107, %118 : vector<16x1xf32>
      %120 = arith.addf %114, %119 : vector<16x1xf32>
      %121 = arith.mulf %100, %112 : vector<16x1xf32>
      %122 = arith.mulf %107, %118 : vector<16x1xf32>
      %123 = arith.addf %121, %122 : vector<16x1xf32>
      %cst_106 = arith.constant dense<0.000000e+00> : vector<16x32xf32>
      %124 = tpu.matmul %88, %26, %cst_106 {dimension_numbers = #tpu.dot_dimension_numbers<[1], [0], [0], [1], [0, 0, 1, 1], [], []>} : vector<16x32xf32>, vector<32x32xf32>, vector<16x32xf32> -> vector<16x32xf32>
      %125 = vector.shape_cast %28 : vector<32xf32> to vector<1x32xf32>
      %126 = vector.broadcast %125 : vector<1x32xf32> to vector<16x32xf32>
      %127 = arith.addf %124, %126 : vector<16x32xf32>
      %cst_107 = arith.constant dense<0.000000e+00> : vector<16x32xf32>
      %128 = tpu.matmul %88, %29, %cst_107 {dimension_numbers = #tpu.dot_dimension_numbers<[1], [0], [0], [1], [0, 0, 1, 1], [], []>} : vector<16x32xf32>, vector<32x32xf32>, vector<16x32xf32> -> vector<16x32xf32>
      %129 = vector.shape_cast %31 : vector<32xf32> to vector<1x32xf32>
      %130 = vector.broadcast %129 : vector<1x32xf32> to vector<16x32xf32>
      %131 = arith.addf %128, %130 : vector<16x32xf32>
      %cst_108 = arith.constant dense<0.000000e+00> : vector<16x32xf32>
      %132 = tpu.matmul %88, %32, %cst_108 {dimension_numbers = #tpu.dot_dimension_numbers<[1], [0], [0], [1], [0, 0, 1, 1], [], []>} : vector<16x32xf32>, vector<32x32xf32>, vector<16x32xf32> -> vector<16x32xf32>
      %133 = vector.shape_cast %34 : vector<32xf32> to vector<1x32xf32>
      %134 = vector.broadcast %133 : vector<1x32xf32> to vector<16x32xf32>
      %135 = arith.addf %132, %134 : vector<16x32xf32>
      %cst_109 = arith.constant dense<0.000000e+00> : vector<16x16xf32>
      %136 = tpu.matmul %127, %131, %cst_109 {dimension_numbers = #tpu.dot_dimension_numbers<[1], [1], [0], [0], [0, 0, 1, 0], [], []>} : vector<16x32xf32>, vector<16x32xf32>, vector<16x16xf32> -> vector<16x16xf32>
      %cst_110 = arith.constant 0.176776692 : f32
      %137 = vector.broadcast %cst_110 : f32 to vector<16x16xf32>
      %138 = arith.mulf %136, %137 : vector<16x16xf32>
      %139 = arith.addf %138, %1 : vector<16x16xf32>
      %cst_111 = arith.constant dense<0xFF800000> : vector<16xf32>
      %140 = vector.multi_reduction <maximumf>, %139, %cst_111 [1] : vector<16x16xf32> to vector<16xf32>
      %141 = vector.shape_cast %140 : vector<16xf32> to vector<16x1xf32>
      %142 = vector.broadcast %141 : vector<16x1xf32> to vector<16x16xf32>
      %143 = arith.subf %139, %142 : vector<16x16xf32>
      %144 = math.exp %143 : vector<16x16xf32>
      %cst_112 = arith.constant dense<0.000000e+00> : vector<16xf32>
      %145 = vector.multi_reduction <add>, %144, %cst_112 [1] : vector<16x16xf32> to vector<16xf32>
      %146 = vector.shape_cast %145 : vector<16xf32> to vector<16x1xf32>
      %147 = vector.broadcast %146 : vector<16x1xf32> to vector<16x16xf32>
      %148 = arith.divf %144, %147 : vector<16x16xf32>
      %cst_113 = arith.constant dense<0.000000e+00> : vector<16x32xf32>
      %149 = tpu.matmul %148, %135, %cst_113 {dimension_numbers = #tpu.dot_dimension_numbers<[1], [0], [0], [1], [0, 0, 1, 1], [], []>} : vector<16x16xf32>, vector<16x32xf32>, vector<16x32xf32> -> vector<16x32xf32>
      %cst_114 = arith.constant dense<0.000000e+00> : vector<16x32xf32>
      %150 = tpu.matmul %149, %35, %cst_114 {dimension_numbers = #tpu.dot_dimension_numbers<[1], [0], [0], [1], [0, 0, 1, 1], [], []>} : vector<16x32xf32>, vector<32x32xf32>, vector<16x32xf32> -> vector<16x32xf32>
      %151 = vector.shape_cast %37 : vector<32xf32> to vector<1x32xf32>
      %152 = vector.broadcast %151 : vector<1x32xf32> to vector<16x32xf32>
      %153 = arith.addf %150, %152 : vector<16x32xf32>
      %154 = arith.addf %88, %153 : vector<16x32xf32>
      %cst_115 = arith.constant dense<0.000000e+00> : vector<16xf32>
      %155 = vector.multi_reduction <add>, %154, %cst_115 [1] : vector<16x32xf32> to vector<16xf32>
      %156 = vector.shape_cast %155 : vector<16xf32> to vector<16x1xf32>
      %cst_116 = arith.constant 3.200000e+01 : f32
      %157 = vector.broadcast %cst_116 : f32 to vector<16x1xf32>
      %158 = arith.divf %156, %157 : vector<16x1xf32>
      %159 = vector.broadcast %158 : vector<16x1xf32> to vector<16x32xf32>
      %160 = arith.subf %154, %159 : vector<16x32xf32>
      %161 = arith.mulf %160, %160 : vector<16x32xf32>
      %cst_117 = arith.constant dense<0.000000e+00> : vector<16xf32>
      %162 = vector.multi_reduction <add>, %161, %cst_117 [1] : vector<16x32xf32> to vector<16xf32>
      %163 = vector.shape_cast %162 : vector<16xf32> to vector<16x1xf32>
      %cst_118 = arith.constant 3.200000e+01 : f32
      %164 = vector.broadcast %cst_118 : f32 to vector<16x1xf32>
      %165 = arith.divf %163, %164 : vector<16x1xf32>
      %166 = vector.broadcast %158 : vector<16x1xf32> to vector<16x32xf32>
      %167 = arith.subf %154, %166 : vector<16x32xf32>
      %cst_119 = arith.constant 9.99999974E-6 : f32
      %168 = vector.broadcast %cst_119 : f32 to vector<16x1xf32>
      %169 = arith.addf %165, %168 : vector<16x1xf32>
      %170 = math.rsqrt %169 : vector<16x1xf32>
      %171 = vector.broadcast %170 : vector<16x1xf32> to vector<16x32xf32>
      %172 = arith.mulf %167, %171 : vector<16x32xf32>
      %173 = vector.shape_cast %45 : vector<32xf32> to vector<1x32xf32>
      %174 = vector.broadcast %173 : vector<1x32xf32> to vector<16x32xf32>
      %175 = arith.mulf %172, %174 : vector<16x32xf32>
      %176 = vector.shape_cast %47 : vector<32xf32> to vector<1x32xf32>
      %177 = vector.broadcast %176 : vector<1x32xf32> to vector<16x32xf32>
      %178 = arith.addf %175, %177 : vector<16x32xf32>
      %cst_120 = arith.constant dense<0.000000e+00> : vector<16x32xf32>
      %179 = tpu.matmul %178, %38, %cst_120 {dimension_numbers = #tpu.dot_dimension_numbers<[1], [0], [0], [1], [0, 0, 1, 1], [], []>} : vector<16x32xf32>, vector<32x32xf32>, vector<16x32xf32> -> vector<16x32xf32>
      %180 = vector.shape_cast %40 : vector<32xf32> to vector<1x32xf32>
      %181 = vector.broadcast %180 : vector<1x32xf32> to vector<16x32xf32>
      %182 = arith.addf %179, %181 : vector<16x32xf32>
      %cst_121 = arith.constant dense<0.000000e+00> : vector<16x16xf32>
      %183 = tpu.matmul %182, %65, %cst_121 {dimension_numbers = #tpu.dot_dimension_numbers<[1], [1], [0], [0], [0, 0, 1, 0], [], []>} : vector<16x32xf32>, vector<16x32xf32>, vector<16x16xf32> -> vector<16x16xf32>
      %cst_122 = arith.constant 0.176776692 : f32
      %184 = vector.broadcast %cst_122 : f32 to vector<16x16xf32>
      %185 = arith.mulf %183, %184 : vector<16x16xf32>
      %186 = arith.addf %185, %2 : vector<16x16xf32>
      %cst_123 = arith.constant dense<0xFF800000> : vector<16xf32>
      %187 = vector.multi_reduction <maximumf>, %186, %cst_123 [1] : vector<16x16xf32> to vector<16xf32>
      %188 = vector.shape_cast %187 : vector<16xf32> to vector<16x1xf32>
      %189 = vector.broadcast %188 : vector<16x1xf32> to vector<16x16xf32>
      %190 = arith.subf %186, %189 : vector<16x16xf32>
      %191 = math.exp %190 : vector<16x16xf32>
      %cst_124 = arith.constant dense<0.000000e+00> : vector<16xf32>
      %192 = vector.multi_reduction <add>, %191, %cst_124 [1] : vector<16x16xf32> to vector<16xf32>
      %193 = vector.shape_cast %192 : vector<16xf32> to vector<16x1xf32>
      %194 = vector.broadcast %193 : vector<16x1xf32> to vector<16x16xf32>
      %195 = arith.divf %191, %194 : vector<16x16xf32>
      %cst_125 = arith.constant dense<0.000000e+00> : vector<16x32xf32>
      %196 = tpu.matmul %195, %72, %cst_125 {dimension_numbers = #tpu.dot_dimension_numbers<[1], [0], [0], [1], [0, 0, 1, 1], [], []>} : vector<16x16xf32>, vector<16x32xf32>, vector<16x32xf32> -> vector<16x32xf32>
      %cst_126 = arith.constant dense<0.000000e+00> : vector<16x32xf32>
      %197 = tpu.matmul %196, %41, %cst_126 {dimension_numbers = #tpu.dot_dimension_numbers<[1], [0], [0], [1], [0, 0, 1, 1], [], []>} : vector<16x32xf32>, vector<32x32xf32>, vector<16x32xf32> -> vector<16x32xf32>
      %198 = vector.shape_cast %43 : vector<32xf32> to vector<1x32xf32>
      %199 = vector.broadcast %198 : vector<1x32xf32> to vector<16x32xf32>
      %200 = arith.addf %197, %199 : vector<16x32xf32>
      %201 = arith.addf %178, %200 : vector<16x32xf32>
      %cst_127 = arith.constant dense<0.000000e+00> : vector<16xf32>
      %202 = vector.multi_reduction <add>, %201, %cst_127 [1] : vector<16x32xf32> to vector<16xf32>
      %203 = vector.shape_cast %202 : vector<16xf32> to vector<16x1xf32>
      %cst_128 = arith.constant 3.200000e+01 : f32
      %204 = vector.broadcast %cst_128 : f32 to vector<16x1xf32>
      %205 = arith.divf %203, %204 : vector<16x1xf32>
      %206 = vector.broadcast %205 : vector<16x1xf32> to vector<16x32xf32>
      %207 = arith.subf %201, %206 : vector<16x32xf32>
      %208 = arith.mulf %207, %207 : vector<16x32xf32>
      %cst_129 = arith.constant dense<0.000000e+00> : vector<16xf32>
      %209 = vector.multi_reduction <add>, %208, %cst_129 [1] : vector<16x32xf32> to vector<16xf32>
      %210 = vector.shape_cast %209 : vector<16xf32> to vector<16x1xf32>
      %cst_130 = arith.constant 3.200000e+01 : f32
      %211 = vector.broadcast %cst_130 : f32 to vector<16x1xf32>
      %212 = arith.divf %210, %211 : vector<16x1xf32>
      %213 = vector.broadcast %205 : vector<16x1xf32> to vector<16x32xf32>
      %214 = arith.subf %201, %213 : vector<16x32xf32>
      %cst_131 = arith.constant 9.99999974E-6 : f32
      %215 = vector.broadcast %cst_131 : f32 to vector<16x1xf32>
      %216 = arith.addf %212, %215 : vector<16x1xf32>
      %217 = math.rsqrt %216 : vector<16x1xf32>
      %218 = vector.broadcast %217 : vector<16x1xf32> to vector<16x32xf32>
      %219 = arith.mulf %214, %218 : vector<16x32xf32>
      %220 = vector.shape_cast %49 : vector<32xf32> to vector<1x32xf32>
      %221 = vector.broadcast %220 : vector<1x32xf32> to vector<16x32xf32>
      %222 = arith.mulf %219, %221 : vector<16x32xf32>
      %223 = vector.shape_cast %51 : vector<32xf32> to vector<1x32xf32>
      %224 = vector.broadcast %223 : vector<1x32xf32> to vector<16x32xf32>
      %225 = arith.addf %222, %224 : vector<16x32xf32>
      %226 = arith.truncf %225 : vector<16x32xf32> to vector<16x32xbf16>
      %c0_132 = arith.constant 0 : index
      %c0_133 = arith.constant 0 : index
      %227 = vector.load %arg43[%c0_132, %c0_133] : memref<1x2048xf32, #tpu.memory_space<vmem>>, vector<1x2048xf32>
      %228 = vector.shape_cast %227 : vector<1x2048xf32> to vector<2048xf32>
      %cst_134 = arith.constant 0.000000e+00 : f32
      %229 = vector.broadcast %cst_134 : f32 to vector<16x32xf32>
      %c0_135 = arith.constant 0 : index
      %c0_136 = arith.constant 0 : index
      %230 = vector.load %arg42[%c0_135, %c0_136] : memref<32x2048xbf16, #tpu.memory_space<vmem>>, vector<32x512xbf16>
      %cst_137 = arith.constant dense<0.000000e+00> : vector<16x512xf32>
      %231 = tpu.matmul %226, %230, %cst_137 {dimension_numbers = #tpu.dot_dimension_numbers<[1], [0], [0], [1], [0, 0, 1, 1], [], []>} : vector<16x32xbf16>, vector<32x512xbf16>, vector<16x512xf32> -> vector<16x512xf32>
      %232 = vector.extract_strided_slice %228 {offsets = [0], sizes = [512], strides = [1]} : vector<2048xf32> to vector<512xf32>
      %233 = vector.shape_cast %232 : vector<512xf32> to vector<1x512xf32>
      %234 = vector.broadcast %233 : vector<1x512xf32> to vector<16x512xf32>
      %235 = arith.addf %231, %234 : vector<16x512xf32>
      %cst_138 = arith.constant 5.000000e-01 : f32
      %236 = vector.broadcast %cst_138 : f32 to vector<16x512xf32>
      %237 = arith.mulf %236, %235 : vector<16x512xf32>
      %cst_139 = arith.constant 0.707106769 : f32
      %238 = vector.broadcast %cst_139 : f32 to vector<16x512xf32>
      %239 = arith.mulf %235, %238 : vector<16x512xf32>
      %240 = math.erf %239 : vector<16x512xf32>
      %cst_140 = arith.constant 1.000000e+00 : f32
      %241 = vector.broadcast %cst_140 : f32 to vector<16x512xf32>
      %242 = arith.addf %241, %240 : vector<16x512xf32>
      %243 = arith.mulf %237, %242 : vector<16x512xf32>
      %244 = arith.truncf %243 : vector<16x512xf32> to vector<16x512xbf16>
      %c0_141 = arith.constant 0 : index
      %c0_142 = arith.constant 0 : index
      %245 = vector.load %arg44[%c0_141, %c0_142] : memref<2048x32xbf16, #tpu.memory_space<vmem>>, vector<512x32xbf16>
      %cst_143 = arith.constant dense<0.000000e+00> : vector<16x32xf32>
      %246 = tpu.matmul %244, %245, %cst_143 {dimension_numbers = #tpu.dot_dimension_numbers<[1], [0], [0], [1], [0, 0, 1, 1], [], []>} : vector<16x512xbf16>, vector<512x32xbf16>, vector<16x32xf32> -> vector<16x32xf32>
      %247 = arith.addf %229, %246 : vector<16x32xf32>
      %c0_144 = arith.constant 0 : index
      %c512 = arith.constant 512 : index
      %248 = vector.load %arg42[%c0_144, %c512] : memref<32x2048xbf16, #tpu.memory_space<vmem>>, vector<32x512xbf16>
      %cst_145 = arith.constant dense<0.000000e+00> : vector<16x512xf32>
      %249 = tpu.matmul %226, %248, %cst_145 {dimension_numbers = #tpu.dot_dimension_numbers<[1], [0], [0], [1], [0, 0, 1, 1], [], []>} : vector<16x32xbf16>, vector<32x512xbf16>, vector<16x512xf32> -> vector<16x512xf32>
      %250 = vector.extract_strided_slice %228 {offsets = [512], sizes = [512], strides = [1]} : vector<2048xf32> to vector<512xf32>
      %251 = vector.shape_cast %250 : vector<512xf32> to vector<1x512xf32>
      %252 = vector.broadcast %251 : vector<1x512xf32> to vector<16x512xf32>
      %253 = arith.addf %249, %252 : vector<16x512xf32>
      %cst_146 = arith.constant 5.000000e-01 : f32
      %254 = vector.broadcast %cst_146 : f32 to vector<16x512xf32>
      %255 = arith.mulf %254, %253 : vector<16x512xf32>
      %cst_147 = arith.constant 0.707106769 : f32
      %256 = vector.broadcast %cst_147 : f32 to vector<16x512xf32>
      %257 = arith.mulf %253, %256 : vector<16x512xf32>
      %258 = math.erf %257 : vector<16x512xf32>
      %cst_148 = arith.constant 1.000000e+00 : f32
      %259 = vector.broadcast %cst_148 : f32 to vector<16x512xf32>
      %260 = arith.addf %259, %258 : vector<16x512xf32>
      %261 = arith.mulf %255, %260 : vector<16x512xf32>
      %262 = arith.truncf %261 : vector<16x512xf32> to vector<16x512xbf16>
      %c512_149 = arith.constant 512 : index
      %c0_150 = arith.constant 0 : index
      %263 = vector.load %arg44[%c512_149, %c0_150] : memref<2048x32xbf16, #tpu.memory_space<vmem>>, vector<512x32xbf16>
      %cst_151 = arith.constant dense<0.000000e+00> : vector<16x32xf32>
      %264 = tpu.matmul %262, %263, %cst_151 {dimension_numbers = #tpu.dot_dimension_numbers<[1], [0], [0], [1], [0, 0, 1, 1], [], []>} : vector<16x512xbf16>, vector<512x32xbf16>, vector<16x32xf32> -> vector<16x32xf32>
      %265 = arith.addf %247, %264 : vector<16x32xf32>
      %c0_152 = arith.constant 0 : index
      %c1024 = arith.constant 1024 : index
      %266 = vector.load %arg42[%c0_152, %c1024] : memref<32x2048xbf16, #tpu.memory_space<vmem>>, vector<32x512xbf16>
      %cst_153 = arith.constant dense<0.000000e+00> : vector<16x512xf32>
      %267 = tpu.matmul %226, %266, %cst_153 {dimension_numbers = #tpu.dot_dimension_numbers<[1], [0], [0], [1], [0, 0, 1, 1], [], []>} : vector<16x32xbf16>, vector<32x512xbf16>, vector<16x512xf32> -> vector<16x512xf32>
      %268 = vector.extract_strided_slice %228 {offsets = [1024], sizes = [512], strides = [1]} : vector<2048xf32> to vector<512xf32>
      %269 = vector.shape_cast %268 : vector<512xf32> to vector<1x512xf32>
      %270 = vector.broadcast %269 : vector<1x512xf32> to vector<16x512xf32>
      %271 = arith.addf %267, %270 : vector<16x512xf32>
      %cst_154 = arith.constant 5.000000e-01 : f32
      %272 = vector.broadcast %cst_154 : f32 to vector<16x512xf32>
      %273 = arith.mulf %272, %271 : vector<16x512xf32>
      %cst_155 = arith.constant 0.707106769 : f32
      %274 = vector.broadcast %cst_155 : f32 to vector<16x512xf32>
      %275 = arith.mulf %271, %274 : vector<16x512xf32>
      %276 = math.erf %275 : vector<16x512xf32>
      %cst_156 = arith.constant 1.000000e+00 : f32
      %277 = vector.broadcast %cst_156 : f32 to vector<16x512xf32>
      %278 = arith.addf %277, %276 : vector<16x512xf32>
      %279 = arith.mulf %273, %278 : vector<16x512xf32>
      %280 = arith.truncf %279 : vector<16x512xf32> to vector<16x512xbf16>
      %c1024_157 = arith.constant 1024 : index
      %c0_158 = arith.constant 0 : index
      %281 = vector.load %arg44[%c1024_157, %c0_158] : memref<2048x32xbf16, #tpu.memory_space<vmem>>, vector<512x32xbf16>
      %cst_159 = arith.constant dense<0.000000e+00> : vector<16x32xf32>
      %282 = tpu.matmul %280, %281, %cst_159 {dimension_numbers = #tpu.dot_dimension_numbers<[1], [0], [0], [1], [0, 0, 1, 1], [], []>} : vector<16x512xbf16>, vector<512x32xbf16>, vector<16x32xf32> -> vector<16x32xf32>
      %283 = arith.addf %265, %282 : vector<16x32xf32>
      %c0_160 = arith.constant 0 : index
      %c1536 = arith.constant 1536 : index
      %284 = vector.load %arg42[%c0_160, %c1536] : memref<32x2048xbf16, #tpu.memory_space<vmem>>, vector<32x512xbf16>
      %cst_161 = arith.constant dense<0.000000e+00> : vector<16x512xf32>
      %285 = tpu.matmul %226, %284, %cst_161 {dimension_numbers = #tpu.dot_dimension_numbers<[1], [0], [0], [1], [0, 0, 1, 1], [], []>} : vector<16x32xbf16>, vector<32x512xbf16>, vector<16x512xf32> -> vector<16x512xf32>
      %286 = vector.extract_strided_slice %228 {offsets = [1536], sizes = [512], strides = [1]} : vector<2048xf32> to vector<512xf32>
      %287 = vector.shape_cast %286 : vector<512xf32> to vector<1x512xf32>
      %288 = vector.broadcast %287 : vector<1x512xf32> to vector<16x512xf32>
      %289 = arith.addf %285, %288 : vector<16x512xf32>
      %cst_162 = arith.constant 5.000000e-01 : f32
      %290 = vector.broadcast %cst_162 : f32 to vector<16x512xf32>
      %291 = arith.mulf %290, %289 : vector<16x512xf32>
      %cst_163 = arith.constant 0.707106769 : f32
      %292 = vector.broadcast %cst_163 : f32 to vector<16x512xf32>
      %293 = arith.mulf %289, %292 : vector<16x512xf32>
      %294 = math.erf %293 : vector<16x512xf32>
      %cst_164 = arith.constant 1.000000e+00 : f32
      %295 = vector.broadcast %cst_164 : f32 to vector<16x512xf32>
      %296 = arith.addf %295, %294 : vector<16x512xf32>
      %297 = arith.mulf %291, %296 : vector<16x512xf32>
      %298 = arith.truncf %297 : vector<16x512xf32> to vector<16x512xbf16>
      %c1536_165 = arith.constant 1536 : index
      %c0_166 = arith.constant 0 : index
      %299 = vector.load %arg44[%c1536_165, %c0_166] : memref<2048x32xbf16, #tpu.memory_space<vmem>>, vector<512x32xbf16>
      %cst_167 = arith.constant dense<0.000000e+00> : vector<16x32xf32>
      %300 = tpu.matmul %298, %299, %cst_167 {dimension_numbers = #tpu.dot_dimension_numbers<[1], [0], [0], [1], [0, 0, 1, 1], [], []>} : vector<16x512xbf16>, vector<512x32xbf16>, vector<16x32xf32> -> vector<16x32xf32>
      %301 = arith.addf %283, %300 : vector<16x32xf32>
      %c0_168 = arith.constant 0 : index
      %c0_169 = arith.constant 0 : index
      %302 = vector.load %arg45[%c0_168, %c0_169] : memref<1x32xf32, #tpu.memory_space<vmem>>, vector<1x32xf32>
      %303 = vector.shape_cast %302 : vector<1x32xf32> to vector<32xf32>
      %304 = vector.shape_cast %303 : vector<32xf32> to vector<1x32xf32>
      %305 = vector.broadcast %304 : vector<1x32xf32> to vector<16x32xf32>
      %306 = arith.addf %301, %305 : vector<16x32xf32>
      %307 = arith.addf %225, %306 : vector<16x32xf32>
      %cst_170 = arith.constant dense<0.000000e+00> : vector<16xf32>
      %308 = vector.multi_reduction <add>, %307, %cst_170 [1] : vector<16x32xf32> to vector<16xf32>
      %309 = vector.shape_cast %308 : vector<16xf32> to vector<16x1xf32>
      %cst_171 = arith.constant 3.200000e+01 : f32
      %310 = vector.broadcast %cst_171 : f32 to vector<16x1xf32>
      %311 = arith.divf %309, %310 : vector<16x1xf32>
      %312 = vector.broadcast %311 : vector<16x1xf32> to vector<16x32xf32>
      %313 = arith.subf %307, %312 : vector<16x32xf32>
      %314 = arith.mulf %313, %313 : vector<16x32xf32>
      %cst_172 = arith.constant dense<0.000000e+00> : vector<16xf32>
      %315 = vector.multi_reduction <add>, %314, %cst_172 [1] : vector<16x32xf32> to vector<16xf32>
      %316 = vector.shape_cast %315 : vector<16xf32> to vector<16x1xf32>
      %cst_173 = arith.constant 3.200000e+01 : f32
      %317 = vector.broadcast %cst_173 : f32 to vector<16x1xf32>
      %318 = arith.divf %316, %317 : vector<16x1xf32>
      %319 = vector.broadcast %311 : vector<16x1xf32> to vector<16x32xf32>
      %320 = arith.subf %307, %319 : vector<16x32xf32>
      %cst_174 = arith.constant 9.99999974E-6 : f32
      %321 = vector.broadcast %cst_174 : f32 to vector<16x1xf32>
      %322 = arith.addf %318, %321 : vector<16x1xf32>
      %323 = math.rsqrt %322 : vector<16x1xf32>
      %324 = vector.broadcast %323 : vector<16x1xf32> to vector<16x32xf32>
      %325 = arith.mulf %320, %324 : vector<16x32xf32>
      %326 = vector.shape_cast %53 : vector<32xf32> to vector<1x32xf32>
      %327 = vector.broadcast %326 : vector<1x32xf32> to vector<16x32xf32>
      %328 = arith.mulf %325, %327 : vector<16x32xf32>
      %329 = vector.shape_cast %55 : vector<32xf32> to vector<1x32xf32>
      %330 = vector.broadcast %329 : vector<1x32xf32> to vector<16x32xf32>
      %331 = arith.addf %328, %330 : vector<16x32xf32>
      %332 = vector.broadcast %123 : vector<16x1xf32> to vector<16x32xf32>
      %333 = arith.mulf %331, %332 : vector<16x32xf32>
      %cst_175 = arith.constant 1.000000e+00 : f32
      %334 = vector.broadcast %cst_175 : f32 to vector<16x1xf32>
      %335 = arith.subf %334, %123 : vector<16x1xf32>
      %336 = vector.broadcast %335 : vector<16x1xf32> to vector<16x32xf32>
      %337 = arith.mulf %arg55, %336 : vector<16x32xf32>
      %338 = arith.addf %333, %337 : vector<16x32xf32>
      scf.yield %331, %338, %120, %118 : vector<16x32xf32>, vector<16x32xf32>, vector<16x1xf32>, vector<16x1xf32>
    }
    %c3_i32_85 = arith.constant 3 : i32
    %c0_86 = arith.constant 0 : index
    %c0_87 = arith.constant 0 : index
    %77 = vector.load %arg50[%c0_86, %c0_87] : memref<32x16xf32, #tpu.memory_space<vmem>>, vector<32x16xf32>
    %cst_88 = arith.constant dense<0.000000e+00> : vector<16x16xf32>
    %78 = tpu.matmul %76#1, %77, %cst_88 {dimension_numbers = #tpu.dot_dimension_numbers<[1], [0], [0], [1], [0, 0, 1, 1], [], []>} : vector<16x32xf32>, vector<32x16xf32>, vector<16x16xf32> -> vector<16x16xf32>
    %c0_89 = arith.constant 0 : index
    %c0_90 = arith.constant 0 : index
    %79 = vector.load %arg51[%c0_89, %c0_90] : memref<1x16xf32, #tpu.memory_space<vmem>>, vector<1x16xf32>
    %80 = vector.shape_cast %79 : vector<1x16xf32> to vector<16xf32>
    %81 = vector.shape_cast %80 : vector<16xf32> to vector<1x16xf32>
    %82 = vector.broadcast %81 : vector<1x16xf32> to vector<16x16xf32>
    %83 = arith.addf %78, %82 : vector<16x16xf32>
    %c0_91 = arith.constant 0 : index
    %c0_92 = arith.constant 0 : index
    %84 = vector.load %arg52[%c0_91, %c0_92] : memref<16x16xf32, #tpu.memory_space<vmem>>, vector<16x16xf32>
    tpu.vector_store %arg52[%c0_91, %c0_92], %83 {strides = array<i32>} : memref<16x16xf32, #tpu.memory_space<vmem>>, vector<16x16xf32>,
    return
  }
}

</mosaic_0001>

<bundles_post_ra>
// kernel: tile.8
= control target key start
LH: loop header
LB: loop body
LE: loop exit
PB: predicated region body
PF: predicated region fallthrough
CT: control target
= control target key end

     0   :  { %s154_s0 = inlined_call_operand.vmem [shape: f32[8,8], index: 0, kind: input, shape index: {}]   ;;  %s155_s1 = inlined_call_operand.vmem [shape: f32[2,8,2,8], index: 1, kind: output, shape index: {}]  }
   0x1   :  { %v4_v0 = vld [vmem:[%s154_s0] ss:$0 sm:$0xff]  ;;  %v51_v1 = vld [vmem:[%s154_s0 + $0x1] ss:$0 sm:$0xff]  ;;  %v54_v2 = vld [vmem:[%s154_s0 + $0x2] ss:$0 sm:$0xff] }
   0x2   :  { %5 = vst [vmem:[%s155_s1] sm:$0x3] %v4_v0  ;;  %v57_v3 = vld [vmem:[%s154_s0 + $0x3] ss:$0 sm:$0xff]  ;;  %v60_v4 = vld [vmem:[%s154_s0 + $0x4] ss:$0 sm:$0xff] }
   0x3   :  { %50 = vst [vmem:[%s155_s1 + $0x10] sm:$0x3] %v4_v0  ;;  %v63_v5 = vld [vmem:[%s154_s0 + $0x5] ss:$0 sm:$0xff]  ;;  %v66_v6 = vld [vmem:[%s154_s0 + $0x6] ss:$0 sm:$0xff] }
   0x4   :  { %52 = vst [vmem:[%s155_s1 + $0x2] sm:$0x3] %v51_v1  ;;  %v69_v7 = vld [vmem:[%s154_s0 + $0x7] ss:$0 sm:$0xff] }
   0x5   :  { %53 = vst [vmem:[%s155_s1 + $0x12] sm:$0x3] %v51_v1 }
   0x6   :  { %55 = vst [vmem:[%s155_s1 + $0x4] sm:$0x3] %v54_v2 }
   0x7   :  { %56 = vst [vmem:[%s155_s1 + $0x14] sm:$0x3] %v54_v2 }
   0x8   :  { %58 = vst [vmem:[%s155_s1 + $0x6] sm:$0x3] %v57_v3 }
   0x9   :  { %59 = vst [vmem:[%s155_s1 + $0x16] sm:$0x3] %v57_v3 }
   0xa   :  { %61 = vst [vmem:[%s155_s1 + $0x8] sm:$0x3] %v60_v4 }
   0xb   :  { %62 = vst [vmem:[%s155_s1 + $0x18] sm:$0x3] %v60_v4 }
   0xc   :  { %64 = vst [vmem:[%s155_s1 + $0xa] sm:$0x3] %v63_v5 }
   0xd   :  { %65 = vst [vmem:[%s155_s1 + $0x1a] sm:$0x3] %v63_v5 }
   0xe   :  { %67 = vst [vmem:[%s155_s1 + $0xc] sm:$0x3] %v66_v6 }
   0xf   :  { %68 = vst [vmem:[%s155_s1 + $0x1c] sm:$0x3] %v66_v6 }
  0x10   :  { %70 = vst [vmem:[%s155_s1 + $0xe] sm:$0x3] %v69_v7 }
  0x11   :  { %71 = vst [vmem:[%s155_s1 + $0x1e] sm:$0x3] %v69_v7 }

// kernel: tile.9
= control target key start
LH: loop header
LB: loop body
LE: loop exit
PB: predicated region body
PF: predicated region fallthrough
CT: control target
= control target key end

     0   :  { %vm68_vm0 = vcmask 1047556   ;;  %vm70_vm1 = vcmask 64512   ;;  %vm89_vm2 = vcmask 130112   ;;  %s195_s0 = inlined_call_operand.vmem [shape: f32[2,8,2,8], index: 0, kind: input, shape index: {}]   ;;  %s196_s1 = inlined_call_operand.vmem [shape: f32[16,16], index: 1, kind: output, shape index: {}]  }
   0x1   :  { %v110_v0 = vld [vmem:[%s195_s0 + $0xe] sm:$0x3]  ;;  %v111_v1 = vld [vmem:[%s195_s0 + $0xc] sm:$0x3]  ;;  %v112_v2 = vld [vmem:[%s195_s0 + $0xa] sm:$0x3] }
   0x2   :  { %39 = vst [vmem:[#allocation0 + $0x38] sm:$0x3] %v110_v0  ;;  %v113_v3 = vld [vmem:[%s195_s0 + $0x8] sm:$0x3]  ;;  %v114_v4 = vld [vmem:[%s195_s0 + $0x6] sm:$0x3] }
   0x3   :  { %43 = vst [vmem:[#allocation0 + $0x30] sm:$0x3] %v111_v1  ;;  %v115_v5 = vld [vmem:[%s195_s0 + $0x4] sm:$0x3]  ;;  %v116_v6 = vld [vmem:[%s195_s0 + $0x2] sm:$0x3] }
   0x4   :  { %47 = vst [vmem:[#allocation0 + $0x28] sm:$0x3] %v112_v2  ;;  %v64_v7 = vld [vmem:[%s195_s0] sm:$0x3]  ;;  %v102_v8 = vld [vmem:[%s195_s0 + $0x1e] sm:$0x3] }
   0x5   :  { %51 = vst [vmem:[#allocation0 + $0x20] sm:$0x3] %v113_v3  ;;  %v103_v9 = vld [vmem:[%s195_s0 + $0x1c] sm:$0x3]  ;;  %v104_v10 = vld [vmem:[%s195_s0 + $0x1a] sm:$0x3] }
   0x6   :  { %55 = vst [vmem:[#allocation0 + $0x18] sm:$0x3] %v114_v4  ;;  %v105_v11 = vld [vmem:[%s195_s0 + $0x18] sm:$0x3]  ;;  %v106_v12 = vld [vmem:[%s195_s0 + $0x16] sm:$0x3] }
   0x7   :  { %59 = vst [vmem:[#allocation0 + $0x10] sm:$0x3] %v115_v5  ;;  %v107_v13 = vld [vmem:[%s195_s0 + $0x14] sm:$0x3]  ;;  %v108_v14 = vld [vmem:[%s195_s0 + $0x12] sm:$0x3] }
   0x8   :  { %63 = vst [vmem:[#allocation0 + $0x8] sm:$0x3] %v116_v6  ;;  %v109_v15 = vld [vmem:[%s195_s0 + $0x10] sm:$0x3]  ;;  %s120_s0 = smov 8  }
   0x9   :  { %65 = vst [vmem:[#allocation0] sm:$0x3] %v64_v7 }
   0xa   :  { %7 = vst [vmem:[#allocation0 + $0x78] sm:$0x3] %v102_v8 }
   0xb   :  { %11 = vst [vmem:[#allocation0 + $0x70] sm:$0x3] %v103_v9 }
   0xc   :  { %15 = vst [vmem:[#allocation0 + $0x68] sm:$0x3] %v104_v10  ;;  %v84_v16 = vld [vmem:[#allocation0 + $0x1] ss:$8 sm:$0xf0]  }
   0xd   :  { %19 = vst [vmem:[#allocation0 + $0x60] sm:$0x3] %v105_v11  ;;  %v67_v23 = vld [vmem:[#allocation0] ss:$8 sm:$0xf0]  }
   0xe   :  { %23 = vst [vmem:[#allocation0 + $0x58] sm:$0x3] %v106_v12 }
   0xf   :  { %27 = vst [vmem:[#allocation0 + $0x50] sm:$0x3] %v107_v13 }
  0x10   :  { %v82_v17 = vld [vmem:[#allocation0 + $0x1] ss:$8 sm:$0xf]   ;;  %31 = vst [vmem:[#allocation0 + $0x48] sm:$0x3] %v108_v14 }
  0x11   :  { %v86_v18 = vsel %vm68_vm0, %v84_v16, %v82_v17  ;;  %35 = vst [vmem:[#allocation0 + $0x40] sm:$0x3] %v109_v15  ;;  %v66_v22 = vld [vmem:[#allocation0] ss:$8 sm:$0xf]  }
  0x12   :  { %87 = vrot.lane.b32.xlu0 %v86_v18, %s120_s0  ;;  %v69_v24 = vsel %vm68_vm0, %v67_v23, %v66_v22 }
  0x13   :  { %71 = vst.msk [vmem:[%s196_s1] sm:$0xff] %vm70_vm1, %v69_v24  }
  0x14   :  { %v94_v19 = vld [vmem:[#allocation0 + $0x41] ss:$8 sm:$0xf0]   ;;  %v75_v26 = vld [vmem:[#allocation0 + $0x40] ss:$8 sm:$0xf0]  }
  0x18   :  { %v92_v20 = vld [vmem:[#allocation0 + $0x41] ss:$8 sm:$0xf]   ;;  %v73_v25 = vld [vmem:[#allocation0 + $0x40] ss:$8 sm:$0xf]  }
  0x19   :  { %v96_v21 = vsel %vm68_vm0, %v94_v19, %v92_v20  ;;  %v77_v27 = vsel %vm68_vm0, %v75_v26, %v73_v25 }
  0x1a   :  { %97 = vrot.lane.b32.xlu0 %v96_v21, %s120_s0  ;;  %117 = vst.msk [vmem:[%s196_s1 + $0x8] sm:$0xff] %vm70_vm1, %v77_v27  }
  0x84   :  { %v88_v28 = vpop.permute.xlu0 %87  }
  0x85   :  { %90 = vst.msk [vmem:[%s196_s1] sm:$0xff] %vm89_vm2, %v88_v28  }
  0x8c   :  { %v98_v29 = vpop.permute.xlu0 %97  }
  0x8d   :  { %118 = vst.msk [vmem:[%s196_s1 + $0x8] sm:$0xff] %vm89_vm2, %v98_v29  }

// kernel: universal_transformer_forward.1
= control target key start
LH: loop header
LB: loop body
LE: loop exit
PB: predicated region body
PF: predicated region fallthrough
CT: control target
= control target key end

     0   :  { %s10269_s6 = smov 1   ;;  %s10270_s10 = smov 2   ;;  %s14847_s0 = inlined_call_operand.smem [shape: u32[53], index: -1, kind: input, shape index: {}] }
   0x1   :  { %s10339_s5 = sld [smem:[%s14847_s0]]   ;;  %s10271_s14 = smov 3  }
   0x2   :  { %s10344_s9 = sld [smem:[%s14847_s0 + %s10269_s6]]   ;;  %s10272_s18 = smov 4  }
   0x3   :  { %s10349_s13 = sld [smem:[%s14847_s0 + %s10270_s10]]   ;;  %s10273_s22 = smov 5  }
   0x4   :  { %s10354_s17 = sld [smem:[%s14847_s0 + %s10271_s14]]   ;;  %s10274_s26 = smov 6  }
   0x5   :  { %s10359_s21 = sld [smem:[%s14847_s0 + %s10272_s18]]   ;;  %s10275_s30 = smov 7  }
   0x6   :  { %s10364_s25 = sld [smem:[%s14847_s0 + %s10273_s22]]   ;;  %s10276_s4 = smov 8  }
   0x7   :  { %14924 = sst [smem:[#allocation16_spill]] %s10339_s5  ;;  %s10277_s10 = smov 9  }
   0x8   :  { %14925 = sst [smem:[#allocation17_spill]] %s10344_s9  ;;  %s10278_s15 = smov 10  }
   0x9   :  { %s10369_s29 = sld [smem:[%s14847_s0 + %s10274_s26]]   ;;  %s10279_s20 = smov 11  }
   0xa   :  { %s10374_s3 = sld [smem:[%s14847_s0 + %s10275_s30]]   ;;  %s10280_s26 = smov 12  }
   0xb   :  { %s10379_s8 = sld [smem:[%s14847_s0 + %s10276_s4]]   ;;  %s10281_s1 = smov 13  }
   0xc   :  { %14926 = sst [smem:[#allocation18_spill]] %s10364_s25  ;;  %s10282_s7 = smov 14  }
   0xd   :  { %s10384_s14 = sld [smem:[%s14847_s0 + %s10277_s10]]   ;;  %s10284_s22 = smov 16  }
   0xe   :  { %s10389_s19 = sld [smem:[%s14847_s0 + %s10278_s15]]   ;;  %s10283_s15 = smov 15  }
   0xf   :  { %s10394_s24 = sld [smem:[%s14847_s0 + %s10279_s20]]   ;;  %s10285_s28 = smov 17  }
  0x10   :  { %s10399_s30 = sld [smem:[%s14847_s0 + %s10280_s26]]   ;;  %s10318_s10 = smov 50  }
  0x11   :  { %s10404_s6 = sld [smem:[%s14847_s0 + %s10281_s1]]   ;;  %s10319_s16 = smov 51  }
  0x12   :  { %s10409_s12 = sld [smem:[%s14847_s0 + %s10282_s7]]   ;;  %s10286_s7 = smov 18  }
  0x13   :  { %s10414_s20 = sld [smem:[%s14847_s0 + %s10283_s15]]   ;;  %s10287_s15 = smov 19  }
  0x14   :  { %s10419_s27 = sld [smem:[%s14847_s0 + %s10284_s22]]   ;;  %s10288_s22 = smov 20  }
  0x15   :  { %s10424_s4 = sld [smem:[%s14847_s0 + %s10285_s28]]   ;;  %s10289_s28 = smov 21  }
  0x16   :  { %s10429_s25 = sld [smem:[%s14847_s0 + %s10286_s7]]   ;;  %s10290_s7 = smov 22  }
  0x17   :  { %s10434_s9 = sld [smem:[%s14847_s0 + %s10287_s15]]   ;;  %s10291_s15 = smov 23  }
  0x18   :  { %14927 = sst [smem:[#allocation19_spill]] %s10409_s12  ;;  %s10320_s23 = smov 52  }
  0x19   :  { %14928 = sst [smem:[#allocation20_spill]] %s10414_s20 }
  0x1a   :  { %14929 = sst [smem:[#allocation21_spill]] %s10419_s27 }
  0x1b   :  { %14930 = sst [smem:[#allocation22_spill]] %s10424_s4 }
  0x1c   :  { %14931 = sst [smem:[#allocation23_spill]] %s10429_s25 }
  0x1d   :  { %14932 = sst [smem:[#allocation24_spill]] %s10434_s9 }
  0x1e   :  { %s10439_s27 = sld [smem:[%s14847_s0 + %s10288_s22]]   ;;  %s10292_s22 = smov 24  }
  0x1f   :  { %s10444_s4 = sld [smem:[%s14847_s0 + %s10289_s28]]   ;;  %s10293_s28 = smov 25  }
  0x20   :  { %s10449_s25 = sld [smem:[%s14847_s0 + %s10290_s7]]   ;;  %s10294_s7 = smov 26  }
  0x21   :  { %s10454_s9 = sld [smem:[%s14847_s0 + %s10291_s15]]   ;;  %s10295_s15 = smov 27  }
  0x22   :  { %s10459_s5 = sld [smem:[%s14847_s0 + %s10292_s22]]   ;;  %s10296_s22 = smov 28  }
  0x23   :  { %s10592_s20 = sld [smem:[%s14847_s0 + %s10319_s16]]  }
  0x24   :  { %14933 = sst [smem:[#allocation25_spill]] %s10439_s27 }
  0x25   :  { %14934 = sst [smem:[#allocation26_spill]] %s10444_s4 }
  0x26   :  { %14935 = sst [smem:[#allocation27_spill]] %s10449_s25 }
  0x27   :  { %14936 = sst [smem:[#allocation28_spill]] %s10454_s9 }
  0x28   :  { %14937 = sst [smem:[#allocation29_spill]] %s10459_s5 }
  0x29   :  { %s10464_s4 = sld [smem:[%s14847_s0 + %s10293_s28]]   ;;  %s10297_s28 = smov 29  }
  0x2a   :  { %s10469_s25 = sld [smem:[%s14847_s0 + %s10294_s7]]   ;;  %s10298_s7 = smov 30  }
  0x2b   :  { %s10474_s9 = sld [smem:[%s14847_s0 + %s10295_s15]]   ;;  %s10299_s15 = smov 31  }
  0x2c   :  { %s10479_s5 = sld [smem:[%s14847_s0 + %s10296_s22]]   ;;  %s10300_s22 = smov 32  }
  0x2d   :  { %s10587_s27 = sld [smem:[%s14847_s0 + %s10318_s10]]  }
  0x2e   :  { %s10597_s12 = sld [smem:[%s14847_s0 + %s10320_s23]]  }
  0x2f   :  { %14938 = sst [smem:[#allocation30_spill]] %s10464_s4 }
  0x30   :  { %14939 = sst [smem:[#allocation31_spill]] %s10469_s25 }
  0x31   :  { %14940 = sst [smem:[#allocation32_spill]] %s10474_s9 }
  0x32   :  { %14941 = sst [smem:[#allocation33_spill]] %s10479_s5 }
  0x33   :  { %s10484_s4 = sld [smem:[%s14847_s0 + %s10297_s28]]   ;;  %s10301_s28 = smov 33  }
  0x34   :  { %s10489_s25 = sld [smem:[%s14847_s0 + %s10298_s7]]   ;;  %s10302_s7 = smov 34  }
  0x35   :  { %s10494_s9 = sld [smem:[%s14847_s0 + %s10299_s15]]   ;;  %s10303_s15 = smov 35  }
  0x36   :  { %s10499_s5 = sld [smem:[%s14847_s0 + %s10300_s22]]   ;;  %s10304_s22 = smov 36  }
  0x39   :  { %14942 = sst [smem:[#allocation34_spill]] %s10484_s4 }
  0x3a   :  { %14943 = sst [smem:[#allocation35_spill]] %s10489_s25 }
  0x3b   :  { %14944 = sst [smem:[#allocation36_spill]] %s10494_s9 }
  0x3c   :  { %14945 = sst [smem:[#allocation37_spill]] %s10499_s5 }
  0x3d   :  { %s10504_s4 = sld [smem:[%s14847_s0 + %s10301_s28]]   ;;  %s10305_s28 = smov 37  }
  0x3e   :  { %s10509_s25 = sld [smem:[%s14847_s0 + %s10302_s7]]   ;;  %s10306_s7 = smov 38  }
  0x3f   :  { %s10514_s9 = sld [smem:[%s14847_s0 + %s10303_s15]]   ;;  %s10307_s15 = smov 39  }
  0x40   :  { %s10519_s5 = sld [smem:[%s14847_s0 + %s10304_s22]]   ;;  %s10308_s22 = smov 40  }
  0x43   :  { %14946 = sst [smem:[#allocation38_spill]] %s10504_s4 }
  0x44   :  { %14947 = sst [smem:[#allocation39_spill]] %s10509_s25 }
  0x45   :  { %14948 = sst [smem:[#allocation40_spill]] %s10514_s9 }
  0x46   :  { %14949 = sst [smem:[#allocation41_spill]] %s10519_s5 }
  0x47   :  { %s10524_s4 = sld [smem:[%s14847_s0 + %s10305_s28]]   ;;  %s10309_s28 = smov 41  }
  0x48   :  { %s10529_s25 = sld [smem:[%s14847_s0 + %s10306_s7]]   ;;  %s10310_s7 = smov 42  }
  0x49   :  { %s10534_s9 = sld [smem:[%s14847_s0 + %s10307_s15]]   ;;  %s10311_s15 = smov 43  }
  0x4a   :  { %s10539_s5 = sld [smem:[%s14847_s0 + %s10308_s22]]   ;;  %s10312_s22 = smov 44  }
  0x4d   :  { %14950 = sst [smem:[#allocation42_spill]] %s10524_s4 }
  0x4e   :  { %14951 = sst [smem:[#allocation43_spill]] %s10529_s25 }
  0x4f   :  { %14952 = sst [smem:[#allocation44_spill]] %s10534_s9 }
  0x50   :  { %14953 = sst [smem:[#allocation45_spill]] %s10539_s5 }
  0x51   :  { %s10544_s4 = sld [smem:[%s14847_s0 + %s10309_s28]]   ;;  %s10313_s28 = smov 45  }
  0x52   :  { %s10549_s25 = sld [smem:[%s14847_s0 + %s10310_s7]]   ;;  %s10314_s7 = smov 46  }
  0x53   :  { %s10554_s9 = sld [smem:[%s14847_s0 + %s10311_s15]]   ;;  %s10315_s15 = smov 47  }
  0x54   :  { %s10559_s5 = sld [smem:[%s14847_s0 + %s10312_s22]]   ;;  %s10316_s22 = smov 48  }
  0x57   :  { %14954 = sst [smem:[#allocation46_spill]] %s10544_s4 }
  0x58   :  { %14955 = sst [smem:[#allocation47_spill]] %s10549_s25 }
  0x59   :  { %14956 = sst [smem:[#allocation48_spill]] %s10554_s9 }
  0x5a   :  { %14957 = sst [smem:[#allocation49_spill]] %s10559_s5 }
  0x5b   :  { %s10564_s4 = sld [smem:[%s14847_s0 + %s10313_s28]]   ;;  %s10317_s28 = smov 49  }
  0x5c   :  { %s10569_s25 = sld [smem:[%s14847_s0 + %s10314_s7]]  }
  0x5d   :  { %s10574_s9 = sld [smem:[%s14847_s0 + %s10315_s15]]  }
  0x5e   :  { %s10579_s5 = sld [smem:[%s14847_s0 + %s10316_s22]]  }
  0x61   :  { %14958 = sst [smem:[#allocation50_spill]] %s10564_s4 }
  0x62   :  { %s7900_s4 = sld [smem:[%s14847_s0 + %s10317_s28]]  }
  0x68   :  { %v110_v0 = vstv %s7900_s4 }
  0x69   :  { %111 = vst [vmem:[#allocation2] sm:$0x1] %v110_v0 }
  0x6a   :  { %112 = vsyncpa [#allocation4], 0 }
  0x6b   :  { %113 = vsyncpa [#allocation7], 0 }
  0x6c   :  { %114 = vsyncpa [#allocation10], 0  ;;  %s224_s28 = sshll.u32 %s10574_s9, 4  ;;  %s225_s28 = int_to_ptr.hbm [resolvable:$true] %s224_s28 }
  0x6d   :  { %115 = vsyncpa [#allocation5], 0  ;;  %s10321_s1 = smov [#allocation6]   ;;  %s213_s10 = sshll.u32 %s10569_s25, 4  ;;  %s214_s10 = int_to_ptr.hbm [resolvable:$true] %s213_s10 }
  0x6e   :  { %s226_s2 = sshll.u32 %s10321_s1, 4  ;;  %s10029_s7 = sshra.s32 %s225_s28, 4  ;;  %s227_s2 = int_to_ptr.vmem [resolvable:$true] %s226_s2  ;;  %s10030_s7 = int_to_ptr.hbm [resolvable:$true] %s10029_s7 }
  0x6f   :  { %s10031_s0 = scalar_lea.hbm %s10030_s7, 1  ;;  %s10033_s4 = scalar_lea.hbm %s10574_s9, 1 }
  0x70   :  { %p10032_p0 = scmp.ne.s32.totalorder %s10030_s7, %s10031_s0  ;;  %p10034_p1 = scmp.lt.s32.totalorder %s10030_s7, %s10574_s9 }
  0x71   :  { %p10035_p2 = scmp.lt.s32.totalorder %s10033_s4, %s10031_s0 }
  0x73   :  { %p10036_p3 = por %p10035_p2, %p10034_p1 }
  0x75   :  { %p10037_p4 = pnand %p10036_p3, %p10032_p0 }
  0x77   :  { %10040 = shalt.err (!%p10037_p4)
}
  0x78   :  { %229 = dma.hbm_to_vmem [thread:$0]  %s225_s28, 16, %s227_s2, [#allocation7]  }
  0x79   :  { %s10322_s11 = smov [#allocation3]   ;;  %s235_s15 = sshll.u32 %s10579_s5, 4  ;;  %s236_s15 = int_to_ptr.hbm [resolvable:$true] %s235_s15 }
  0x7a   :  { %s215_s16 = sshll.u32 %s10322_s11, 4  ;;  %s10053_s18 = sshra.s32 %s214_s10, 4  ;;  %s216_s16 = int_to_ptr.vmem [resolvable:$true] %s215_s16  ;;  %s10054_s18 = int_to_ptr.hbm [resolvable:$true] %s10053_s18 }
  0x7b   :  { %s10055_s23 = scalar_lea.hbm %s10054_s18, 1  ;;  %s10057_s22 = scalar_lea.hbm %s10569_s25, 1 }
  0x7c   :  { %p10056_p5 = scmp.ne.s32.totalorder %s10054_s18, %s10055_s23  ;;  %p10058_p6 = scmp.lt.s32.totalorder %s10054_s18, %s10569_s25 }
  0x7d   :  { %p10059_p7 = scmp.lt.s32.totalorder %s10057_s22, %s10055_s23 }
  0x7f   :  { %p10060_p8 = por %p10059_p7, %p10058_p6 }
  0x81   :  { %p10061_p9 = pnand %p10060_p8, %p10056_p5 }
  0x83   :  { %10064 = shalt.err (!%p10061_p9)
}
  0x84   :  { %218 = dma.hbm_to_vmem [thread:$0]  %s214_s10, 16, %s216_s16, [#allocation4]  }
  0x85   :  { %s250_s9 = sshll.u32 %s10592_s20, 4  ;;  %s10323_s26 = smov [#allocation8]   ;;  %s251_s9 = int_to_ptr.hbm [resolvable:$true] %s250_s9 }
  0x86   :  { %s237_s28 = sshll.u32 %s10323_s26, 4  ;;  %s10077_s1 = sshra.s32 %s236_s15, 4  ;;  %s238_s28 = int_to_ptr.vmem [resolvable:$true] %s237_s28  ;;  %s10078_s1 = int_to_ptr.hbm [resolvable:$true] %s10077_s1 }
  0x87   :  { %s10079_s2 = scalar_lea.hbm %s10078_s1, 1  ;;  %s10081_s7 = scalar_lea.hbm %s10579_s5, 1 }
  0x88   :  { %p10080_p10 = scmp.ne.s32.totalorder %s10078_s1, %s10079_s2  ;;  %p10082_p11 = scmp.lt.s32.totalorder %s10078_s1, %s10579_s5 }
  0x89   :  { %p10083_p12 = scmp.lt.s32.totalorder %s10081_s7, %s10079_s2 }
  0x8b   :  { %p10084_p13 = por %p10083_p12, %p10082_p11 }
  0x8d   :  { %p10085_p0 = pnand %p10084_p13, %p10080_p10 }
  0x8f   :  { %10088 = shalt.err (!%p10085_p0)
}
  0x90   :  { %240 = dma.hbm_to_vmem [thread:$0]  %s236_s15, 16, %s238_s28, [#allocation7]  }
  0x91   :  { %s10324_s25 = smov [#allocation9]   ;;  %s10101_s0 = sshra.s32 %s251_s9, 4  ;;  %s10102_s0 = int_to_ptr.hbm [resolvable:$true] %s10101_s0 }
  0x92   :  { %s252_s10 = sshll.u32 %s10324_s25, 4  ;;  %s10103_s4 = scalar_lea.hbm %s10102_s0, 1  ;;  %s253_s10 = int_to_ptr.vmem [resolvable:$true] %s252_s10 }
  0x93   :  { %p10104_p1 = scmp.ne.s32.totalorder %s10102_s0, %s10103_s4  ;;  %s10105_s11 = scalar_lea.hbm %s10592_s20, 1 }
  0x94   :  { %p10106_p2 = scmp.lt.s32.totalorder %s10102_s0, %s10592_s20  ;;  %p10107_p3 = scmp.lt.s32.totalorder %s10105_s11, %s10103_s4 }
  0x96   :  { %p10108_p4 = por %p10107_p3, %p10106_p2 }
  0x98   :  { %p10109_p5 = pnand %p10108_p4, %p10104_p1 }
  0x9a   :  { %10112 = shalt.err (!%p10109_p5)
}
  0x9b   :  { %255 = dma.hbm_to_vmem [thread:$0]  %s251_s9, 16, %s253_s10, [#allocation10]  }
  0x9c   :  { %10205 = dma.done.wait [#allocation4], 16  }
  0x9d   :  { %10206 = vsyncadd [#allocation4], 4294967280 }
  0x9e   :  { %10207 = dma.done.wait [#allocation7], 32  }
  0x9f   :  { %10208 = vsyncadd [#allocation7], 4294967264 }
  0xa0   :  { %10209 = dma.done.wait [#allocation10], 16  }
  0xa1   :  { %10210 = vsyncadd [#allocation10], 4294967280  ;;  %v10612_v1 = vld [vmem:[%s10349_s13] sm:$0xff]  ;;  %v10615_v2 = vld [vmem:[%s10349_s13 + $0x8] sm:$0xff]  ;;  %s14970_s5 = sld [smem:[#allocation19_spill]] }
  0xa2   :  { %14959 = vst [vmem:[#allocation51_spill] sm:$0xff] %v10612_v1  ;;  %v10618_v3 = vld [vmem:[%s10354_s17] sm:$0xff]  ;;  %v10621_v4 = vld [vmem:[%s10354_s17 + $0x8] sm:$0xff]  ;;  %v10636_v9 = vld [vmem:[%s10369_s29 + $0x10] sm:$0xff]  ;;  %s14972_s13 = sld [smem:[#allocation20_spill]] }
  0xa3   :  { %14960 = vst [vmem:[#allocation52_spill] sm:$0xff] %v10615_v2  ;;  %v10624_v5 = vld [vmem:[%s10359_s21] sm:$0xff]  ;;  %v10627_v6 = vld [vmem:[%s10359_s21 + $0x8] sm:$0xff]  ;;  %v10639_v10 = vld [vmem:[%s10369_s29 + $0x18] sm:$0xff]  ;;  %s14974_s17 = sld [smem:[#allocation25_spill]] }
  0xa4   :  { %14961 = vst [vmem:[#allocation53_spill] sm:$0xff] %v10618_v3  ;;  %v10630_v7 = vld [vmem:[%s10369_s29] sm:$0xff]  ;;  %v10633_v8 = vld [vmem:[%s10369_s29 + $0x8] sm:$0xff]  ;;  %v10651_v14 = vld [vmem:[%s10379_s8 + $0x10] sm:$0xff]  ;;  %s14976_s21 = sld [smem:[#allocation26_spill]]  ;;  %s10711_s29 = smov 0  }
  0xa5   :  { %14962 = vst [vmem:[#allocation54_spill] sm:$0xff] %v10621_v4  ;;  %v10642_v11 = vld [vmem:[%s10374_s3] sm:$0x1]  ;;  %v10648_v13 = vld [vmem:[%s10379_s8 + $0x8] sm:$0xff]  ;;  %v10654_v15 = vld [vmem:[%s10379_s8 + $0x18] sm:$0xff]  ;;  %s14978_s20 = sld [smem:[#allocation16_spill]] }
  0xa6   :  { %14963 = vst [vmem:[#allocation55_spill] sm:$0xff] %v10624_v5  ;;  %v10645_v12 = vld [vmem:[%s10379_s8] sm:$0xff]  ;;  %v10663_v18 = vld [vmem:[%s10389_s19 + $0x8] sm:$0xff]  ;;  %v10666_v19 = vld [vmem:[%s10389_s19 + $0x10] sm:$0xff] }
  0xa7   :  { %14964 = vst [vmem:[#allocation56_spill] sm:$0xff] %v10627_v6  ;;  %v10657_v16 = vld [vmem:[%s10384_s14] sm:$0x1]  ;;  %v10669_v20 = vld [vmem:[%s10389_s19 + $0x18] sm:$0xff]  ;;  %v10678_v23 = vld [vmem:[%s10399_s30 + $0x8] sm:$0xff] }
  0xa8   :  { %14965 = vst [vmem:[#allocation57_spill] sm:$0xff] %v10630_v7  ;;  %v10660_v17 = vld [vmem:[%s10389_s19] sm:$0xff]  ;;  %v10681_v24 = vld [vmem:[%s10399_s30 + $0x10] sm:$0xff]  ;;  %v10684_v25 = vld [vmem:[%s10399_s30 + $0x18] sm:$0xff] }
  0xa9   :  { %14966 = vst [vmem:[#allocation58_spill] sm:$0xff] %v10633_v8  ;;  %v10672_v21 = vld [vmem:[%s10394_s24] sm:$0x1] }
  0xaa   :  { %14967 = vst [vmem:[#allocation59_spill] sm:$0xff] %v10636_v9  ;;  %v10675_v22 = vld [vmem:[%s10399_s30] sm:$0xff] }
  0xab   :  { %14968 = vst [vmem:[#allocation60_spill] sm:$0xff] %v10639_v10  ;;  %v10687_v26 = vld [vmem:[%s10404_s6] sm:$0x1]  ;;  %v304_v32 = vld [vmem:[%s14978_s20 + $0x8] sm:$0xff]  }
  0xac   :  { %14969 = vst [vmem:[#allocation61_spill] sm:$0xff] %v10642_v11  ;;  %v10690_v27 = vld [vmem:[%s14970_s5] sm:$0x1]  ;;  %v14994_v33 = vmov %v304_v32 }
  0xad   :  { %14971 = vst [vmem:[#allocation62_spill] sm:$0xff] %v10645_v12  ;;  %v10693_v28 = vld [vmem:[%s14972_s13] sm:$0x1] }
  0xae   :  { %14973 = vst [vmem:[#allocation63_spill] sm:$0xff] %v10648_v13  ;;  %v10696_v29 = vld [vmem:[%s14974_s17] sm:$0x1] }
  0xaf   :  { %14975 = vst [vmem:[#allocation64_spill] sm:$0xff] %v10651_v14  ;;  %v10699_v30 = vld [vmem:[%s14976_s21] sm:$0x1] }
  0xb0   :  { %14977 = vst [vmem:[#allocation65_spill] sm:$0xff] %v10654_v15  ;;  %v303_v31 = vld [vmem:[%s14978_s20] sm:$0xff]  }
  0xb1   :  { %14979 = vst [vmem:[#allocation66_spill] sm:$0xff] %v10657_v16  ;;  %v14995_v34 = vmov %v303_v31 }
  0xb2   :  { %14980 = vst [vmem:[#allocation67_spill] sm:$0xff] %v10660_v17 }
  0xb3   :  { %14981 = vst [vmem:[#allocation68_spill] sm:$0xff] %v10663_v18 }
  0xb4   :  { %14982 = vst [vmem:[#allocation69_spill] sm:$0xff] %v10666_v19 }
  0xb5   :  { %14983 = vst [vmem:[#allocation70_spill] sm:$0xff] %v10669_v20 }
  0xb6   :  { %14984 = vst [vmem:[#allocation71_spill] sm:$0xff] %v10672_v21 }
  0xb7   :  { %14985 = vst [vmem:[#allocation72_spill] sm:$0xff] %v10675_v22 }
  0xb8   :  { %14986 = vst [vmem:[#allocation73_spill] sm:$0xff] %v10678_v23 }
  0xb9   :  { %14987 = vst [vmem:[#allocation74_spill] sm:$0xff] %v10681_v24 }
  0xba   :  { %14988 = vst [vmem:[#allocation75_spill] sm:$0xff] %v10684_v25 }
  0xbb   :  { %14989 = vst [vmem:[#allocation76_spill] sm:$0xff] %v10687_v26 }
  0xbc   :  { %14990 = vst [vmem:[#allocation77_spill] sm:$0xff] %v10690_v27 }
  0xbd   :  { %14991 = vst [vmem:[#allocation78_spill] sm:$0xff] %v10693_v28 }
  0xbe   :  { %14992 = vst [vmem:[#allocation79_spill] sm:$0xff] %v10696_v29 }
  0xbf   :  { %14993 = vst [vmem:[#allocation80_spill] sm:$0xff] %v10699_v30 }
  0xc0 LB: > { %v14996_v15 = vld [vmem:[#allocation65_spill] sm:$0xff]  ;;  %v14997_v14 = vld [vmem:[#allocation64_spill] sm:$0xff]  ;;  %v14998_v13 = vld [vmem:[#allocation63_spill] sm:$0xff]  ;;  %15004 = vst [vmem:[#allocation81_spill] sm:$0xff] %v10215_v33  ;;  %vm318_vm0 = vcmask 261120   ;;  %vm439_vm1 = vcmask 130048   ;;  %v10223_v32 = vphi %v304_v32, %v3807_v32   ;;  %v10219_v34 = vphi %v14995_v34, %v15152_v34   ;;  %v10215_v33 = vphi %v14994_v33, %v15151_v33   ;;  %s10231_s29 = sphi %s10711_s29, %s310_s29   ;;  %v10227_v31 = vphi %v303_v31, %v3806_v31  }
  0xc1   : > { %v14999_v12 = vld [vmem:[#allocation62_spill] sm:$0xff]  ;;  %v15000_v10 = vld [vmem:[#allocation60_spill] sm:$0xff]  ;;  %v15001_v9 = vld [vmem:[#allocation59_spill] sm:$0xff]  ;;  %15005 = vst [vmem:[#allocation82_spill] sm:$0xff] %v10219_v34  ;;  %9649 = vmatpush.msra.mxu3 %v14996_v15  ;;  %363 = vmatpush.msra.mxu1 %v14996_v15  ;;  %s15020_s3 = sld [smem:[#allocation21_spill]]  ;;  %s310_s29 = sadd.s32 1, %s10231_s29  }
  0xc2   : > { %v15002_v8 = vld [vmem:[#allocation58_spill] sm:$0xff]  ;;  %v15003_v7 = vld [vmem:[#allocation57_spill] sm:$0xff]  ;;  %337 = vmatpush.msra.mxu0 %v15000_v10  ;;  %9645 = vmatpush.msra.mxu2 %v15000_v10  ;;  %v15007_v25 = vld [vmem:[#allocation75_spill] sm:$0xff]  ;;  %s15025_s8 = sld [smem:[#allocation22_spill]]  ;;  %p307_p6 = scmp.ge.s32.totalorder %s310_s29, 2  }
  0xc3   : > { %9650 = vmatpush.msra.mxu3 %v14997_v14  ;;  %364 = vmatpush.msra.mxu1 %v14997_v14  ;;  %v15006_v20 = vld [vmem:[#allocation70_spill] sm:$0xff]  ;;  %v15008_v19 = vld [vmem:[#allocation69_spill] sm:$0xff]  ;;  %v15010_v18 = vld [vmem:[#allocation68_spill] sm:$0xff]  ;;  %s15065_s14 = sld [smem:[#allocation23_spill]]  ;;  %s12807_s17 = smov (%p307_p6), 0  }
  0xc4   : > { %338 = vmatpush.msra.mxu0 %v15001_v9  ;;  %9646 = vmatpush.msra.mxu2 %v15001_v9  ;;  %v15009_v24 = vld [vmem:[#allocation74_spill] sm:$0xff]  ;;  %v15011_v23 = vld [vmem:[#allocation73_spill] sm:$0xff]  ;;  %v15012_v17 = vld [vmem:[#allocation67_spill] sm:$0xff]  ;;  %s15141_s19 = sld [smem:[#allocation24_spill]] }
  0xc5   : > { %9651 = vmatpush.msra.mxu3 %v14998_v13  ;;  %365 = vmatpush.msra.mxu1 %v14998_v13  ;;  %v15013_v22 = vld [vmem:[#allocation72_spill] sm:$0xff]  ;;  %v15014_v16 = vld [vmem:[#allocation66_spill] sm:$0xff]  ;;  %v15015_v11 = vld [vmem:[#allocation61_spill] sm:$0xff]  ;;  %s15153_s24 = sld [smem:[#allocation39_spill]] (%p307_p6) }
  0xc6   : > { %339 = vmatpush.msra.mxu0 %v15002_v8  ;;  %9647 = vmatpush.msra.mxu2 %v15002_v8  ;;  %v349_v35 = vperm.slane %v15014_v16, 0  ;;  %v316_v39 = vperm.slane %v15015_v11, 0  ;;  %v15016_v1 = vld [vmem:[#allocation51_spill] sm:$0xff]  ;;  %v15017_v2 = vld [vmem:[#allocation52_spill] sm:$0xff]  ;;  %v15023_v27 = vld [vmem:[#allocation77_spill] sm:$0xff]  ;;  %s15154_s30 = sld [smem:[#allocation41_spill]] (%p307_p6) }
  0xc7   : > { %9652 = vmatpush.msra.mxu3 %v14999_v12  ;;  %366 = vmatpush.msra.mxu1 %v14999_v12  ;;  %v15018_v21 = vld [vmem:[#allocation71_spill] sm:$0xff]  ;;  %v15019_v26 = vld [vmem:[#allocation76_spill] sm:$0xff]  ;;  %v15024_v28 = vld [vmem:[#allocation78_spill] sm:$0xff]  ;;  %s15155_s6 = sld [smem:[#allocation27_spill]] (%p307_p6) }
  0xc8   : > { %7907 = vmatmul.msk.f32.vlgmr.msra.gmra.mxu3 %vm318_vm0, %v10223_v32  ;;  %7906 = vmatmul.msk.f32.vlgmr.msra.gmra.mxu1 %vm318_vm0, %v10227_v31  ;;  %v375_v0 = vperm.slane %v15018_v21, 0  ;;  %s15156_s16 = sld [smem:[#allocation28_spill]] (%p307_p6) }
  0xc9   : > { %340 = vmatpush.msra.mxu0 %v15003_v7  ;;  %9648 = vmatpush.msra.mxu2 %v15003_v7  ;;  %s15157_s15 = sld [smem:[#allocation29_spill]] (%p307_p6) }
  0xca   : > { %7904 = vmatmul.msk.f32.vlgmr.msra.gmra.mxu0 %vm318_vm0, %v10227_v31  ;;  %7905 = vmatmul.msk.f32.vlgmr.msra.gmra.mxu2 %vm318_vm0, %v10223_v32  ;;  %s15160_s18 = sld [smem:[#allocation30_spill]] (%p307_p6) }
  0xcb   : > { %389 = vmatpush.msrb.mxu2 %v15006_v20  ;;  %538 = vmatpush.msrb.mxu1 %v15007_v25  ;;  %s15162_s23 = sld [smem:[#allocation31_spill]] (%p307_p6) }
  0xcc   :  { %s15163_s22 = sld [smem:[#allocation32_spill]] (%p307_p6) }
  0xcd   : > { %390 = vmatpush.msrb.mxu2 %v15008_v19  ;;  %539 = vmatpush.msrb.mxu1 %v15009_v24  ;;  %s15167_s9 = sld [smem:[#allocation33_spill]] (%p307_p6) }
  0xce   :  { %s15171_s26 = sld [smem:[#allocation34_spill]] (%p307_p6) }
  0xcf   : > { %391 = vmatpush.msrb.mxu2 %v15010_v18  ;;  %540 = vmatpush.msrb.mxu1 %v15011_v23  ;;  %s15172_s28 = sld [smem:[#allocation37_spill]] (%p307_p6) }
  0xd0   :  { %s15175_s1 = sld [smem:[#allocation38_spill]] (%p307_p6) }
  0xd1   : > { %392 = vmatpush.msrb.mxu2 %v15012_v17  ;;  %541 = vmatpush.msrb.mxu1 %v15013_v22  ;;  %s15177_s2 = sld [smem:[#allocation43_spill]] (%p307_p6) }
  0xd2   : > { %7908 = vmatmul.msk.f32.vlgmr.msrb.gmra.mxu2 %vm318_vm0, %v10227_v31  ;;  %s15181_s7 = sld [smem:[#allocation44_spill]] (%p307_p6) }
  0xd3   :  { %s15182_s25 = sld [smem:[#allocation35_spill]] (%p307_p6) }
  0xd4   :  { %s15184_s10 = sld [smem:[#allocation36_spill]] (%p307_p6) }
  0xd5   :  { %s15186_s0 = sld [smem:[#allocation45_spill]] (%p307_p6) }
  0xd6   :  { %s15188_s4 = sld [smem:[#allocation46_spill]] (%p307_p6) }
  0xd7   :  { %s15204_s11 = sld [smem:[#allocation17_spill]] (%p307_p6) }
  0xd8   :  { %s15207_s5 = sld [smem:[#allocation40_spill]] (%p307_p6) }
  0xd9   :  { %s15209_s13 = sld [smem:[#allocation42_spill]] (%p307_p6) }
  0xda   : > { %7909 = vmatmul.msk.f32.gmra.mxu2 %vm318_vm0, %v10223_v32 }
 0x145   : > { %v368_v37 = vpop.f32.mrf.mxu1 }
 0x146   : > { %v369_v40 = vadd.f32 %v368_v37, %v349_v35 }
 0x147   : > { %v342_v41 = vpop.f32.mrf.mxu0 }
 0x148   : > { %v343_v42 = vadd.f32 %v342_v41, %v316_v39 }
 0x14b   : > { %v371_v36 = vpop.f32.mrf.mxu3 }
 0x14c   : > { %v372_v38 = vadd.f32 %v371_v36, %v349_v35 }
 0x14d   : > { %v345_v43 = vpop.f32.mrf.mxu2 }
 0x14e   : > { %7910 = vmatpush.xpose.msk.msrb.mxu3 %vm318_vm0, %v372_v38  ;;  %v346_v44 = vadd.f32 %v345_v43, %v316_v39 }
 0x152   : > { %7911 = vmatpush.xpose.msk.msrb.mxu3 %vm318_vm0, %v369_v40 }
 0x155   : > { %7912 = vmatmul.msk.f32.vlgmr.msrb.gmra.mxu3 %vm318_vm0, %v343_v42  ;;  %v394_v63 = vpop.f32.mrf.mxu2 }
 0x156   : > { %v395_v36 = vadd.f32 %v394_v63, %v375_v0 }
 0x15d   : > { %7913 = vmatmul.msk.f32.gmra.mxu3 %vm318_vm0, %v346_v44  ;;  %v397_v35 = vpop.f32.mrf.mxu2 }
 0x15e   : > { %v398_v37 = vadd.f32 %v397_v35, %v375_v0  ;;  %v518_v35 = vperm.slane %v15019_v26, 0 }
 0x160   : > { %508 = vmatpush.msrb.mxu0 %v398_v37 }
 0x162   : > { %509 = vmatpush.msrb.mxu0 %v395_v36 }
 0x1d8   : > { %v429_v45 = vpop.f32.mrf.mxu3 }
 0x1d9   : > { %v435_v46 = vmul.f32 0.17677669, %v429_v45 }
 0x1db   : > { %v437_v47 = vadd.f32 %v435_v46, %v15016_v1 }
 0x1dd   : > { %v440_v48 = vsel %vm439_vm1, %v437_v47, -inf }
 0x1de   : > { %441 = vmax.xlane.f32.xlu0 %v440_v48 }
 0x1e0   : > { %v432_v49 = vpop.f32.mrf.mxu3 }
 0x1e1   : > { %v436_v50 = vmul.f32 0.17677669, %v432_v49 }
 0x1e3   : > { %v438_v51 = vadd.f32 %v436_v50, %v15017_v2 }
 0x1e5   : > { %v443_v52 = vsel %vm439_vm1, %v438_v51, -inf }
 0x1e6   : > { %444 = vmax.xlane.f32.xlu0 %v443_v52 }
 0x251   : > { %v442_v53 = vpop.xlane.xlu0 %441 }
 0x252   : > { %v446_v54 = vsub.f32 %v437_v47, %v442_v53 }
 0x254   : > { %v448_v55 = vmul.f32 1.442695, %v446_v54 }
 0x256   : > { %9848 = vpow2.f32 %v448_v55 }
 0x259   : > { %v445_v56 = vpop.xlane.xlu0 %444 }
 0x25a   : > { %v447_v57 = vsub.f32 %v438_v51, %v445_v56 }
 0x25c   : > { %v9849_v58 = vpop.eup %9848  ;;  %v450_v59 = vmul.f32 1.442695, %v447_v57 }
 0x25d   : > { %v452_v60 = vsel %vm439_vm1, %v9849_v58, 0.0 }
 0x25e   : > { %9850 = vpow2.f32 %v450_v59  ;;  %453 = vadd.xlane.f32.xlu1 %v452_v60 }
 0x264   : > { %v9851_v61 = vpop.eup %9850 }
 0x265   : > { %v455_v62 = vsel %vm439_vm1, %v9851_v61, 0.0 }
 0x266   : > { %456 = vadd.xlane.f32.xlu1 %v455_v62 }
 0x2d1   : > { %v454_v38 = vpop.xlane.xlu1 %453 }
 0x2d2   : > { %9852 = vrcp.f32 %v454_v38  ;;  %v469_v43 = vand.u32 2147483648, %v454_v38  ;;  %v467_v45 = vand.u32 2147483647, %v454_v38  ;;  %vm463_vm3 = vweird.f32 %v454_v38 }
 0x2d4   : > { %v470_v48 = vor.u32 1.1754944e-38, %v469_v43  ;;  %vm468_vm5 = vcmp.eq.f32.partialorder %v467_v45, 8.507059e+37  ;;  %v10325_v43 = vmov 32.0  }
 0x2d8   : > { %v9853_v39 = vpop.eup %9852 }
 0x2d9   : > { %v459_v40 = vmul.f32 %v9853_v39, %v454_v38  ;;  %v457_v41 = vpop.xlane.xlu1 %456  ;;  %vm464_vm2 = vweird.f32 %v9853_v39 }
 0x2da   : > { %9854 = vrcp.f32 %v457_v41  ;;  %vm465_vm4 = vmor %vm463_vm3, %vm464_vm2  ;;  %v484_v54 = vand.u32 2147483648, %v457_v41  ;;  %v482_v56 = vand.u32 2147483647, %v457_v41  ;;  %vm478_vm7 = vweird.f32 %v457_v41 }
 0x2db   : > { %v460_v42 = vsub.f32 1.0, %v459_v40  ;;  %9856 = vrcp.f32 %v10325_v43  ;;  %v7920_v43 = vld [vmem:[%s15020_s3] sm:$0xf] }
 0x2dc   : > { %v485_v59 = vor.u32 1.1754944e-38, %v484_v54  ;;  %vm483_vm9 = vcmp.eq.f32.partialorder %v482_v56, 8.507059e+37 }
 0x2dd   : > { %v461_v44 = vmul.f32 %v9853_v39, %v460_v42 }
 0x2df   : > { %v462_v46 = vadd.f32 %v9853_v39, %v461_v44 }
 0x2e0   : > { %v9855_v47 = vpop.eup %9854 }
 0x2e1   : > { %v474_v49 = vmul.f32 %v9855_v47, %v457_v41  ;;  %v466_v50 = vsel %vm465_vm4, %v9853_v39, %v462_v46  ;;  %vm479_vm6 = vweird.f32 %v9855_v47  ;;  %v9857_v44 = vpop.eup %9856 }
 0x2e2   : > { %v471_v51 = vsel %vm468_vm5, %v470_v48, %v466_v50  ;;  %vm480_vm8 = vmor %vm478_vm7, %vm479_vm6  ;;  %v558_v45 = vmul.f32 32.0, %v9857_v44  ;;  %vm562_vm10 = vweird.f32 %v9857_v44 }
 0x2e3   : > { %v475_v52 = vsub.f32 1.0, %v474_v49  ;;  %v472_v53 = vmul.f32 %v9849_v58, %v471_v51 }
 0x2e4   : > { %v559_v46 = vsub.f32 1.0, %v558_v45  ;;  %v9325_v45 = vld [vmem:[%s15020_s3 + $0x4] sm:$0xf] }
 0x2e5   : > { %v476_v55 = vmul.f32 %v9855_v47, %v475_v52  ;;  %7914 = vmatmul.msk.f32.vlgmr.msrb.gmra.mxu0 %vm439_vm1, %v472_v53 }
 0x2e7   : > { %v477_v57 = vadd.f32 %v9855_v47, %v476_v55 }
 0x2e9   : > { %v481_v60 = vsel %vm480_vm8, %v9855_v47, %v477_v57  ;;  %v560_v47 = vmul.f32 %v9857_v44, %v559_v46 }
 0x2ea   : > { %v486_v62 = vsel %vm483_vm9, %v485_v59, %v481_v60  ;;  %v7936_v60 = vld [vmem:[%s15020_s3 + $0x80] sm:$0xf] }
 0x2eb   : > { %v487_v63 = vmul.f32 %v9851_v61, %v486_v62  ;;  %v561_v48 = vadd.f32 %v9857_v44, %v560_v47  ;;  %v9331_v62 = vld [vmem:[%s15020_s3 + $0xbc] sm:$0xf0]  ;;  %v7922_v47 = vld [vmem:[%s15020_s3 + $0x40] sm:$0xf0] }
 0x2ed   : > { %7915 = vmatmul.msk.f32.gmra.mxu0 %vm439_vm1, %v487_v63  ;;  %v9329_v63 = vld [vmem:[%s15020_s3 + $0x84] sm:$0xf] }
 0x362   : > { %v511_v0 = vpop.f32.mrf.mxu0 }
 0x363   : > { %7916 = vmatmul.msk.f32.vlgmr.msrb.gmra.mxu1 %vm318_vm0, %v511_v0  ;;  %v7937_v0 = vor.u32 %v9331_v62, %v7936_v60  ;;  %v9371_v60 = vld [vmem:[%s15020_s3 + $0xcc] sm:$0xf0]  ;;  %v9369_v62 = vld [vmem:[%s15020_s3 + $0x94] sm:$0xf] }
 0x365   : > { %681 = vmatpush.bf16.msra.mxu2 %v7937_v0 }
 0x36a   : > { %v514_v58 = vpop.f32.mrf.mxu0 }
 0x36b   : > { %7917 = vmatmul.msk.f32.gmra.mxu1 %vm318_vm0, %v514_v58  ;;  %v7938_v58 = vld [vmem:[%s15020_s3 + $0xc0] sm:$0xf0] }
 0x3e0   : > { %v543_v36 = vpop.f32.mrf.mxu1 }
 0x3e1   : > { %v544_v37 = vadd.f32 %v543_v36, %v518_v35  ;;  %v9332_v36 = vld [vmem:[%s15020_s3 + $0xc4] sm:$0xf0] }
 0x3e3   : > { %v549_v38 = vadd.f32 %v10227_v31, %v544_v37  ;;  %v10786_v31 = vsel %vm562_vm10, %v9857_v44, %v561_v48  ;;  %v7941_v37 = vor.u32 %v9329_v63, %v7938_v58  ;;  %v9327_v44 = vld [vmem:[%s15020_s3 + $0x3c] sm:$0xf0]  ;;  %v7928_v48 = vld [vmem:[%s15020_s3 + $0x8] sm:$0xf]  ;;  %v7982_v58 = vld [vmem:[%s15020_s3 + $0xd0] sm:$0xf0] }
 0x3e4   : > { %15021 = vst [vmem:[#allocation83_spill] sm:$0xff] %v10786_v31  ;;  %v15022_v49 = vmov %v10786_v31  ;;  %v7921_v46 = vor.u32 %v9327_v44, %v7920_v43  ;;  %v9328_v31 = vld [vmem:[%s15020_s3 + $0x44] sm:$0xf0]  ;;  %v9372_v43 = vld [vmem:[%s15020_s3 + $0xd4] sm:$0xf0] }
 0x3e5   : > { %v551_v39 = vsel %vm318_vm0, %v549_v38, 0.0  ;;  %695 = vmatpush.bf16.msra.mxu3 %v7941_v37  ;;  %v7985_v37 = vor.u32 %v9369_v62, %v7982_v58  ;;  %v9370_v44 = vld [vmem:[%s15020_s3 + $0x9c] sm:$0xf] }
 0x3e6   : > { %552 = vadd.xlane.f32.xlu2 %v551_v39  ;;  %v9330_v39 = vld [vmem:[%s15020_s3 + $0x8c] sm:$0xf]  ;;  %682 = vmatpush.bf16.msra.mxu2 %v7921_v46 }
 0x3e8   : > { %v546_v40 = vpop.f32.mrf.mxu1 }
 0x3e9   : > { %v547_v41 = vadd.f32 %v546_v40, %v518_v35  ;;  %v7944_v35 = vld [vmem:[%s15020_s3 + $0x88] sm:$0xf]  ;;  %v7946_v40 = vld [vmem:[%s15020_s3 + $0xc8] sm:$0xf0] }
 0x3eb   : > { %v550_v61 = vadd.f32 %v10223_v32, %v547_v41 }
 0x3ed   : > { %v554_v42 = vsel %vm318_vm0, %v550_v61, 0.0 }
 0x3ee   : > { %555 = vadd.xlane.f32.xlu2 %v554_v42 }
 0x459   : > { %v553_v50 = vpop.xlane.xlu2 %552 }
 0x45a   : > { %v564_v32 = vmul.f32 %v15022_v49, %v553_v50 }
 0x45c   : > { %v10789_v51 = vsub.f32 %v549_v38, %v564_v32  ;;  %v7945_v38 = vor.u32 %v9332_v36, %v7944_v35  ;;  %v7925_v32 = vor.u32 %v9325_v45, %v7922_v47  ;;  %v7964_v35 = vld [vmem:[%s15020_s3 + $0x10] sm:$0xf] }
 0x45d   : > { %v9367_v36 = vld [vmem:[%s15020_s3 + $0x4c] sm:$0xf0] }
 0x45e   : > { %v568_v52 = vmul.f32 %v10789_v51, %v10789_v51  ;;  %709 = vmatpush.bf16.msra.mxu0 %v7945_v38  ;;  %696 = vmatpush.bf16.msra.mxu3 %v7925_v32  ;;  %v9365_v38 = vld [vmem:[%s15020_s3 + $0x14] sm:$0xf]  ;;  %v9368_v32 = vld [vmem:[%s15020_s3 + $0x54] sm:$0xf0] }
 0x460   : > { %v570_v53 = vsel %vm318_vm0, %v568_v52, 0.0  ;;  %v7929_v52 = vor.u32 %v9328_v31, %v7928_v48  ;;  %v7990_v48 = vld [vmem:[%s15020_s3 + $0xd8] sm:$0xf0]  ;;  %v7972_v31 = vld [vmem:[%s15020_s3 + $0x18] sm:$0xf] }
 0x461   : > { %571 = vadd.xlane.f32.xlu0 %v570_v53  ;;  %v556_v54 = vpop.xlane.xlu2 %555  ;;  %v9326_v53 = vld [vmem:[%s15020_s3 + $0xc] sm:$0xf] }
 0x462   : > { %v565_v55 = vmul.f32 %v15022_v49, %v556_v54  ;;  %v7930_v54 = vld [vmem:[%s15020_s3 + $0x48] sm:$0xf0]  ;;  %710 = vmatpush.bf16.msra.mxu0 %v7929_v52  ;;  %1228 = vmatpush.bf16.msrb.mxu3 %v7985_v37  ;;  %v7993_v52 = vor.u32 %v9370_v44, %v7990_v48  ;;  %v608_v44 = vperm.slane %v15024_v28, 0 }
 0x464   : > { %v10795_v56 = vsub.f32 %v550_v61, %v565_v55  ;;  %v7949_v61 = vor.u32 %v9330_v39, %v7946_v40  ;;  %v7933_v55 = vor.u32 %v9326_v53, %v7930_v54  ;;  %v7966_v39 = vld [vmem:[%s15020_s3 + $0x50] sm:$0xf0]  ;;  %v7988_v40 = vld [vmem:[%s15020_s3 + $0x98] sm:$0xf]  ;;  %v9366_v53 = vld [vmem:[%s15020_s3 + $0x1c] sm:$0xf] }
 0x465   : > { %v7969_v46 = vor.u32 %v9365_v38, %v7966_v39  ;;  %v7989_v47 = vor.u32 %v9372_v43, %v7988_v40  ;;  %v7974_v54 = vld [vmem:[%s15020_s3 + $0x58] sm:$0xf0]  ;;  %v603_v39 = vperm.slane %v15023_v27, 0 }
 0x466   : > { %v569_v57 = vmul.f32 %v10795_v56, %v10795_v56  ;;  %723 = vmatpush.bf16.msra.mxu1 %v7949_v61 }
 0x467   : > { %1242 = vmatpush.bf16.msrb.mxu0 %v7989_v47  ;;  %1229 = vmatpush.bf16.msrb.mxu3 %v7969_v46 }
 0x468   : > { %v573_v59 = vsel %vm318_vm0, %v569_v57, 0.0 }
 0x469   : > { %574 = vadd.xlane.f32.xlu1 %v573_v59  ;;  %v7980_v59 = vld [vmem:[%s15020_s3 + $0x90] sm:$0xf] }
 0x46a   : > { %724 = vmatpush.bf16.msra.mxu1 %v7933_v55  ;;  %v7981_v0 = vor.u32 %v9371_v60, %v7980_v59  ;;  %v7977_v59 = vor.u32 %v9366_v53, %v7974_v54 }
 0x46c   : > { %1214 = vmatpush.bf16.msrb.mxu2 %v7981_v0 }
 0x46e   : > { %1256 = vmatpush.bf16.msrb.mxu1 %v7993_v52 }
 0x472   : > { %1257 = vmatpush.bf16.msrb.mxu1 %v7977_v59 }
 0x4d4   : > { %v572_v41 = vpop.xlane.xlu0 %571 }
 0x4d5   : > { %v576_v42 = vmul.f32 %v572_v41, %v15022_v49 }
 0x4d7   : > { %v578_v50 = vadd.f32 1e-05, %v576_v42  ;;  %v7965_v42 = vor.u32 %v9367_v36, %v7964_v35 }
 0x4d9   : > { %9858 = vrsqrt.f32 %v578_v50  ;;  %1215 = vmatpush.bf16.msrb.mxu2 %v7965_v42  ;;  %vm586_vm12 = vweird.f32 %v578_v50 }
 0x4dc   : > { %v575_v57 = vpop.xlane.xlu1 %574 }
 0x4dd   : > { %v577_v63 = vmul.f32 %v575_v57, %v15022_v49  ;;  %v7973_v57 = vor.u32 %v9368_v32, %v7972_v31 }
 0x4df   : > { %v9859_v41 = vpop.eup %9858  ;;  %v579_v61 = vadd.f32 1e-05, %v577_v63  ;;  %1243 = vmatpush.bf16.msrb.mxu0 %v7973_v57 }
 0x4e0   : > { %v581_v45 = vmul.f32 %v9859_v41, %v578_v50  ;;  %vm587_vm11 = vweird.f32 %v9859_v41 }
 0x4e1   : > { %9860 = vrsqrt.f32 %v579_v61  ;;  %vm588_vm13 = vmor %vm586_vm12, %vm587_vm11  ;;  %vm596_vm15 = vweird.f32 %v579_v61 }
 0x4e2   : > { %v582_v55 = vmul.f32 %v9859_v41, %v581_v45 }
 0x4e4   : > { %v583_v60 = vmul.f32 0.5, %v582_v55 }
 0x4e6   : > { %v584_v62 = vsub.f32 1.5, %v583_v60 }
 0x4e7   : > { %v9861_v63 = vpop.eup %9860 }
 0x4e8   : > { %v585_v0 = vmul.f32 %v9859_v41, %v584_v62  ;;  %v591_v58 = vmul.f32 %v9861_v63, %v579_v61  ;;  %vm597_vm14 = vweird.f32 %v9861_v63 }
 0x4e9   : > { %vm598_vm2 = vmor %vm596_vm15, %vm597_vm14 }
 0x4ea   : > { %v592_v35 = vmul.f32 %v9861_v63, %v591_v58  ;;  %v589_v36 = vsel %vm588_vm13, %v9859_v41, %v585_v0 }
 0x4eb   : > { %v600_v40 = vmul.f32 %v589_v36, %v10789_v51  ;;  %v10863_v51 = vld [vmem:[%s15025_s8] sm:$0xff] }
 0x4ec   : > { %v593_v37 = vmul.f32 0.5, %v592_v35  ;;  %v627_v61 = vperm.slane %v10863_v51, 3  ;;  %v14865_v59 = vperm.slane %v10863_v51, 0  ;;  %v15031_v16 = vperm.slane %v10863_v51, 0 }
 0x4ed   : > { %v605_v45 = vmul.f32 %v603_v39, %v600_v40 }
 0x4ee   : > { %v594_v38 = vsub.f32 1.5, %v593_v37 }
 0x4ef   : > { %v10838_v47 = vadd.f32 %v608_v44, %v605_v45  ;;  %v14864_v45 = vperm.slane %v10863_v51, 1 }
 0x4f0   : > { %v595_v42 = vmul.f32 %v9861_v63, %v594_v38 }
 0x4f1   : > { %15026 = vst [vmem:[#allocation84_spill] sm:$0xff] %v10838_v47 }
 0x4f2   : > { %v599_v43 = vsel %vm598_vm2, %v9861_v63, %v595_v42 }
 0x4f3   : > { %v601_v50 = vmul.f32 %v599_v43, %v10795_v56  ;;  %v626_v56 = vperm.slane %v10863_v51, 2 }
 0x4f5   : > { %v606_v46 = vmul.f32 %v603_v39, %v601_v50 }
 0x4f7   : > { %v10840_v41 = vadd.f32 %v608_v44, %v606_v46 }
 0x4f9   : > { %15027 = vst [vmem:[#allocation85_spill] sm:$0xff] %v10840_v41  ;;  %v10844_v48 = vpack.c.bf16 %v10840_v41, %v10838_v47 }
 0x4fb   : > { %15028 = vst [vmem:[#allocation86_spill] sm:$0xff] %v10844_v48  ;;  %7950 = vmatmul.msk.bf16.vlgmr.msra.gmra.mxu2 %vm318_vm0, %v10844_v48  ;;  %7951 = vmatmul.msk.bf16.vlgmr.msra.gmra.mxu3 %vm318_vm0, %v10844_v48 }
 0x4fc   : > { %7952 = vmatmul.msk.bf16.vlgmr.msra.gmra.mxu0 %vm318_vm0, %v10844_v48  ;;  %7953 = vmatmul.msk.bf16.vlgmr.msra.gmra.mxu1 %vm318_vm0, %v10844_v48 }
 0x50b   : > { %7994 = vmatmul.msk.bf16.vlgmr.msrb.gmra.mxu2 %vm318_vm0, %v10844_v48  ;;  %7995 = vmatmul.msk.bf16.vlgmr.msrb.gmra.mxu3 %vm318_vm0, %v10844_v48 }
 0x50c   : > { %7996 = vmatmul.msk.bf16.vlgmr.msrb.gmra.mxu0 %vm318_vm0, %v10844_v48  ;;  %7997 = vmatmul.msk.bf16.vlgmr.msrb.gmra.mxu1 %vm318_vm0, %v10844_v48 }
 0x579   : > { %v712_v31 = vpop.f32.mrf.mxu0  ;;  %v726_v32 = vpop.f32.mrf.mxu1 }
 0x57a   : > { %v10867_v52 = vadd.f32 %v712_v31, %v626_v56  ;;  %v10869_v53 = vadd.f32 %v726_v32, %v627_v61 }
 0x57c   : > { %v10872_v54 = vmul.f32 0.70710677, %v10867_v52  ;;  %v10875_v55 = vmul.f32 0.70710677, %v10869_v53 }
 0x57e   : > { %v827_v57 = vmul.f32 %v10872_v54, %v10872_v54  ;;  %v867_v60 = vmul.f32 %v10875_v55, %v10875_v55  ;;  %v684_v62 = vpop.f32.mrf.mxu2  ;;  %v698_v46 = vpop.f32.mrf.mxu3 }
 0x57f   : > { %v10886_v0 = vadd.f32 %v684_v62, %v14865_v59 }
 0x580   : > { %v10882_v63 = vmin.f32 %v827_v57, 16.0  ;;  %v10888_v58 = vmin.f32 %v867_v60, 16.0  ;;  %v10907_v60 = vadd.f32 %v698_v46, %v14864_v45 }
 0x581   : > { %v10892_v36 = vmul.f32 0.70710677, %v10886_v0  ;;  %v714_v43 = vpop.f32.mrf.mxu0 }
 0x582   : > { %v840_v35 = vmul.f32 3.8918573e-05, %v10882_v63  ;;  %v880_v37 = vmul.f32 3.8918573e-05, %v10888_v58  ;;  %v10902_v31 = vadd.f32 %v714_v43, %v626_v56  ;;  %15029 = vst [vmem:[#allocation87_spill] sm:$0xff] %v10907_v60 }
 0x583   : > { %v747_v39 = vmul.f32 %v10892_v36, %v10892_v36  ;;  %v10916_v56 = vmul.f32 0.70710677, %v10907_v60 }
 0x584   : > { %v841_v38 = vadd.f32 0.001143296, %v840_v35  ;;  %v881_v40 = vadd.f32 0.001143296, %v880_v37  ;;  %v10910_v35 = vmul.f32 0.70710677, %v10902_v31 }
 0x585   : > { %v10898_v44 = vmin.f32 %v747_v39, 16.0  ;;  %v829_v37 = vmul.f32 2.1237322e-06, %v10882_v63  ;;  %v869_v39 = vmul.f32 2.1237322e-06, %v10888_v58  ;;  %15030 = vst [vmem:[#allocation88_spill] sm:$0xff] %v10916_v56  ;;  %v787_v1 = vmul.f32 %v10916_v56, %v10916_v56 }
 0x586   : > { %v842_v42 = vmul.f32 %v841_v38, %v10882_v63  ;;  %v882_v50 = vmul.f32 %v881_v40, %v10888_v58  ;;  %v987_v43 = vmul.f32 %v10910_v35, %v10910_v35 }
 0x587   : > { %v760_v57 = vmul.f32 3.8918573e-05, %v10898_v44  ;;  %v830_v46 = vadd.f32 0.00028619796, %v829_v37  ;;  %v870_v45 = vadd.f32 0.00028619796, %v869_v39 }
 0x588   : > { %v843_v32 = vadd.f32 0.014752088, %v842_v42  ;;  %v883_v62 = vadd.f32 0.014752088, %v882_v50  ;;  %v10924_v2 = vmin.f32 %v987_v43, 16.0  ;;  %v10930_v37 = vmin.f32 %v787_v1, 16.0 }
 0x589   : > { %v761_v40 = vadd.f32 0.001143296, %v760_v57  ;;  %v831_v57 = vmul.f32 %v830_v46, %v10882_v63  ;;  %v749_v8 = vmul.f32 2.1237322e-06, %v10898_v44 }
 0x58a   : > { %v844_v38 = vmul.f32 %v843_v32, %v10882_v63  ;;  %v884_v42 = vmul.f32 %v883_v62, %v10888_v58  ;;  %v871_v62 = vmul.f32 %v870_v45, %v10888_v58  ;;  %v789_v45 = vmul.f32 2.1237322e-06, %v10930_v37 }
 0x58b   : > { %v762_v59 = vmul.f32 %v761_v40, %v10898_v44  ;;  %v1000_v40 = vmul.f32 3.8918573e-05, %v10924_v2  ;;  %v832_v10 = vadd.f32 0.0036580483, %v831_v57  ;;  %v750_v11 = vadd.f32 0.00028619796, %v749_v8 }
 0x58c   : > { %v845_v50 = vadd.f32 0.112945676, %v844_v38  ;;  %v885_v32 = vadd.f32 0.112945676, %v884_v42  ;;  %v728_v38 = vpop.f32.mrf.mxu1  ;;  %v872_v43 = vadd.f32 0.0036580483, %v871_v62 }
 0x58d   : > { %v763_v9 = vadd.f32 0.014752088, %v762_v59  ;;  %v10934_v12 = vadd.f32 %v728_v38, %v627_v61  ;;  %v1001_v13 = vadd.f32 0.001143296, %v1000_v40  ;;  %v833_v1 = vmul.f32 %v832_v10, %v10882_v63  ;;  %v686_v40 = vpop.f32.mrf.mxu2 }
 0x58e   : > { %v846_v7 = vmul.f32 %v845_v50, %v10882_v63  ;;  %v886_v39 = vmul.f32 %v885_v32, %v10888_v58  ;;  %v873_v32 = vmul.f32 %v872_v43, %v10888_v58  ;;  %v751_v14 = vmul.f32 %v750_v11, %v10898_v44 }
 0x58f   : > { %v764_v46 = vmul.f32 %v763_v9, %v10898_v44  ;;  %v790_v61 = vadd.f32 0.00028619796, %v789_v45  ;;  %v800_v9 = vmul.f32 3.8918573e-05, %v10930_v37  ;;  %v1002_v62 = vmul.f32 %v1001_v13, %v10924_v2 }
 0x590   : > { %v847_v42 = vadd.f32 0.4994258, %v846_v7  ;;  %v887_v50 = vadd.f32 0.4994258, %v886_v39  ;;  %v10943_v7 = vmul.f32 0.70710677, %v10934_v12  ;;  %v10958_v13 = vadd.f32 %v686_v40, %v15031_v16 }
 0x591   : > { %v765_v8 = vadd.f32 0.112945676, %v764_v46  ;;  %v834_v38 = vadd.f32 0.05243302, %v833_v1  ;;  %v874_v10 = vadd.f32 0.05243302, %v873_v32  ;;  %v791_v46 = vmul.f32 %v790_v61, %v10930_v37 }
 0x592   : > { %v848_v59 = vmul.f32 %v847_v42, %v10882_v63  ;;  %v888_v57 = vmul.f32 %v887_v50, %v10888_v58  ;;  %v752_v42 = vadd.f32 0.0036580483, %v751_v14  ;;  %v1027_v11 = vmul.f32 %v10943_v7, %v10943_v7 }
 0x593   : > { %v766_v43 = vmul.f32 %v765_v8, %v10898_v44  ;;  %v801_v50 = vadd.f32 0.001143296, %v800_v9  ;;  %v1003_v15 = vadd.f32 0.014752088, %v1002_v62  ;;  %v835_v1 = vmul.f32 %v834_v38, %v10882_v63 }
 0x594   : > { %v10948_v39 = vadd.f32 1.0, %v848_v59  ;;  %v10954_v45 = vadd.f32 1.0, %v888_v57  ;;  %v875_v14 = vmul.f32 %v874_v10, %v10888_v58  ;;  %v753_v59 = vmul.f32 %v752_v42, %v10898_v44 }
 0x595   : > { %v10964_v32 = vmin.f32 %v1027_v11, 16.0  ;;  %v767_v8 = vadd.f32 0.4994258, %v766_v43  ;;  %v792_v61 = vadd.f32 0.0036580483, %v791_v46  ;;  %v802_v57 = vmul.f32 %v801_v50, %v10930_v37 }
 0x596   : > { %9862 = vrcp.f32 %v10948_v39  ;;  %v1004_v9 = vmul.f32 %v1003_v15, %v10924_v2  ;;  %v10970_v16 = vmul.f32 0.70710677, %v10958_v13  ;;  %v836_v62 = vadd.f32 0.18741608, %v835_v1 }
 0x597   : > { %9864 = vrcp.f32 %v10954_v45  ;;  %v876_v38 = vadd.f32 0.18741608, %v875_v14  ;;  %v754_v40 = vadd.f32 0.05243302, %v753_v59  ;;  %v1040_v10 = vmul.f32 3.8918573e-05, %v10964_v32 }
 0x598   : > { %v768_v42 = vmul.f32 %v767_v8, %v10898_v44  ;;  %v793_v11 = vmul.f32 %v792_v61, %v10930_v37  ;;  %v803_v43 = vadd.f32 0.014752088, %v802_v57  ;;  %v1005_v46 = vadd.f32 0.112945676, %v1004_v9 }
 0x599   : > { %v907_v50 = vmul.f32 %v10970_v16, %v10970_v16  ;;  %v837_v15 = vmul.f32 %v836_v62, %v10882_v63  ;;  %v877_v18 = vmul.f32 %v876_v38, %v10888_v58  ;;  %v10984_v14 = vmul.f32 0.5, %v10867_v52 }
 0x59a   : > { %v755_v8 = vmul.f32 %v754_v40, %v10898_v44  ;;  %v1041_v61 = vadd.f32 0.001143296, %v1040_v10  ;;  %v10990_v57 = vmul.f32 0.5, %v10869_v53  ;;  %v10993_v9 = vmul.f32 0.5, %v10886_v0 }
 0x59b   : > { %v10995_v63 = vadd.f32 1.0, %v768_v42  ;;  %v989_v58 = vmul.f32 2.1237322e-06, %v10924_v2  ;;  %v794_v62 = vadd.f32 0.05243302, %v793_v11  ;;  %v804_v52 = vmul.f32 %v803_v43, %v10930_v37 }
 0x59c   : > { %v10973_v17 = vpop.eup %9862  ;;  %15032 = vst [vmem:[#allocation89_spill] sm:$0xff] %v10990_v57  ;;  %v1006_v38 = vmul.f32 %v1005_v46, %v10924_v2  ;;  %v11000_v19 = vmin.f32 %v907_v50, 16.0  ;;  %v838_v20 = vadd.f32 1.1283791, %v837_v15  ;;  %v878_v40 = vadd.f32 1.1283791, %v877_v18 }
 0x59d   : > { %v10981_v1 = vpop.eup %9864  ;;  %v851_v59 = vmul.f32 %v10973_v17, %v10948_v39  ;;  %15033 = vst [vmem:[#allocation90_spill] sm:$0xff] %v10993_v9  ;;  %v11005_v10 = vmul.f32 0.5, %v10902_v31  ;;  %v859_v42 = vand.u32 2147483647, %v10948_v39  ;;  %v756_v21 = vadd.f32 0.18741608, %v755_v8 }
 0x59e   : > { %v891_v53 = vmul.f32 %v10981_v1, %v10954_v45  ;;  %v1042_v11 = vmul.f32 %v1041_v61, %v10964_v32  ;;  %9866 = vrcp.f32 %v10995_v63  ;;  %v990_v43 = vadd.f32 0.00028619796, %v989_v58  ;;  %v9393_v9 = vld [vmem:[%s15065_s14 + $0x1a0] sm:$0xff] }
 0x59f   : > { %v852_v0 = vsub.f32 1.0, %v851_v59  ;;  %v1029_v46 = vmul.f32 2.1237322e-06, %v10964_v32  ;;  %v11012_v50 = vrot.slane %v10863_v51, 4  ;;  %v795_v18 = vmul.f32 %v794_v62, %v10930_v37 }
 0x5a0   : > { %v805_v15 = vadd.f32 0.112945676, %v804_v52  ;;  %v1007_v22 = vadd.f32 0.4994258, %v1006_v38  ;;  %v920_v31 = vmul.f32 3.8918573e-05, %v11000_v19  ;;  %v11017_v59 = vmul.f32 %v838_v20, %v10872_v54 }
 0x5a1   : > { %v861_v8 = vand.u32 2147483648, %v10948_v39  ;;  %v892_v61 = vsub.f32 1.0, %v891_v53  ;;  %v901_v23 = vand.u32 2147483648, %v10954_v45  ;;  %v853_v58 = vmul.f32 %v10973_v17, %v852_v0 }
 0x5a2   : > { %vm855_vm3 = vweird.f32 %v10948_v39  ;;  %v11024_v24 = vmul.f32 %v878_v40, %v10875_v55  ;;  %v1043_v62 = vadd.f32 0.014752088, %v1042_v11  ;;  %v899_v52 = vand.u32 2147483647, %v10954_v45  ;;  %v1245_v11 = vpop.f32.mrf.mxu0 }
 0x5a3   : > { %v991_v38 = vmul.f32 %v990_v43, %v10924_v2  ;;  %v1030_v25 = vadd.f32 0.00028619796, %v1029_v46  ;;  %vm11029_vm4 = vcmp.eq.f32.partialorder %v859_v42, 8.507059e+37  ;;  %vm895_vm5 = vweird.f32 %v10954_v45 }
 0x5a4   : > { %v757_v53 = vmul.f32 %v756_v21, %v10898_v44  ;;  %v806_v0 = vmul.f32 %v805_v15, %v10930_v37  ;;  %v1008_v55 = vmul.f32 %v1007_v22, %v10924_v2  ;;  %v921_v40 = vadd.f32 0.001143296, %v920_v31  ;;  %v11037_v26 = vpop.eup %9866  ;;  %v700_v31 = vpop.f32.mrf.mxu3 }
 0x5a5   : > { %v862_v43 = vor.u32 1.1754944e-38, %v861_v8  ;;  %v893_v46 = vmul.f32 %v10981_v1, %v892_v61  ;;  %v902_v20 = vor.u32 1.1754944e-38, %v901_v23  ;;  %v796_v42 = vadd.f32 0.18741608, %v795_v18  ;;  %v1259_v23 = vpop.f32.mrf.mxu1 }
 0x5a6   : > { %v854_v27 = vadd.f32 %v10973_v17, %v853_v58  ;;  %vm856_vm6 = vweird.f32 %v10973_v17  ;;  %v1044_v28 = vmul.f32 %v1043_v62, %v10964_v32  ;;  %v992_v44 = vadd.f32 0.0036580483, %v991_v38 }
 0x5a7   : > { %v1031_v22 = vmul.f32 %v1030_v25, %v10964_v32  ;;  %v909_v15 = vmul.f32 2.1237322e-06, %v11000_v19  ;;  %v15036_v8 = vperm.slane %v11012_v50, 2  ;;  %v771_v18 = vmul.f32 %v11037_v26, %v10995_v63  ;;  %vm11057_vm7 = vmor %vm855_vm3, %vm856_vm6 }
 0x5a8   : > { %v807_v61 = vadd.f32 0.4994258, %v806_v0  ;;  %v11052_v58 = vadd.f32 1.0, %v1008_v55  ;;  %v922_v62 = vmul.f32 %v921_v40, %v11000_v19  ;;  %v894_v38 = vadd.f32 %v10981_v1, %v893_v46 }
 0x5a9   : > { %v11048_v6 = vadd.f32 %v1245_v11, %v15036_v8  ;;  %vm896_vm8 = vweird.f32 %v10981_v1  ;;  %vm11063_vm9 = vcmp.eq.f32.partialorder %v899_v52, 8.507059e+37  ;;  %v758_v8 = vadd.f32 1.1283791, %v757_v53 }
 0x5aa   : > { %v797_v0 = vmul.f32 %v796_v42, %v10930_v37  ;;  %v858_v55 = vsel %vm11057_vm7, %v10973_v17, %v854_v27  ;;  %v1045_v39 = vadd.f32 0.112945676, %v1044_v28  ;;  %v15041_v40 = vperm.slane %v10863_v51, 1  ;;  %vm11091_vm10 = vmor %vm895_vm5, %vm896_vm8 }
 0x5ab   : > { %v15043_v46 = vperm.slane %v11012_v50, 3  ;;  %v993_v52 = vmul.f32 %v992_v44, %v10924_v2  ;;  %v1032_v4 = vadd.f32 0.0036580483, %v1031_v22  ;;  %v910_v3 = vadd.f32 0.00028619796, %v909_v15 }
 0x5ac   : > { %v11073_v21 = vadd.f32 %v700_v31, %v15041_v40  ;;  %v11081_v53 = vmul.f32 0.70710677, %v11048_v6  ;;  %v772_v42 = vsub.f32 1.0, %v771_v18  ;;  %v808_v25 = vmul.f32 %v807_v61, %v10930_v37 }
 0x5ad   : > { %v11077_v5 = vadd.f32 %v1259_v23, %v15043_v46  ;;  %9868 = vrcp.f32 %v11052_v58  ;;  %v923_v17 = vadd.f32 0.014752088, %v922_v62  ;;  %v863_v27 = vsel %vm11029_vm4, %v862_v43, %v858_v55 }
 0x5ae   : > { %15042 = vst [vmem:[#allocation91_spill] sm:$0xff] %v11073_v21  ;;  %v11096_v51 = vmul.f32 %v758_v8, %v10892_v36  ;;  %v11099_v44 = vmul.f32 0.5, %v10934_v12  ;;  %v1360_v37 = vmul.f32 %v11081_v53, %v11081_v53  ;;  %v898_v54 = vsel %vm11091_vm10, %v10981_v1, %v894_v38 }
 0x5af   : > { %vm775_vm11 = vweird.f32 %v10995_v63  ;;  %v1046_v45 = vmul.f32 %v1045_v39, %v10964_v32  ;;  %v11109_v43 = vmul.f32 0.70710677, %v11073_v21  ;;  %v11112_v36 = vmul.f32 0.70710677, %v11077_v5 }
 0x5b0   : > { %15046 = vst [vmem:[#allocation92_spill] sm:$0xff] %v11099_v44  ;;  %v994_v22 = vadd.f32 0.05243302, %v993_v52  ;;  %v1033_v12 = vmul.f32 %v1032_v4, %v10964_v32  ;;  %v911_v15 = vmul.f32 %v910_v3, %v11000_v19  ;;  %v11116_v31 = vmin.f32 %v1360_v37, 16.0 }
 0x5b1   : > { %15047 = vst [vmem:[#allocation93_spill] sm:$0xff] %v11109_v43  ;;  %v773_v23 = vmul.f32 %v11037_v26, %v772_v42  ;;  %v779_v1 = vand.u32 2147483647, %v10995_v63  ;;  %v11120_v18 = vadd.f32 1.0, %v808_v25  ;;  %v924_v61 = vmul.f32 %v923_v17, %v11000_v19 }
 0x5b2   : > { %v864_v62 = vmul.f32 %v863_v27, %v11017_v59  ;;  %v781_v38 = vand.u32 2147483648, %v10995_v63  ;;  %v11125_v8 = vadd.f32 1.1283791, %v797_v0  ;;  %v1373_v4 = vmul.f32 3.8918573e-05, %v11116_v31 }
 0x5b3   : > { %v11128_v55 = vpop.eup %9868  ;;  %v903_v3 = vsel %vm11063_vm9, %v902_v20, %v898_v54  ;;  %v1047_v39 = vadd.f32 0.4994258, %v1046_v45  ;;  %v947_v40 = vmul.f32 %v11109_v43, %v11109_v43  ;;  %v1400_v46 = vmul.f32 %v11112_v36, %v11112_v36 }
 0x5b4   : > { %15048 = vst [vmem:[#allocation94_spill] sm:$0xff] %v11125_v8  ;;  %v995_v59 = vmul.f32 %v994_v22, %v10924_v2  ;;  %v1034_v52 = vadd.f32 0.05243302, %v1033_v12  ;;  %v912_v42 = vadd.f32 0.0036580483, %v911_v15  ;;  %v774_v25 = vadd.f32 %v11037_v26, %v773_v23 }
 0x5b5   : > { %v1374_v0 = vadd.f32 0.001143296, %v1373_v4  ;;  %vm776_vm12 = vweird.f32 %v11037_v26  ;;  %9870 = vrcp.f32 %v11120_v18  ;;  %v925_v11 = vadd.f32 0.112945676, %v924_v61 }
 0x5b6   : > { %v904_v20 = vmul.f32 %v903_v3, %v11024_v24  ;;  %v1011_v17 = vmul.f32 %v11128_v55, %v11052_v58  ;;  %v11144_v28 = vmin.f32 %v1400_v46, 16.0  ;;  %v7956_v37 = vclamps-f32 %v864_v62, 1.0  ;;  %vm11155_vm14 = vmor %vm775_vm11, %vm776_vm12 }
 0x5b7   : > { %v1375_v27 = vmul.f32 %v1374_v0, %v11116_v31  ;;  %vm11146_vm13 = vcmp.eq.f32.partialorder %v779_v1, 8.507059e+37  ;;  %v1048_v45 = vmul.f32 %v1047_v39, %v10964_v32  ;;  %v11151_v22 = vmin.f32 %v947_v40, 16.0 }
 0x5b8   : > { %v996_v12 = vadd.f32 0.18741608, %v995_v59  ;;  %v1035_v15 = vmul.f32 %v1034_v52, %v10964_v32  ;;  %v913_v23 = vmul.f32 %v912_v42, %v11000_v19  ;;  %v778_v1 = vsel %vm11155_vm14, %v11037_v26, %v774_v25  ;;  %v1217_v59 = vpop.f32.mrf.mxu2 }
 0x5b9   : > { %15051 = vst [vmem:[#allocation95_spill] sm:$0xff] %v11151_v22  ;;  %v1376_v61 = vadd.f32 0.014752088, %v1375_v27  ;;  %v782_v62 = vor.u32 1.1754944e-38, %v781_v38  ;;  %v926_v4 = vmul.f32 %v925_v11, %v11000_v19  ;;  %v14875_v3 = vperm.slane %v11012_v50, 0 }
 0x5ba   : > { %v7957_v63 = vclamps-f32 %v904_v20, 1.0  ;;  %v1012_v39 = vsub.f32 1.0, %v1011_v17  ;;  %v11167_v40 = vmul.f32 0.5, %v10958_v13  ;;  %v1413_v46 = vmul.f32 3.8918573e-05, %v11144_v28 }
 0x5bb   : > { %v11170_v52 = vpop.eup %9870  ;;  %v1069_v42 = vadd.f32 1.0, %v7956_v37  ;;  %v11172_v0 = vadd.f32 1.0, %v1048_v45  ;;  %v960_v26 = vmul.f32 3.8918573e-05, %v11151_v22  ;;  %v1377_v38 = vmul.f32 %v1376_v61, %v11116_v31 }
 0x5bc   : > { %15054 = vst [vmem:[#allocation96_spill] sm:$0xff] %v11167_v40  ;;  %v783_v25 = vsel %vm11146_vm13, %v782_v62, %v778_v1  ;;  %v997_v11 = vmul.f32 %v996_v12, %v10924_v2  ;;  %v1036_v20 = vadd.f32 0.18741608, %v1035_v15  ;;  %v914_v13 = vadd.f32 0.05243302, %v913_v23  ;;  %v9401_v40 = vld [vmem:[%s15065_s14 + $0x1e0] sm:$0xff] }
 0x5bd   : > { %15055 = vst [vmem:[#allocation97_spill] sm:$0xff] %v11170_v52  ;;  %v927_v17 = vadd.f32 0.4994258, %v926_v4  ;;  %v1362_v27 = vmul.f32 2.1237322e-06, %v11116_v31  ;;  %v11182_v37 = vadd.f32 %v1217_v59, %v14875_v3  ;;  %v11184_v45 = vadd.f32 1.0, %v7957_v63  ;;  %v1231_v59 = vpop.f32.mrf.mxu3 }
 0x5be   : > { %v1378_v24 = vadd.f32 0.112945676, %v1377_v38  ;;  %v11188_v61 = vmul.f32 %v11170_v52, %v11120_v18  ;;  %v1013_v54 = vmul.f32 %v11128_v55, %v1012_v39  ;;  %v1414_v1 = vadd.f32 0.001143296, %v1413_v46 }
 0x5bf   : > { %15056 = vst [vmem:[#allocation98_spill] sm:$0xff] %v11184_v45  ;;  %9872 = vrcp.f32 %v11172_v0  ;;  %v961_v2 = vadd.f32 0.001143296, %v960_v26  ;;  %v14874_v15 = vperm.slane %v11012_v50, 1  ;;  %v11195_v23 = vmul.f32 %v1069_v42, %v10984_v14 }
 0x5c0   : > { %v1379_v12 = vmul.f32 %v1378_v24, %v11116_v31  ;;  %v11198_v62 = vmul.f32 %v783_v25, %v11096_v51  ;;  %v998_v4 = vadd.f32 1.1283791, %v997_v11  ;;  %v915_v63 = vmul.f32 %v914_v13, %v11000_v19 }
 0x5c1   : > { %v1037_v39 = vmul.f32 %v1036_v20, %v10964_v32  ;;  %v928_v46 = vmul.f32 %v927_v17, %v11000_v19  ;;  %v1363_v38 = vadd.f32 0.00028619796, %v1362_v27  ;;  %v11204_v26 = vmul.f32 0.70710677, %v11182_v37 }
 0x5c2   : > { %vm1015_vm15 = vweird.f32 %v11052_v58  ;;  %v1019_v14 = vand.u32 2147483647, %v11052_v58  ;;  %v1380_v42 = vadd.f32 0.4994258, %v1379_v12  ;;  %v1415_v51 = vmul.f32 %v1414_v1, %v11144_v28 }
 0x5c3   : > { %v1014_v25 = vadd.f32 %v11128_v55, %v1013_v54  ;;  %vm1016_vm2 = vweird.f32 %v11128_v55  ;;  %v962_v11 = vmul.f32 %v961_v2, %v11151_v22  ;;  %v11214_v32 = vadd.f32 %v1231_v59, %v14874_v15 }
 0x5c4   : > { %v1021_v20 = vand.u32 2147483648, %v11052_v58  ;;  %v916_v13 = vadd.f32 0.18741608, %v915_v63  ;;  %v1402_v17 = vmul.f32 2.1237322e-06, %v11144_v28  ;;  %v1280_v27 = vmul.f32 %v11204_v26, %v11204_v26  ;;  %vm11229_vm3 = vmor %vm1015_vm15, %vm1016_vm2 }
 0x5c5   : > { %15057 = vst [vmem:[#allocation99_spill] sm:$0xff] %v11214_v32  ;;  %v11220_v24 = vpop.eup %9872  ;;  %v1038_v1 = vadd.f32 1.1283791, %v1037_v39  ;;  %v11222_v54 = vadd.f32 1.0, %v928_v46  ;;  %v949_v12 = vmul.f32 2.1237322e-06, %v11151_v22  ;;  %v1364_v2 = vmul.f32 %v1363_v38, %v11116_v31 }
 0x5c6   : > { %v999_v59 = vmul.f32 %v998_v4, %v10910_v35  ;;  %v1381_v15 = vmul.f32 %v1380_v42, %v11116_v31  ;;  %v1416_v3 = vadd.f32 0.014752088, %v1415_v51  ;;  %v11234_v33 = vmin.f32 %v1280_v27, 16.0 }
 0x5c7   : > { %v1018_v39 = vsel %vm11229_vm3, %v11128_v55, %v1014_v25  ;;  %vm1020_vm4 = vcmp.eq.f32.partialorder %v1019_v14, 8.507059e+37  ;;  %v963_v46 = vadd.f32 0.014752088, %v962_v11  ;;  %v11240_v38 = vmul.f32 0.70710677, %v11214_v32 }
 0x5c8   : > { %v1022_v35 = vor.u32 1.1754944e-38, %v1021_v20  ;;  %v1051_v58 = vmul.f32 %v11220_v24, %v11172_v0  ;;  %v917_v4 = vmul.f32 %v916_v13, %v11000_v19  ;;  %v1403_v34 = vadd.f32 0.00028619796, %v1402_v17  ;;  %v1247_v20 = vpop.f32.mrf.mxu0 }
 0x5c9   : > { %v11246_v42 = vmul.f32 %v1038_v1, %v10943_v7  ;;  %9874 = vrcp.f32 %v11222_v54  ;;  %v950_v51 = vadd.f32 0.00028619796, %v949_v12  ;;  %v1365_v27 = vadd.f32 0.0036580483, %v1364_v2 }
 0x5ca   : > { %v1023_v55 = vsel %vm1020_vm4, %v1022_v35, %v1018_v39  ;;  %v11249_v14 = vadd.f32 1.0, %v1381_v15  ;;  %v1417_v25 = vmul.f32 %v1416_v3, %v11144_v28  ;;  %v1293_v11 = vmul.f32 3.8918573e-05, %v11234_v33 }
 0x5cb   : > { %v1059_v63 = vand.u32 2147483647, %v11172_v0  ;;  %v1061_v19 = vand.u32 2147483648, %v11172_v0  ;;  %v964_v13 = vmul.f32 %v963_v46, %v11151_v22  ;;  %v1320_v7 = vmul.f32 %v11240_v38, %v11240_v38 }
 0x5cc   : > { %v1052_v17 = vsub.f32 1.0, %v1051_v58  ;;  %v918_v1 = vadd.f32 1.1283791, %v917_v4  ;;  %v1404_v12 = vmul.f32 %v1403_v34, %v11144_v28  ;;  %v1294_v15 = vadd.f32 0.001143296, %v1293_v11 }
 0x5cd   : > { %v1024_v2 = vmul.f32 %v1023_v55, %v999_v59  ;;  %v951_v3 = vmul.f32 %v950_v51, %v11151_v22  ;;  %v1366_v39 = vmul.f32 %v1365_v27, %v11116_v31  ;;  %v15060_v35 = vperm.slane %v11012_v50, 2 }
 0x5ce   : > { %9876 = vrcp.f32 %v11249_v14  ;;  %v1418_v46 = vadd.f32 0.112945676, %v1417_v25  ;;  %v1282_v29 = vmul.f32 2.1237322e-06, %v11234_v33  ;;  %v1295_v58 = vmul.f32 %v1294_v15, %v11234_v33 }
 0x5cf   : > { %v11263_v30 = vadd.f32 %v1247_v20, %v15060_v35  ;;  %v11268_v4 = vpop.eup %9874  ;;  %vm1055_vm5 = vweird.f32 %v11172_v0  ;;  %v965_v34 = vadd.f32 0.112945676, %v964_v13  ;;  %v11272_v59 = vmul.f32 0.5, %v11048_v6 }
 0x5d0   : > { %v11274_v51 = vmin.f32 %v1320_v7, 16.0  ;;  %v1053_v27 = vmul.f32 %v11220_v24, %v1052_v17  ;;  %v1062_v55 = vor.u32 1.1754944e-38, %v1061_v19  ;;  %v1405_v11 = vadd.f32 0.0036580483, %v1404_v12 }
 0x5d1   : > { %v1296_v20 = vadd.f32 0.014752088, %v1295_v58  ;;  %v7960_v25 = vclamps-f32 %v1024_v2, 1.0  ;;  %v11278_v35 = vmul.f32 %v918_v1, %v10970_v16  ;;  %v952_v15 = vadd.f32 0.0036580483, %v951_v3 }
 0x5d2   : > { %v1367_v49 = vadd.f32 0.05243302, %v1366_v39  ;;  %vm11280_vm6 = vcmp.eq.f32.partialorder %v1059_v63, 8.507059e+37  ;;  %v931_v6 = vmul.f32 %v11268_v4, %v11222_v54  ;;  %v1419_v13 = vmul.f32 %v1418_v46, %v11144_v28 }
 0x5d3   : > { %v1283_v7 = vadd.f32 0.00028619796, %v1282_v29  ;;  %v11288_v19 = vmul.f32 0.70710677, %v11263_v30  ;;  %v941_v16 = vand.u32 2147483648, %v11222_v54  ;;  %v966_v1 = vmul.f32 %v965_v34, %v11151_v22 }
 0x5d4   : > { %v1333_v63 = vmul.f32 3.8918573e-05, %v11274_v51  ;;  %v11294_v12 = vpop.eup %9876  ;;  %v1054_v2 = vadd.f32 %v11220_v24, %v1053_v27  ;;  %vm1056_vm7 = vweird.f32 %v11220_v24  ;;  %v1406_v3 = vmul.f32 %v1405_v11, %v11144_v28 }
 0x5d5   : > { %v1297_v29 = vmul.f32 %v1296_v20, %v11234_v33  ;;  %v1073_v39 = vadd.f32 1.0, %v7960_v25  ;;  %v953_v46 = vmul.f32 %v952_v15, %v11151_v22  ;;  %v1368_v58 = vmul.f32 %v1367_v49, %v11116_v31  ;;  %vm11308_vm8 = vmor %vm1055_vm5, %vm1056_vm7 }
 0x5d6   : > { %v1322_v17 = vmul.f32 2.1237322e-06, %v11274_v51  ;;  %v932_v34 = vsub.f32 1.0, %v931_v6  ;;  %v1420_v47 = vadd.f32 0.4994258, %v1419_v13  ;;  %v1284_v60 = vmul.f32 %v1283_v7, %v11234_v33 }
 0x5d7   : > { %v1520_v27 = vmul.f32 %v11288_v19, %v11288_v19  ;;  %v967_v20 = vadd.f32 0.4994258, %v966_v1  ;;  %v1384_v25 = vmul.f32 %v11294_v12, %v11249_v14  ;;  %v11315_v49 = vmul.f32 0.5, %v11077_v5 }
 0x5d8   : > { %v1334_v15 = vadd.f32 0.001143296, %v1333_v63  ;;  %v1058_v6 = vsel %vm11308_vm8, %v11220_v24, %v1054_v2  ;;  %v11320_v13 = vor.u32 1.1754944e-38, %v941_v16  ;;  %v1407_v7 = vadd.f32 0.05243302, %v1406_v3 }
 0x5d9   : > { %v1298_v0 = vadd.f32 0.112945676, %v1297_v29  ;;  %v11323_v21 = vmul.f32 %v1073_v39, %v11005_v10  ;;  %v954_v8 = vadd.f32 0.05243302, %v953_v46  ;;  %v1369_v1 = vadd.f32 0.18741608, %v1368_v58  ;;  %v1261_v46 = vpop.f32.mrf.mxu1 }
 0x5da   : > { %v1323_v56 = vadd.f32 0.00028619796, %v1322_v17  ;;  %v933_v48 = vmul.f32 %v11268_v4, %v932_v34  ;;  %v1421_v5 = vmul.f32 %v1420_v47, %v11144_v28  ;;  %v1285_v43 = vadd.f32 0.0036580483, %v1284_v60  ;;  %v9396_v58 = vld [vmem:[%s15065_s14 + $0x1b8] sm:$0xff] }
 0x5db   : > { %v11327_v63 = vmin.f32 %v1520_v27, 16.0  ;;  %v1063_v24 = vsel %vm11280_vm6, %v1062_v55, %v1058_v6  ;;  %v968_v16 = vmul.f32 %v967_v20, %v11151_v22  ;;  %v1385_v2 = vsub.f32 1.0, %v1384_v25  ;;  %v9404_v34 = vld [vmem:[%s15065_s14 + $0x1f8] sm:$0xff]  ;;  %1904 = vmatpush.bf16.msra.mxu0 %v9396_v58 }
 0x5dc   : > { %v1335_v10 = vmul.f32 %v1334_v15, %v11274_v51  ;;  %v1408_v3 = vmul.f32 %v1407_v7, %v11144_v28  ;;  %v1299_v17 = vmul.f32 %v1298_v0, %v11234_v33  ;;  %vm936_vm9 = vweird.f32 %v11268_v4  ;;  %v1219_v15 = vpop.f32.mrf.mxu2  ;;  %1918 = vmatpush.bf16.msra.mxu1 %v9404_v34  ;;  %v9380_v34 = vld [vmem:[%s15065_s14 + $0x138] sm:$0xff] }
 0x5dd   : > { %v1522_v29 = vmul.f32 2.1237322e-06, %v11327_v63  ;;  %v1533_v47 = vmul.f32 3.8918573e-05, %v11327_v63  ;;  %v11341_v41 = vmul.f32 %v954_v8, %v11151_v22  ;;  %v1370_v55 = vmul.f32 %v1369_v1, %v11116_v31  ;;  %1876 = vmatpush.bf16.msra.mxu2 %v9380_v34  ;;  %v9384_v22 = vld [vmem:[%s15065_s14 + $0x158] sm:$0xff] }
 0x5de   : > { %v1324_v39 = vmul.f32 %v1323_v56, %v11274_v51  ;;  %v11347_v27 = vadd.f32 1.0, %v1421_v5  ;;  %v1286_v11 = vmul.f32 %v1285_v43, %v11234_v33  ;;  %v11351_v6 = vmul.f32 %v1063_v24, %v11246_v42 }
 0x5df   : > { %v1523_v20 = vadd.f32 0.00028619796, %v1522_v29  ;;  %v1534_v25 = vadd.f32 0.001143296, %v1533_v47  ;;  %v11354_v8 = vadd.f32 %v11268_v4, %v933_v48  ;;  %vm935_vm10 = vweird.f32 %v11222_v54  ;;  %v9403_v47 = vld [vmem:[%s15065_s14 + $0x1f0] sm:$0xff] }
 0x5e0   : > { %v1386_v56 = vmul.f32 %v11294_v12, %v1385_v2  ;;  %v1336_v31 = vadd.f32 0.014752088, %v1335_v10  ;;  %v11358_v7 = vadd.f32 1.0, %v968_v16  ;;  %v1409_v43 = vadd.f32 0.18741608, %v1408_v3  ;;  %v9395_v10 = vld [vmem:[%s15065_s14 + $0x1b0] sm:$0xff]  ;;  %1919 = vmatpush.bf16.msra.mxu1 %v9403_v47  ;;  %vm11421_vm14 = vmor %vm935_vm10, %vm936_vm9 }
 0x5e1   : > { %v1300_v0 = vadd.f32 0.4994258, %v1299_v17  ;;  %v15066_v1 = vperm.slane %v11012_v50, 3  ;;  %v1325_v42 = vadd.f32 0.0036580483, %v1324_v39  ;;  %v1524_v48 = vmul.f32 %v1523_v20, %v11327_v63  ;;  %1905 = vmatpush.bf16.msra.mxu0 %v9395_v10 }
 0x5e2   : > { %v1535_v24 = vmul.f32 %v1534_v25, %v11327_v63  ;;  %v15067_v29 = vperm.slane %v11012_v50, 0  ;;  %v11372_v16 = vadd.f32 1.1283791, %v1370_v55  ;;  %v1394_v3 = vand.u32 2147483648, %v11249_v14 }
 0x5e3   : > { %v11362_v5 = vadd.f32 %v1261_v46, %v15066_v1  ;;  %9878 = vrcp.f32 %v11347_v27  ;;  %v1287_v17 = vadd.f32 0.05243302, %v1286_v11  ;;  %v1387_v39 = vadd.f32 %v11294_v12, %v1386_v56 }
 0x5e4   : > { %v11368_v2 = vadd.f32 %v1219_v15, %v15067_v29  ;;  %vm1389_vm11 = vweird.f32 %v11294_v12  ;;  %v1337_v46 = vmul.f32 %v1336_v31, %v11274_v51  ;;  %v1525_v58 = vadd.f32 0.0036580483, %v1524_v48 }
 0x5e5   : > { %v1410_v55 = vmul.f32 %v1409_v43, %v11144_v28  ;;  %v1301_v20 = vmul.f32 %v1300_v0, %v11234_v33  ;;  %v1536_v25 = vadd.f32 0.014752088, %v1535_v24  ;;  %v11383_v11 = vmul.f32 0.70710677, %v11362_v5  ;;  %v9388_v28 = vld [vmem:[%s15065_s14 + $0x178] sm:$0xff]  ;;  %v9394_v43 = vld [vmem:[%s15065_s14 + $0x1a8] sm:$0xff] }
 0x5e6   : > { %vm1388_vm12 = vweird.f32 %v11249_v14  ;;  %v1392_v15 = vand.u32 2147483647, %v11249_v14  ;;  %v1326_v56 = vmul.f32 %v1325_v42, %v11274_v51  ;;  %v11389_v31 = vmul.f32 0.70710677, %v11368_v2  ;;  %v9402_v24 = vld [vmem:[%s15065_s14 + $0x1e8] sm:$0xff]  ;;  %1890 = vmatpush.bf16.msra.mxu3 %v9388_v28  ;;  %1906 = vmatpush.bf16.msra.mxu0 %v9394_v43 }
 0x5e7   : > { %vm11395_vm13 = vmor %vm1388_vm12, %vm1389_vm11  ;;  %v1288_v1 = vmul.f32 %v1287_v17, %v11234_v33  ;;  %v11401_v14 = vmul.f32 0.5, %v11263_v30  ;;  %v1526_v42 = vmul.f32 %v1525_v58, %v11327_v63  ;;  %v1537_v48 = vmul.f32 %v1536_v25, %v11327_v63  ;;  %v9379_v30 = vld [vmem:[%s15065_s14 + $0x130] sm:$0xff]  ;;  %1920 = vmatpush.bf16.msra.mxu1 %v9402_v24 }
 0x5e8   : > { %v1391_v29 = vsel %vm11395_vm13, %v11294_v12, %v1387_v39  ;;  %v1338_v10 = vadd.f32 0.112945676, %v1337_v46  ;;  %v1560_v47 = vmul.f32 %v11383_v11, %v11383_v11  ;;  %v1440_v34 = vmul.f32 %v11389_v31, %v11389_v31  ;;  %v9387_v17 = vld [vmem:[%s15065_s14 + $0x170] sm:$0xff]  ;;  %1877 = vmatpush.bf16.msra.mxu2 %v9379_v30 }
 0x5e9   : > { %v11415_v58 = vpop.eup %9878  ;;  %v1395_v39 = vor.u32 1.1754944e-38, %v1394_v3  ;;  %v1411_v46 = vadd.f32 1.1283791, %v1410_v55  ;;  %v11425_v25 = vadd.f32 1.0, %v1301_v20  ;;  %v1538_v28 = vadd.f32 0.112945676, %v1537_v48 }
 0x5ea   : > { %vm1393_vm15 = vcmp.eq.f32.partialorder %v1392_v15, 8.507059e+37  ;;  %v1327_v0 = vadd.f32 0.05243302, %v1326_v56  ;;  %v11431_v60 = vmin.f32 %v1560_v47, 16.0  ;;  %v1527_v3 = vadd.f32 0.05243302, %v1526_v42  ;;  %1891 = vmatpush.bf16.msra.mxu3 %v9387_v17  ;;  %1907 = vmatpush.bf16.msra.mxu0 %v9393_v9 }
 0x5eb   : > { %v1396_v32 = vsel %vm1393_vm15, %v1395_v39, %v1391_v29  ;;  %v1539_v55 = vmul.f32 %v1538_v28, %v11327_v63  ;;  %v11436_v20 = vmin.f32 %v1440_v34, 16.0  ;;  %v1424_v48 = vmul.f32 %v11415_v58, %v11347_v27  ;;  %v9378_v47 = vld [vmem:[%s15065_s14 + $0x128] sm:$0xff]  ;;  %1921 = vmatpush.bf16.msra.mxu1 %v9401_v40  ;;  %v9392_v17 = vld [vmem:[%s15065_s14 + $0x198] sm:$0xff] }
 0x5ec   : > { %v1289_v24 = vadd.f32 0.18741608, %v1288_v1  ;;  %v1339_v15 = vmul.f32 %v1338_v10, %v11274_v51  ;;  %v1562_v56 = vmul.f32 2.1237322e-06, %v11431_v60  ;;  %9880 = vrcp.f32 %v11425_v25  ;;  %1878 = vmatpush.bf16.msra.mxu2 %v9378_v47  ;;  %v9386_v9 = vld [vmem:[%s15065_s14 + $0x168] sm:$0xff]  ;;  %v9400_v40 = vld [vmem:[%s15065_s14 + $0x1d8] sm:$0xff] }
 0x5ed   : > { %v1540_v42 = vadd.f32 0.4994258, %v1539_v55  ;;  %v1573_v29 = vmul.f32 3.8918573e-05, %v11431_v60  ;;  %v1442_v34 = vmul.f32 2.1237322e-06, %v11436_v20  ;;  %9882 = vrcp.f32 %v11358_v7 }
 0x5ee   : > { %v1372_v1 = vmul.f32 %v11372_v16, %v11081_v53  ;;  %v1563_v10 = vadd.f32 0.00028619796, %v1562_v56  ;;  %v1453_v30 = vmul.f32 3.8918573e-05, %v11436_v20  ;;  %v1528_v39 = vmul.f32 %v1527_v3, %v11327_v63  ;;  %1892 = vmatpush.bf16.msra.mxu3 %v9386_v9  ;;  %1908 = vmatpush.bf16.msra.mxu0 %v9392_v17  ;;  %v9377_v56 = vld [vmem:[%s15065_s14 + $0x120] sm:$0xff] }
 0x5ef   : > { %v1541_v28 = vmul.f32 %v1540_v42, %v11327_v63  ;;  %v1574_v55 = vadd.f32 0.001143296, %v1573_v29  ;;  %v1443_v43 = vadd.f32 0.00028619796, %v1442_v34  ;;  %v11456_v57 = vmul.f32 %v1411_v46, %v11112_v36  ;;  %v9385_v47 = vld [vmem:[%s15065_s14 + $0x160] sm:$0xff]  ;;  %1922 = vmatpush.bf16.msra.mxu1 %v9400_v40  ;;  %v9399_v34 = vld [vmem:[%s15065_s14 + $0x1d0] sm:$0xff] }
 0x5f0   : > { %v1397_v45 = vmul.f32 %v1396_v32, %v1372_v1  ;;  %v1425_v53 = vsub.f32 1.0, %v1424_v48  ;;  %v1340_v16 = vadd.f32 0.4994258, %v1339_v15  ;;  %v1434_v44 = vand.u32 2147483648, %v11347_v27  ;;  %v1233_v32 = vpop.f32.mrf.mxu3  ;;  %1879 = vmatpush.bf16.msra.mxu2 %v9377_v56  ;;  %v9391_v15 = vld [vmem:[%s15065_s14 + $0x190] sm:$0xff]  ;;  %v9376_v56 = vld [vmem:[%s15065_s14 + $0x118] sm:$0xff] }
 0x5f1   : > { %v1328_v3 = vmul.f32 %v1327_v0, %v11274_v51  ;;  %v11462_v42 = vadd.f32 1.0, %v1541_v28  ;;  %v1575_v29 = vmul.f32 %v1574_v55, %v11431_v60  ;;  %vm1428_vm2 = vweird.f32 %v11347_v27 }
 0x5f2   : > { %v1564_v36 = vmul.f32 %v1563_v10, %v11431_v60  ;;  %v1444_v46 = vmul.f32 %v1443_v43, %v11436_v20  ;;  %v1454_v48 = vadd.f32 0.001143296, %v1453_v30  ;;  %v11470_v1 = vpop.eup %9880  ;;  %v1432_v0 = vand.u32 2147483647, %v11347_v27  ;;  %1893 = vmatpush.bf16.msra.mxu3 %v9385_v47  ;;  %1909 = vmatpush.bf16.msra.mxu0 %v9391_v15  ;;  %v9390_v47 = vld [vmem:[%s15065_s14 + $0x188] sm:$0xff] }
 0x5f3   : > { %v1290_v9 = vmul.f32 %v1289_v24, %v11234_v33  ;;  %v1529_v17 = vadd.f32 0.18741608, %v1528_v39  ;;  %9884 = vrcp.f32 %v11462_v42  ;;  %v11475_v28 = vpop.eup %9882  ;;  %v8000_v10 = vclamps-f32 %v1397_v45, 1.0  ;;  %1923 = vmatpush.bf16.msra.mxu1 %v9399_v34 }
 0x5f4   : > { %v1426_v43 = vmul.f32 %v11415_v58, %v1425_v53  ;;  %v1341_v30 = vmul.f32 %v1340_v16, %v11274_v51  ;;  %v15072_v55 = vperm.slane %v11012_v50, 1  ;;  %v11485_v33 = vor.u32 1.1754944e-38, %v1434_v44  ;;  %1880 = vmatpush.bf16.msra.mxu2 %v9376_v56 }
 0x5f5   : > { %v1329_v24 = vadd.f32 0.18741608, %v1328_v3  ;;  %v1576_v39 = vadd.f32 0.014752088, %v1575_v29  ;;  %v1455_v45 = vmul.f32 %v1454_v48, %v11436_v20  ;;  %vm1429_vm3 = vweird.f32 %v11415_v58  ;;  %v9398_v48 = vld [vmem:[%s15065_s14 + $0x1c8] sm:$0xff] }
 0x5f6   : > { %v11481_v40 = vadd.f32 %v1233_v32, %v15072_v55  ;;  %v1304_v50 = vmul.f32 %v11470_v1, %v11425_v25  ;;  %v1565_v53 = vadd.f32 0.0036580483, %v1564_v36  ;;  %v1445_v16 = vadd.f32 0.0036580483, %v1444_v46  ;;  %1894 = vmatpush.bf16.msra.mxu3 %v9384_v22  ;;  %1910 = vmatpush.bf16.msra.mxu0 %v9390_v47  ;;  %v9375_v46 = vld [vmem:[%s15065_s14 + $0x110] sm:$0xff]  ;;  %vm11530_vm5 = vmor %vm1428_vm2, %vm1429_vm3 }
 0x5f7   : > { %v11492_v32 = vadd.f32 1.1283791, %v1290_v9  ;;  %v1530_v44 = vmul.f32 %v1529_v17, %v11327_v63  ;;  %v1577_v3 = vmul.f32 %v1576_v39, %v11431_v60  ;;  %v1456_v29 = vadd.f32 0.014752088, %v1455_v45  ;;  %v9383_v63 = vld [vmem:[%s15065_s14 + $0x150] sm:$0xff]  ;;  %1924 = vmatpush.bf16.msra.mxu1 %v9398_v48  ;;  %v9364_v48 = vld [vmem:[%s15065_s14 + $0xf8] sm:$0xff] }
 0x5f8   : > { %15073 = vst [vmem:[#allocation100_spill] sm:$0xff] %v11481_v40  ;;  %v11497_v15 = vadd.f32 1.0, %v8000_v10  ;;  %v11500_v34 = vadd.f32 %v11415_v58, %v1426_v43  ;;  %v11502_v55 = vadd.f32 1.0, %v1341_v30  ;;  %v11505_v36 = vmul.f32 0.70710677, %v11481_v40  ;;  %1881 = vmatpush.bf16.msra.mxu2 %v9375_v46 }
 0x5f9   : > { %v11509_v9 = vpop.eup %9884  ;;  %v11513_v10 = vmul.f32 %v1329_v24, %v11274_v51  ;;  %v1578_v43 = vadd.f32 0.112945676, %v1577_v3  ;;  %v1457_v30 = vmul.f32 %v1456_v29, %v11436_v20  ;;  %vm11516_vm4 = vcmp.eq.f32.partialorder %v1432_v0, 8.507059e+37  ;;  %v9389_v51 = vld [vmem:[%s15065_s14 + $0x180] sm:$0xff] }
 0x5fa   : > { %15074 = vst [vmem:[#allocation101_spill] sm:$0xff] %v11505_v36  ;;  %v1305_v56 = vsub.f32 1.0, %v1304_v50  ;;  %v1544_v39 = vmul.f32 %v11509_v9, %v11462_v42  ;;  %v1566_v45 = vmul.f32 %v1565_v53, %v11431_v60  ;;  %v1446_v47 = vmul.f32 %v1445_v16, %v11436_v20  ;;  %v9397_v24 = vld [vmem:[%s15065_s14 + $0x1c0] sm:$0xff]  ;;  %v9356_v16 = vld [vmem:[%s15065_s14 + $0xb8] sm:$0xff]  ;;  %1895 = vmatpush.bf16.msra.mxu3 %v9383_v63 }
 0x5fb   : > { %v1531_v50 = vadd.f32 1.1283791, %v1530_v44  ;;  %v1579_v3 = vmul.f32 %v1578_v43, %v11431_v60  ;;  %v1458_v29 = vadd.f32 0.112945676, %v1457_v30  ;;  %v1480_v53 = vmul.f32 %v11505_v36, %v11505_v36  ;;  %1911 = vmatpush.bf16.msra.mxu0 %v9389_v51  ;;  %v9374_v44 = vld [vmem:[%s15065_s14 + $0x108] sm:$0xff]  ;;  %1925 = vmatpush.bf16.msra.mxu1 %v9397_v24  ;;  %v9355_v24 = vld [vmem:[%s15065_s14 + $0xb0] sm:$0xff] }
 0x5fc   : > { %v1431_v46 = vsel %vm11530_vm5, %v11415_v58, %v11500_v34  ;;  %9886 = vrcp.f32 %v11502_v55  ;;  %v1545_v27 = vsub.f32 1.0, %v1544_v39  ;;  %v1552_v17 = vand.u32 2147483647, %v11462_v42  ;;  %v9382_v43 = vld [vmem:[%s15065_s14 + $0x148] sm:$0xff]  ;;  %1882 = vmatpush.bf16.msra.mxu2 %v9374_v44 }
 0x5fd   : > { %v1554_v30 = vand.u32 2147483648, %v11462_v42  ;;  %v1580_v40 = vadd.f32 0.4994258, %v1579_v3  ;;  %v1459_v36 = vmul.f32 %v1458_v29, %v11436_v20  ;;  %v11549_v52 = vmin.f32 %v1480_v53, 16.0  ;;  %v9363_v29 = vld [vmem:[%s15065_s14 + $0xf0] sm:$0xff] }
 0x5fe   : > { %v1546_v58 = vmul.f32 %v11509_v9, %v1545_v27  ;;  %vm1549_vm6 = vweird.f32 %v11509_v9  ;;  %v1567_v34 = vadd.f32 0.05243302, %v1566_v45  ;;  %v1447_v63 = vadd.f32 0.05243302, %v1446_v47  ;;  %1896 = vmatpush.bf16.msra.mxu3 %v9382_v43  ;;  %v9373_v47 = vld [vmem:[%s15065_s14 + $0x100] sm:$0xff] }
 0x5ff   : > { %2152 = vmatpush.bf16.msrb.mxu0 %v9356_v16  ;;  %2166 = vmatpush.bf16.msrb.mxu1 %v9364_v48  ;;  %v1306_v39 = vmul.f32 %v11470_v1, %v1305_v56  ;;  %v1581_v51 = vmul.f32 %v1580_v40, %v11431_v60  ;;  %v1460_v0 = vadd.f32 0.4994258, %v1459_v36  ;;  %v1482_v3 = vmul.f32 2.1237322e-06, %v11549_v52  ;;  %v9381_v56 = vld [vmem:[%s15065_s14 + $0x140] sm:$0xff] }
 0x600   : > { %v1532_v53 = vmul.f32 %v1531_v50, %v11288_v19  ;;  %v1547_v16 = vadd.f32 %v11509_v9, %v1546_v58  ;;  %vm1548_vm7 = vweird.f32 %v11462_v42  ;;  %v1493_v45 = vmul.f32 3.8918573e-05, %v11549_v52  ;;  %v9340_v42 = vld [vmem:[%s15065_s14 + $0x38] sm:$0xff]  ;;  %1883 = vmatpush.bf16.msra.mxu2 %v9373_v47 }
 0x601   : > { %vm11566_vm8 = vmor %vm1548_vm7, %vm1549_vm6  ;;  %v1555_v36 = vor.u32 1.1754944e-38, %v1554_v30  ;;  %v11570_v48 = vadd.f32 1.0, %v1581_v51  ;;  %v1461_v19 = vmul.f32 %v1460_v0, %v11436_v20  ;;  %v1483_v50 = vadd.f32 0.00028619796, %v1482_v3  ;;  %v9348_v30 = vld [vmem:[%s15065_s14 + $0x78] sm:$0xff] }
 0x602   : > { %v11574_v27 = vpop.eup %9886  ;;  %v1551_v44 = vsel %vm11566_vm8, %v11509_v9, %v1547_v16  ;;  %vm1553_vm9 = vcmp.eq.f32.partialorder %v1552_v17, 8.507059e+37  ;;  %v1568_v43 = vmul.f32 %v1567_v34, %v11431_v60  ;;  %v1494_v58 = vadd.f32 0.001143296, %v1493_v45  ;;  %v9354_v9 = vld [vmem:[%s15065_s14 + $0xa8] sm:$0xff]  ;;  %1897 = vmatpush.bf16.msra.mxu3 %v9381_v56  ;;  %v9339_v16 = vld [vmem:[%s15065_s14 + $0x30] sm:$0xff] }
 0x603   : > { %2153 = vmatpush.bf16.msrb.mxu0 %v9355_v24  ;;  %2167 = vmatpush.bf16.msrb.mxu1 %v9363_v29  ;;  %v1436_v51 = vsel %vm11516_vm4, %v11485_v33, %v1431_v46  ;;  %v1556_v0 = vsel %vm1553_vm9, %v1555_v36, %v1551_v44  ;;  %9888 = vrcp.f32 %v11570_v48  ;;  %v1448_v3 = vmul.f32 %v1447_v63, %v11436_v20  ;;  %v9362_v17 = vld [vmem:[%s15065_s14 + $0xe8] sm:$0xff] }
 0x604   : > { %2124 = vmatpush.bf16.msrb.mxu2 %v9340_v42  ;;  %v1307_v34 = vadd.f32 %v11470_v1, %v1306_v39  ;;  %vm1309_vm10 = vweird.f32 %v11470_v1  ;;  %v1557_v24 = vmul.f32 %v1556_v0, %v1532_v53  ;;  %v11590_v29 = vadd.f32 1.0, %v1461_v19  ;;  %v9347_v39 = vld [vmem:[%s15065_s14 + $0x70] sm:$0xff]  ;;  %v9345_v19 = vld [vmem:[%s15065_s14 + $0x60] sm:$0xff] }
 0x605   : > { %v1314_v33 = vand.u32 2147483648, %v11425_v25  ;;  %v1344_v22 = vmul.f32 %v11574_v27, %v11502_v55  ;;  %v1484_v46 = vmul.f32 %v1483_v50, %v11549_v52  ;;  %v1495_v63 = vmul.f32 %v1494_v58, %v11549_v52 }
 0x606   : > { %2138 = vmatpush.bf16.msrb.mxu3 %v9348_v30  ;;  %vm1308_vm11 = vweird.f32 %v11425_v25  ;;  %v8004_v53 = vclamps-f32 %v1557_v24, 1.0  ;;  %v1569_v45 = vadd.f32 0.18741608, %v1568_v43  ;;  %9890 = vrcp.f32 %v11590_v29  ;;  %v9361_v43 = vld [vmem:[%s15065_s14 + $0xe0] sm:$0xff] }
 0x607   : > { %2154 = vmatpush.bf16.msrb.mxu0 %v9354_v9  ;;  %2168 = vmatpush.bf16.msrb.mxu1 %v9362_v17  ;;  %v11602_v47 = vmul.f32 %v1436_v51, %v11456_v57  ;;  %v1292_v56 = vmul.f32 %v11492_v32, %v11204_v26  ;;  %vm11608_vm12 = vmor %vm1308_vm11, %vm1309_vm10  ;;  %v15083_v36 = vand.u32 2147483647, %v11425_v25  ;;  %v1449_v50 = vadd.f32 0.18741608, %v1448_v3  ;;  %v9353_v57 = vld [vmem:[%s15065_s14 + $0xa0] sm:$0xff]  ;;  %v9338_v3 = vld [vmem:[%s15065_s14 + $0x28] sm:$0xff] }
 0x608   : > { %2125 = vmatpush.bf16.msrb.mxu2 %v9339_v16  ;;  %v1311_v26 = vsel %vm11608_vm12, %v11470_v1, %v1307_v34  ;;  %v1606_v32 = vadd.f32 1.0, %v8004_v53  ;;  %v1485_v42 = vadd.f32 0.0036580483, %v1484_v46  ;;  %v1496_v44 = vadd.f32 0.014752088, %v1495_v63  ;;  %v9346_v9 = vld [vmem:[%s15065_s14 + $0x68] sm:$0xff] }
 0x609   : > { %vm11614_vm13 = vcmp.eq.f32.partialorder %v15083_v36, 8.507059e+37  ;;  %v11623_v58 = vpop.eup %9888  ;;  %v1610_v25 = vmul.f32 %v11497_v15, %v11272_v59  ;;  %v1315_v30 = vor.u32 1.1754944e-38, %v1314_v33  ;;  %v1345_v51 = vsub.f32 1.0, %v1344_v22  ;;  %v9337_v36 = vld [vmem:[%s15065_s14 + $0x20] sm:$0xff] }
 0x60a   : > { %v1352_v0 = vand.u32 2147483647, %v11502_v55  ;;  %2139 = vmatpush.bf16.msrb.mxu3 %v9347_v39  ;;  %v1614_v1 = vmul.f32 %v1606_v32, %v11401_v14  ;;  %v1570_v17 = vmul.f32 %v1569_v45, %v11431_v60  ;;  %v1584_v34 = vmul.f32 %v11623_v58, %v11570_v48  ;;  %v9352_v14 = vld [vmem:[%s15065_s14 + $0x98] sm:$0xff] }
 0x60b   : > { %2155 = vmatpush.bf16.msrb.mxu0 %v9353_v57  ;;  %v1497_v24 = vmul.f32 %v1496_v44, %v11549_v52  ;;  %2169 = vmatpush.bf16.msrb.mxu1 %v9361_v43  ;;  %v8001_v59 = vclamps-f32 %v11602_v47, 1.0  ;;  %v1316_v15 = vsel %vm11614_vm13, %v1315_v30, %v1311_v26  ;;  %v1354_v33 = vand.u32 2147483648, %v11502_v55  ;;  %v9360_v60 = vld [vmem:[%s15065_s14 + $0xd8] sm:$0xff]  ;;  %v9351_v30 = vld [vmem:[%s15065_s14 + $0x90] sm:$0xff] }
 0x60c   : > { %v1450_v22 = vmul.f32 %v1449_v50, %v11436_v20  ;;  %2126 = vmatpush.bf16.msrb.mxu2 %v9338_v3  ;;  %v11642_v46 = vpop.eup %9890  ;;  %vm1349_vm15 = vweird.f32 %v11574_v27  ;;  %v1618_v63 = vpack.c.bf16 %v1614_v1, %v1610_v25  ;;  %v1585_v16 = vsub.f32 1.0, %v1584_v34 }
 0x60d   : > { %v1486_v39 = vmul.f32 %v1485_v42, %v11549_v52  ;;  %v1498_v53 = vadd.f32 0.112945676, %v1497_v24  ;;  %v1346_v45 = vmul.f32 %v11574_v27, %v1345_v51  ;;  %vm1589_vm2 = vweird.f32 %v11623_v58  ;;  %v9359_v51 = vld [vmem:[%s15065_s14 + $0xd0] sm:$0xff] }
 0x60e   : > { %v1594_v20 = vand.u32 2147483648, %v11570_v48  ;;  %v1464_v40 = vmul.f32 %v11642_v46, %v11590_v29  ;;  %2140 = vmatpush.bf16.msrb.mxu3 %v9346_v9  ;;  %v15086_v50 = vand.u32 2147483647, %v11222_v54  ;;  %vm1348_vm4 = vweird.f32 %v11502_v55  ;;  %1912 = vmatmul.bf16.vlgmr.msra.gmra.mxu0 %v1618_v63 }
 0x60f   : > { %2156 = vmatpush.bf16.msrb.mxu0 %v9352_v14  ;;  %v1571_v26 = vadd.f32 1.1283791, %v1570_v17  ;;  %v1586_v32 = vmul.f32 %v11623_v58, %v1585_v16  ;;  %v1592_v42 = vand.u32 2147483647, %v11570_v48  ;;  %v1499_v44 = vmul.f32 %v1498_v53, %v11549_v52  ;;  %2170 = vmatpush.bf16.msrb.mxu1 %v9360_v60  ;;  %v9350_v14 = vld [vmem:[%s15065_s14 + $0x88] sm:$0xff]  ;;  %vm11720_vm12 = vmor %vm1348_vm4, %vm1349_vm15 }
 0x610   : > { %vm11655_vm3 = vcmp.eq.f32.partialorder %v15086_v50, 8.507059e+37  ;;  %v11663_v43 = vmul.f32 %v1316_v15, %v1292_v56  ;;  %vm1588_vm5 = vweird.f32 %v11570_v48  ;;  %v1451_v54 = vadd.f32 1.1283791, %v1450_v22  ;;  %2127 = vmatpush.bf16.msrb.mxu2 %v9337_v36  ;;  %v9336_v15 = vld [vmem:[%s15065_s14 + $0x18] sm:$0xff] }
 0x611   : > { %v1465_v25 = vsub.f32 1.0, %v1464_v40  ;;  %v1587_v3 = vadd.f32 %v11623_v58, %v1586_v32  ;;  %vm11671_vm6 = vmor %vm1588_vm5, %vm1589_vm2  ;;  %v1474_v56 = vand.u32 2147483648, %v11590_v29  ;;  %v1487_v1 = vadd.f32 0.05243302, %v1486_v39  ;;  %v9344_v22 = vld [vmem:[%s15065_s14 + $0x58] sm:$0xff]  ;;  %v9358_v39 = vld [vmem:[%s15065_s14 + $0xc8] sm:$0xff] }
 0x612   : > { %v1500_v48 = vadd.f32 0.4994258, %v1499_v44  ;;  %v1595_v17 = vor.u32 1.1754944e-38, %v1594_v20  ;;  %vm1469_vm7 = vweird.f32 %v11642_v46  ;;  %v1472_v24 = vand.u32 2147483647, %v11590_v29  ;;  %2141 = vmatpush.bf16.msrb.mxu3 %v9345_v19 }
 0x613   : > { %v1466_v34 = vmul.f32 %v11642_v46, %v1465_v25  ;;  %2157 = vmatpush.bf16.msrb.mxu0 %v9351_v30  ;;  %v1572_v60 = vmul.f32 %v1571_v26, %v11383_v11  ;;  %v1591_v63 = vsel %vm11671_vm6, %v11623_v58, %v1587_v3  ;;  %vm1593_vm8 = vcmp.eq.f32.partialorder %v1592_v42, 8.507059e+37  ;;  %2171 = vmatpush.bf16.msrb.mxu1 %v9359_v51  ;;  %v9335_v11 = vld [vmem:[%s15065_s14 + $0x10] sm:$0xff]  ;;  %v9349_v42 = vld [vmem:[%s15065_s14 + $0x80] sm:$0xff] }
 0x614   : > { %v1501_v16 = vmul.f32 %v1500_v48, %v11549_v52  ;;  %v1347_v53 = vadd.f32 %v11574_v27, %v1346_v45  ;;  %v1596_v20 = vsel %vm1593_vm8, %v1595_v17, %v1591_v63  ;;  %vm1468_vm9 = vweird.f32 %v11590_v29  ;;  %2128 = vmatpush.bf16.msrb.mxu2 %v9336_v15  ;;  %v9343_v29 = vld [vmem:[%s15065_s14 + $0x50] sm:$0xff]  ;;  %v9357_v51 = vld [vmem:[%s15065_s14 + $0xc0] sm:$0xff] }
 0x615   : > { %v1467_v40 = vadd.f32 %v11642_v46, %v1466_v34  ;;  %v1597_v36 = vmul.f32 %v1596_v20, %v1572_v60  ;;  %vm1470_vm10 = vmor %vm1468_vm9, %vm1469_vm7  ;;  %v1475_v58 = vor.u32 1.1754944e-38, %v1474_v56  ;;  %v1488_v19 = vmul.f32 %v1487_v1, %v11549_v52 }
 0x616   : > { %v11695_v50 = vadd.f32 1.0, %v1501_v16  ;;  %v7998_v45 = vclamps-f32 %v11663_v43, 1.0  ;;  %v1452_v26 = vmul.f32 %v1451_v54, %v11389_v31  ;;  %vm1473_vm11 = vcmp.eq.f32.partialorder %v1472_v24, 8.507059e+37  ;;  %2142 = vmatpush.bf16.msrb.mxu3 %v9344_v22  ;;  %v9333_v24 = vld [vmem:[%s15065_s14] sm:$0xff] }
 0x617   : > { %v1471_v32 = vsel %vm1470_vm10, %v11642_v46, %v1467_v40  ;;  %2158 = vmatpush.bf16.msrb.mxu0 %v9350_v14  ;;  %v1603_v44 = vadd.f32 1.0, %v8001_v59  ;;  %v8005_v25 = vclamps-f32 %v1597_v36, 1.0  ;;  %2172 = vmatpush.bf16.msrb.mxu1 %v9358_v39  ;;  %v15091_v31 = vsel %vm11421_vm14, %v11268_v4, %v11354_v8  ;;  %v9334_v4 = vld [vmem:[%s15065_s14 + $0x8] sm:$0xff]  ;;  %v8280_v36 = vld [vmem:[%s15020_s3 + $0xa0] sm:$0xf] }
 0x618   : > { %v1476_v30 = vsel %vm1473_vm11, %v1475_v58, %v1471_v32  ;;  %9892 = vrcp.f32 %v11695_v50  ;;  %v943_v46 = vsel %vm11655_vm3, %v11320_v13, %v15091_v31  ;;  %v971_v43 = vmul.f32 %v11475_v28, %v11358_v7  ;;  %2129 = vmatpush.bf16.msrb.mxu2 %v9335_v11  ;;  %v9411_v58 = vld [vmem:[%s15020_s3 + $0xdc] sm:$0xf0]  ;;  %v8288_v32 = vld [vmem:[%s15020_s3 + $0xa8] sm:$0xf]  ;;  %v8290_v31 = vld [vmem:[%s15020_s3 + $0xe8] sm:$0xf0] }
 0x619   : > { %v1271_v12 = vmul.f32 0.5, %v11362_v5  ;;  %v1477_v59 = vmul.f32 %v1476_v30, %v1452_v26  ;;  %v1331_v8 = vadd.f32 1.1283791, %v11513_v10  ;;  %v1351_v13 = vsel %vm11720_vm12, %v11574_v27, %v1347_v53  ;;  %v9342_v5 = vld [vmem:[%s15065_s14 + $0x48] sm:$0xff] }
 0x61a   : > { %v1607_v57 = vadd.f32 1.0, %v8005_v25  ;;  %v1489_v54 = vadd.f32 0.18741608, %v1488_v19  ;;  %v7961_v3 = vclamps-f32 %v11351_v6, 1.0  ;;  %v1600_v9 = vadd.f32 1.0, %v7998_v45  ;;  %2143 = vmatpush.bf16.msrb.mxu3 %v9343_v29 }
 0x61b   : > { %v1355_v56 = vor.u32 1.1754944e-38, %v1354_v33  ;;  %v8002_v1 = vclamps-f32 %v1477_v59, 1.0  ;;  %2159 = vmatpush.bf16.msrb.mxu0 %v9349_v42  ;;  %v11735_v48 = vmul.f32 %v943_v46, %v11278_v35  ;;  %v1611_v10 = vmul.f32 %v1603_v44, %v11315_v49  ;;  %2173 = vmatpush.bf16.msrb.mxu1 %v9357_v51  ;;  %v9412_v29 = vld [vmem:[%s15020_s3 + $0xe4] sm:$0xf0]  ;;  %v9410_v51 = vld [vmem:[%s15020_s3 + $0xac] sm:$0xf] }
 0x61c   : > { %vm1353_vm14 = vcmp.eq.f32.partialorder %v1352_v0, 8.507059e+37  ;;  %v1615_v27 = vmul.f32 %v1607_v57, %v1271_v12  ;;  %v1264_v6 = vmul.f32 0.5, %v11182_v37  ;;  %v1268_v33 = vmul.f32 0.5, %v11368_v2  ;;  %2130 = vmatpush.bf16.msrb.mxu2 %v9334_v4  ;;  %v9341_v2 = vld [vmem:[%s15065_s14 + $0x40] sm:$0xff]  ;;  %v15097_v42 = vld [vmem:[#allocation97_spill] sm:$0xff] }
 0x61d   : > { %v1356_v17 = vsel %vm1353_vm14, %v1355_v56, %v1351_v13  ;;  %v1604_v34 = vadd.f32 1.0, %v8002_v1  ;;  %v972_v35 = vsub.f32 1.0, %v971_v43  ;;  %v1332_v22 = vmul.f32 %v1331_v8, %v11240_v38  ;;  %v8272_v46 = vld [vmem:[%s15020_s3 + $0x28] sm:$0xf]  ;;  %v15098_v43 = vld [vmem:[#allocation95_spill] sm:$0xff] }
 0x61e   : > { %v11743_v15 = vpop.eup %9892  ;;  %v1619_v49 = vpack.c.bf16 %v1615_v27, %v1611_v10  ;;  %v1490_v55 = vmul.f32 %v1489_v54, %v11549_v52  ;;  %v812_v0 = vsub.f32 1.0, %v11188_v61  ;;  %v1608_v14 = vmul.f32 %v1600_v9, %v1264_v6  ;;  %2144 = vmatpush.bf16.msrb.mxu3 %v9342_v5  ;;  %v9408_v4 = vld [vmem:[%s15020_s3 + $0x64] sm:$0xf0]  ;;  %v9406_v8 = vld [vmem:[%s15020_s3 + $0x2c] sm:$0xf] }
 0x61f   : > { %v1612_v60 = vmul.f32 %v1604_v34, %v1268_v33  ;;  %v1504_v37 = vmul.f32 %v11743_v15, %v11695_v50  ;;  %v7954_v63 = vclamps-f32 %v11198_v62, 1.0  ;;  %v956_v16 = vadd.f32 0.18741608, %v11341_v41  ;;  %v8274_v13 = vld [vmem:[%s15020_s3 + $0x68] sm:$0xf0] }
 0x620   : > { %v11753_v39 = vmul.f32 %v1356_v17, %v1332_v22  ;;  %v1514_v38 = vand.u32 2147483648, %v11695_v50  ;;  %1926 = vmatmul.bf16.vlgmr.msra.gmra.mxu1 %v1619_v49  ;;  %v15094_v52 = vpack.c.bf16 %v11323_v21, %v11195_v23  ;;  %v1074_v61 = vadd.f32 1.0, %v7961_v3  ;;  %2131 = vmatpush.bf16.msrb.mxu2 %v9333_v24  ;;  %v15099_v57 = vld [vmem:[#allocation101_spill] sm:$0xff]  ;;  %v8264_v56 = vld [vmem:[%s15020_s3 + $0x20] sm:$0xf] }
 0x621   : > { %v1616_v53 = vpack.c.bf16 %v1612_v60, %v1608_v14  ;;  %v1505_v20 = vsub.f32 1.0, %v1504_v37  ;;  %vm1509_vm13 = vweird.f32 %v11743_v15  ;;  %v7958_v62 = vclamps-f32 %v11735_v48, 1.0  ;;  %v9407_v1 = vld [vmem:[%s15020_s3 + $0x5c] sm:$0xf0]  ;;  %v15103_v60 = vld [vmem:[#allocation89_spill] sm:$0xff]  ;;  %v15104_v37 = vld [vmem:[#allocation98_spill] sm:$0xff] }
 0x622   : > { %2160 = vmatmul.bf16.vlgmr.msrb.gmra.mxu0 %v15094_v52  ;;  %v973_v41 = vmul.f32 %v11475_v28, %v972_v35  ;;  %v979_v40 = vand.u32 2147483647, %v11358_v7  ;;  %v1491_v11 = vadd.f32 1.1283791, %v1490_v55  ;;  %vm1508_vm15 = vweird.f32 %v11695_v50  ;;  %2145 = vmatpush.bf16.msrb.mxu3 %v9341_v2  ;;  %v15100_v35 = vld [vmem:[#allocation92_spill] sm:$0xff] }
 0x623   : > { %v1506_v21 = vmul.f32 %v11743_v15, %v1505_v20  ;;  %v1512_v23 = vand.u32 2147483647, %v11695_v50  ;;  %1884 = vmatmul.bf16.vlgmr.msra.gmra.mxu2 %v1616_v53  ;;  %vm815_vm2 = vweird.f32 %v11120_v18  ;;  %v7999_v19 = vclamps-f32 %v11753_v39, 1.0  ;;  %vm11772_vm3 = vmor %vm1508_vm15, %vm1509_vm13  ;;  %v15107_v39 = vld [vmem:[#allocation99_spill] sm:$0xff]  ;;  %v15108_v52 = vld [vmem:[#allocation96_spill] sm:$0xff] }
 0x624   : > { %v1515_v26 = vor.u32 1.1754944e-38, %v1514_v38  ;;  %v8281_v50 = vor.u32 %v9411_v58, %v8280_v36  ;;  %v813_v44 = vmul.f32 %v15097_v42, %v812_v0  ;;  %vm816_vm4 = vweird.f32 %v15097_v42  ;;  %v15109_v53 = vld [vmem:[#allocation100_spill] sm:$0xff]  ;;  %v15111_v58 = vld [vmem:[#allocation93_spill] sm:$0xff] }
 0x625   : > { %v1507_v25 = vadd.f32 %v11743_v15, %v1506_v21  ;;  %v8289_v30 = vor.u32 %v9412_v29, %v8288_v32  ;;  %v957_v47 = vmul.f32 %v956_v16, %v15098_v43  ;;  %v974_v12 = vadd.f32 %v11475_v28, %v973_v41  ;;  %vm11817_vm9 = vmor %vm815_vm2, %vm816_vm4  ;;  %v9409_v41 = vld [vmem:[%s15020_s3 + $0xa4] sm:$0xf]  ;;  %v15112_v29 = vld [vmem:[#allocation86_spill] sm:$0xff] }
 0x626   : > { %vm976_vm5 = vweird.f32 %v11475_v28  ;;  %2243 = vmatpush.bf16.msra.mxu2 %v8281_v50  ;;  %v8293_v59 = vor.u32 %v9410_v51, %v8290_v31  ;;  %v1492_v54 = vmul.f32 %v1491_v11, %v15099_v57  ;;  %vm1513_vm6 = vcmp.eq.f32.partialorder %v1512_v23, 8.507059e+37  ;;  %v15110_v23 = vld [vmem:[#allocation90_spill] sm:$0xff]  ;;  %v8266_v43 = vld [vmem:[%s15020_s3 + $0x60] sm:$0xf0]  ;;  %v15115_v57 = vld [vmem:[#allocation91_spill] sm:$0xff] }
 0x627   : > { %v1511_v3 = vsel %vm11772_vm3, %v11743_v15, %v1507_v25  ;;  %2271 = vmatpush.bf16.msra.mxu0 %v8289_v30  ;;  %v8273_v9 = vor.u32 %v9408_v4, %v8272_v46  ;;  %v981_v5 = vand.u32 2147483648, %v11358_v7  ;;  %v8277_v10 = vor.u32 %v9406_v8, %v8274_v13  ;;  %v9405_v46 = vld [vmem:[%s15020_s3 + $0x24] sm:$0xf] }
 0x628   : > { %v1516_v48 = vsel %vm1513_vm6, %v1515_v26, %v1511_v3  ;;  %2285 = vmatpush.bf16.msra.mxu1 %v8293_v59  ;;  %v8265_v27 = vor.u32 %v9407_v1, %v8264_v56  ;;  %v814_v6 = vadd.f32 %v15097_v42, %v813_v44  ;;  %v1071_v17 = vadd.f32 1.0, %v7958_v62  ;;  %v15114_v44 = vld [vmem:[#allocation94_spill] sm:$0xff]  ;;  %v15116_v3 = vld [vmem:[#allocation87_spill] sm:$0xff] }
 0x629   : > { %vm975_vm7 = vweird.f32 %v11358_v7  ;;  %v1517_v33 = vmul.f32 %v1516_v48, %v1492_v54  ;;  %v1067_v34 = vadd.f32 1.0, %v7954_v63  ;;  %v819_v24 = vand.u32 2147483647, %v11120_v18 }
 0x62a   : > { %v821_v15 = vand.u32 2147483648, %v11120_v18  ;;  %v1082_v22 = vmul.f32 %v1074_v61, %v15100_v35  ;;  %vm11804_vm8 = vmor %vm975_vm7, %vm976_vm5  ;;  %2244 = vmatpush.bf16.msra.mxu2 %v8265_v27  ;;  %v958_v55 = vadd.f32 1.1283791, %v957_v47  ;;  %v1601_v0 = vadd.f32 1.0, %v7999_v19  ;;  %v8282_v18 = vld [vmem:[%s15020_s3 + $0xe0] sm:$0xf0] }
 0x62b   : > { %v978_v7 = vsel %vm11804_vm8, %v11475_v28, %v974_v12  ;;  %v8003_v14 = vclamps-f32 %v1517_v33, 1.0  ;;  %2272 = vmatpush.bf16.msra.mxu0 %v8273_v9  ;;  %v1078_v2 = vmul.f32 %v15104_v37, %v15103_v60  ;;  %vm980_vm10 = vcmp.eq.f32.partialorder %v979_v40, 8.507059e+37 }
 0x62c   : > { %v982_v16 = vor.u32 1.1754944e-38, %v981_v5  ;;  %v1265_v38 = vmul.f32 0.5, %v15107_v39  ;;  %2286 = vmatpush.bf16.msra.mxu1 %v8277_v10  ;;  %v818_v28 = vsel %vm11817_vm9, %v15097_v42, %v814_v6  ;;  %v1079_v61 = vmul.f32 %v1071_v17, %v15108_v52  ;;  %v15113_v42 = vld [vmem:[#allocation88_spill] sm:$0xff] }
 0x62d   : > { %v1269_v20 = vmul.f32 0.5, %v15109_v53  ;;  %v1605_v62 = vadd.f32 1.0, %v8003_v14  ;;  %vm820_vm11 = vcmp.eq.f32.partialorder %v819_v24, 8.507059e+37  ;;  %v822_v11 = vor.u32 1.1754944e-38, %v821_v15  ;;  %v11850_v24 = vld [vmem:[%s15025_s8 + $0x8] sm:$0xff] }
 0x62e   : > { %v1086_v40 = vpack.c.bf16 %v1082_v22, %v1078_v2  ;;  %v983_v21 = vsel %vm980_vm10, %v982_v16, %v978_v7  ;;  %v1075_v36 = vmul.f32 %v1067_v34, %v15110_v23  ;;  %v959_v19 = vmul.f32 %v958_v55, %v15111_v58 }
 0x62f   : > { %v1609_v45 = vmul.f32 %v1601_v0, %v1265_v38  ;;  %v1613_v26 = vmul.f32 %v1605_v62, %v1269_v20  ;;  %v823_v50 = vsel %vm820_vm11, %v822_v11, %v818_v28  ;;  %v8285_v32 = vor.u32 %v9409_v41, %v8282_v18 }
 0x630   : > { %2174 = vmatmul.bf16.vlgmr.msrb.gmra.mxu1 %v1086_v40  ;;  %v799_v25 = vmul.f32 %v15114_v44, %v15113_v42  ;;  %v1083_v30 = vpack.c.bf16 %v1079_v61, %v1075_v36  ;;  %v984_v51 = vmul.f32 %v983_v21, %v959_v19  ;;  %v8269_v12 = vor.u32 %v9405_v46, %v8266_v43 }
 0x631   : > { %v1617_v31 = vpack.c.bf16 %v1613_v26, %v1609_v45  ;;  %v736_v54 = vmul.f32 0.5, %v15115_v57  ;;  %v732_v9 = vmul.f32 0.5, %v15116_v3  ;;  %v2191_v15 = vperm.slane %v11850_v24, 2 }
 0x632   : > { %8296 = vmatmul.msk.bf16.vlgmr.msra.gmra.mxu0 %vm318_vm0, %v15112_v29  ;;  %v824_v47 = vmul.f32 %v823_v50, %v799_v25  ;;  %v7959_v59 = vclamps-f32 %v984_v51, 1.0  ;;  %v2192_v41 = vperm.slane %v11850_v24, 3 }
 0x633   : > { %1898 = vmatmul.bf16.vlgmr.msra.gmra.mxu3 %v1617_v31  ;;  %2132 = vmatmul.bf16.vlgmr.msrb.gmra.mxu2 %v1083_v30 }
 0x634   : > { %2257 = vmatpush.bf16.msra.mxu3 %v8285_v32  ;;  %v7955_v4 = vclamps-f32 %v824_v47, 1.0  ;;  %v1072_v8 = vadd.f32 1.0, %v7959_v59 }
 0x636   : > { %v1068_v13 = vadd.f32 1.0, %v7955_v4  ;;  %v1080_v56 = vmul.f32 %v1072_v8, %v736_v54 }
 0x638   : > { %2258 = vmatpush.bf16.msra.mxu3 %v8269_v12  ;;  %v1076_v1 = vmul.f32 %v1068_v13, %v732_v9 }
 0x63a   : > { %v1084_v5 = vpack.c.bf16 %v1080_v56, %v1076_v1 }
 0x640   : > { %8297 = vmatmul.msk.bf16.vlgmr.msra.gmra.mxu1 %vm318_vm0, %v15112_v29 }
 0x643   : > { %2146 = vmatmul.bf16.vlgmr.msrb.gmra.mxu3 %v1084_v5  ;;  %8294 = vmatmul.msk.bf16.vlgmr.msra.gmra.mxu2 %vm318_vm0, %v15112_v29 }
 0x653   : > { %8295 = vmatmul.msk.bf16.vlgmr.msra.gmra.mxu3 %vm318_vm0, %v15112_v29 }
 0x68b   : > { %v1913_v48 = vpop.f32.mrf.mxu0 }
 0x693   : > { %v1915_v10 = vpop.f32.mrf.mxu0 }
 0x69d   : > { %v1927_v27 = vpop.f32.mrf.mxu1 }
 0x69f   : > { %v11845_v6 = vpop.f32.mrf.mxu0 }
 0x6a5   : > { %v1929_v17 = vpop.f32.mrf.mxu1 }
 0x6a6   : > { %v1885_v34 = vpop.f32.mrf.mxu2 }
 0x6a7   : > { %v11847_v33 = vpop.f32.mrf.mxu0 }
 0x6ad   : > { %v11853_v35 = vpop.f32.mrf.mxu1 }
 0x6ae   : > { %v1887_v49 = vpop.f32.mrf.mxu2 }
 0x6af   : > { %v2274_v22 = vpop.f32.mrf.mxu0 }
 0x6b0   : > { %v11855_v55 = vadd.f32 %v2274_v22, %v2191_v15 }
 0x6b2   : > { %v11858_v7 = vmul.f32 0.70710677, %v11855_v55 }
 0x6b4   : > { %v2389_v0 = vmul.f32 %v11858_v7, %v11858_v7 }
 0x6b5   : > { %v11864_v60 = vpop.f32.mrf.mxu1 }
 0x6b6   : > { %v11862_v14 = vmin.f32 %v2389_v0, 16.0  ;;  %v1899_v2 = vpop.f32.mrf.mxu3  ;;  %v2133_v28 = vpop.f32.mrf.mxu2 }
 0x6b7   : > { %v2276_v37 = vpop.f32.mrf.mxu0  ;;  %v1900_v38 = vadd.f32 %v1899_v2, %v1885_v34 }
 0x6b8   : > { %v2391_v63 = vmul.f32 2.1237322e-06, %v11862_v14  ;;  %v2402_v16 = vmul.f32 3.8918573e-05, %v11862_v14  ;;  %v11868_v39 = vadd.f32 %v2276_v37, %v2191_v15 }
 0x6b9   : > { %v1914_v61 = vadd.f32 %v1913_v48, %v1900_v38 }
 0x6ba   : > { %v2403_v52 = vadd.f32 0.001143296, %v2402_v16  ;;  %v2392_v53 = vadd.f32 0.00028619796, %v2391_v63  ;;  %v11871_v20 = vmul.f32 0.70710677, %v11868_v39 }
 0x6bb   : > { %v1928_v18 = vadd.f32 %v1927_v27, %v1914_v61 }
 0x6bc   : > { %v2404_v62 = vmul.f32 %v2403_v52, %v11862_v14  ;;  %v2549_v11 = vmul.f32 %v11871_v20, %v11871_v20  ;;  %v2393_v23 = vmul.f32 %v2392_v53, %v11862_v14  ;;  %v2189_v52 = vperm.slane %v11850_v24, 0 }
 0x6bd   : > { %v2134_v21 = vadd.f32 %v2133_v28, %v1928_v18  ;;  %v2288_v36 = vpop.f32.mrf.mxu1 }
 0x6be   : > { %v2405_v40 = vadd.f32 0.014752088, %v2404_v62  ;;  %v11878_v58 = vmin.f32 %v2549_v11, 16.0  ;;  %v1901_v19 = vpop.f32.mrf.mxu3  ;;  %v11881_v26 = vadd.f32 %v2288_v36, %v2192_v41  ;;  %v2394_v30 = vadd.f32 0.0036580483, %v2393_v23  ;;  %v2135_v43 = vpop.f32.mrf.mxu2 }
 0x6bf   : > { %v1902_v50 = vadd.f32 %v1901_v19, %v1887_v49 }
 0x6c0   : > { %v2406_v45 = vmul.f32 %v2405_v40, %v11862_v14  ;;  %v2551_v32 = vmul.f32 2.1237322e-06, %v11878_v58  ;;  %v2562_v42 = vmul.f32 3.8918573e-05, %v11878_v58  ;;  %v11886_v51 = vmul.f32 0.70710677, %v11881_v26 }
 0x6c1   : > { %v1916_v25 = vadd.f32 %v1915_v10, %v1902_v50  ;;  %v2395_v13 = vmul.f32 %v2394_v30, %v11862_v14 }
 0x6c2   : > { %v2407_v44 = vadd.f32 0.112945676, %v2406_v45  ;;  %v2563_v31 = vadd.f32 0.001143296, %v2562_v42  ;;  %v2552_v47 = vadd.f32 0.00028619796, %v2551_v32  ;;  %v2429_v12 = vmul.f32 %v11886_v51, %v11886_v51 }
 0x6c3   : > { %v1930_v59 = vadd.f32 %v1929_v17, %v1916_v25  ;;  %v2396_v49 = vadd.f32 0.05243302, %v2395_v13 }
 0x6c4   : > { %v2408_v46 = vmul.f32 %v2407_v44, %v11862_v14  ;;  %v2564_v4 = vmul.f32 %v2563_v31, %v11878_v58  ;;  %v11893_v57 = vmin.f32 %v2429_v12, 16.0  ;;  %v2553_v5 = vmul.f32 %v2552_v47, %v11878_v58 }
 0x6c5   : > { %v2136_v54 = vadd.f32 %v2135_v43, %v1930_v59  ;;  %v2290_v9 = vpop.f32.mrf.mxu1  ;;  %v2397_v61 = vmul.f32 %v2396_v49, %v11862_v14 }
 0x6c6   : > { %v2409_v8 = vadd.f32 0.4994258, %v2408_v46  ;;  %v2565_v3 = vadd.f32 0.014752088, %v2564_v4  ;;  %v2147_v56 = vpop.f32.mrf.mxu3  ;;  %v2431_v10 = vmul.f32 2.1237322e-06, %v11893_v57  ;;  %v11902_v15 = vadd.f32 %v2290_v9, %v2192_v41  ;;  %v2246_v62 = vpop.f32.mrf.mxu2 }
 0x6c7   : > { %v2148_v48 = vadd.f32 %v2147_v56, %v2134_v21  ;;  %v2442_v27 = vmul.f32 3.8918573e-05, %v11893_v57  ;;  %v2554_v2 = vadd.f32 0.0036580483, %v2553_v5  ;;  %v11927_v45 = vadd.f32 %v2246_v62, %v2189_v52 }
 0x6c8   : > { %v2410_v1 = vmul.f32 %v2409_v8, %v11862_v14  ;;  %v2566_v34 = vmul.f32 %v2565_v3, %v11878_v58  ;;  %v2432_v0 = vadd.f32 0.00028619796, %v2431_v10  ;;  %v11911_v28 = vmul.f32 0.70710677, %v11902_v15 }
 0x6c9   : > { %v2162_v22 = vadd.f32 %v11845_v6, %v2148_v48  ;;  %v2443_v37 = vadd.f32 0.001143296, %v2442_v27  ;;  %v2555_v18 = vmul.f32 %v2554_v2, %v11878_v58  ;;  %v2398_v50 = vadd.f32 0.18741608, %v2397_v61 }
 0x6ca   : > { %v11899_v17 = vadd.f32 1.0, %v2410_v1  ;;  %v2567_v38 = vadd.f32 0.112945676, %v2566_v34  ;;  %v2433_v6 = vmul.f32 %v2432_v0, %v11893_v57  ;;  %v2589_v11 = vmul.f32 %v11911_v28, %v11911_v28 }
 0x6cb   : > { %v11907_v63 = vadd.f32 %v11853_v35, %v2162_v22  ;;  %v2444_v16 = vmul.f32 %v2443_v37, %v11893_v57  ;;  %v2556_v30 = vadd.f32 0.05243302, %v2555_v18  ;;  %v11942_v8 = vmul.f32 0.70710677, %v11927_v45 }
 0x6cc   : > { %9894 = vrcp.f32 %v11899_v17  ;;  %v2568_v35 = vmul.f32 %v2567_v38, %v11878_v58  ;;  %v11923_v19 = vmin.f32 %v2589_v11, 16.0  ;;  %v2434_v42 = vadd.f32 0.0036580483, %v2433_v6 }
 0x6cd   : > { %v2445_v53 = vadd.f32 0.014752088, %v2444_v16  ;;  %v2399_v9 = vmul.f32 %v2398_v50, %v11862_v14  ;;  %v2557_v56 = vmul.f32 %v2556_v30, %v11878_v58  ;;  %v2309_v48 = vmul.f32 %v11942_v8, %v11942_v8 }
 0x6ce   : > { %v2149_v41 = vpop.f32.mrf.mxu3  ;;  %v2569_v36 = vadd.f32 0.4994258, %v2568_v35  ;;  %v2591_v46 = vmul.f32 2.1237322e-06, %v11923_v19  ;;  %v2602_v47 = vmul.f32 3.8918573e-05, %v11923_v19  ;;  %vm2417_vm14 = vweird.f32 %v11899_v17 }
 0x6cf   : > { %v2446_v40 = vmul.f32 %v2445_v53, %v11893_v57  ;;  %v2150_v21 = vadd.f32 %v2149_v41, %v2136_v54  ;;  %v2190_v10 = vperm.slane %v11850_v24, 1  ;;  %v2400_v0 = vadd.f32 1.1283791, %v2399_v9  ;;  %v9444_v9 = vld [vmem:[%s15065_s14 + $0x2f8] sm:$0xff] }
 0x6d0   : > { %v2570_v31 = vmul.f32 %v2569_v36, %v11878_v58  ;;  %v2592_v4 = vadd.f32 0.00028619796, %v2591_v46  ;;  %v2603_v3 = vadd.f32 0.001143296, %v2602_v47  ;;  %v2558_v37 = vadd.f32 0.18741608, %v2557_v56  ;;  %2947 = vmatpush.bf16.msrb.mxu1 %v9444_v9 }
 0x6d1   : > { %v2447_v44 = vadd.f32 0.112945676, %v2446_v40  ;;  %v2164_v25 = vadd.f32 %v11847_v33, %v2150_v21  ;;  %v2435_v33 = vmul.f32 %v2434_v42, %v11893_v57  ;;  %v11958_v16 = vmul.f32 0.5, %v11855_v55 }
 0x6d2   : > { %v11921_v23 = vpop.eup %9894  ;;  %v11939_v59 = vadd.f32 1.0, %v2570_v31  ;;  %v2593_v1 = vmul.f32 %v2592_v4, %v11923_v19  ;;  %v2604_v5 = vmul.f32 %v2603_v3, %v11923_v19  ;;  %v2421_v38 = vand.u32 2147483647, %v11899_v17  ;;  %v9436_v3 = vld [vmem:[%s15065_s14 + $0x2b8] sm:$0xff] }
 0x6d3   : > { %v2413_v32 = vmul.f32 %v11921_v23, %v11899_v17  ;;  %v2448_v43 = vmul.f32 %v2447_v44, %v11893_v57  ;;  %v11937_v12 = vadd.f32 %v11864_v60, %v2164_v25  ;;  %v2436_v34 = vadd.f32 0.05243302, %v2435_v33  ;;  %2933 = vmatpush.bf16.msrb.mxu0 %v9436_v3 }
 0x6d4   : > { %9896 = vrcp.f32 %v11939_v59  ;;  %v2594_v14 = vadd.f32 0.0036580483, %v2593_v1  ;;  %v2605_v2 = vadd.f32 0.014752088, %v2604_v5  ;;  %v11962_v61 = vmin.f32 %v2309_v48, 16.0 }
 0x6d5   : > { %v2414_v13 = vsub.f32 1.0, %v2413_v32  ;;  %v2449_v54 = vadd.f32 0.4994258, %v2448_v43  ;;  %v2423_v53 = vand.u32 2147483648, %v11899_v17  ;;  %vm2418_vm12 = vweird.f32 %v11921_v23 }
 0x6d6   : > { %v2260_v49 = vpop.f32.mrf.mxu3  ;;  %v2595_v62 = vmul.f32 %v2594_v14, %v11923_v19  ;;  %v2606_v41 = vmul.f32 %v2605_v2, %v11923_v19  ;;  %v2437_v35 = vmul.f32 %v2436_v34, %v11893_v57  ;;  %v2401_v40 = vmul.f32 %v2400_v0, %v11858_v7  ;;  %vm11986_vm13 = vmor %vm2417_vm14, %vm2418_vm12 }
 0x6d7   : > { %v2450_v60 = vmul.f32 %v2449_v54, %v11893_v57  ;;  %v2415_v27 = vmul.f32 %v11921_v23, %v2414_v13  ;;  %v11971_v18 = vadd.f32 %v2260_v49, %v2190_v10  ;;  %v11980_v21 = vmul.f32 0.5, %v11868_v39 }
 0x6d8   : > { %v2559_v36 = vmul.f32 %v2558_v37, %v11878_v58  ;;  %v2607_v50 = vadd.f32 0.112945676, %v2606_v41  ;;  %v2311_v42 = vmul.f32 2.1237322e-06, %v11962_v61  ;;  %v2322_v44 = vmul.f32 3.8918573e-05, %v11962_v61 }
 0x6d9   : > { %v11955_v22 = vadd.f32 1.0, %v2450_v60  ;;  %v2416_v55 = vadd.f32 %v11921_v23, %v2415_v27  ;;  %vm11990_vm15 = vcmp.eq.f32.partialorder %v2421_v38, 8.507059e+37  ;;  %v2596_v39 = vadd.f32 0.05243302, %v2595_v62  ;;  %v9435_v62 = vld [vmem:[%s15065_s14 + $0x2b0] sm:$0xff] }
 0x6da   : > { %v11964_v6 = vpop.eup %9896  ;;  %v2608_v58 = vmul.f32 %v2607_v50, %v11923_v19  ;;  %v11996_v17 = vmul.f32 0.70710677, %v11971_v18  ;;  %v2424_v46 = vor.u32 1.1754944e-38, %v2423_v53  ;;  %v2438_v43 = vadd.f32 0.18741608, %v2437_v35  ;;  %v2248_v53 = vpop.f32.mrf.mxu2  ;;  %v9443_v41 = vld [vmem:[%s15065_s14 + $0x2f0] sm:$0xff]  ;;  %2934 = vmatpush.bf16.msrb.mxu0 %v9435_v62 }
 0x6db   : > { %9898 = vrcp.f32 %v11955_v22  ;;  %v2573_v11 = vmul.f32 %v11964_v6, %v11939_v59  ;;  %v2420_v31 = vsel %vm11986_vm13, %v11921_v23, %v2416_v55  ;;  %v2323_v47 = vadd.f32 0.001143296, %v2322_v44  ;;  %2948 = vmatpush.bf16.msrb.mxu1 %v9443_v41 }
 0x6dc   : > { %v2560_v13 = vadd.f32 1.1283791, %v2559_v36  ;;  %v2609_v54 = vadd.f32 0.4994258, %v2608_v58  ;;  %vm2577_vm2 = vweird.f32 %v11939_v59  ;;  %v2312_v56 = vadd.f32 0.00028619796, %v2311_v42 }
 0x6dd   : > { %v2574_v32 = vsub.f32 1.0, %v2573_v11  ;;  %v2324_v60 = vmul.f32 %v2323_v47, %v11962_v61  ;;  %v2349_v23 = vmul.f32 %v11996_v17, %v11996_v17  ;;  %v2425_v1 = vsel %vm11990_vm15, %v2424_v46, %v2420_v31  ;;  %v9442_v47 = vld [vmem:[%s15065_s14 + $0x2e8] sm:$0xff]  ;;  %v9432_v42 = vld [vmem:[%s15065_s14 + $0x298] sm:$0xff] }
 0x6de   : > { %v2597_v48 = vmul.f32 %v2596_v39, %v11923_v19  ;;  %v2610_v27 = vmul.f32 %v2609_v54, %v11923_v19  ;;  %v2439_v34 = vmul.f32 %v2438_v43, %v11893_v57  ;;  %vm2578_vm3 = vweird.f32 %v11964_v6  ;;  %v9440_v31 = vld [vmem:[%s15065_s14 + $0x2d8] sm:$0xff] }
 0x6df   : > { %v2575_v33 = vmul.f32 %v11964_v6, %v2574_v32  ;;  %v2581_v14 = vand.u32 2147483647, %v11939_v59  ;;  %v2325_v49 = vadd.f32 0.014752088, %v2324_v60  ;;  %v12023_v38 = vmin.f32 %v2349_v23, 16.0  ;;  %vm12041_vm6 = vmor %vm2577_vm2, %vm2578_vm3  ;;  %2949 = vmatpush.bf16.msrb.mxu1 %v9442_v47  ;;  %v9420_v60 = vld [vmem:[%s15065_s14 + $0x238] sm:$0xff] }
 0x6e0   : > { %v12021_v2 = vadd.f32 1.0, %v2610_v27  ;;  %v12027_v55 = vmul.f32 %v2425_v1, %v2401_v40  ;;  %v2583_v57 = vand.u32 2147483648, %v11939_v59  ;;  %v2313_v35 = vmul.f32 %v2312_v56, %v11962_v61  ;;  %v2262_v27 = vpop.f32.mrf.mxu3  ;;  %2905 = vmatpush.bf16.msrb.mxu2 %v9420_v60 }
 0x6e1   : > { %v11998_v30 = vpop.eup %9898  ;;  %v2576_v37 = vadd.f32 %v11964_v6, %v2575_v33  ;;  %v2326_v11 = vmul.f32 %v2325_v49, %v11962_v61  ;;  %v2598_v50 = vadd.f32 0.18741608, %v2597_v48  ;;  %v2440_v32 = vadd.f32 1.1283791, %v2439_v34  ;;  %v9428_v34 = vld [vmem:[%s15065_s14 + $0x278] sm:$0xff]  ;;  %v9441_v49 = vld [vmem:[%s15065_s14 + $0x2e0] sm:$0xff] }
 0x6e2   : > { %v2453_v4 = vmul.f32 %v11998_v30, %v11955_v22  ;;  %vm2458_vm4 = vweird.f32 %v11998_v30  ;;  %9900 = vrcp.f32 %v12021_v2  ;;  %vm2457_vm5 = vweird.f32 %v11955_v22  ;;  %2919 = vmatpush.bf16.msrb.mxu3 %v9428_v34 }
 0x6e3   : > { %v2463_v40 = vand.u32 2147483648, %v11955_v22  ;;  %v12047_v44 = vadd.f32 %v2248_v53, %v2189_v52  ;;  %v2461_v25 = vand.u32 2147483647, %v11955_v22  ;;  %v2580_v7 = vsel %vm12041_vm6, %v11964_v6, %v2576_v37  ;;  %vm12054_vm7 = vmor %vm2457_vm5, %vm2458_vm4  ;;  %v9434_v52 = vld [vmem:[%s15065_s14 + $0x2a8] sm:$0xff]  ;;  %2950 = vmatpush.bf16.msrb.mxu1 %v9441_v49 }
 0x6e4   : > { %v2454_v5 = vsub.f32 1.0, %v2453_v4  ;;  %v2327_v39 = vadd.f32 0.112945676, %v2326_v11  ;;  %v2362_v58 = vmul.f32 3.8918573e-05, %v12023_v38  ;;  %v2561_v59 = vmul.f32 %v2560_v13, %v11871_v20  ;;  %2935 = vmatpush.bf16.msrb.mxu0 %v9434_v52 }
 0x6e5   : > { %vm2582_vm8 = vcmp.eq.f32.partialorder %v2581_v14, 8.507059e+37  ;;  %v2584_v46 = vor.u32 1.1754944e-38, %v2583_v57  ;;  %v2314_v43 = vadd.f32 0.0036580483, %v2313_v35  ;;  %v8300_v22 = vclamps-f32 %v12027_v55, 1.0  ;;  %v9433_v14 = vld [vmem:[%s15065_s14 + $0x2a0] sm:$0xff] }
 0x6e6   : > { %v2455_v0 = vmul.f32 %v11998_v30, %v2454_v5  ;;  %v2599_v4 = vmul.f32 %v2598_v50, %v11923_v19  ;;  %v2328_v33 = vmul.f32 %v2327_v39, %v11962_v61  ;;  %v2464_v54 = vor.u32 1.1754944e-38, %v2463_v40  ;;  %v9427_v40 = vld [vmem:[%s15065_s14 + $0x270] sm:$0xff] }
 0x6e7   : > { %v2585_v3 = vsel %vm2582_vm8, %v2584_v46, %v2580_v7  ;;  %v2363_v20 = vadd.f32 0.001143296, %v2362_v58  ;;  %v12068_v13 = vmul.f32 0.70710677, %v12047_v44  ;;  %v2441_v56 = vmul.f32 %v2440_v32, %v11886_v51  ;;  %v9419_v32 = vld [vmem:[%s15065_s14 + $0x230] sm:$0xff]  ;;  %2920 = vmatpush.bf16.msrb.mxu3 %v9427_v40  ;;  %2951 = vmatpush.bf16.msrb.mxu1 %v9440_v31 }
 0x6e8   : > { %v2456_v36 = vadd.f32 %v11998_v30, %v2455_v0  ;;  %v12070_v9 = vpop.eup %9900  ;;  %vm2462_vm9 = vcmp.eq.f32.partialorder %v2461_v25, 8.507059e+37  ;;  %v2351_v19 = vmul.f32 2.1237322e-06, %v12023_v38  ;;  %v2315_v5 = vmul.f32 %v2314_v43, %v11962_v61  ;;  %2936 = vmatpush.bf16.msrb.mxu0 %v9433_v14  ;;  %2906 = vmatpush.bf16.msrb.mxu2 %v9419_v32  ;;  %v9438_v32 = vld [vmem:[%s15065_s14 + $0x2c8] sm:$0xff] }
 0x6e9   : > { %v2613_v1 = vmul.f32 %v12070_v9, %v12021_v2  ;;  %v2364_v48 = vmul.f32 %v2363_v20, %v12023_v38  ;;  %v2586_v0 = vmul.f32 %v2585_v3, %v2561_v59  ;;  %v2600_v51 = vadd.f32 1.1283791, %v2599_v4 }
 0x6ea   : > { %v2460_v6 = vsel %vm12054_vm7, %v11998_v30, %v2456_v36  ;;  %v2329_v30 = vadd.f32 0.4994258, %v2328_v33  ;;  %v2621_v37 = vand.u32 2147483647, %v12021_v2  ;;  %v2623_v41 = vand.u32 2147483648, %v12021_v2 }
 0x6eb   : > { %v2465_v23 = vsel %vm2462_vm9, %v2464_v54, %v2460_v6  ;;  %v2614_v62 = vsub.f32 1.0, %v2613_v1  ;;  %v2365_v57 = vadd.f32 0.014752088, %v2364_v48  ;;  %v2469_v35 = vmul.f32 %v12068_v13, %v12068_v13  ;;  %v9431_v48 = vld [vmem:[%s15065_s14 + $0x290] sm:$0xff] }
 0x6ec   : > { %v2330_v53 = vmul.f32 %v2329_v30, %v11962_v61  ;;  %v2466_v11 = vmul.f32 %v2465_v23, %v2441_v56  ;;  %vm2618_vm10 = vweird.f32 %v12070_v9  ;;  %v2352_v36 = vadd.f32 0.00028619796, %v2351_v19  ;;  %2937 = vmatpush.bf16.msrb.mxu0 %v9432_v42  ;;  %v9418_v56 = vld [vmem:[%s15065_s14 + $0x228] sm:$0xff] }
 0x6ed   : > { %v12090_v50 = vadd.f32 %v2262_v27, %v2190_v10  ;;  %v2615_v25 = vmul.f32 %v12070_v9, %v2614_v62  ;;  %v2366_v39 = vmul.f32 %v2365_v57, %v12023_v38  ;;  %v12099_v58 = vmin.f32 %v2469_v35, 16.0  ;;  %v9426_v30 = vld [vmem:[%s15065_s14 + $0x268] sm:$0xff]  ;;  %2907 = vmatpush.bf16.msrb.mxu2 %v9418_v56  ;;  %v9425_v62 = vld [vmem:[%s15065_s14 + $0x260] sm:$0xff] }
 0x6ee   : > { %v12096_v7 = vadd.f32 1.0, %v2330_v53  ;;  %v8304_v59 = vclamps-f32 %v2586_v0, 1.0  ;;  %v2601_v46 = vmul.f32 %v2600_v51, %v11911_v28  ;;  %vm2617_vm11 = vweird.f32 %v12021_v2  ;;  %2921 = vmatpush.bf16.msrb.mxu3 %v9426_v30  ;;  %v9417_v53 = vld [vmem:[%s15065_s14 + $0x220] sm:$0xff] }
 0x6ef   : > { %vm12104_vm12 = vcmp.eq.f32.partialorder %v2621_v37, 8.507059e+37  ;;  %v2616_v43 = vadd.f32 %v12070_v9, %v2615_v25  ;;  %v2624_v52 = vor.u32 1.1754944e-38, %v2623_v41  ;;  %v2367_v47 = vadd.f32 0.112945676, %v2366_v39  ;;  %vm2619_vm14 = vmor %vm2617_vm11, %vm2618_vm10  ;;  %v9430_v41 = vld [vmem:[%s15065_s14 + $0x288] sm:$0xff] }
 0x6f0   : > { %v2471_v6 = vmul.f32 2.1237322e-06, %v12099_v58  ;;  %v8301_v4 = vclamps-f32 %v2466_v11, 1.0  ;;  %v2353_v28 = vmul.f32 %v2352_v36, %v12023_v38  ;;  %v2482_v2 = vmul.f32 3.8918573e-05, %v12099_v58  ;;  %2938 = vmatpush.bf16.msrb.mxu0 %v9431_v48  ;;  %v9423_v48 = vld [vmem:[%s15065_s14 + $0x250] sm:$0xff] }
 0x6f1   : > { %v12115_v33 = vmul.f32 0.70710677, %v12090_v50  ;;  %v2620_v54 = vsel %vm2619_vm14, %v12070_v9, %v2616_v43  ;;  %9902 = vrcp.f32 %v12096_v7  ;;  %v2368_v3 = vmul.f32 %v2367_v47, %v12023_v38  ;;  %v9439_v9 = vld [vmem:[%s15065_s14 + $0x2d0] sm:$0xff]  ;;  %2908 = vmatpush.bf16.msrb.mxu2 %v9417_v53  ;;  %v9424_v47 = vld [vmem:[%s15065_s14 + $0x258] sm:$0xff] }
 0x6f2   : > { %v2472_v20 = vadd.f32 0.00028619796, %v2471_v6  ;;  %v2625_v19 = vsel %vm12104_vm12, %v2624_v52, %v2620_v54  ;;  %v2316_v60 = vadd.f32 0.05243302, %v2315_v5  ;;  %v2483_v23 = vadd.f32 0.001143296, %v2482_v2  ;;  %2952 = vmatpush.bf16.msrb.mxu1 %v9439_v9  ;;  %2922 = vmatpush.bf16.msrb.mxu3 %v9425_v62 }
 0x6f3   : > { %v2509_v1 = vmul.f32 %v12115_v33, %v12115_v33  ;;  %v2635_v27 = vadd.f32 1.0, %v8304_v59  ;;  %v2626_v34 = vmul.f32 %v2625_v19, %v2601_v46  ;;  %v2369_v14 = vadd.f32 0.4994258, %v2368_v3  ;;  %v9416_v52 = vld [vmem:[%s15065_s14 + $0x218] sm:$0xff]  ;;  %v9429_v6 = vld [vmem:[%s15065_s14 + $0x280] sm:$0xff] }
 0x6f4   : > { %v2473_v49 = vmul.f32 %v2472_v20, %v12099_v58  ;;  %v2631_v5 = vadd.f32 1.0, %v8300_v22  ;;  %v2296_v0 = vmul.f32 0.5, %v11881_v26  ;;  %v2484_v51 = vmul.f32 %v2483_v23, %v12099_v58  ;;  %2939 = vmatpush.bf16.msrb.mxu0 %v9430_v41  ;;  %v9437_v54 = vld [vmem:[%s15065_s14 + $0x2c0] sm:$0xff]  ;;  %v9414_v41 = vld [vmem:[%s15065_s14 + $0x208] sm:$0xff] }
 0x6f5   : > { %v12133_v37 = vmin.f32 %v2509_v1, 16.0  ;;  %v2632_v57 = vadd.f32 1.0, %v8301_v4  ;;  %v2300_v35 = vmul.f32 0.5, %v11902_v15  ;;  %v8305_v11 = vclamps-f32 %v2626_v34, 1.0  ;;  %2909 = vmatpush.bf16.msrb.mxu2 %v9416_v52  ;;  %v9415_v1 = vld [vmem:[%s15065_s14 + $0x210] sm:$0xff] }
 0x6f6   : > { %v2354_v36 = vadd.f32 0.0036580483, %v2353_v28  ;;  %v2317_v55 = vmul.f32 %v2316_v60, %v11962_v61  ;;  %v2370_v22 = vmul.f32 %v2369_v14, %v12023_v38  ;;  %v2485_v26 = vadd.f32 0.014752088, %v2484_v51  ;;  %2953 = vmatpush.bf16.msrb.mxu1 %v9438_v32  ;;  %2923 = vmatpush.bf16.msrb.mxu3 %v9424_v47  ;;  %v9450_v47 = vld [vmem:[%s15020_s3 + $0xbc] sm:$0xf] }
 0x6f7   : > { %v2511_v40 = vmul.f32 2.1237322e-06, %v12133_v37  ;;  %v12143_v42 = vpop.eup %9902  ;;  %v2643_v25 = vmul.f32 %v2635_v27, %v11980_v21  ;;  %v2636_v39 = vadd.f32 1.0, %v8305_v11  ;;  %v2474_v31 = vadd.f32 0.0036580483, %v2473_v49 }
 0x6f8   : > { %v2522_v15 = vmul.f32 3.8918573e-05, %v12133_v37  ;;  %v2639_v59 = vmul.f32 %v2631_v5, %v11958_v16  ;;  %v12148_v46 = vadd.f32 1.0, %v2370_v22  ;;  %v2486_v10 = vmul.f32 %v2485_v26, %v12099_v58  ;;  %2940 = vmatpush.bf16.msrb.mxu0 %v9429_v6  ;;  %v8462_v6 = vld [vmem:[%s15020_s3 + $0xf8] sm:$0xf0] }
 0x6f9   : > { %v2512_v43 = vadd.f32 0.00028619796, %v2511_v40  ;;  %v2640_v21 = vmul.f32 %v2632_v57, %v2296_v0  ;;  %v2644_v4 = vmul.f32 %v2636_v39, %v2300_v35  ;;  %v2355_v28 = vmul.f32 %v2354_v36, %v12023_v38  ;;  %2910 = vmatpush.bf16.msrb.mxu2 %v9415_v1  ;;  %v9422_v57 = vld [vmem:[%s15065_s14 + $0x248] sm:$0xff]  ;;  %v8460_v40 = vld [vmem:[%s15020_s3 + $0xb8] sm:$0xf] }
 0x6fa   : > { %v2523_v2 = vadd.f32 0.001143296, %v2522_v15  ;;  %v2318_v3 = vadd.f32 0.18741608, %v2317_v55  ;;  %v2333_v16 = vmul.f32 %v12143_v42, %v12096_v7  ;;  %9904 = vrcp.f32 %v12148_v46  ;;  %2954 = vmatpush.bf16.msrb.mxu1 %v9437_v54  ;;  %2924 = vmatpush.bf16.msrb.mxu3 %v9423_v48  ;;  %v9413_v15 = vld [vmem:[%s15065_s14 + $0x200] sm:$0xff] }
 0x6fb   : > { %v2647_v20 = vpack.c.bf16 %v2643_v25, %v2639_v59  ;;  %v2648_v56 = vpack.c.bf16 %v2644_v4, %v2640_v21  ;;  %v2475_v30 = vmul.f32 %v2474_v31, %v12099_v58  ;;  %v2487_v19 = vadd.f32 0.112945676, %v2486_v10  ;;  %v9421_v59 = vld [vmem:[%s15065_s14 + $0x240] sm:$0xff]  ;;  %v9452_v10 = vld [vmem:[%s15020_s3 + $0xf4] sm:$0xf0] }
 0x6fc   : > { %v2513_v60 = vmul.f32 %v2512_v43, %v12133_v37  ;;  %v2524_v23 = vmul.f32 %v2523_v2, %v12133_v37  ;;  %v2356_v9 = vadd.f32 0.05243302, %v2355_v28  ;;  %v2334_v34 = vsub.f32 1.0, %v2333_v16  ;;  %v8444_v16 = vld [vmem:[%s15020_s3 + $0x38] sm:$0xf] }
 0x6fd   : > { %v2488_v27 = vmul.f32 %v2487_v19, %v12099_v58  ;;  %v2319_v49 = vmul.f32 %v2318_v3, %v11962_v61  ;;  %v2476_v5 = vadd.f32 0.05243302, %v2475_v30  ;;  %2941 = vmatmul.bf16.vlgmr.msrb.gmra.mxu0 %v2647_v20  ;;  %2955 = vmatmul.bf16.vlgmr.msrb.gmra.mxu1 %v2648_v56  ;;  %v2341_v22 = vand.u32 2147483647, %v12096_v7  ;;  %v9448_v30 = vld [vmem:[%s15020_s3 + $0x74] sm:$0xf0] }
 0x6fe   : > { %v2525_v14 = vadd.f32 0.014752088, %v2524_v23  ;;  %v2514_v53 = vadd.f32 0.0036580483, %v2513_v60  ;;  %v2357_v35 = vmul.f32 %v2356_v9, %v12023_v38  ;;  %v2335_v61 = vmul.f32 %v12143_v42, %v2334_v34  ;;  %2911 = vmatpush.bf16.msrb.mxu2 %v9414_v41  ;;  %2925 = vmatpush.bf16.msrb.mxu3 %v9422_v57  ;;  %v8452_v60 = vld [vmem:[%s15020_s3 + $0xb0] sm:$0xf] }
 0x6ff   : > { %v2489_v0 = vadd.f32 0.4994258, %v2488_v27  ;;  %v2320_v55 = vadd.f32 1.1283791, %v2319_v49  ;;  %v2477_v26 = vmul.f32 %v2476_v5, %v12099_v58  ;;  %vm2338_vm13 = vweird.f32 %v12143_v42  ;;  %v9451_v23 = vld [vmem:[%s15020_s3 + $0xec] sm:$0xf0] }
 0x700   : > { %v12166_v51 = vpop.eup %9904  ;;  %v2526_v62 = vmul.f32 %v2525_v14, %v12133_v37  ;;  %v2515_v39 = vmul.f32 %v2514_v53, %v12133_v37  ;;  %v2343_v43 = vand.u32 2147483648, %v12096_v7  ;;  %v8461_v52 = vor.u32 %v9452_v10, %v8460_v40  ;;  %v9449_v1 = vld [vmem:[%s15020_s3 + $0xb4] sm:$0xf]  ;;  %v8446_v49 = vld [vmem:[%s15020_s3 + $0x78] sm:$0xf0] }
 0x701   : > { %v2373_v11 = vmul.f32 %v12166_v51, %v12148_v46  ;;  %v2490_v36 = vmul.f32 %v2489_v0, %v12099_v58  ;;  %v2336_v21 = vadd.f32 %v12143_v42, %v2335_v61  ;;  %v2358_v4 = vadd.f32 0.18741608, %v2357_v35  ;;  %v8454_v14 = vld [vmem:[%s15020_s3 + $0xf0] sm:$0xf0]  ;;  %v8436_v5 = vld [vmem:[%s15020_s3 + $0x30] sm:$0xf] }
 0x702   : > { %v2527_v32 = vadd.f32 0.112945676, %v2526_v62  ;;  %vm2337_vm15 = vweird.f32 %v12096_v7  ;;  %v2478_v2 = vadd.f32 0.18741608, %v2477_v26  ;;  %3054 = vmatpush.bf16.msra.mxu0 %v8461_v52  ;;  %v8465_v3 = vor.u32 %v9450_v47, %v8462_v6  ;;  %2912 = vmatpush.bf16.msrb.mxu2 %v9413_v15  ;;  %v9446_v7 = vld [vmem:[%s15020_s3 + $0x3c] sm:$0xf] }
 0x703   : > { %v12179_v25 = vadd.f32 1.0, %v2490_v36  ;;  %v2374_v28 = vsub.f32 1.0, %v2373_v11  ;;  %vm12196_vm2 = vmor %vm2337_vm15, %vm2338_vm13  ;;  %v2516_v56 = vadd.f32 0.05243302, %v2515_v39  ;;  %2926 = vmatpush.bf16.msrb.mxu3 %v9421_v59  ;;  %v8445_v48 = vor.u32 %v9448_v30, %v8444_v16  ;;  %v9447_v41 = vld [vmem:[%s15020_s3 + $0x6c] sm:$0xf0] }
 0x704   : > { %v2528_v31 = vmul.f32 %v2527_v32, %v12133_v37  ;;  %3068 = vmatpush.bf16.msra.mxu1 %v8465_v3  ;;  %v2340_v9 = vsel %vm12196_vm2, %v12143_v42, %v2336_v21  ;;  %v8453_v34 = vor.u32 %v9451_v23, %v8452_v60  ;;  %vm2342_vm3 = vcmp.eq.f32.partialorder %v2341_v22, 8.507059e+37  ;;  %v9445_v36 = vld [vmem:[%s15020_s3 + $0x34] sm:$0xf] }
 0x705   : > { %9906 = vrcp.f32 %v12179_v25  ;;  %v2375_v27 = vmul.f32 %v12166_v51, %v2374_v28  ;;  %v2344_v0 = vor.u32 1.1754944e-38, %v2343_v43  ;;  %v8457_v62 = vor.u32 %v9449_v1, %v8454_v14  ;;  %v8438_v32 = vld [vmem:[%s15020_s3 + $0x70] sm:$0xf0] }
 0x706   : > { %v2529_v54 = vadd.f32 0.4994258, %v2528_v31  ;;  %3055 = vmatpush.bf16.msra.mxu0 %v8445_v48  ;;  %v2479_v35 = vmul.f32 %v2478_v2, %v12099_v58  ;;  %v2517_v42 = vmul.f32 %v2516_v56, %v12133_v37  ;;  %3026 = vmatpush.bf16.msra.mxu2 %v8453_v34  ;;  %v8449_v61 = vor.u32 %v9446_v7, %v8446_v49 }
 0x707   : > { %v8437_v11 = vor.u32 %v9447_v41, %v8436_v5  ;;  %v2321_v26 = vmul.f32 %v2320_v55, %v11942_v8  ;;  %v2345_v40 = vsel %vm2342_vm3, %v2344_v0, %v2340_v9  ;;  %v2359_v22 = vmul.f32 %v2358_v4, %v12023_v38  ;;  %3040 = vmatpush.bf16.msra.mxu3 %v8457_v62 }
 0x708   : > { %v2530_v19 = vmul.f32 %v2529_v54, %v12133_v37  ;;  %v2376_v31 = vadd.f32 %v12166_v51, %v2375_v27  ;;  %vm2377_vm4 = vweird.f32 %v12148_v46  ;;  %vm2378_vm5 = vweird.f32 %v12166_v51  ;;  %3069 = vmatpush.bf16.msra.mxu1 %v8449_v61 }
 0x709   : > { %v2381_v58 = vand.u32 2147483647, %v12148_v46  ;;  %v2383_v15 = vand.u32 2147483648, %v12148_v46  ;;  %v8441_v38 = vor.u32 %v9445_v36, %v8438_v32  ;;  %v2346_v55 = vmul.f32 %v2345_v40, %v2321_v26  ;;  %vm12232_vm6 = vmor %vm2377_vm4, %vm2378_vm5 }
 0x70a   : > { %v12213_v53 = vadd.f32 1.0, %v2530_v19  ;;  %v2480_v59 = vadd.f32 1.1283791, %v2479_v35  ;;  %v2503_v10 = vand.u32 2147483648, %v12179_v25  ;;  %v2518_v43 = vadd.f32 0.18741608, %v2517_v42  ;;  %3027 = vmatpush.bf16.msra.mxu2 %v8437_v11 }
 0x70b   : > { %v9907_v57 = vpop.eup %9906  ;;  %v2501_v6 = vand.u32 2147483647, %v12179_v25  ;;  %3041 = vmatpush.bf16.msra.mxu3 %v8441_v38  ;;  %v2360_v46 = vadd.f32 1.1283791, %v2359_v22  ;;  %v2380_v21 = vsel %vm12232_vm6, %v12166_v51, %v2376_v31  ;;  %vm2382_vm8 = vcmp.eq.f32.partialorder %v2381_v58, 8.507059e+37 }
 0x70c   : > { %v2493_v39 = vmul.f32 %v9907_v57, %v12179_v25  ;;  %9908 = vrcp.f32 %v12213_v53  ;;  %vm2498_vm7 = vweird.f32 %v9907_v57  ;;  %v2384_v4 = vor.u32 1.1754944e-38, %v2383_v15 }
 0x70d   : > { %8468 = vmatmul.msk.bf16.vlgmr.msra.gmra.mxu0 %vm318_vm0, %v15112_v29  ;;  %8469 = vmatmul.msk.bf16.vlgmr.msra.gmra.mxu1 %vm318_vm0, %v15112_v29  ;;  %vm2497_vm9 = vweird.f32 %v12179_v25  ;;  %v8298_v54 = vclamps-f32 %v2346_v55, 1.0  ;;  %v2481_v3 = vmul.f32 %v2480_v59, %v12068_v13  ;;  %v2504_v16 = vor.u32 1.1754944e-38, %v2503_v10 }
 0x70e   : > { %v2494_v8 = vsub.f32 1.0, %v2493_v39  ;;  %vm2499_vm10 = vmor %vm2497_vm9, %vm2498_vm7  ;;  %v2519_v20 = vmul.f32 %v2518_v43, %v12133_v37  ;;  %v2385_v56 = vsel %vm2382_vm8, %v2384_v4, %v2380_v21  ;;  %vm2502_vm11 = vcmp.eq.f32.partialorder %v2501_v6, 8.507059e+37 }
 0x70f   : > { %v2361_v51 = vmul.f32 %v2360_v46, %v11996_v17  ;;  %v2629_v1 = vadd.f32 1.0, %v8298_v54  ;;  %v2543_v9 = vand.u32 2147483648, %v12213_v53  ;;  %v2541_v37 = vand.u32 2147483647, %v12213_v53 }
 0x710   : > { %v2495_v47 = vmul.f32 %v9907_v57, %v2494_v8  ;;  %v2520_v48 = vadd.f32 1.1283791, %v2519_v20  ;;  %v2293_v34 = vmul.f32 0.5, %v11927_v45  ;;  %v2297_v14 = vmul.f32 0.5, %v12047_v44 }
 0x711   : > { %v2386_v25 = vmul.f32 %v2385_v56, %v2361_v51  ;;  %vm2537_vm14 = vweird.f32 %v12213_v53  ;;  %v2544_v62 = vor.u32 1.1754944e-38, %v2543_v9  ;;  %vm2542_vm15 = vcmp.eq.f32.partialorder %v2541_v37, 8.507059e+37 }
 0x712   : > { %v2496_v28 = vadd.f32 %v9907_v57, %v2495_v47  ;;  %v9909_v2 = vpop.eup %9908  ;;  %v2637_v17 = vmul.f32 %v2629_v1, %v2293_v34  ;;  %v2294_v44 = vmul.f32 0.5, %v11971_v18  ;;  %v2298_v32 = vmul.f32 0.5, %v12090_v50 }
 0x713   : > { %v2533_v7 = vmul.f32 %v9909_v2, %v12213_v53  ;;  %vm2538_vm12 = vweird.f32 %v9909_v2  ;;  %v8299_v0 = vclamps-f32 %v2386_v25, 1.0  ;;  %v12268_v50 = vrot.slane %v11850_v24, 4 }
 0x714   : > { %v2500_v30 = vsel %vm2499_vm10, %v9907_v57, %v2496_v28  ;;  %vm2539_vm13 = vmor %vm2537_vm14, %vm2538_vm12  ;;  %v2521_v57 = vmul.f32 %v2520_v48, %v12115_v33 }
 0x715   : > { %v2505_v19 = vsel %vm2502_vm11, %v2504_v16, %v2500_v30  ;;  %v2534_v23 = vsub.f32 1.0, %v2533_v7  ;;  %v2630_v36 = vadd.f32 1.0, %v8299_v0  ;;  %v2974_v58 = vperm.slane %v12268_v50, 2 }
 0x716   : > { %v2506_v60 = vmul.f32 %v2505_v19, %v2481_v3  ;;  %v2975_v15 = vperm.slane %v12268_v50, 3 }
 0x717   : > { %v2535_v27 = vmul.f32 %v9909_v2, %v2534_v23  ;;  %v2638_v26 = vmul.f32 %v2630_v36, %v2294_v44 }
 0x718   : > { %v8302_v13 = vclamps-f32 %v2506_v60, 1.0 }
 0x719   : > { %v2536_v5 = vadd.f32 %v9909_v2, %v2535_v27 }
 0x71a   : > { %v2633_v49 = vadd.f32 1.0, %v8302_v13 }
 0x71b   : > { %v2540_v35 = vsel %vm2539_vm13, %v9909_v2, %v2536_v5 }
 0x71c   : > { %v2641_v41 = vmul.f32 %v2633_v49, %v2297_v14  ;;  %v2545_v42 = vsel %vm2542_vm15, %v2544_v62, %v2540_v35 }
 0x71d   : > { %v2546_v11 = vmul.f32 %v2545_v42, %v2521_v57 }
 0x71e   : > { %v2645_v61 = vpack.c.bf16 %v2641_v41, %v2637_v17 }
 0x71f   : > { %v8303_v45 = vclamps-f32 %v2546_v11, 1.0 }
 0x720   : > { %2913 = vmatmul.bf16.vlgmr.msrb.gmra.mxu2 %v2645_v61 }
 0x721   : > { %v2634_v53 = vadd.f32 1.0, %v8303_v45 }
 0x723   : > { %v2642_v40 = vmul.f32 %v2634_v53, %v2298_v32 }
 0x725   : > { %v2646_v22 = vpack.c.bf16 %v2642_v40, %v2638_v26 }
 0x727   : > { %2927 = vmatmul.bf16.vlgmr.msrb.gmra.mxu3 %v2646_v22 }
 0x730   : > { %8466 = vmatmul.msk.bf16.vlgmr.msra.gmra.mxu2 %vm318_vm0, %v15112_v29 }
 0x737   : > { %8467 = vmatmul.msk.bf16.vlgmr.msra.gmra.mxu3 %vm318_vm0, %v15112_v29 }
 0x77a   : > { %v12259_v33 = vpop.f32.mrf.mxu0  ;;  %v12261_v39 = vpop.f32.mrf.mxu1 }
 0x782   : > { %v12263_v31 = vpop.f32.mrf.mxu0  ;;  %v12265_v18 = vpop.f32.mrf.mxu1 }
 0x78a   : > { %v3057_v8 = vpop.f32.mrf.mxu0  ;;  %v3071_v55 = vpop.f32.mrf.mxu1 }
 0x78b   : > { %v12272_v38 = vadd.f32 %v3057_v8, %v2974_v58  ;;  %v12277_v59 = vadd.f32 %v3071_v55, %v2975_v15 }
 0x78d   : > { %v12275_v29 = vmul.f32 0.70710677, %v12272_v38  ;;  %v12282_v43 = vmul.f32 0.70710677, %v12277_v59 }
 0x78f   : > { %v3172_v10 = vmul.f32 %v12275_v29, %v12275_v29  ;;  %v3212_v52 = vmul.f32 %v12282_v43, %v12282_v43 }
 0x791   : > { %v12284_v24 = vmin.f32 %v3172_v10, 16.0  ;;  %v12290_v21 = vmin.f32 %v3212_v52, 16.0 }
 0x792   : > { %v3059_v47 = vpop.f32.mrf.mxu0  ;;  %v3073_v28 = vpop.f32.mrf.mxu1 }
 0x793   : > { %v3174_v6 = vmul.f32 2.1237322e-06, %v12284_v24  ;;  %v3185_v46 = vmul.f32 3.8918573e-05, %v12284_v24  ;;  %v12292_v4 = vadd.f32 %v3059_v47, %v2974_v58  ;;  %v3214_v3 = vmul.f32 2.1237322e-06, %v12290_v21 }
 0x794   : > { %v12295_v16 = vadd.f32 %v3073_v28, %v2975_v15  ;;  %v3225_v20 = vmul.f32 3.8918573e-05, %v12290_v21 }
 0x795   : > { %v3175_v2 = vadd.f32 0.00028619796, %v3174_v6  ;;  %v3186_v54 = vadd.f32 0.001143296, %v3185_v46  ;;  %v12299_v56 = vmul.f32 0.70710677, %v12292_v4 }
 0x796   : > { %v3215_v51 = vadd.f32 0.00028619796, %v3214_v3  ;;  %v3226_v19 = vadd.f32 0.001143296, %v3225_v20  ;;  %v12306_v23 = vmul.f32 0.70710677, %v12295_v16 }
 0x797   : > { %v3176_v30 = vmul.f32 %v3175_v2, %v12284_v24  ;;  %v3187_v7 = vmul.f32 %v3186_v54, %v12284_v24  ;;  %v3332_v60 = vmul.f32 %v12299_v56, %v12299_v56 }
 0x798   : > { %v3216_v48 = vmul.f32 %v3215_v51, %v12290_v21  ;;  %v3227_v9 = vmul.f32 %v3226_v19, %v12290_v21  ;;  %v3372_v27 = vmul.f32 %v12306_v23, %v12306_v23 }
 0x799   : > { %v3177_v1 = vadd.f32 0.0036580483, %v3176_v30  ;;  %v3188_v25 = vadd.f32 0.014752088, %v3187_v7  ;;  %v12310_v13 = vmin.f32 %v3332_v60, 16.0 }
 0x79a   : > { %v3217_v14 = vadd.f32 0.0036580483, %v3216_v48  ;;  %v3228_v49 = vadd.f32 0.014752088, %v3227_v9  ;;  %v12318_v41 = vmin.f32 %v3372_v27, 16.0 }
 0x79b   : > { %v3178_v37 = vmul.f32 %v3177_v1, %v12284_v24  ;;  %v3189_v34 = vmul.f32 %v3188_v25, %v12284_v24  ;;  %v3334_v5 = vmul.f32 2.1237322e-06, %v12310_v13  ;;  %v3345_v17 = vmul.f32 3.8918573e-05, %v12310_v13 }
 0x79c   : > { %v3229_v57 = vmul.f32 %v3228_v49, %v12290_v21  ;;  %v3218_v11 = vmul.f32 %v3217_v14, %v12290_v21  ;;  %v3374_v36 = vmul.f32 2.1237322e-06, %v12318_v41  ;;  %v3385_v53 = vmul.f32 3.8918573e-05, %v12318_v41 }
 0x79d   : > { %v3179_v0 = vadd.f32 0.05243302, %v3178_v37  ;;  %v3190_v62 = vadd.f32 0.112945676, %v3189_v34  ;;  %v3335_v35 = vadd.f32 0.00028619796, %v3334_v5 }
 0x79e   : > { %v3346_v42 = vadd.f32 0.001143296, %v3345_v17  ;;  %v3230_v45 = vadd.f32 0.112945676, %v3229_v57  ;;  %v3375_v22 = vadd.f32 0.00028619796, %v3374_v36 }
 0x79f   : > { %v3191_v61 = vmul.f32 %v3190_v62, %v12284_v24  ;;  %v3336_v44 = vmul.f32 %v3335_v35, %v12310_v13  ;;  %v3180_v26 = vmul.f32 %v3179_v0, %v12284_v24  ;;  %v3386_v10 = vadd.f32 0.001143296, %v3385_v53 }
 0x7a0   : > { %v3347_v32 = vmul.f32 %v3346_v42, %v12310_v13  ;;  %v3231_v58 = vmul.f32 %v3230_v45, %v12290_v21  ;;  %v3219_v47 = vadd.f32 0.05243302, %v3218_v11  ;;  %v3376_v6 = vmul.f32 %v3375_v22, %v12318_v41 }
 0x7a1   : > { %v3192_v40 = vadd.f32 0.4994258, %v3191_v61  ;;  %v3337_v8 = vadd.f32 0.0036580483, %v3336_v44  ;;  %v3387_v54 = vmul.f32 %v3386_v10, %v12318_v41  ;;  %v3181_v3 = vadd.f32 0.18741608, %v3180_v26 }
 0x7a2   : > { %v3348_v55 = vadd.f32 0.014752088, %v3347_v32  ;;  %v3232_v46 = vadd.f32 0.4994258, %v3231_v58  ;;  %v3220_v19 = vmul.f32 %v3219_v47, %v12290_v21  ;;  %v3377_v25 = vadd.f32 0.0036580483, %v3376_v6 }
 0x7a3   : > { %v2914_v15 = vpop.f32.mrf.mxu2  ;;  %v3193_v52 = vmul.f32 %v3192_v40, %v12284_v24  ;;  %v3338_v28 = vmul.f32 %v3337_v8, %v12310_v13  ;;  %v3388_v51 = vadd.f32 0.014752088, %v3387_v54  ;;  %v3182_v48 = vmul.f32 %v3181_v3, %v12284_v24 }
 0x7a4   : > { %v3349_v2 = vmul.f32 %v3348_v55, %v12310_v13  ;;  %v3233_v30 = vmul.f32 %v3232_v46, %v12290_v21  ;;  %v3221_v14 = vadd.f32 0.18741608, %v3220_v19  ;;  %v3378_v0 = vmul.f32 %v3377_v25, %v12318_v41  ;;  %v9484_v25 = vld [vmem:[%s15065_s14 + $0x3f8] sm:$0xff] }
 0x7a5   : > { %v12334_v20 = vadd.f32 1.0, %v3193_v52  ;;  %v3339_v1 = vadd.f32 0.05243302, %v3338_v28  ;;  %v3389_v27 = vmul.f32 %v3388_v51, %v12318_v41  ;;  %v12350_v24 = vmul.f32 0.5, %v12272_v38  ;;  %3730 = vmatpush.bf16.msrb.mxu1 %v9484_v25  ;;  %v9481_v25 = vld [vmem:[%s15065_s14 + $0x3e0] sm:$0xff] }
 0x7a6   : > { %v3350_v7 = vadd.f32 0.112945676, %v3349_v2  ;;  %v12339_v60 = vadd.f32 1.0, %v3233_v30  ;;  %v3183_v35 = vadd.f32 1.1283791, %v3182_v48  ;;  %v12356_v11 = vmul.f32 0.5, %v12292_v4 }
 0x7a7   : > { %9910 = vrcp.f32 %v12334_v20  ;;  %v3340_v5 = vmul.f32 %v3339_v1, %v12310_v13  ;;  %v3390_v62 = vadd.f32 0.112945676, %v3389_v27  ;;  %v12360_v45 = vmul.f32 0.5, %v12295_v16  ;;  %v9476_v1 = vld [vmem:[%s15065_s14 + $0x3b8] sm:$0xff] }
 0x7a8   : > { %v3351_v9 = vmul.f32 %v3350_v7, %v12310_v13  ;;  %9912 = vrcp.f32 %v12339_v60  ;;  %v3222_v44 = vmul.f32 %v3221_v14, %v12290_v21  ;;  %v2972_v53 = vperm.slane %v12268_v50, 0  ;;  %3716 = vmatpush.bf16.msrb.mxu0 %v9476_v1  ;;  %v9473_v1 = vld [vmem:[%s15065_s14 + $0x3a0] sm:$0xff] }
 0x7a9   : > { %v3391_v38 = vmul.f32 %v3390_v62, %v12318_v41  ;;  %v3341_v40 = vadd.f32 0.18741608, %v3340_v5  ;;  %v3379_v4 = vadd.f32 0.05243302, %v3378_v0  ;;  %v12371_v58 = vmul.f32 %v3183_v35, %v12275_v29 }
 0x7aa   : > { %v2928_v37 = vpop.f32.mrf.mxu3  ;;  %v3352_v17 = vadd.f32 0.4994258, %v3351_v9  ;;  %vm3200_vm2 = vweird.f32 %v12334_v20  ;;  %v3204_v8 = vand.u32 2147483647, %v12334_v20  ;;  %v3206_v29 = vand.u32 2147483648, %v12334_v20 }
 0x7ab   : > { %v2916_v34 = vpop.f32.mrf.mxu2  ;;  %v2929_v49 = vadd.f32 %v2928_v37, %v2914_v15  ;;  %v3223_v52 = vadd.f32 1.1283791, %v3222_v44  ;;  %v3342_v6 = vmul.f32 %v3341_v40, %v12310_v13  ;;  %v3380_v46 = vmul.f32 %v3379_v4, %v12318_v41 }
 0x7ac   : > { %v3353_v36 = vmul.f32 %v3352_v17, %v12310_v13  ;;  %v3244_v54 = vand.u32 2147483647, %v12339_v60  ;;  %v3246_v3 = vand.u32 2147483648, %v12339_v60  ;;  %vm12402_vm4 = vcmp.eq.f32.partialorder %v3204_v8, 8.507059e+37 }
 0x7ad   : > { %v12347_v57 = vpop.eup %9910  ;;  %v2943_v42 = vadd.f32 %v12259_v33, %v2929_v49  ;;  %v3207_v9 = vor.u32 1.1754944e-38, %v3206_v29  ;;  %v12407_v27 = vmul.f32 %v3223_v52, %v12282_v43  ;;  %v3343_v14 = vadd.f32 1.1283791, %v3342_v6 }
 0x7ae   : > { %v3196_v61 = vmul.f32 %v12347_v57, %v12334_v20  ;;  %v12366_v33 = vpop.eup %9912  ;;  %v12368_v22 = vadd.f32 1.0, %v3353_v36  ;;  %vm3201_vm3 = vweird.f32 %v12347_v57  ;;  %v3381_v49 = vadd.f32 0.18741608, %v3380_v46  ;;  %v9483_v36 = vld [vmem:[%s15065_s14 + $0x3f0] sm:$0xff] }
 0x7af   : > { %v2957_v32 = vadd.f32 %v12261_v39, %v2943_v42  ;;  %v3236_v16 = vmul.f32 %v12366_v33, %v12339_v60  ;;  %v2973_v39 = vperm.slane %v12268_v50, 1  ;;  %vm12418_vm5 = vmor %vm3200_vm2, %vm3201_vm3  ;;  %vm3240_vm6 = vweird.f32 %v12339_v60  ;;  %3731 = vmatpush.bf16.msrb.mxu1 %v9483_v36  ;;  %v9480_v36 = vld [vmem:[%s15065_s14 + $0x3d8] sm:$0xff] }
 0x7b0   : > { %v3197_v26 = vsub.f32 1.0, %v3196_v61  ;;  %9914 = vrcp.f32 %v12368_v22  ;;  %vm12423_vm7 = vcmp.eq.f32.partialorder %v3244_v54, 8.507059e+37  ;;  %vm3241_vm8 = vweird.f32 %v12366_v33  ;;  %v9475_v61 = vld [vmem:[%s15065_s14 + $0x3b0] sm:$0xff] }
 0x7b1   : > { %v12376_v21 = vadd.f32 %v2957_v32, %v11907_v63  ;;  %v3237_v47 = vsub.f32 1.0, %v3236_v16  ;;  %v3392_v63 = vadd.f32 0.4994258, %v3391_v38  ;;  %v3247_v62 = vor.u32 1.1754944e-38, %v3246_v3  ;;  %3717 = vmatpush.bf16.msrb.mxu0 %v9475_v61  ;;  %vm12455_vm9 = vmor %vm3240_vm6, %vm3241_vm8  ;;  %v9472_v61 = vld [vmem:[%s15065_s14 + $0x398] sm:$0xff] }
 0x7b2   : > { %v3198_v15 = vmul.f32 %v12347_v57, %v3197_v26  ;;  %v2930_v55 = vpop.f32.mrf.mxu3  ;;  %v3364_v32 = vand.u32 2147483647, %v12368_v22  ;;  %v3366_v38 = vand.u32 2147483648, %v12368_v22  ;;  %v3382_v40 = vmul.f32 %v3381_v49, %v12318_v41 }
 0x7b3   : > { %v3029_v10 = vpop.f32.mrf.mxu2  ;;  %v2931_v28 = vadd.f32 %v2930_v55, %v2916_v34  ;;  %v3393_v30 = vmul.f32 %v3392_v63, %v12318_v41  ;;  %v3238_v51 = vmul.f32 %v12366_v33, %v3237_v47  ;;  %vm3360_vm11 = vweird.f32 %v12368_v22 }
 0x7b4   : > { %v12388_v2 = vadd.f32 %v3029_v10, %v2972_v53  ;;  %v3199_v7 = vadd.f32 %v12347_v57, %v3198_v15  ;;  %v9474_v10 = vld [vmem:[%s15065_s14 + $0x3a8] sm:$0xff]  ;;  %vm3365_vm12 = vcmp.eq.f32.partialorder %v3364_v32, 8.507059e+37  ;;  %v3367_v47 = vor.u32 1.1754944e-38, %v3366_v38 }
 0x7b5   : > { %v2945_v13 = vadd.f32 %v12263_v31, %v2931_v28  ;;  %v12409_v37 = vadd.f32 1.0, %v3393_v30  ;;  %v3239_v20 = vadd.f32 %v12366_v33, %v3238_v51  ;;  %3718 = vmatpush.bf16.msrb.mxu0 %v9474_v10 }
 0x7b6   : > { %v12398_v19 = vmul.f32 0.70710677, %v12388_v2  ;;  %v9915_v34 = vpop.eup %9914  ;;  %v3203_v0 = vsel %vm12418_vm5, %v12347_v57, %v3199_v7  ;;  %v3344_v57 = vmul.f32 %v3343_v14, %v12299_v56 }
 0x7b7   : > { %v2959_v31 = vadd.f32 %v12265_v18, %v2945_v13  ;;  %v3356_v18 = vmul.f32 %v9915_v34, %v12368_v22  ;;  %9916 = vrcp.f32 %v12409_v37  ;;  %v3208_v15 = vsel %vm12402_vm4, %v3207_v9, %v3203_v0 }
 0x7b8   : > { %v3092_v5 = vmul.f32 %v12398_v19, %v12398_v19  ;;  %vm3361_vm10 = vweird.f32 %v9915_v34  ;;  %v3243_v8 = vsel %vm12455_vm9, %v12366_v33, %v3239_v20  ;;  %v12475_v6 = vmul.f32 %v3208_v15, %v12371_v58 }
 0x7b9   : > { %v3357_v44 = vsub.f32 1.0, %v3356_v18  ;;  %v12439_v26 = vadd.f32 %v2959_v31, %v11937_v12  ;;  %vm3362_vm14 = vmor %vm3360_vm11, %vm3361_vm10  ;;  %v3383_v33 = vadd.f32 1.1283791, %v3382_v40  ;;  %v3248_v28 = vsel %vm12423_vm7, %v3247_v62, %v3243_v8  ;;  %3719 = vmatpush.bf16.msrb.mxu0 %v9473_v1  ;;  %v9460_v8 = vld [vmem:[%s15065_s14 + $0x338] sm:$0xff] }
 0x7ba   : > { %v3043_v35 = vpop.f32.mrf.mxu3  ;;  %v12443_v4 = vmin.f32 %v3092_v5, 16.0  ;;  %v3404_v48 = vand.u32 2147483647, %v12409_v37  ;;  %v3406_v9 = vand.u32 2147483648, %v12409_v37  ;;  %v3249_v43 = vmul.f32 %v3248_v28, %v12407_v27  ;;  %3688 = vmatpush.bf16.msrb.mxu2 %v9460_v8 }
 0x7bb   : > { %v3031_v42 = vpop.f32.mrf.mxu2  ;;  %v12447_v16 = vadd.f32 %v3043_v35, %v2973_v39  ;;  %v3358_v56 = vmul.f32 %v9915_v34, %v3357_v44  ;;  %v3384_v17 = vmul.f32 %v3383_v33, %v12306_v23  ;;  %vm3400_vm15 = vweird.f32 %v12409_v37 }
 0x7bc   : > { %v12461_v41 = vadd.f32 %v3031_v42, %v2972_v53  ;;  %v3094_v55 = vmul.f32 2.1237322e-06, %v12443_v4  ;;  %v3105_v60 = vmul.f32 3.8918573e-05, %v12443_v4  ;;  %v9482_v53 = vld [vmem:[%s15065_s14 + $0x3e8] sm:$0xff]  ;;  %v8472_v27 = vclamps-f32 %v12475_v6, 1.0 }
 0x7bd   : > { %v9917_v29 = vpop.eup %9916  ;;  %v3359_v52 = vadd.f32 %v9915_v34, %v3358_v56  ;;  %v12471_v63 = vmul.f32 0.70710677, %v12447_v16  ;;  %3732 = vmatpush.bf16.msrb.mxu1 %v9482_v53  ;;  %vm3405_vm3 = vcmp.eq.f32.partialorder %v3404_v48, 8.507059e+37  ;;  %v3407_v23 = vor.u32 1.1754944e-38, %v3406_v9  ;;  %3720 = vmatpush.bf16.msrb.mxu0 %v9472_v61  ;;  %v9479_v53 = vld [vmem:[%s15065_s14 + $0x3d0] sm:$0xff]  ;;  %v9466_v61 = vld [vmem:[%s15065_s14 + $0x368] sm:$0xff] }
 0x7be   : > { %v3396_v22 = vmul.f32 %v9917_v29, %v12409_v37  ;;  %v3106_v46 = vadd.f32 0.001143296, %v3105_v60  ;;  %v12483_v30 = vmul.f32 0.70710677, %v12461_v41  ;;  %v3095_v51 = vadd.f32 0.00028619796, %v3094_v55 }
 0x7bf   : > { %v3363_v54 = vsel %vm3362_vm14, %v9915_v34, %v3359_v52  ;;  %v3132_v3 = vmul.f32 %v12471_v63, %v12471_v63  ;;  %vm3401_vm13 = vweird.f32 %v9917_v29  ;;  %v8473_v40 = vclamps-f32 %v3249_v43, 1.0  ;;  %v9468_v55 = vld [vmem:[%s15065_s14 + $0x378] sm:$0xff] }
 0x7c0   : > { %v3368_v58 = vsel %vm3365_vm12, %v3367_v47, %v3363_v54  ;;  %v3397_v7 = vsub.f32 1.0, %v3396_v22  ;;  %v3107_v13 = vmul.f32 %v3106_v46, %v12443_v4  ;;  %v3252_v34 = vmul.f32 %v12483_v30, %v12483_v30  ;;  %vm3402_vm2 = vmor %vm3400_vm15, %vm3401_vm13  ;;  %v9471_v47 = vld [vmem:[%s15065_s14 + $0x390] sm:$0xff]  ;;  %3702 = vmatpush.bf16.msrb.mxu3 %v9468_v55 }
 0x7c1   : > { %v12490_v14 = vmin.f32 %v3132_v3, 16.0  ;;  %v3369_v49 = vmul.f32 %v3368_v58, %v3344_v57  ;;  %3733 = vmatpush.bf16.msrb.mxu1 %v9481_v25  ;;  %v3096_v62 = vmul.f32 %v3095_v51, %v12443_v4  ;;  %v3414_v50 = vadd.f32 1.0, %v8472_v27  ;;  %3721 = vmatpush.bf16.msrb.mxu0 %v9471_v47  ;;  %v9459_v54 = vld [vmem:[%s15065_s14 + $0x330] sm:$0xff] }
 0x7c2   : > { %v3398_v31 = vmul.f32 %v9917_v29, %v3397_v7  ;;  %v3108_v5 = vadd.f32 0.014752088, %v3107_v13  ;;  %v12497_v0 = vmin.f32 %v3252_v34, 16.0  ;;  %v3045_v42 = vpop.f32.mrf.mxu3  ;;  %v9467_v13 = vld [vmem:[%s15065_s14 + $0x370] sm:$0xff]  ;;  %v3415_v1 = vadd.f32 1.0, %v8473_v40  ;;  %v9470_v34 = vld [vmem:[%s15065_s14 + $0x388] sm:$0xff]  ;;  %3689 = vmatpush.bf16.msrb.mxu2 %v9459_v54 }
 0x7c3   : > { %v3145_v18 = vmul.f32 3.8918573e-05, %v12490_v14  ;;  %v8476_v32 = vclamps-f32 %v3369_v49, 1.0  ;;  %v12510_v56 = vadd.f32 %v3045_v42, %v2973_v39  ;;  %v3097_v10 = vadd.f32 0.0036580483, %v3096_v62  ;;  %v9478_v49 = vld [vmem:[%s15065_s14 + $0x3c8] sm:$0xff] }
 0x7c4   : > { %v3399_v20 = vadd.f32 %v9917_v29, %v3398_v31  ;;  %v3109_v35 = vmul.f32 %v3108_v5, %v12443_v4  ;;  %v3254_v57 = vmul.f32 2.1237322e-06, %v12497_v0  ;;  %v3134_v6 = vmul.f32 2.1237322e-06, %v12490_v14  ;;  %3703 = vmatpush.bf16.msrb.mxu3 %v9467_v13  ;;  %v9458_v42 = vld [vmem:[%s15065_s14 + $0x328] sm:$0xff] }
 0x7c5   : > { %v3146_v44 = vadd.f32 0.001143296, %v3145_v18  ;;  %3734 = vmatpush.bf16.msrb.mxu1 %v9480_v36  ;;  %v3265_v22 = vmul.f32 3.8918573e-05, %v12497_v0  ;;  %v3418_v39 = vadd.f32 1.0, %v8476_v32  ;;  %v3098_v48 = vmul.f32 %v3097_v10, %v12443_v4  ;;  %3722 = vmatpush.bf16.msrb.mxu0 %v9470_v34  ;;  %v9465_v10 = vld [vmem:[%s15065_s14 + $0x360] sm:$0xff] }
 0x7c6   : > { %v3403_v38 = vsel %vm3402_vm2, %v9917_v29, %v3399_v20  ;;  %v3110_v37 = vadd.f32 0.112945676, %v3109_v35  ;;  %v3255_v52 = vadd.f32 0.00028619796, %v3254_v57  ;;  %v12523_v51 = vmul.f32 0.70710677, %v12510_v56  ;;  %3690 = vmatpush.bf16.msrb.mxu2 %v9458_v42 }
 0x7c7   : > { %v3408_v15 = vsel %vm3405_vm3, %v3407_v23, %v3403_v38  ;;  %v3147_v12 = vmul.f32 %v3146_v44, %v12490_v14  ;;  %v3266_v7 = vadd.f32 0.001143296, %v3265_v22  ;;  %v3135_v31 = vadd.f32 0.00028619796, %v3134_v6  ;;  %v9455_v34 = vld [vmem:[%s15065_s14 + $0x310] sm:$0xff] }
 0x7c8   : > { %v3409_v60 = vmul.f32 %v3408_v15, %v3384_v17  ;;  %v3111_v29 = vmul.f32 %v3110_v37, %v12443_v4  ;;  %v3256_v58 = vmul.f32 %v3255_v52, %v12497_v0  ;;  %v3292_v17 = vmul.f32 %v12523_v51, %v12523_v51  ;;  %3704 = vmatpush.bf16.msrb.mxu3 %v9466_v61 }
 0x7c9   : > { %v3148_v33 = vadd.f32 0.014752088, %v3147_v12  ;;  %3735 = vmatpush.bf16.msrb.mxu1 %v9479_v53  ;;  %v3267_v43 = vmul.f32 %v3266_v7, %v12497_v0  ;;  %v3079_v18 = vmul.f32 0.5, %v12277_v59  ;;  %v3426_v20 = vmul.f32 %v3418_v39, %v12356_v11  ;;  %v9469_v11 = vld [vmem:[%s15065_s14 + $0x380] sm:$0xff] }
 0x7ca   : > { %v8477_v46 = vclamps-f32 %v3409_v60, 1.0  ;;  %v3112_v28 = vadd.f32 0.4994258, %v3111_v29  ;;  %v3257_v27 = vadd.f32 0.0036580483, %v3256_v58  ;;  %v12541_v44 = vmin.f32 %v3292_v17, 16.0  ;;  %3723 = vmatpush.bf16.msrb.mxu0 %v9469_v11 }
 0x7cb   : > { %v3149_v3 = vmul.f32 %v3148_v33, %v12490_v14  ;;  %v3268_v23 = vadd.f32 0.014752088, %v3267_v43  ;;  %v3422_v32 = vmul.f32 %v3414_v50, %v12350_v24  ;;  %v3423_v59 = vmul.f32 %v3415_v1, %v3079_v18  ;;  %v9457_v60 = vld [vmem:[%s15065_s14 + $0x320] sm:$0xff]  ;;  %v9464_v58 = vld [vmem:[%s15065_s14 + $0x358] sm:$0xff] }
 0x7cc   : > { %v3419_v25 = vadd.f32 1.0, %v8477_v46  ;;  %v3113_v9 = vmul.f32 %v3112_v28, %v12443_v4  ;;  %v3099_v38 = vadd.f32 0.05243302, %v3098_v48  ;;  %v3136_v37 = vmul.f32 %v3135_v31, %v12490_v14  ;;  %3691 = vmatpush.bf16.msrb.mxu2 %v9457_v60  ;;  %3705 = vmatpush.bf16.msrb.mxu3 %v9465_v10  ;;  %v9456_v46 = vld [vmem:[%s15065_s14 + $0x318] sm:$0xff] }
 0x7cd   : > { %v3150_v5 = vadd.f32 0.112945676, %v3149_v3  ;;  %3736 = vmatpush.bf16.msrb.mxu1 %v9478_v49  ;;  %v3269_v57 = vmul.f32 %v3268_v23, %v12497_v0  ;;  %v3430_v40 = vpack.c.bf16 %v3426_v20, %v3422_v32  ;;  %v3294_v8 = vmul.f32 2.1237322e-06, %v12541_v44  ;;  %v9463_v49 = vld [vmem:[%s15065_s14 + $0x350] sm:$0xff] }
 0x7ce   : > { %v3427_v62 = vmul.f32 %v3419_v25, %v12360_v45  ;;  %v12536_v35 = vadd.f32 1.0, %v3113_v9  ;;  %v9477_v45 = vld [vmem:[%s15065_s14 + $0x3c0] sm:$0xff]  ;;  %v3258_v24 = vmul.f32 %v3257_v27, %v12497_v0  ;;  %v3305_v52 = vmul.f32 3.8918573e-05, %v12541_v44  ;;  %v9454_v27 = vld [vmem:[%s15065_s14 + $0x308] sm:$0xff] }
 0x7cf   : > { %v3151_v36 = vmul.f32 %v3150_v5, %v12490_v14  ;;  %v3270_v55 = vadd.f32 0.112945676, %v3269_v57  ;;  %v3100_v47 = vmul.f32 %v3099_v38, %v12443_v4  ;;  %v3295_v6 = vadd.f32 0.00028619796, %v3294_v8  ;;  %3724 = vmatmul.bf16.vlgmr.msrb.gmra.mxu0 %v3430_v40  ;;  %v9461_v8 = vld [vmem:[%s15065_s14 + $0x340] sm:$0xff] }
 0x7d0   : > { %9918 = vrcp.f32 %v12536_v35  ;;  %v3431_v15 = vpack.c.bf16 %v3427_v62, %v3423_v59  ;;  %v3137_v22 = vadd.f32 0.0036580483, %v3136_v37  ;;  %v3306_v39 = vadd.f32 0.001143296, %v3305_v52  ;;  %3692 = vmatpush.bf16.msrb.mxu2 %v9456_v46  ;;  %3706 = vmatpush.bf16.msrb.mxu3 %v9464_v58  ;;  %v9462_v59 = vld [vmem:[%s15065_s14 + $0x348] sm:$0xff] }
 0x7d1   : > { %v3152_v12 = vadd.f32 0.4994258, %v3151_v36  ;;  %3737 = vmatpush.bf16.msrb.mxu1 %v9477_v45  ;;  %v3271_v53 = vmul.f32 %v3270_v55, %v12497_v0  ;;  %v3259_v54 = vadd.f32 0.05243302, %v3258_v24  ;;  %v3101_v7 = vadd.f32 0.18741608, %v3100_v47 }
 0x7d2   : > { %v3296_v25 = vmul.f32 %v3295_v6, %v12541_v44  ;;  %v3138_v48 = vmul.f32 %v3137_v22, %v12490_v14  ;;  %v3307_v9 = vmul.f32 %v3306_v39, %v12541_v44  ;;  %v3126_v23 = vand.u32 2147483648, %v12536_v35 }
 0x7d3   : > { %v3153_v29 = vmul.f32 %v3152_v12, %v12490_v14  ;;  %v3272_v3 = vadd.f32 0.4994258, %v3271_v53  ;;  %v3260_v5 = vmul.f32 %v3259_v54, %v12497_v0  ;;  %v3102_v18 = vmul.f32 %v3101_v7, %v12443_v4  ;;  %v9453_v12 = vld [vmem:[%s15065_s14 + $0x300] sm:$0xff] }
 0x7d4   : > { %3738 = vmatmul.bf16.vlgmr.msrb.gmra.mxu1 %v3431_v15  ;;  %v3308_v17 = vadd.f32 0.014752088, %v3307_v9  ;;  %v3297_v20 = vadd.f32 0.0036580483, %v3296_v25  ;;  %3693 = vmatpush.bf16.msrb.mxu2 %v9455_v34  ;;  %v3139_v61 = vadd.f32 0.05243302, %v3138_v48  ;;  %vm3120_vm5 = vweird.f32 %v12536_v35 }
 0x7d5   : > { %v12557_v50 = vadd.f32 1.0, %v3153_v29  ;;  %v3273_v1 = vmul.f32 %v3272_v3, %v12497_v0  ;;  %3707 = vmatpush.bf16.msrb.mxu3 %v9463_v49  ;;  %v3261_v32 = vadd.f32 0.18741608, %v3260_v5  ;;  %v3124_v11 = vand.u32 2147483647, %v12536_v35 }
 0x7d6   : > { %v9919_v33 = vpop.eup %9918  ;;  %v3309_v36 = vmul.f32 %v3308_v17, %v12541_v44  ;;  %v3298_v38 = vmul.f32 %v3297_v20, %v12541_v44  ;;  %v3103_v57 = vadd.f32 1.1283791, %v3102_v18  ;;  %v3140_v15 = vmul.f32 %v3139_v61, %v12490_v14 }
 0x7d7   : > { %v3116_v28 = vmul.f32 %v9919_v33, %v12536_v35  ;;  %9920 = vrcp.f32 %v12557_v50  ;;  %v12570_v43 = vadd.f32 1.0, %v3273_v1  ;;  %vm3121_vm4 = vweird.f32 %v9919_v33 }
 0x7d8   : > { %vm12584_vm6 = vmor %vm3120_vm5, %vm3121_vm4  ;;  %v3310_v37 = vadd.f32 0.112945676, %v3309_v36  ;;  %3694 = vmatpush.bf16.msrb.mxu2 %v9454_v27  ;;  %v3127_v55 = vor.u32 1.1754944e-38, %v3126_v23  ;;  %v3262_v60 = vmul.f32 %v3261_v32, %v12497_v0  ;;  %vm3125_vm7 = vcmp.eq.f32.partialorder %v3124_v11, 8.507059e+37 }
 0x7d9   : > { %v3117_v13 = vsub.f32 1.0, %v3116_v28  ;;  %9922 = vrcp.f32 %v12570_v43  ;;  %3708 = vmatpush.bf16.msrb.mxu3 %v9462_v59  ;;  %v3299_v47 = vadd.f32 0.05243302, %v3298_v38  ;;  %v3104_v6 = vmul.f32 %v3103_v57, %v12398_v19 }
 0x7da   : > { %v3311_v10 = vmul.f32 %v3310_v37, %v12541_v44  ;;  %v3263_v46 = vadd.f32 1.1283791, %v3262_v60  ;;  %v3286_v28 = vand.u32 2147483648, %v12570_v43  ;;  %v3284_v58 = vand.u32 2147483647, %v12570_v43 }
 0x7db   : > { %v3118_v31 = vmul.f32 %v9919_v33, %v3117_v13  ;;  %v3300_v7 = vmul.f32 %v3299_v47, %v12541_v44  ;;  %v3166_v19 = vand.u32 2147483648, %v12557_v50  ;;  %vm3280_vm9 = vweird.f32 %v12570_v43 }
 0x7dc   : > { %v3312_v53 = vadd.f32 0.4994258, %v3311_v10  ;;  %3695 = vmatpush.bf16.msrb.mxu2 %v9453_v12  ;;  %v3287_v9 = vor.u32 1.1754944e-38, %v3286_v28  ;;  %v3264_v49 = vmul.f32 %v3263_v46, %v12483_v30  ;;  %vm3285_vm12 = vcmp.eq.f32.partialorder %v3284_v58, 8.507059e+37 }
 0x7dd   : > { %v12574_v62 = vpop.eup %9920  ;;  %v3119_v42 = vadd.f32 %v9919_v33, %v3118_v31  ;;  %3709 = vmatpush.bf16.msrb.mxu3 %v9461_v8  ;;  %vm3160_vm14 = vweird.f32 %v12557_v50  ;;  %v3301_v17 = vadd.f32 0.18741608, %v3300_v7  ;;  %v3167_v61 = vor.u32 1.1754944e-38, %v3166_v19 }
 0x7de   : > { %v3156_v4 = vmul.f32 %v12574_v62, %v12557_v50  ;;  %v3313_v0 = vmul.f32 %v3312_v53, %v12541_v44  ;;  %vm3161_vm10 = vweird.f32 %v12574_v62  ;;  %v3076_v23 = vmul.f32 0.5, %v12388_v2 }
 0x7df   : > { %v3123_v40 = vsel %vm12584_vm6, %v9919_v33, %v3119_v42  ;;  %v9923_v24 = vpop.eup %9922  ;;  %v3141_v33 = vadd.f32 0.18741608, %v3140_v15  ;;  %vm3162_vm13 = vmor %vm3160_vm14, %vm3161_vm10  ;;  %v3302_v30 = vmul.f32 %v3301_v17, %v12541_v44  ;;  %v3080_v32 = vmul.f32 0.5, %v12461_v41 }
 0x7e0   : > { %v3157_v35 = vsub.f32 1.0, %v3156_v4  ;;  %v3276_v29 = vmul.f32 %v9923_v24, %v12570_v43  ;;  %v3128_v52 = vsel %vm3125_vm7, %v3127_v55, %v3123_v40  ;;  %vm3281_vm8 = vweird.f32 %v9923_v24 }
 0x7e1   : > { %v3129_v54 = vmul.f32 %v3128_v52, %v3104_v6  ;;  %v3314_v13 = vadd.f32 1.0, %v3313_v0  ;;  %v3142_v1 = vmul.f32 %v3141_v33, %v12490_v14  ;;  %vm3282_vm11 = vmor %vm3280_vm9, %vm3281_vm8  ;;  %v3164_v14 = vand.u32 2147483647, %v12557_v50 }
 0x7e2   : > { %v3277_v22 = vsub.f32 1.0, %v3276_v29  ;;  %v3158_v39 = vmul.f32 %v12574_v62, %v3157_v35  ;;  %v3303_v57 = vadd.f32 1.1283791, %v3302_v30  ;;  %v3077_v29 = vmul.f32 0.5, %v12447_v16 }
 0x7e3   : > { %9924 = vrcp.f32 %v3314_v13  ;;  %v8470_v34 = vclamps-f32 %v3129_v54, 1.0  ;;  %v3143_v18 = vadd.f32 1.1283791, %v3142_v1  ;;  %vm3165_vm15 = vcmp.eq.f32.partialorder %v3164_v14, 8.507059e+37 }
 0x7e4   : > { %v3278_v3 = vmul.f32 %v9923_v24, %v3277_v22  ;;  %v3159_v48 = vadd.f32 %v12574_v62, %v3158_v39  ;;  %v3326_v40 = vand.u32 2147483648, %v3314_v13  ;;  %v3324_v2 = vand.u32 2147483647, %v3314_v13 }
 0x7e5   : > { %v3412_v42 = vadd.f32 1.0, %v8470_v34  ;;  %v3144_v11 = vmul.f32 %v3143_v18, %v12471_v63  ;;  %vm3320_vm3 = vweird.f32 %v3314_v13  ;;  %v3081_v52 = vmul.f32 0.5, %v12510_v56  ;;  %v15144_v18 = vld [vmem:[#allocation83_spill] sm:$0xff] }
 0x7e6   : > { %v3279_v25 = vadd.f32 %v9923_v24, %v3278_v3  ;;  %v3163_v20 = vsel %vm3162_vm13, %v12574_v62, %v3159_v48  ;;  %v3327_v44 = vor.u32 1.1754944e-38, %v3326_v40  ;;  %vm3325_vm5 = vcmp.eq.f32.partialorder %v3324_v2, 8.507059e+37  ;;  %v9847_v3 = vld [vmem:[%s15141_s19] ss:$0 sm:$0xff] }
 0x7e7   : > { %v3168_v4 = vsel %vm3165_vm15, %v3167_v61, %v3163_v20  ;;  %v3420_v45 = vmul.f32 %v3412_v42, %v3076_v23 }
 0x7e8   : > { %v3283_v31 = vsel %vm3282_vm11, %v9923_v24, %v3279_v25  ;;  %v3169_v62 = vmul.f32 %v3168_v4, %v3144_v11  ;;  %v3304_v24 = vmul.f32 %v3303_v57, %v12523_v51  ;;  %v15142_v25 = vld [vmem:[#allocation84_spill] sm:$0xff] }
 0x7e9   : > { %v3288_v5 = vsel %vm3285_vm12, %v3287_v9, %v3283_v31  ;;  %v9925_v27 = vpop.eup %9924 }
 0x7ea   : > { %v3289_v43 = vmul.f32 %v3288_v5, %v3264_v49  ;;  %v3316_v59 = vmul.f32 %v9925_v27, %v3314_v13  ;;  %vm3321_vm2 = vweird.f32 %v9925_v27  ;;  %v8471_v41 = vclamps-f32 %v3169_v62, 1.0  ;;  %v15143_v5 = vld [vmem:[#allocation85_spill] sm:$0xff] }
 0x7eb   : > { %vm3322_vm4 = vmor %vm3320_vm3, %vm3321_vm2 }
 0x7ec   : > { %v8474_v36 = vclamps-f32 %v3289_v43, 1.0  ;;  %v3317_v37 = vsub.f32 1.0, %v3316_v59  ;;  %v3413_v60 = vadd.f32 1.0, %v8471_v41 }
 0x7ee   : > { %v3416_v50 = vadd.f32 1.0, %v8474_v36  ;;  %v3318_v12 = vmul.f32 %v9925_v27, %v3317_v37  ;;  %v3421_v53 = vmul.f32 %v3413_v60, %v3077_v29 }
 0x7f0   : > { %v3424_v38 = vmul.f32 %v3416_v50, %v3080_v32  ;;  %v3319_v8 = vadd.f32 %v9925_v27, %v3318_v12 }
 0x7f2   : > { %v3428_v15 = vpack.c.bf16 %v3424_v38, %v3420_v45  ;;  %v3323_v55 = vsel %vm3322_vm4, %v9925_v27, %v3319_v8 }
 0x7f3   : > { %v3328_v63 = vsel %vm3325_vm5, %v3327_v44, %v3323_v55  ;;  %v15145_v44 = vld [vmem:[#allocation79_spill] sm:$0xff] }
 0x7f4   : > { %3696 = vmatmul.bf16.vlgmr.msrb.gmra.mxu2 %v3428_v15  ;;  %v3329_v35 = vmul.f32 %v3328_v63, %v3304_v24  ;;  %v3799_v41 = vperm.slane %v15145_v44, 0  ;;  %v15146_v63 = vld [vmem:[#allocation80_spill] sm:$0xff] }
 0x7f5   :  { %v3917_v44 = vld [vmem:[%s15204_s11] sm:$0xff] (%p307_p6)  }
 0x7f6   : > { %v8475_v10 = vclamps-f32 %v3329_v35, 1.0  ;;  %v3804_v35 = vperm.slane %v15146_v63, 0 }
 0x7f8   : > { %v3417_v47 = vadd.f32 1.0, %v8475_v10 }
 0x7fa   : > { %v3425_v6 = vmul.f32 %v3417_v47, %v3081_v52 }
 0x7fc   : > { %v3429_v33 = vpack.c.bf16 %v3425_v6, %v3421_v53  ;;  %v15147_v53 = vld [vmem:[#allocation82_spill] sm:$0xff] }
 0x7fe   : > { %3710 = vmatmul.bf16.vlgmr.msrb.gmra.mxu3 %v3429_v33 }
 0x84c   : > { %v3725_v39 = vpop.f32.mrf.mxu0 }
 0x851   : > { %v3739_v28 = vpop.f32.mrf.mxu1 }
 0x854   : > { %v3727_v56 = vpop.f32.mrf.mxu0 }
 0x859   : > { %v3741_v9 = vpop.f32.mrf.mxu1 }
 0x877   : > { %v3697_v22 = vpop.f32.mrf.mxu2 }
 0x87f   : > { %v3699_v58 = vpop.f32.mrf.mxu2 }
 0x881   : > { %v3711_v46 = vpop.f32.mrf.mxu3 }
 0x882   : > { %v3712_v51 = vadd.f32 %v3711_v46, %v3697_v22  ;;  %v15149_v46 = vld [vmem:[#allocation81_spill] sm:$0xff] }
 0x884   : > { %v3726_v0 = vadd.f32 %v3725_v39, %v3712_v51 }
 0x886   : > { %v3740_v54 = vadd.f32 %v3739_v28, %v3726_v0  ;;  %v3851_v28 = vld [vmem:[%s15153_s24 + $0x18] sm:$0xff] (%p307_p6) }
 0x887   :  { %v3889_v0 = vld [vmem:[%s15154_s30 + $0x18] sm:$0xff] (%p307_p6)  ;;  %9653 = vmatpush.msra.mxu2 (%p307_p6), %v3851_v28  ;;  %3875 = vmatpush.msra.mxu0 (%p307_p6), %v3851_v28 }
 0x888   : > { %v3744_v7 = vadd.f32 %v3740_v54, %v12376_v21  ;;  %v3850_v54 = vld [vmem:[%s15153_s24 + $0x10] sm:$0xff] (%p307_p6)  ;;  %9657 = vmatpush.msra.mxu3 (%p307_p6), %v3889_v0  ;;  %3906 = vmatpush.msra.mxu1 (%p307_p6), %v3889_v0 }
 0x889   : > { %v3713_v13 = vpop.f32.mrf.mxu3  ;;  %9654 = vmatpush.msra.mxu2 (%p307_p6), %v3850_v54  ;;  %3876 = vmatpush.msra.mxu0 (%p307_p6), %v3850_v54 }
 0x88a   : > { %v3714_v16 = vadd.f32 %v3713_v13, %v3699_v58  ;;  %v3750_v1 = vadd.f32 %v9847_v3, %v3744_v7  ;;  %v3849_v58 = vld [vmem:[%s15153_s24 + $0x8] sm:$0xff] (%p307_p6)  ;;  %v12660_v13 = vld [vmem:[%s15155_s6] sm:$0xff] (%p307_p6) }
 0x88b   :  { %v3887_v7 = vld [vmem:[%s15154_s30 + $0x8] sm:$0xff] (%p307_p6)  ;;  %15158 = vst [vmem:[#allocation51_spill] sm:$0xff] (%p307_p6), %v12660_v13  ;;  %9655 = vmatpush.msra.mxu2 (%p307_p6), %v3849_v58  ;;  %3877 = vmatpush.msra.mxu0 (%p307_p6), %v3849_v58 }
 0x88c   : > { %v3728_v19 = vadd.f32 %v3727_v56, %v3714_v16  ;;  %v3752_v48 = vadd.f32 %v3750_v1, %v15142_v25  ;;  %v12663_v16 = vld [vmem:[%s15155_s6 + $0x8] sm:$0xff] (%p307_p6)  ;;  %v12666_v1 = vld [vmem:[%s15155_s6 + $0x10] sm:$0xff] (%p307_p6)  ;;  %v12669_v56 = vld [vmem:[%s15155_s6 + $0x18] sm:$0xff] (%p307_p6) }
 0x88d   :  { %15159 = vst [vmem:[#allocation52_spill] sm:$0xff] (%p307_p6), %v12663_v16  ;;  %v12675_v25 = vld [vmem:[%s15157_s15] sm:$0xff] (%p307_p6) }
 0x88e   : > { %v3742_v34 = vadd.f32 %v3741_v9, %v3728_v19  ;;  %v3754_v49 = vsel %vm318_vm0, %v3752_v48, 0.0  ;;  %15161 = vst [vmem:[#allocation57_spill] sm:$0xff] (%p307_p6), %v12666_v1  ;;  %v12672_v19 = vld [vmem:[%s15156_s16] sm:$0x1] (%p307_p6)  ;;  %v12681_v9 = vld [vmem:[%s15157_s15 + $0x10] sm:$0xff] (%p307_p6) }
 0x88f   : > { %3755 = vadd.xlane.f32.xlu2 %v3754_v49  ;;  %15164 = vst [vmem:[#allocation58_spill] sm:$0xff] (%p307_p6), %v12669_v56  ;;  %v12687_v49 = vld [vmem:[%s15160_s18] sm:$0x1] (%p307_p6) }
 0x890   : > { %v3745_v31 = vadd.f32 %v3742_v34, %v12439_v26  ;;  %15165 = vst [vmem:[#allocation59_spill] sm:$0xff] (%p307_p6), %v12672_v19 }
 0x891   :  { %15166 = vst [vmem:[#allocation60_spill] sm:$0xff] (%p307_p6), %v12675_v25 }
 0x892   : > { %v3751_v14 = vadd.f32 %v9847_v3, %v3745_v31  ;;  %v3888_v3 = vld [vmem:[%s15154_s30 + $0x10] sm:$0xff] (%p307_p6)  ;;  %15169 = vst [vmem:[#allocation62_spill] sm:$0xff] (%p307_p6), %v12681_v9 }
 0x893   :  { %9658 = vmatpush.msra.mxu3 (%p307_p6), %v3888_v3  ;;  %3907 = vmatpush.msra.mxu1 (%p307_p6), %v3888_v3  ;;  %15173 = vst [vmem:[#allocation64_spill] sm:$0xff] (%p307_p6), %v12687_v49 }
 0x894   : > { %v3753_v17 = vadd.f32 %v3751_v14, %v15143_v5  ;;  %v12693_v14 = vld [vmem:[%s15162_s23 + $0x8] sm:$0xff] (%p307_p6)  ;;  %v12696_v5 = vld [vmem:[%s15162_s23 + $0x10] sm:$0xff] (%p307_p6) }
 0x895   :  { %9659 = vmatpush.msra.mxu3 (%p307_p6), %v3887_v7  ;;  %15176 = vst [vmem:[#allocation66_spill] sm:$0xff] (%p307_p6), %v12693_v14  ;;  %3908 = vmatpush.msra.mxu1 (%p307_p6), %v3887_v7 }
 0x896   : > { %v3757_v43 = vsel %vm318_vm0, %v3753_v17, 0.0  ;;  %15178 = vst [vmem:[#allocation67_spill] sm:$0xff] (%p307_p6), %v12696_v5 }
 0x897   : > { %3758 = vadd.xlane.f32.xlu0 %v3757_v43  ;;  %v12702_v43 = vld [vmem:[%s15163_s22] sm:$0x1] (%p307_p6) }
 0x898   :  { %15180 = vst [vmem:[#allocation69_spill] sm:$0xff] (%p307_p6), %v12702_v43 }
 0x902   : > { %v3756_v21 = vpop.xlane.xlu2 %3755 }
 0x903   : > { %v3760_v20 = vmul.f32 %v3756_v21, %v15144_v18  ;;  %v12705_v21 = vld [vmem:[%s15167_s9] sm:$0xff] (%p307_p6) }
 0x904   :  { %15183 = vst [vmem:[#allocation70_spill] sm:$0xff] (%p307_p6), %v12705_v21 }
 0x905   : > { %v3762_v42 = vsub.f32 %v3752_v48, %v3760_v20  ;;  %v12678_v48 = vld [vmem:[%s15157_s15 + $0x8] sm:$0xff] (%p307_p6)  ;;  %v12711_v20 = vld [vmem:[%s15167_s9 + $0x10] sm:$0xff] (%p307_p6) }
 0x906   :  { %15168 = vst [vmem:[#allocation61_spill] sm:$0xff] (%p307_p6), %v12678_v48 }
 0x907   : > { %v3764_v61 = vmul.f32 %v3762_v42, %v3762_v42  ;;  %15187 = vst [vmem:[#allocation72_spill] sm:$0xff] (%p307_p6), %v12711_v20 }
 0x909   : > { %v3766_v36 = vsel %vm318_vm0, %v3764_v61, 0.0  ;;  %v12717_v61 = vld [vmem:[%s15171_s26] sm:$0x1] (%p307_p6) }
 0x90a   : > { %v3759_v27 = vpop.xlane.xlu0 %3758  ;;  %3767 = vadd.xlane.f32.xlu1 %v3766_v36  ;;  %15190 = vst [vmem:[#allocation74_spill] sm:$0xff] (%p307_p6), %v12717_v61  ;;  %v12720_v36 = vld [vmem:[%s15172_s28] sm:$0xff] (%p307_p6) }
 0x90b   : > { %v3761_v23 = vmul.f32 %v3759_v27, %v15144_v18  ;;  %15191 = vst [vmem:[#allocation75_spill] sm:$0xff] (%p307_p6), %v12720_v36  ;;  %v12723_v27 = vld [vmem:[%s15172_s28 + $0x8] sm:$0xff] (%p307_p6) }
 0x90c   :  { %15192 = vst [vmem:[#allocation76_spill] sm:$0xff] (%p307_p6), %v12723_v27 }
 0x90d   : > { %v3763_v30 = vsub.f32 %v3753_v17, %v3761_v23  ;;  %v12699_v17 = vld [vmem:[%s15162_s23 + $0x18] sm:$0xff] (%p307_p6)  ;;  %v12726_v23 = vld [vmem:[%s15172_s28 + $0x10] sm:$0xff] (%p307_p6) }
 0x90e   :  { %15179 = vst [vmem:[#allocation68_spill] sm:$0xff] (%p307_p6), %v12699_v17 }
 0x90f   : > { %v3765_v4 = vmul.f32 %v3763_v30, %v3763_v30  ;;  %15193 = vst [vmem:[#allocation77_spill] sm:$0xff] (%p307_p6), %v12726_v23 }
 0x911   : > { %v3769_v26 = vsel %vm318_vm0, %v3765_v4, 0.0  ;;  %v12732_v4 = vld [vmem:[%s15175_s1] sm:$0x1] (%p307_p6) }
 0x912   : > { %3770 = vadd.xlane.f32.xlu2 %v3769_v26  ;;  %15195 = vst [vmem:[#allocation79_spill] sm:$0xff] (%p307_p6), %v12732_v4  ;;  %v12735_v26 = vld [vmem:[%s15177_s2] sm:$0xff] (%p307_p6) }
 0x913   :  { %15196 = vst [vmem:[#allocation80_spill] sm:$0xff] (%p307_p6), %v12735_v26 }
 0x97d   : > { %v3768_v32 = vpop.xlane.xlu1 %3767 }
 0x97e   : > { %v3772_v50 = vmul.f32 %v3768_v32, %v15144_v18 }
 0x980   : > { %v3774_v59 = vadd.f32 1e-05, %v3772_v50  ;;  %v12741_v50 = vld [vmem:[%s15177_s2 + $0x10] sm:$0xff] (%p307_p6) }
 0x981   :  { %15198 = vst [vmem:[#allocation103_spill] sm:$0xff] (%p307_p6), %v12741_v50 }
 0x982   : > { %9926 = vrsqrt.f32 %v3774_v59  ;;  %vm3782_vm7 = vweird.f32 %v3774_v59 }
 0x985   : > { %v3771_v11 = vpop.xlane.xlu2 %3770 }
 0x986   : > { %v3773_v45 = vmul.f32 %v3771_v11, %v15144_v18  ;;  %v12708_v18 = vld [vmem:[%s15167_s9 + $0x8] sm:$0xff] (%p307_p6)  ;;  %v12747_v11 = vld [vmem:[%s15181_s7] sm:$0x1] (%p307_p6) }
 0x987   :  { %15185 = vst [vmem:[#allocation71_spill] sm:$0xff] (%p307_p6), %v12708_v18 }
 0x988   : > { %v9927_v38 = vpop.eup %9926  ;;  %v3775_v37 = vadd.f32 1e-05, %v3773_v45  ;;  %15200 = vst [vmem:[#allocation105_spill] sm:$0xff] (%p307_p6), %v12747_v11  ;;  %v12750_v45 = vld [vmem:[%s15182_s25] sm:$0x1] (%p307_p6) }
 0x989   : > { %v3777_v62 = vmul.f32 %v9927_v38, %v3774_v59  ;;  %vm3783_vm6 = vweird.f32 %v9927_v38  ;;  %v12744_v59 = vld [vmem:[%s15177_s2 + $0x18] sm:$0xff] (%p307_p6)  ;;  %15201 = vst [vmem:[#allocation106_spill] sm:$0xff] (%p307_p6), %v12750_v45 }
 0x98a   : > { %9928 = vrsqrt.f32 %v3775_v37  ;;  %vm3784_vm8 = vmor %vm3782_vm7, %vm3783_vm6  ;;  %vm3792_vm10 = vweird.f32 %v3775_v37  ;;  %15199 = vst [vmem:[#allocation104_spill] sm:$0xff] (%p307_p6), %v12744_v59 }
 0x98b   : > { %v3778_v57 = vmul.f32 %v9927_v38, %v3777_v62  ;;  %v12759_v62 = vld [vmem:[%s15188_s4] sm:$0x1] (%p307_p6) }
 0x98c   :  { %15205 = vst [vmem:[#allocation109_spill] sm:$0xff] (%p307_p6), %v12759_v62 }
 0x98d   : > { %v3779_v40 = vmul.f32 0.5, %v3778_v57  ;;  %v12761_v57 = vld [vmem:[#allocation3] sm:$0x1] (%p307_p6) }
 0x98e   :  { %15206 = vst [vmem:[#allocation110_spill] sm:$0xff] (%p307_p6), %v12761_v57 }
 0x98f   : > { %v3780_v15 = vsub.f32 1.5, %v3779_v40  ;;  %v12763_v40 = vld [vmem:[#allocation6] sm:$0x1] (%p307_p6) }
 0x990   : > { %v9929_v12 = vpop.eup %9928  ;;  %15208 = vst [vmem:[#allocation111_spill] sm:$0xff] (%p307_p6), %v12763_v40 }
 0x991   : > { %v3781_v2 = vmul.f32 %v9927_v38, %v3780_v15  ;;  %v3787_v8 = vmul.f32 %v9929_v12, %v3775_v37  ;;  %vm3793_vm9 = vweird.f32 %v9929_v12  ;;  %v12756_v37 = vld [vmem:[%s15186_s0] sm:$0x1] (%p307_p6)  ;;  %v12765_v15 = vld [vmem:[#allocation8] sm:$0x1] (%p307_p6) }
 0x992   : > { %vm3794_vm11 = vmor %vm3792_vm10, %vm3793_vm9  ;;  %15203 = vst [vmem:[#allocation108_spill] sm:$0xff] (%p307_p6), %v12756_v37 }
 0x993   : > { %v3785_v24 = vsel %vm3784_vm8, %v9927_v38, %v3781_v2  ;;  %v3788_v55 = vmul.f32 %v9929_v12, %v3787_v8  ;;  %v12753_v38 = vld [vmem:[%s15184_s10] sm:$0x1] (%p307_p6)  ;;  %15210 = vst [vmem:[#allocation112_spill] sm:$0xff] (%p307_p6), %v12765_v15 }
 0x994   : > { %v3796_v60 = vmul.f32 %v3785_v24, %v3762_v42  ;;  %v12714_v42 = vld [vmem:[%s15167_s9 + $0x18] sm:$0xff] (%p307_p6)  ;;  %15202 = vst [vmem:[#allocation107_spill] sm:$0xff] (%p307_p6), %v12753_v38  ;;  %v3848_v2 = vld [vmem:[%s15153_s24] sm:$0xff] (%p307_p6) }
 0x995   : > { %v3789_v10 = vmul.f32 0.5, %v3788_v55  ;;  %15189 = vst [vmem:[#allocation73_spill] sm:$0xff] (%p307_p6), %v12714_v42  ;;  %9656 = vmatpush.msra.mxu2 (%p307_p6), %v3848_v2  ;;  %v3886_v8 = vld [vmem:[%s15154_s30] sm:$0xff] (%p307_p6)  ;;  %3878 = vmatpush.msra.mxu0 (%p307_p6), %v3848_v2 }
 0x996   : > { %v3801_v29 = vmul.f32 %v3799_v41, %v3796_v60  ;;  %9660 = vmatpush.msra.mxu3 (%p307_p6), %v3886_v8  ;;  %3909 = vmatpush.msra.mxu1 (%p307_p6), %v3886_v8  ;;  %v9930_v24 = vld [vmem:[%s15207_s5] ss:$0 sm:$0xff] (%p307_p6) }
 0x997   : > { %v3790_v52 = vsub.f32 1.5, %v3789_v10  ;;  %v9931_v55 = vld [vmem:[%s15209_s13] ss:$0 sm:$0xff] (%p307_p6) }
 0x998   : > { %v3806_v31 = vadd.f32 %v3804_v35, %v3801_v29  }
 0x999   : > { %v3791_v47 = vmul.f32 %v9929_v12, %v3790_v52 }
 0x99a   : > { %v12635_v34 = vadd.f32 %v15147_v53, %v3806_v31   ;;  %v12690_v31 = vld [vmem:[%s15162_s23] sm:$0xff] (%p307_p6) }
 0x99b   : > { %v3795_v33 = vsel %vm3794_vm11, %v9929_v12, %v3791_v47  ;;  %15174 = vst [vmem:[#allocation65_spill] sm:$0xff] (%p307_p6), %v12690_v31  ;;  %v12767_v12 = vld [vmem:[#allocation2] sm:$0x1] (%p307_p6) }
 0x99c   : > { %v15148_v6 = vmov %v12635_v34  ;;  %v3797_v22 = vmul.f32 %v3795_v33, %v3763_v30  ;;  %v12729_v30 = vld [vmem:[%s15172_s28 + $0x18] sm:$0xff] (%p307_p6)  ;;  %15211 = vst [vmem:[#allocation113_spill] sm:$0xff] (%p307_p6), %v12767_v12 }
 0x99d   : > { %v15152_v34 = vmov %v15148_v6  ;;  %15194 = vst [vmem:[#allocation78_spill] sm:$0xff] (%p307_p6), %v12729_v30  ;;  %8606 = vmatmul.msk.f32.vlgmr.msra.gmra.mxu0 (%p307_p6), %vm318_vm0, %v15148_v6  ;;  %8608 = vmatmul.msk.f32.vlgmr.msra.gmra.mxu1 (%p307_p6), %vm318_vm0, %v15148_v6  ;;  %v12795_v6 = vmov (%p307_p6), 0.0  }
 0x99e   : > { %v3802_v39 = vmul.f32 %v3799_v41, %v3797_v22  ;;  %v12684_v34 = vld [vmem:[%s15157_s15 + $0x18] sm:$0xff] (%p307_p6)  ;;  %v3918_v41 = vld [vmem:[%s15204_s11 + $0x8] sm:$0xff] (%p307_p6)   ;;  %v12793_v22 = vmov (%p307_p6), 0.0  }
 0x99f   :  { %15170 = vst [vmem:[#allocation63_spill] sm:$0xff] (%p307_p6), %v12684_v34 }
 0x9a0   : > { %v3807_v32 = vadd.f32 %v3804_v35, %v3802_v39   ;;  %v12797_v39 = vmov (%p307_p6), 0.0  }
 0x9a1   :  { %309 = sbr.rel (!%p307_p6) target bundleno = 192 (0xc0), region = 311 }
 0x9a2   : > { %v12638_v33 = vadd.f32 %v15149_v46, %v3807_v32   ;;  %v12738_v32 = vld [vmem:[%s15177_s2 + $0x8] sm:$0xff] (%p307_p6)  ;;  %v15216_v46 = vmov (%p307_p6), %v3918_v41 }
 0x9a3   :  { %15197 = vst [vmem:[#allocation102_spill] sm:$0xff] (%p307_p6), %v12738_v32 }
 0x9a4   : > { %v15150_v51 = vmov %v12638_v33 }
 0x9a5   : > { %v15151_v33 = vmov %v15150_v51  ;;  %8607 = vmatmul.msk.f32.vlgmr.msra.gmra.mxu2 (%p307_p6), %vm318_vm0, %v15150_v51  ;;  %8609 = vmatmul.msk.f32.vlgmr.msra.gmra.mxu3 (%p307_p6), %vm318_vm0, %v15150_v51  ;;  %v15217_v51 = vmov (%p307_p6), %v3917_v44 }
 0x9a6   :  { %v12791_v33 = vmov 0.0  }
 0xa1a   :  { %v3880_v63 = vpop.f32.mrf.mxu0  ;;  %v3911_v35 = vpop.f32.mrf.mxu1 }
 0xa1b   :  { %v12783_v60 = vadd.f32 %v9930_v24, %v3880_v63  ;;  %v12785_v10 = vadd.f32 %v9931_v55, %v3911_v35 }
 0xa1d   :  { %15212 = vst [vmem:[#allocation114_spill] sm:$0xff] %v12783_v60 }
 0xa1e   :  { %15213 = vst [vmem:[#allocation115_spill] sm:$0xff] %v12785_v10 }
 0xa28   :  { %v3883_v29 = vpop.f32.mrf.mxu2  ;;  %v3914_v47 = vpop.f32.mrf.mxu3 }
 0xa29   :  { %v12787_v52 = vadd.f32 %v9930_v24, %v3883_v29  ;;  %v12789_v53 = vadd.f32 %v9931_v55, %v3914_v47 }
 0xa2b   :  { %15214 = vst [vmem:[#allocation116_spill] sm:$0xff] %v12787_v52 }
 0xa2c   :  { %15215 = vst [vmem:[#allocation117_spill] sm:$0xff] %v12789_v53 }
 0xa2d LB: > { %v15218_v56 = vld [vmem:[#allocation58_spill] sm:$0xff]  ;;  %v15219_v48 = vld [vmem:[#allocation61_spill] sm:$0xff]  ;;  %v15220_v34 = vld [vmem:[#allocation63_spill] sm:$0xff]  ;;  %15226 = vst [vmem:[#allocation118_spill] sm:$0xff] %v10235_v33  ;;  %s15227_s21 = sld [smem:[#allocation18_spill]]  ;;  %s8610_s20 = sshll.u32 %s10267_s17, 4  ;;  %v10263_v44 = vphi %v3917_v44, %v7713_v44   ;;  %v10259_v41 = vphi %v3918_v41, %v7714_v41   ;;  %v10255_v51 = vphi %v15217_v51, %v15406_v51   ;;  %v10251_v46 = vphi %v15216_v46, %v15405_v46   ;;  %v10247_v39 = vphi %v12797_v39, %v15404_v39   ;;  %v10243_v6 = vphi %v12795_v6, %v15403_v6   ;;  %v10239_v22 = vphi %v12793_v22, %v3979_v22   ;;  %v10235_v33 = vphi %v12791_v33, %v14799_v33   ;;  %s10267_s17 = sphi %s12807_s17, %s3924_s17  }
 0xa2e   : > { %v15221_v25 = vld [vmem:[#allocation60_spill] sm:$0xff]  ;;  %v15223_v13 = vld [vmem:[#allocation51_spill] sm:$0xff]  ;;  %v15224_v9 = vld [vmem:[#allocation62_spill] sm:$0xff]  ;;  %15228 = vst [vmem:[#allocation119_spill] sm:$0xff] %v10239_v22  ;;  %9665 = vmatpush.msra.mxu3 %v15220_v34  ;;  %4034 = vmatpush.msra.mxu1 %v15220_v34  ;;  %s15268_s3 = sld [smem:[#allocation47_spill]]  ;;  %s3924_s17 = sadd.s32 1, %s10267_s17  }
 0xa2f   : > { %v15222_v16 = vld [vmem:[#allocation52_spill] sm:$0xff]  ;;  %v15225_v1 = vld [vmem:[#allocation57_spill] sm:$0xff]  ;;  %15229 = vst [vmem:[#allocation120_spill] sm:$0xff] %v10243_v6  ;;  %4008 = vmatpush.msra.mxu0 %v15218_v56  ;;  %9661 = vmatpush.msra.mxu2 %v15218_v56  ;;  %v15237_v5 = vld [vmem:[#allocation67_spill] sm:$0xff]  ;;  %s15271_s8 = sld [smem:[#allocation48_spill]]  ;;  %p3921_p7 = scmp.ge.s32.totalorder %s3924_s17, 3  }
 0xa30   : > { %15230 = vst [vmem:[#allocation121_spill] sm:$0xff] %v10247_v39  ;;  %9666 = vmatpush.msra.mxu3 %v15224_v9  ;;  %4035 = vmatpush.msra.mxu1 %v15224_v9  ;;  %v15235_v17 = vld [vmem:[#allocation68_spill] sm:$0xff]  ;;  %v15236_v42 = vld [vmem:[#allocation73_spill] sm:$0xff]  ;;  %v15239_v14 = vld [vmem:[#allocation66_spill] sm:$0xff]  ;;  %s15311_s14 = sld [smem:[#allocation49_spill]]  ;;  %s10328_s24 = smov (%p3921_p7), [#allocation11]  }
 0xa31   : > { %15231 = vst [vmem:[#allocation122_spill] sm:$0xff] %v10251_v46  ;;  %4009 = vmatpush.msra.mxu0 %v15225_v1  ;;  %9662 = vmatpush.msra.mxu2 %v15225_v1  ;;  %v15238_v20 = vld [vmem:[#allocation72_spill] sm:$0xff]  ;;  %v15240_v18 = vld [vmem:[#allocation71_spill] sm:$0xff]  ;;  %v15241_v31 = vld [vmem:[#allocation65_spill] sm:$0xff]  ;;  %s15387_s19 = sld [smem:[#allocation50_spill]]  ;;  %s7787_s30 = sshll.u32 (%p3921_p7), %s10328_s24, 4  ;;  %s7788_s30 = int_to_ptr.vmem [resolvable:$true] %s7787_s30 }
 0xa32   : > { %15232 = vst [vmem:[#allocation123_spill] sm:$0xff] %v10255_v51  ;;  %9667 = vmatpush.msra.mxu3 %v15219_v48  ;;  %4036 = vmatpush.msra.mxu1 %v15219_v48  ;;  %v15242_v21 = vld [vmem:[#allocation70_spill] sm:$0xff]  ;;  %v15243_v59 = vld [vmem:[#allocation104_spill] sm:$0xff]  ;;  %v15245_v50 = vld [vmem:[#allocation103_spill] sm:$0xff]  ;;  %s7789_s6 = sshll.u32 (%p3921_p7), %s10597_s12, 4  ;;  %s10141_s15 = scalar_lea.hbm (%p3921_p7), %s10597_s12, 16  ;;  %s7790_s6 = int_to_ptr.hbm [resolvable:$true] %s7789_s6 }
 0xa33   : > { %s3934_s29 = scalar_lea.vmem %s15227_s21, %s8610_s20  ;;  %4010 = vmatpush.msra.mxu0 %v15222_v16  ;;  %9663 = vmatpush.msra.mxu2 %v15222_v16  ;;  %v15244_v30 = vld [vmem:[#allocation78_spill] sm:$0xff]  ;;  %v15246_v23 = vld [vmem:[#allocation77_spill] sm:$0xff]  ;;  %v15248_v27 = vld [vmem:[#allocation76_spill] sm:$0xff] }
 0xa34   : > { %v3936_v28 = vld [vmem:[%s3934_s29 + $0x8] sm:$0xff]  ;;  %v3935_v0 = vld [vmem:[%s3934_s29] sm:$0xff]  ;;  %9668 = vmatpush.msra.mxu3 %v15221_v25  ;;  %4037 = vmatpush.msra.mxu1 %v15221_v25  ;;  %v15247_v32 = vld [vmem:[#allocation102_spill] sm:$0xff] }
 0xa35   : > { %v12844_v54 = vadd.f32 %v10259_v41, %v3936_v28  ;;  %v12847_v3 = vadd.f32 %v10263_v44, %v3935_v0  ;;  %4011 = vmatpush.msra.mxu0 %v15223_v13  ;;  %9664 = vmatpush.msra.mxu2 %v15223_v13  ;;  %v15249_v26 = vld [vmem:[#allocation80_spill] sm:$0xff]  ;;  %v15250_v36 = vld [vmem:[#allocation75_spill] sm:$0xff]  ;;  %v15254_v60 = vld [vmem:[#allocation114_spill] sm:$0xff] }
 0xa36   : > { %4209 = vmatpush.msrb.mxu1 %v15236_v42  ;;  %v15251_v49 = vld [vmem:[#allocation64_spill] sm:$0xff]  ;;  %v15252_v19 = vld [vmem:[#allocation59_spill] sm:$0xff]  ;;  %v15255_v28 = vld [vmem:[#allocation53_spill] sm:$0xff] }
 0xa37   : > { %15233 = vst [vmem:[#allocation124_spill] sm:$0xff] %v12844_v54  ;;  %8614 = vmatmul.msk.f32.vlgmr.msra.gmra.mxu3 %vm318_vm0, %v12844_v54  ;;  %8613 = vmatmul.msk.f32.vlgmr.msra.gmra.mxu1 %vm318_vm0, %v12847_v3  ;;  %v4020_v58 = vperm.slane %v15251_v49, 0  ;;  %v3988_v44 = vperm.slane %v15252_v19, 0  ;;  %v15253_v52 = vld [vmem:[#allocation116_spill] sm:$0xff]  ;;  %v15257_v43 = vld [vmem:[#allocation69_spill] sm:$0xff]  ;;  %v15259_v10 = vld [vmem:[#allocation115_spill] sm:$0xff] }
 0xa38   : > { %15234 = vst [vmem:[#allocation125_spill] sm:$0xff] %v12847_v3  ;;  %8611 = vmatmul.msk.f32.vlgmr.msra.gmra.mxu0 %vm318_vm0, %v12847_v3  ;;  %8612 = vmatmul.msk.f32.vlgmr.msra.gmra.mxu2 %vm318_vm0, %v12844_v54  ;;  %v15258_v53 = vld [vmem:[#allocation117_spill] sm:$0xff]  ;;  %v15260_v61 = vld [vmem:[#allocation74_spill] sm:$0xff]  ;;  %v15263_v38 = vld [vmem:[#allocation107_spill] sm:$0xff] }
 0xa39   : > { %4060 = vmatpush.msrb.mxu2 %v15235_v17  ;;  %4210 = vmatpush.msrb.mxu1 %v15238_v20  ;;  %v15262_v45 = vld [vmem:[#allocation106_spill] sm:$0xff]  ;;  %v15264_v4 = vld [vmem:[#allocation79_spill] sm:$0xff]  ;;  %v15267_v11 = vld [vmem:[#allocation105_spill] sm:$0xff] }
 0xa3a   : > { %v8691_v19 = vld [vmem:[%s15268_s3 + $0x58] sm:$0xf0]  ;;  %v15269_v37 = vld [vmem:[#allocation108_spill] sm:$0xff]  ;;  %v15270_v62 = vld [vmem:[#allocation109_spill] sm:$0xff] }
 0xa3b   : > { %4061 = vmatpush.msrb.mxu2 %v15237_v5  ;;  %4211 = vmatpush.msrb.mxu1 %v15240_v18 }
 0xa3d   : > { %4062 = vmatpush.msrb.mxu2 %v15239_v14  ;;  %4212 = vmatpush.msrb.mxu1 %v15242_v21 }
 0xa3f   : > { %4063 = vmatpush.msrb.mxu2 %v15241_v31  ;;  %4452 = vmatpush.msra.mxu1 %v15243_v59 }
 0xa40   : > { %8615 = vmatmul.msk.f32.vlgmr.msrb.gmra.mxu2 %vm318_vm0, %v12847_v3 }
 0xa41   : > { %4304 = vmatpush.msra.mxu2 %v15244_v30  ;;  %4453 = vmatpush.msra.mxu1 %v15245_v50 }
 0xa43   : > { %4305 = vmatpush.msra.mxu2 %v15246_v23  ;;  %4454 = vmatpush.msra.mxu1 %v15247_v32 }
 0xa45   : > { %4306 = vmatpush.msra.mxu2 %v15248_v27  ;;  %4455 = vmatpush.msra.mxu1 %v15249_v26 }
 0xa47   : > { %4307 = vmatpush.msra.mxu2 %v15250_v36 }
 0xa48   : > { %8616 = vmatmul.msk.f32.gmra.mxu2 %vm318_vm0, %v12844_v54 }
 0xab4   : > { %v4039_v2 = vpop.f32.mrf.mxu1 }
 0xab5   : > { %v4040_v41 = vadd.f32 %v4039_v2, %v4020_v58  ;;  %v4013_v24 = vpop.f32.mrf.mxu0 }
 0xab6   : > { %v4014_v55 = vadd.f32 %v4013_v24, %v3988_v44 }
 0xaba   : > { %v4042_v7 = vpop.f32.mrf.mxu3 }
 0xabb   : > { %v4043_v8 = vadd.f32 %v4042_v7, %v4020_v58  ;;  %v4016_v63 = vpop.f32.mrf.mxu2 }
 0xabc   : > { %v4017_v35 = vadd.f32 %v4016_v63, %v3988_v44 }
 0xabd   : > { %8617 = vmatpush.xpose.msk.msrb.mxu3 %vm318_vm0, %v4043_v8  ;;  %v15256_v8 = vld [vmem:[#allocation54_spill] sm:$0xff] }
 0xac1   : > { %8618 = vmatpush.xpose.msk.msrb.mxu3 %vm318_vm0, %v4040_v41 }
 0xac4   : > { %8619 = vmatmul.msk.f32.vlgmr.msrb.gmra.mxu3 %vm318_vm0, %v4014_v55 }
 0xac5   : > { %8627 = vmatpush.xpose.msk.msra.mxu3 %vm318_vm0, %v15253_v52 }
 0xac9   : > { %8628 = vmatpush.xpose.msk.msra.mxu3 %vm318_vm0, %v15254_v60 }
 0xacc   : > { %8620 = vmatmul.msk.f32.gmra.mxu3 %vm318_vm0, %v4017_v35 }
 0xb47   : > { %v4100_v29 = vpop.f32.mrf.mxu3 }
 0xb48   : > { %v4106_v47 = vmul.f32 0.17677669, %v4100_v29 }
 0xb4a   : > { %v4108_v0 = vadd.f32 %v4106_v47, %v15255_v28 }
 0xb4c   : > { %v4111_v58 = vsel %vm439_vm1, %v4108_v0, -inf }
 0xb4d   : > { %4112 = vmax.xlane.f32.xlu0 %v4111_v58 }
 0xb4f   : > { %v4103_v7 = vpop.f32.mrf.mxu3 }
 0xb50   : > { %v4107_v2 = vmul.f32 0.17677669, %v4103_v7  ;;  %v4065_v7 = vpop.f32.mrf.mxu2 }
 0xb52   : > { %v4109_v41 = vadd.f32 %v4107_v2, %v15256_v8  ;;  %v4046_v2 = vperm.slane %v15257_v43, 0 }
 0xb54   : > { %v4114_v24 = vsel %vm439_vm1, %v4109_v41, -inf }
 0xb55   : > { %4115 = vmax.xlane.f32.xlu0 %v4114_v24  ;;  %v4066_v24 = vadd.f32 %v4065_v7, %v4046_v2 }
 0xb58   : > { %v4068_v8 = vpop.f32.mrf.mxu2 }
 0xbc0   : > { %v4113_v55 = vpop.xlane.xlu0 %4112 }
 0xbc1   : > { %v4117_v1 = vsub.f32 %v4108_v0, %v4113_v55  ;;  %v4069_v0 = vadd.f32 %v4068_v8, %v4046_v2 }
 0xbc3   : > { %v4119_v5 = vmul.f32 1.442695, %v4117_v1  ;;  %4179 = vmatpush.msrb.mxu0 %v4069_v0 }
 0xbc5   : > { %9936 = vpow2.f32 %v4119_v5  ;;  %4180 = vmatpush.msrb.mxu0 %v4066_v24 }
 0xbc7   : > { %4422 = vmatpush.msra.mxu0 %v15258_v53 }
 0xbc8   : > { %v4116_v44 = vpop.xlane.xlu0 %4115 }
 0xbc9   : > { %v4118_v63 = vsub.f32 %v4109_v41, %v4116_v44  ;;  %4423 = vmatpush.msra.mxu0 %v15259_v10 }
 0xbcb   : > { %v9937_v35 = vpop.eup %9936  ;;  %v4121_v29 = vmul.f32 1.442695, %v4118_v63 }
 0xbcc   : > { %v4123_v47 = vsel %vm439_vm1, %v9937_v35, 0.0 }
 0xbcd   : > { %9938 = vpow2.f32 %v4121_v29  ;;  %4124 = vadd.xlane.f32.xlu1 %v4123_v47 }
 0xbd3   : > { %v9939_v28 = vpop.eup %9938 }
 0xbd4   : > { %v4126_v58 = vsel %vm439_vm1, %v9939_v28, 0.0 }
 0xbd5   : > { %4127 = vadd.xlane.f32.xlu1 %v4126_v58 }
 0xc40   : > { %v4125_v1 = vpop.xlane.xlu1 %4124 }
 0xc41   : > { %9940 = vrcp.f32 %v4125_v1  ;;  %v4140_v63 = vand.u32 2147483648, %v4125_v1  ;;  %v4138_v47 = vand.u32 2147483647, %v4125_v1  ;;  %vm4134_vm14 = vweird.f32 %v4125_v1 }
 0xc43   : > { %v4141_v2 = vor.u32 1.1754944e-38, %v4140_v63  ;;  %vm4139_vm15 = vcmp.eq.f32.partialorder %v4138_v47, 8.507059e+37 }
 0xc47   : > { %v9941_v5 = vpop.eup %9940 }
 0xc48   : > { %v4130_v41 = vmul.f32 %v9941_v5, %v4125_v1  ;;  %v4128_v55 = vpop.xlane.xlu1 %4127  ;;  %vm4135_vm12 = vweird.f32 %v9941_v5 }
 0xc49   : > { %9942 = vrcp.f32 %v4128_v55  ;;  %vm4136_vm13 = vmor %vm4134_vm14, %vm4135_vm12  ;;  %v4155_v13 = vand.u32 2147483648, %v4128_v55  ;;  %vm4149_vm3 = vweird.f32 %v4128_v55 }
 0xc4a   : > { %v4131_v44 = vsub.f32 1.0, %v4130_v41  ;;  %v4153_v41 = vand.u32 2147483647, %v4128_v55 }
 0xc4b   : > { %v4156_v1 = vor.u32 1.1754944e-38, %v4155_v13 }
 0xc4c   : > { %v4132_v29 = vmul.f32 %v9941_v5, %v4131_v44  ;;  %vm4154_vm5 = vcmp.eq.f32.partialorder %v4153_v41, 8.507059e+37 }
 0xc4e   : > { %v4133_v58 = vadd.f32 %v9941_v5, %v4132_v29 }
 0xc4f   : > { %v9943_v7 = vpop.eup %9942 }
 0xc50   : > { %v4145_v8 = vmul.f32 %v9943_v7, %v4128_v55  ;;  %v4137_v24 = vsel %vm4136_vm13, %v9941_v5, %v4133_v58  ;;  %vm4150_vm2 = vweird.f32 %v9943_v7 }
 0xc51   : > { %v4142_v0 = vsel %vm4139_vm15, %v4141_v2, %v4137_v24  ;;  %vm4151_vm4 = vmor %vm4149_vm3, %vm4150_vm2  ;;  %v15261_v2 = vld [vmem:[#allocation83_spill] sm:$0xff] }
 0xc52   : > { %v4146_v9 = vsub.f32 1.0, %v4145_v8  ;;  %v4143_v10 = vmul.f32 %v9937_v35, %v4142_v0 }
 0xc54   : > { %v4147_v14 = vmul.f32 %v9943_v7, %v4146_v9  ;;  %8621 = vmatmul.msk.f32.vlgmr.msrb.gmra.mxu0 %vm439_vm1, %v4143_v10  ;;  %v4189_v9 = vperm.slane %v15260_v61, 0 }
 0xc56   : > { %v4148_v44 = vadd.f32 %v9943_v7, %v4147_v14 }
 0xc58   : > { %v4152_v29 = vsel %vm4151_vm4, %v9943_v7, %v4148_v44 }
 0xc59   : > { %v4157_v63 = vsel %vm4154_vm5, %v4156_v1, %v4152_v29 }
 0xc5a   : > { %v4158_v16 = vmul.f32 %v9939_v28, %v4157_v63 }
 0xc5c   : > { %8622 = vmatmul.msk.f32.gmra.mxu0 %vm439_vm1, %v4158_v16 }
 0xcd1   : > { %v4182_v5 = vpop.f32.mrf.mxu0 }
 0xcd2   : > { %8623 = vmatmul.msk.f32.vlgmr.msrb.gmra.mxu1 %vm318_vm0, %v4182_v5 }
 0xcd9   : > { %v4185_v35 = vpop.f32.mrf.mxu0 }
 0xcda   : > { %8624 = vmatmul.msk.f32.gmra.mxu1 %vm318_vm0, %v4185_v35 }
 0xd4f   : > { %v4214_v10 = vpop.f32.mrf.mxu1 }
 0xd50   : > { %v4215_v47 = vadd.f32 %v4214_v10, %v4189_v9 }
 0xd52   : > { %v4220_v14 = vadd.f32 %v4215_v47, %v12847_v3 }
 0xd54   : > { %v4222_v13 = vsel %vm318_vm0, %v4220_v14, 0.0 }
 0xd55   : > { %4223 = vadd.xlane.f32.xlu2 %v4222_v13 }
 0xd57   : > { %v4217_v55 = vpop.f32.mrf.mxu1 }
 0xd58   : > { %v4218_v58 = vadd.f32 %v4217_v55, %v4189_v9 }
 0xd5a   : > { %v4221_v28 = vadd.f32 %v4218_v58, %v12844_v54 }
 0xd5c   : > { %v4225_v16 = vsel %vm318_vm0, %v4221_v28, 0.0 }
 0xd5d   : > { %4226 = vadd.xlane.f32.xlu2 %v4225_v16 }
 0xdc8   : > { %v4224_v7 = vpop.xlane.xlu2 %4223 }
 0xdc9   : > { %v4235_v8 = vmul.f32 %v4224_v7, %v15261_v2 }
 0xdcb   : > { %v4237_v24 = vsub.f32 %v4220_v14, %v4235_v8 }
 0xdcd   : > { %v4239_v0 = vmul.f32 %v4237_v24, %v4237_v24 }
 0xdcf   : > { %v4241_v41 = vsel %vm318_vm0, %v4239_v0, 0.0 }
 0xdd0   : > { %4242 = vadd.xlane.f32.xlu0 %v4241_v41  ;;  %v4227_v44 = vpop.xlane.xlu2 %4226 }
 0xdd1   : > { %v4236_v1 = vmul.f32 %v4227_v44, %v15261_v2  ;;  %v4274_v44 = vperm.slane %v15262_v45, 0 }
 0xdd3   : > { %v4238_v29 = vsub.f32 %v4221_v28, %v4236_v1 }
 0xdd5   : > { %v4240_v63 = vmul.f32 %v4238_v29, %v4238_v29 }
 0xdd7   : > { %v4244_v5 = vsel %vm318_vm0, %v4240_v63, 0.0 }
 0xdd8   : > { %4245 = vadd.xlane.f32.xlu1 %v4244_v5 }
 0xe43   : > { %v4243_v35 = vpop.xlane.xlu0 %4242 }
 0xe44   : > { %v4247_v9 = vmul.f32 %v4243_v35, %v15261_v2  ;;  %v4279_v35 = vperm.slane %v15263_v38, 0 }
 0xe46   : > { %v4249_v10 = vadd.f32 1e-05, %v4247_v9 }
 0xe48   : > { %9944 = vrsqrt.f32 %v4249_v10  ;;  %vm4257_vm7 = vweird.f32 %v4249_v10 }
 0xe4b   : > { %v4246_v47 = vpop.xlane.xlu1 %4245 }
 0xe4c   : > { %v4248_v14 = vmul.f32 %v4246_v47, %v15261_v2 }
 0xe4e   : > { %v9945_v13 = vpop.eup %9944  ;;  %v4250_v55 = vadd.f32 1e-05, %v4248_v14 }
 0xe4f   : > { %v4252_v58 = vmul.f32 %v9945_v13, %v4249_v10  ;;  %vm4258_vm6 = vweird.f32 %v9945_v13 }
 0xe50   : > { %9946 = vrsqrt.f32 %v4250_v55  ;;  %vm4259_vm8 = vmor %vm4257_vm7, %vm4258_vm6  ;;  %vm4267_vm10 = vweird.f32 %v4250_v55 }
 0xe51   : > { %v4253_v16 = vmul.f32 %v9945_v13, %v4252_v58 }
 0xe53   : > { %v4254_v7 = vmul.f32 0.5, %v4253_v16 }
 0xe55   : > { %v4255_v8 = vsub.f32 1.5, %v4254_v7 }
 0xe56   : > { %v9947_v28 = vpop.eup %9946 }
 0xe57   : > { %v4256_v0 = vmul.f32 %v9945_v13, %v4255_v8  ;;  %v4262_v41 = vmul.f32 %v9947_v28, %v4250_v55  ;;  %vm4268_vm9 = vweird.f32 %v9947_v28 }
 0xe58   : > { %vm4269_vm11 = vmor %vm4267_vm10, %vm4268_vm9 }
 0xe59   : > { %v4260_v1 = vsel %vm4259_vm8, %v9945_v13, %v4256_v0  ;;  %v4263_v63 = vmul.f32 %v9947_v28, %v4262_v41 }
 0xe5a   : > { %v4271_v5 = vmul.f32 %v4260_v1, %v4237_v24  ;;  %v4284_v24 = vperm.slane %v15264_v4, 0 }
 0xe5b   : > { %v4264_v9 = vmul.f32 0.5, %v4263_v63 }
 0xe5c   : > { %v4276_v47 = vmul.f32 %v4274_v44, %v4271_v5 }
 0xe5d   : > { %v4265_v14 = vsub.f32 1.5, %v4264_v9 }
 0xe5e   : > { %v12918_v58 = vadd.f32 %v4279_v35, %v4276_v47  ;;  %v15266_v47 = vld [vmem:[#allocation56_spill] sm:$0xff] }
 0xe5f   : > { %v4266_v16 = vmul.f32 %v9947_v28, %v4265_v14 }
 0xe60   : > { %8625 = vmatmul.msk.f32.vlgmr.msra.gmra.mxu2 %vm318_vm0, %v12918_v58 }
 0xe61   : > { %v4270_v10 = vsel %vm4269_vm11, %v9947_v28, %v4266_v16  ;;  %v15265_v28 = vld [vmem:[#allocation55_spill] sm:$0xff] }
 0xe62   : > { %v4272_v7 = vmul.f32 %v4270_v10, %v4238_v29 }
 0xe64   : > { %v4277_v8 = vmul.f32 %v4274_v44, %v4272_v7 }
 0xe66   : > { %v12922_v13 = vadd.f32 %v4279_v35, %v4277_v8 }
 0xe68   : > { %8626 = vmatmul.msk.f32.gmra.mxu2 %vm318_vm0, %v12922_v13 }
 0xee3   : > { %v4309_v0 = vpop.f32.mrf.mxu2 }
 0xee4   : > { %v4310_v41 = vadd.f32 %v4309_v0, %v4284_v24 }
 0xee6   : > { %8629 = vmatmul.msk.f32.vlgmr.msra.gmra.mxu3 %vm318_vm0, %v4310_v41 }
 0xeeb   : > { %v4312_v1 = vpop.f32.mrf.mxu2 }
 0xeec   : > { %v4313_v55 = vadd.f32 %v4312_v1, %v4284_v24 }
 0xeee   : > { %8630 = vmatmul.msk.f32.gmra.mxu3 %vm318_vm0, %v4313_v55 }
 0xf69   : > { %v4344_v63 = vpop.f32.mrf.mxu3 }
 0xf6a   : > { %v4350_v5 = vmul.f32 0.17677669, %v4344_v63 }
 0xf6c   : > { %v4352_v29 = vadd.f32 %v4350_v5, %v15265_v28 }
 0xf6e   : > { %v4354_v44 = vsel %vm439_vm1, %v4352_v29, -inf }
 0xf6f   : > { %4355 = vmax.xlane.f32.xlu2 %v4354_v44 }
 0xf71   : > { %v4347_v35 = vpop.f32.mrf.mxu3 }
 0xf72   : > { %v4351_v9 = vmul.f32 0.17677669, %v4347_v35 }
 0xf74   : > { %v4353_v14 = vadd.f32 %v4351_v9, %v15266_v47 }
 0xf76   : > { %v4357_v16 = vsel %vm439_vm1, %v4353_v14, -inf }
 0xf77   : > { %4358 = vmax.xlane.f32.xlu0 %v4357_v16 }
 0xfe2   : > { %v4356_v10 = vpop.xlane.xlu2 %4355 }
 0xfe3   : > { %v4360_v7 = vsub.f32 %v4352_v29, %v4356_v10 }
 0xfe5   : > { %v4362_v8 = vmul.f32 1.442695, %v4360_v7 }
 0xfe7   : > { %9948 = vpow2.f32 %v4362_v8 }
 0xfea   : > { %v4359_v24 = vpop.xlane.xlu0 %4358 }
 0xfeb   : > { %v4361_v0 = vsub.f32 %v4353_v14, %v4359_v24 }
 0xfed   : > { %v9949_v41 = vpop.eup %9948  ;;  %v4364_v1 = vmul.f32 1.442695, %v4361_v0 }
 0xfee   : > { %v4366_v55 = vsel %vm439_vm1, %v9949_v41, 0.0 }
 0xfef   : > { %9950 = vpow2.f32 %v4364_v1  ;;  %4367 = vadd.xlane.f32.xlu1 %v4366_v55 }
 0xff5   : > { %v9951_v63 = vpop.eup %9950 }
 0xff6   : > { %v4369_v5 = vsel %vm439_vm1, %v9951_v63, 0.0 }
 0xff7   : > { %4370 = vadd.xlane.f32.xlu2 %v4369_v5 }
0x1062   : > { %v4368_v28 = vpop.xlane.xlu1 %4367 }
0x1063   : > { %9952 = vrcp.f32 %v4368_v28  ;;  %v4383_v47 = vand.u32 2147483648, %v4368_v28  ;;  %v4381_v14 = vand.u32 2147483647, %v4368_v28  ;;  %vm4377_vm14 = vweird.f32 %v4368_v28 }
0x1065   : > { %v4384_v8 = vor.u32 1.1754944e-38, %v4383_v47  ;;  %vm4382_vm15 = vcmp.eq.f32.partialorder %v4381_v14, 8.507059e+37  ;;  %v4432_v14 = vperm.slane %v15267_v11, 0  ;;  %v9528_v11 = vld [vmem:[%s15268_s3 + $0x54] sm:$0xf0] }
0x1069   : > { %v9953_v44 = vpop.eup %9952 }
0x106a   : > { %v4373_v35 = vmul.f32 %v9953_v44, %v4368_v28  ;;  %v4371_v9 = vpop.xlane.xlu2 %4370  ;;  %vm4378_vm12 = vweird.f32 %v9953_v44 }
0x106b   : > { %9954 = vrcp.f32 %v4371_v9  ;;  %vm4379_vm13 = vmor %vm4377_vm14, %vm4378_vm12  ;;  %v4398_v4 = vand.u32 2147483648, %v4371_v9  ;;  %vm4392_vm3 = vweird.f32 %v4371_v9 }
0x106c   : > { %v4374_v29 = vsub.f32 1.0, %v4373_v35  ;;  %v4396_v35 = vand.u32 2147483647, %v4371_v9 }
0x106e   : > { %v4375_v16 = vmul.f32 %v9953_v44, %v4374_v29  ;;  %vm4397_vm5 = vcmp.eq.f32.partialorder %v4396_v35, 8.507059e+37 }
0x1070   : > { %v4376_v10 = vadd.f32 %v9953_v44, %v4375_v16  ;;  %v4399_v16 = vor.u32 1.1754944e-38, %v4398_v4 }
0x1071   : > { %v9955_v7 = vpop.eup %9954 }
0x1072   : > { %v4388_v24 = vmul.f32 %v9955_v7, %v4371_v9  ;;  %v4380_v0 = vsel %vm4379_vm13, %v9953_v44, %v4376_v10  ;;  %vm4393_vm2 = vweird.f32 %v9955_v7 }
0x1073   : > { %v4385_v1 = vsel %vm4382_vm15, %v4384_v8, %v4380_v0  ;;  %vm4394_vm4 = vmor %vm4392_vm3, %vm4393_vm2 }
0x1074   : > { %v4389_v55 = vsub.f32 1.0, %v4388_v24  ;;  %v4386_v5 = vmul.f32 %v9949_v41, %v4385_v1 }
0x1076   : > { %v4390_v17 = vmul.f32 %v9955_v7, %v4389_v55  ;;  %8631 = vmatmul.msk.f32.vlgmr.msra.gmra.mxu0 %vm439_vm1, %v4386_v5 }
0x1078   : > { %v4391_v29 = vadd.f32 %v9955_v7, %v4390_v17 }
0x107a   : > { %v4395_v28 = vsel %vm4394_vm4, %v9955_v7, %v4391_v29 }
0x107b   : > { %v4400_v18 = vsel %vm4397_vm5, %v4399_v16, %v4395_v28  ;;  %v8653_v28 = vld [vmem:[%s15268_s3 + $0x80] sm:$0xf] }
0x107c   : > { %v4401_v47 = vmul.f32 %v9951_v63, %v4400_v18 }
0x107e   : > { %8632 = vmatmul.msk.f32.gmra.mxu0 %vm439_vm1, %v4401_v47  ;;  %v9491_v47 = vld [vmem:[%s15268_s3 + $0xbc] sm:$0xf0] }
0x10f3   : > { %v4425_v44 = vpop.f32.mrf.mxu0 }
0x10f4   : > { %8633 = vmatmul.msk.f32.vlgmr.msra.gmra.mxu1 %vm318_vm0, %v4425_v44  ;;  %v9489_v44 = vld [vmem:[%s15268_s3 + $0x84] sm:$0xf] }
0x10fb   : > { %v4428_v41 = vpop.f32.mrf.mxu0 }
0x10fc   : > { %8634 = vmatmul.msk.f32.gmra.mxu1 %vm318_vm0, %v4428_v41  ;;  %v8654_v41 = vor.u32 %v9491_v47, %v8653_v28 }
0x10fe   : > { %4588 = vmatpush.bf16.msrb.mxu2 %v8654_v41  ;;  %v9486_v41 = vld [vmem:[%s15268_s3 + $0xc] sm:$0xf] }
0x1171   : > { %v4457_v10 = vpop.f32.mrf.mxu1 }
0x1172   : > { %v4458_v8 = vadd.f32 %v4457_v10, %v4432_v14  ;;  %v8661_v10 = vld [vmem:[%s15268_s3 + $0x88] sm:$0xf] }
0x1174   : > { %v4463_v17 = vadd.f32 %v4458_v8, %v12918_v58  ;;  %v9492_v8 = vld [vmem:[%s15268_s3 + $0xc4] sm:$0xf0] }
0x1176   : > { %v4465_v4 = vsel %vm318_vm0, %v4463_v17, 0.0 }
0x1177   : > { %4466 = vadd.xlane.f32.xlu0 %v4465_v4  ;;  %v8662_v4 = vor.u32 %v9492_v8, %v8661_v10 }
0x1179   : > { %v4460_v9 = vpop.f32.mrf.mxu1  ;;  %4616 = vmatpush.bf16.msrb.mxu0 %v8662_v4  ;;  %v9531_v4 = vld [vmem:[%s15268_s3 + $0xcc] sm:$0xf0] }
0x117a   : > { %v4461_v7 = vadd.f32 %v4460_v9, %v4432_v14  ;;  %v8655_v14 = vld [vmem:[%s15268_s3 + $0xc0] sm:$0xf0]  ;;  %v9490_v9 = vld [vmem:[%s15268_s3 + $0x8c] sm:$0xf] }
0x117c   : > { %v4464_v18 = vadd.f32 %v4461_v7, %v12922_v13  ;;  %v8663_v7 = vld [vmem:[%s15268_s3 + $0xc8] sm:$0xf0] }
0x117e   : > { %v4468_v63 = vsel %vm318_vm0, %v4464_v18, 0.0 }
0x117f   : > { %4469 = vadd.xlane.f32.xlu1 %v4468_v63  ;;  %v8666_v63 = vor.u32 %v9490_v9, %v8663_v7  ;;  %v9529_v9 = vld [vmem:[%s15268_s3 + $0x94] sm:$0xf] }
0x1181   : > { %4630 = vmatpush.bf16.msrb.mxu1 %v8666_v63  ;;  %v8699_v63 = vld [vmem:[%s15268_s3 + $0xd0] sm:$0xf0] }
0x11ea   : > { %v4467_v24 = vpop.xlane.xlu0 %4466 }
0x11eb   : > { %v4471_v0 = vmul.f32 %v4467_v24, %v15261_v2 }
0x11ed   : > { %v12945_v1 = vsub.f32 %v4463_v17, %v4471_v0  ;;  %v8658_v17 = vor.u32 %v9489_v44, %v8655_v14  ;;  %v8637_v0 = vld [vmem:[%s15268_s3] sm:$0xf]  ;;  %v8647_v14 = vld [vmem:[%s15268_s3 + $0x48] sm:$0xf0] }
0x11ee   : > { %v8650_v10 = vor.u32 %v9486_v41, %v8647_v14  ;;  %v9530_v41 = vld [vmem:[%s15268_s3 + $0x9c] sm:$0xf] }
0x11ef   : > { %v4475_v58 = vmul.f32 %v12945_v1, %v12945_v1  ;;  %4602 = vmatpush.bf16.msrb.mxu3 %v8658_v17  ;;  %v8697_v17 = vld [vmem:[%s15268_s3 + $0x90] sm:$0xf] }
0x11f0   : > { %4631 = vmatpush.bf16.msrb.mxu1 %v8650_v10 }
0x11f1   : > { %v4477_v55 = vsel %vm318_vm0, %v4475_v58, 0.0  ;;  %v9487_v58 = vld [vmem:[%s15268_s3 + $0x3c] sm:$0xf0] }
0x11f2   : > { %v4470_v5 = vpop.xlane.xlu1 %4469  ;;  %4478 = vadd.xlane.f32.xlu2 %v4477_v55  ;;  %v9485_v55 = vld [vmem:[%s15268_s3 + $0x4] sm:$0xf] }
0x11f3   : > { %v4472_v13 = vmul.f32 %v4470_v5, %v15261_v2  ;;  %v8638_v5 = vor.u32 %v9487_v58, %v8637_v0  ;;  %v9527_v0 = vld [vmem:[%s15268_s3 + $0x4c] sm:$0xf0]  ;;  %v8702_v58 = vor.u32 %v9529_v9, %v8699_v63  ;;  %v9526_v63 = vld [vmem:[%s15268_s3 + $0x1c] sm:$0xf] }
0x11f5   : > { %v12951_v35 = vsub.f32 %v4464_v18, %v4472_v13  ;;  %v8639_v13 = vld [vmem:[%s15268_s3 + $0x40] sm:$0xf0]  ;;  %4589 = vmatpush.bf16.msrb.mxu2 %v8638_v5  ;;  %v8683_v5 = vld [vmem:[%s15268_s3 + $0x50] sm:$0xf0] }
0x11f6   : > { %v8642_v47 = vor.u32 %v9485_v55, %v8639_v13  ;;  %v9525_v55 = vld [vmem:[%s15268_s3 + $0x14] sm:$0xf]  ;;  %v8705_v13 = vld [vmem:[%s15268_s3 + $0x98] sm:$0xf] }
0x11f7   : > { %v4476_v29 = vmul.f32 %v12951_v35, %v12951_v35  ;;  %v8686_v10 = vor.u32 %v9525_v55, %v8683_v5 }
0x11f8   : > { %4603 = vmatpush.bf16.msrb.mxu3 %v8642_v47 }
0x11f9   : > { %v4480_v16 = vsel %vm318_vm0, %v4476_v29, 0.0  ;;  %v8645_v29 = vld [vmem:[%s15268_s3 + $0x8] sm:$0xf] }
0x11fa   : > { %4481 = vadd.xlane.f32.xlu0 %v4480_v16  ;;  %v9488_v16 = vld [vmem:[%s15268_s3 + $0x44] sm:$0xf0] }
0x11fb   : > { %v8646_v44 = vor.u32 %v9488_v16, %v8645_v29 }
0x11fc   : > { %5135 = vmatpush.bf16.msra.mxu3 %v8702_v58 }
0x11fd   : > { %4617 = vmatpush.bf16.msrb.mxu0 %v8646_v44  ;;  %v9532_v44 = vld [vmem:[%s15268_s3 + $0xd4] sm:$0xf0] }
0x1200   : > { %5136 = vmatpush.bf16.msra.mxu3 %v8686_v10 }
0x1265   : > { %v4479_v18 = vpop.xlane.xlu2 %4478 }
0x1266   : > { %v4483_v24 = vmul.f32 %v4479_v18, %v15261_v2  ;;  %v8698_v18 = vor.u32 %v9531_v4, %v8697_v17  ;;  %v8707_v17 = vld [vmem:[%s15268_s3 + $0xd8] sm:$0xf0]  ;;  %v8689_v4 = vld [vmem:[%s15268_s3 + $0x18] sm:$0xf] }
0x1267   : > { %v8710_v9 = vor.u32 %v9530_v41, %v8707_v17  ;;  %v8690_v21 = vor.u32 %v9528_v11, %v8689_v4  ;;  %v4510_v11 = vperm.slane %v15269_v37, 0 }
0x1268   : > { %v4485_v28 = vadd.f32 1e-05, %v4483_v24  ;;  %v8681_v24 = vld [vmem:[%s15268_s3 + $0x10] sm:$0xf]  ;;  %5121 = vmatpush.bf16.msra.mxu2 %v8698_v18 }
0x1269   : > { %v8682_v47 = vor.u32 %v9527_v0, %v8681_v24  ;;  %5163 = vmatpush.bf16.msra.mxu1 %v8710_v9 }
0x126a   : > { %9956 = vrsqrt.f32 %v4485_v28  ;;  %vm4493_vm7 = vweird.f32 %v4485_v28 }
0x126c   : > { %5122 = vmatpush.bf16.msra.mxu2 %v8682_v47  ;;  %v4515_v47 = vperm.slane %v15270_v62, 0 }
0x126d   : > { %v4482_v8 = vpop.xlane.xlu0 %4481 }
0x126e   : > { %v4484_v7 = vmul.f32 %v4482_v8, %v15261_v2  ;;  %v8706_v8 = vor.u32 %v9532_v44, %v8705_v13 }
0x1270   : > { %v9957_v29 = vpop.eup %9956  ;;  %v4486_v16 = vadd.f32 1e-05, %v4484_v7  ;;  %5149 = vmatpush.bf16.msra.mxu0 %v8706_v8  ;;  %v8694_v7 = vor.u32 %v9526_v63, %v8691_v19 }
0x1271   : > { %v4488_v14 = vmul.f32 %v9957_v29, %v4485_v28  ;;  %vm4494_vm6 = vweird.f32 %v9957_v29 }
0x1272   : > { %9958 = vrsqrt.f32 %v4486_v16  ;;  %5164 = vmatpush.bf16.msra.mxu1 %v8694_v7  ;;  %vm4495_vm8 = vmor %vm4493_vm7, %vm4494_vm6  ;;  %vm4503_vm10 = vweird.f32 %v4486_v16 }
0x1273   : > { %v4489_v20 = vmul.f32 %v9957_v29, %v4488_v14 }
0x1274   : > { %5150 = vmatpush.bf16.msra.mxu0 %v8690_v21 }
0x1275   : > { %v4490_v18 = vmul.f32 0.5, %v4489_v20 }
0x1277   : > { %v4491_v24 = vsub.f32 1.5, %v4490_v18 }
0x1278   : > { %v9959_v0 = vpop.eup %9958 }
0x1279   : > { %v4492_v58 = vmul.f32 %v9957_v29, %v4491_v24  ;;  %v4498_v55 = vmul.f32 %v9959_v0, %v4486_v16  ;;  %vm4504_vm9 = vweird.f32 %v9959_v0 }
0x127a   : > { %vm4505_vm11 = vmor %vm4503_vm10, %vm4504_vm9 }
0x127b   : > { %v4499_v5 = vmul.f32 %v9959_v0, %v4498_v55  ;;  %v4496_v13 = vsel %vm4495_vm8, %v9957_v29, %v4492_v58 }
0x127c   : > { %v4507_v19 = vmul.f32 %v4496_v13, %v12945_v1  ;;  %v13019_v1 = vld [vmem:[%s15271_s8] sm:$0xff] }
0x127d   : > { %v4500_v44 = vmul.f32 0.5, %v4499_v5  ;;  %v4534_v16 = vperm.slane %v13019_v1, 3  ;;  %v14897_v58 = vperm.slane %v13019_v1, 0  ;;  %v15277_v49 = vperm.slane %v13019_v1, 0 }
0x127e   : > { %v4512_v14 = vmul.f32 %v4510_v11, %v4507_v19 }
0x127f   : > { %v4501_v41 = vsub.f32 1.5, %v4500_v44 }
0x1280   : > { %v12994_v8 = vadd.f32 %v4515_v47, %v4512_v14 }
0x1281   : > { %v4502_v20 = vmul.f32 %v9959_v0, %v4501_v41 }
0x1282   : > { %15272 = vst [vmem:[#allocation126_spill] sm:$0xff] %v12994_v8 }
0x1283   : > { %v4506_v21 = vsel %vm4505_vm11, %v9959_v0, %v4502_v20 }
0x1284   : > { %v4508_v28 = vmul.f32 %v4506_v21, %v12951_v35  ;;  %v4533_v35 = vperm.slane %v13019_v1, 2 }
0x1286   : > { %v4513_v10 = vmul.f32 %v4510_v11, %v4508_v28 }
0x1288   : > { %v12996_v29 = vadd.f32 %v4515_v47, %v4513_v10 }
0x128a   : > { %15273 = vst [vmem:[#allocation127_spill] sm:$0xff] %v12996_v29  ;;  %v13000_v17 = vpack.c.bf16 %v12996_v29, %v12994_v8 }
0x128c   : > { %15274 = vst [vmem:[#allocation128_spill] sm:$0xff] %v13000_v17  ;;  %8667 = vmatmul.msk.bf16.vlgmr.msrb.gmra.mxu2 %vm318_vm0, %v13000_v17  ;;  %8668 = vmatmul.msk.bf16.vlgmr.msrb.gmra.mxu3 %vm318_vm0, %v13000_v17 }
0x128d   : > { %8669 = vmatmul.msk.bf16.vlgmr.msrb.gmra.mxu0 %vm318_vm0, %v13000_v17  ;;  %8670 = vmatmul.msk.bf16.vlgmr.msrb.gmra.mxu1 %vm318_vm0, %v13000_v17 }
0x129c   : > { %8711 = vmatmul.msk.bf16.vlgmr.msra.gmra.mxu2 %vm318_vm0, %v13000_v17  ;;  %8712 = vmatmul.msk.bf16.vlgmr.msra.gmra.mxu3 %vm318_vm0, %v13000_v17 }
0x129d   : > { %8713 = vmatmul.msk.bf16.vlgmr.msra.gmra.mxu0 %vm318_vm0, %v13000_v17  ;;  %8714 = vmatmul.msk.bf16.vlgmr.msra.gmra.mxu1 %vm318_vm0, %v13000_v17 }
0x130a   : > { %v4619_v4 = vpop.f32.mrf.mxu0  ;;  %v4633_v9 = vpop.f32.mrf.mxu1 }
0x130b   : > { %v13023_v63 = vadd.f32 %v4619_v4, %v4533_v35  ;;  %v13025_v7 = vadd.f32 %v4633_v9, %v4534_v16  ;;  %v14899_v9 = vperm.slane %v13019_v1, 1 }
0x130d   : > { %v13028_v18 = vmul.f32 0.70710677, %v13023_v63  ;;  %v13031_v24 = vmul.f32 0.70710677, %v13025_v7 }
0x130f   : > { %v4734_v0 = vmul.f32 %v13028_v18, %v13028_v18  ;;  %v4774_v55 = vmul.f32 %v13031_v24, %v13031_v24  ;;  %v4591_v5 = vpop.f32.mrf.mxu2 }
0x1310   : > { %v13042_v44 = vadd.f32 %v4591_v5, %v14897_v58 }
0x1311   : > { %v13038_v13 = vmin.f32 %v4734_v0, 16.0  ;;  %v13044_v41 = vmin.f32 %v4774_v55, 16.0  ;;  %v4605_v55 = vpop.f32.mrf.mxu3 }
0x1312   : > { %v13048_v19 = vmul.f32 0.70710677, %v13042_v44  ;;  %v4621_v10 = vpop.f32.mrf.mxu0 }
0x1313   : > { %v4747_v11 = vmul.f32 3.8918573e-05, %v13038_v13  ;;  %v4787_v20 = vmul.f32 3.8918573e-05, %v13044_v41  ;;  %v13058_v5 = vadd.f32 %v4621_v10, %v4533_v35 }
0x1314   : > { %v4654_v47 = vmul.f32 %v13048_v19, %v13048_v19 }
0x1315   : > { %v4748_v21 = vadd.f32 0.001143296, %v4747_v11  ;;  %v4788_v14 = vadd.f32 0.001143296, %v4787_v20  ;;  %v13063_v11 = vadd.f32 %v4605_v55, %v14899_v9 }
0x1316   : > { %v13054_v4 = vmin.f32 %v4654_v47, 16.0  ;;  %v4736_v47 = vmul.f32 2.1237322e-06, %v13038_v13 }
0x1317   : > { %v4749_v28 = vmul.f32 %v4748_v21, %v13038_v13  ;;  %v4789_v0 = vmul.f32 %v4788_v14, %v13044_v41  ;;  %15275 = vst [vmem:[#allocation129_spill] sm:$0xff] %v13063_v11  ;;  %v13066_v21 = vmul.f32 0.70710677, %v13058_v5  ;;  %v4776_v14 = vmul.f32 2.1237322e-06, %v13044_v41 }
0x1318   : > { %v4667_v23 = vmul.f32 3.8918573e-05, %v13054_v4  ;;  %v13072_v35 = vmul.f32 0.70710677, %v13063_v11  ;;  %v4737_v55 = vadd.f32 0.00028619796, %v4736_v47 }
0x1319   : > { %v4750_v58 = vadd.f32 0.014752088, %v4749_v28  ;;  %v4790_v20 = vadd.f32 0.014752088, %v4789_v0  ;;  %v4894_v10 = vmul.f32 %v13066_v21, %v13066_v21  ;;  %v4777_v9 = vadd.f32 0.00028619796, %v4776_v14 }
0x131a   : > { %v4668_v26 = vadd.f32 0.001143296, %v4667_v23  ;;  %15276 = vst [vmem:[#allocation130_spill] sm:$0xff] %v13072_v35  ;;  %v4694_v30 = vmul.f32 %v13072_v35, %v13072_v35  ;;  %v4738_v23 = vmul.f32 %v4737_v55, %v13038_v13  ;;  %v4656_v34 = vmul.f32 2.1237322e-06, %v13054_v4 }
0x131b   : > { %v4751_v25 = vmul.f32 %v4750_v58, %v13038_v13  ;;  %v4791_v28 = vmul.f32 %v4790_v20, %v13044_v41  ;;  %v13080_v31 = vmin.f32 %v4894_v10, 16.0  ;;  %v4778_v20 = vmul.f32 %v4777_v9, %v13044_v41 }
0x131c   : > { %v4669_v27 = vmul.f32 %v4668_v26, %v13054_v4  ;;  %v13086_v47 = vmin.f32 %v4694_v30, 16.0  ;;  %v4739_v37 = vadd.f32 0.0036580483, %v4738_v23  ;;  %v4657_v38 = vadd.f32 0.00028619796, %v4656_v34 }
0x131d   : > { %v4752_v0 = vadd.f32 0.112945676, %v4751_v25  ;;  %v4792_v58 = vadd.f32 0.112945676, %v4791_v28  ;;  %v4635_v25 = vpop.f32.mrf.mxu1  ;;  %v4907_v14 = vmul.f32 3.8918573e-05, %v13080_v31 }
0x131e   : > { %v4670_v36 = vadd.f32 0.014752088, %v4669_v27  ;;  %v4779_v10 = vadd.f32 0.0036580483, %v4778_v20  ;;  %v13090_v42 = vadd.f32 %v4635_v25, %v4534_v16  ;;  %v4696_v9 = vmul.f32 2.1237322e-06, %v13086_v47 }
0x131f   : > { %v4753_v32 = vmul.f32 %v4752_v0, %v13038_v13  ;;  %v4793_v26 = vmul.f32 %v4792_v58, %v13044_v41  ;;  %v4908_v43 = vadd.f32 0.001143296, %v4907_v14  ;;  %v4740_v27 = vmul.f32 %v4739_v37, %v13038_v13  ;;  %v4593_v14 = vpop.f32.mrf.mxu2 }
0x1320   : > { %v4671_v55 = vmul.f32 %v4670_v36, %v13054_v4  ;;  %v4780_v58 = vmul.f32 %v4779_v10, %v13044_v41  ;;  %v4658_v45 = vmul.f32 %v4657_v38, %v13054_v4  ;;  %v4697_v16 = vadd.f32 0.00028619796, %v4696_v9 }
0x1321   : > { %v4754_v28 = vadd.f32 0.4994258, %v4753_v32  ;;  %v4794_v0 = vadd.f32 0.4994258, %v4793_v26  ;;  %v13099_v32 = vmul.f32 0.70710677, %v13090_v42  ;;  %v4909_v20 = vmul.f32 %v4908_v43, %v13080_v31 }
0x1322   : > { %v4672_v34 = vadd.f32 0.112945676, %v4671_v55  ;;  %v4707_v36 = vmul.f32 3.8918573e-05, %v13086_v47  ;;  %v4741_v25 = vadd.f32 0.05243302, %v4740_v27  ;;  %v4698_v55 = vmul.f32 %v4697_v16, %v13086_v47 }
0x1323   : > { %v4755_v30 = vmul.f32 %v4754_v28, %v13038_v13  ;;  %v4795_v23 = vmul.f32 %v4794_v0, %v13044_v41  ;;  %v4781_v37 = vadd.f32 0.05243302, %v4780_v58  ;;  %v4659_v28 = vadd.f32 0.0036580483, %v4658_v45 }
0x1324   : > { %v4934_v38 = vmul.f32 %v13099_v32, %v13099_v32  ;;  %v4673_v10 = vmul.f32 %v4672_v34, %v13054_v4  ;;  %v4708_v0 = vadd.f32 0.001143296, %v4707_v36  ;;  %v4910_v48 = vadd.f32 0.014752088, %v4909_v20 }
0x1325   : > { %v13104_v26 = vadd.f32 1.0, %v4755_v30  ;;  %v13110_v9 = vadd.f32 1.0, %v4795_v23  ;;  %v13114_v43 = vadd.f32 %v4593_v14, %v15277_v49  ;;  %v4742_v27 = vmul.f32 %v4741_v25, %v13038_v13 }
0x1326   : > { %v4782_v45 = vmul.f32 %v4781_v37, %v13044_v41  ;;  %v4660_v30 = vmul.f32 %v4659_v28, %v13054_v4  ;;  %v13120_v58 = vmin.f32 %v4934_v38, 16.0  ;;  %v4674_v34 = vadd.f32 0.4994258, %v4673_v10 }
0x1327   : > { %9960 = vrcp.f32 %v13104_v26  ;;  %v4699_v16 = vadd.f32 0.0036580483, %v4698_v55  ;;  %v4709_v23 = vmul.f32 %v4708_v0, %v13086_v47  ;;  %v4911_v36 = vmul.f32 %v4910_v48, %v13080_v31 }
0x1328   : > { %9962 = vrcp.f32 %v13110_v9  ;;  %v13126_v49 = vmul.f32 0.70710677, %v13114_v43  ;;  %v4743_v20 = vadd.f32 0.18741608, %v4742_v27  ;;  %v4783_v25 = vadd.f32 0.18741608, %v4782_v45 }
0x1329   : > { %v4661_v14 = vadd.f32 0.05243302, %v4660_v30  ;;  %v4947_v37 = vmul.f32 3.8918573e-05, %v13120_v58  ;;  %v4675_v28 = vmul.f32 %v4674_v34, %v13054_v4  ;;  %v4700_v38 = vmul.f32 %v4699_v16, %v13086_v47 }
0x132a   : > { %v4710_v10 = vadd.f32 0.014752088, %v4709_v23  ;;  %v4912_v55 = vadd.f32 0.112945676, %v4911_v36  ;;  %v4814_v0 = vmul.f32 %v13126_v49, %v13126_v49  ;;  %v4744_v48 = vmul.f32 %v4743_v20, %v13038_v13 }
0x132b   : > { %v4784_v52 = vmul.f32 %v4783_v25, %v13044_v41  ;;  %v13140_v45 = vmul.f32 0.5, %v13023_v63  ;;  %v4662_v34 = vmul.f32 %v4661_v14, %v13054_v4  ;;  %v4948_v16 = vadd.f32 0.001143296, %v4947_v37 }
0x132c   : > { %v13146_v23 = vmul.f32 0.5, %v13025_v7  ;;  %v13149_v36 = vmul.f32 0.5, %v13042_v44  ;;  %v13151_v13 = vadd.f32 1.0, %v4675_v28  ;;  %v4896_v41 = vmul.f32 2.1237322e-06, %v13080_v31 }
0x132d   : > { %v13129_v50 = vpop.eup %9960  ;;  %v4701_v20 = vadd.f32 0.05243302, %v4700_v38  ;;  %v4711_v63 = vmul.f32 %v4710_v10, %v13086_v47  ;;  %v4913_v25 = vmul.f32 %v4912_v55, %v13080_v31  ;;  %v13156_v53 = vmin.f32 %v4814_v0, 16.0 }
0x132e   : > { %v13137_v27 = vpop.eup %9962  ;;  %v4758_v30 = vmul.f32 %v13129_v50, %v13104_v26  ;;  %15278 = vst [vmem:[#allocation131_spill] sm:$0xff] %v13146_v23  ;;  %v4745_v56 = vadd.f32 1.1283791, %v4744_v48  ;;  %v4785_v14 = vadd.f32 1.1283791, %v4784_v52  ;;  %v13161_v37 = vmul.f32 0.5, %v13058_v5 }
0x132f   : > { %15279 = vst [vmem:[#allocation132_spill] sm:$0xff] %v13149_v36  ;;  %v4798_v7 = vmul.f32 %v13137_v27, %v13110_v9  ;;  %v4766_v28 = vand.u32 2147483647, %v13104_v26  ;;  %v4663_v59 = vadd.f32 0.18741608, %v4662_v34  ;;  %v4949_v38 = vmul.f32 %v4948_v16, %v13120_v58  ;;  %v9553_v36 = vld [vmem:[%s15311_s14 + $0x1a0] sm:$0xff] }
0x1330   : > { %v4759_v44 = vsub.f32 1.0, %v4758_v30  ;;  %9964 = vrcp.f32 %v13151_v13  ;;  %v4897_v10 = vadd.f32 0.00028619796, %v4896_v41  ;;  %v4936_v55 = vmul.f32 2.1237322e-06, %v13120_v58 }
0x1331   : > { %v13168_v0 = vrot.slane %v13019_v1, 4  ;;  %v4702_v52 = vmul.f32 %v4701_v20, %v13086_v47  ;;  %v4712_v48 = vadd.f32 0.112945676, %v4711_v63  ;;  %v4914_v60 = vadd.f32 0.4994258, %v4913_v25 }
0x1332   : > { %v4827_v5 = vmul.f32 3.8918573e-05, %v13156_v53  ;;  %v13173_v30 = vmul.f32 %v4745_v56, %v13028_v18  ;;  %v4768_v34 = vand.u32 2147483648, %v13104_v26  ;;  %v4799_v16 = vsub.f32 1.0, %v4798_v7 }
0x1333   : > { %v4808_v61 = vand.u32 2147483648, %v13110_v9  ;;  %v4760_v41 = vmul.f32 %v13129_v50, %v4759_v44  ;;  %vm4762_vm12 = vweird.f32 %v13104_v26  ;;  %v13180_v62 = vmul.f32 %v4785_v14, %v13031_v24 }
0x1334   : > { %v4950_v20 = vadd.f32 0.014752088, %v4949_v38  ;;  %v4806_v63 = vand.u32 2147483647, %v13110_v9  ;;  %v4898_v25 = vmul.f32 %v4897_v10, %v13080_v31  ;;  %v4937_v51 = vadd.f32 0.00028619796, %v4936_v55  ;;  %v5152_v38 = vpop.f32.mrf.mxu0 }
0x1335   : > { %vm13185_vm14 = vcmp.eq.f32.partialorder %v4766_v28, 8.507059e+37  ;;  %vm4802_vm13 = vweird.f32 %v13110_v9  ;;  %v4664_v7 = vmul.f32 %v4663_v59, %v13054_v4  ;;  %v4713_v44 = vmul.f32 %v4712_v48, %v13086_v47 }
0x1336   : > { %v4915_v24 = vmul.f32 %v4914_v60, %v13080_v31  ;;  %v4828_v14 = vadd.f32 0.001143296, %v4827_v5  ;;  %v13193_v46 = vpop.eup %9964  ;;  %v4769_v10 = vor.u32 1.1754944e-38, %v4768_v34  ;;  %v4800_v55 = vmul.f32 %v13137_v27, %v4799_v16  ;;  %v4607_v5 = vpop.f32.mrf.mxu3 }
0x1337   : > { %v4809_v56 = vor.u32 1.1754944e-38, %v4808_v61  ;;  %v4703_v28 = vadd.f32 0.18741608, %v4702_v52  ;;  %v4761_v40 = vadd.f32 %v13129_v50, %v4760_v41  ;;  %vm4763_vm15 = vweird.f32 %v13129_v50  ;;  %v5166_v61 = vpop.f32.mrf.mxu1 }
0x1338   : > { %v4951_v57 = vmul.f32 %v4950_v20, %v13120_v58  ;;  %v4899_v4 = vadd.f32 0.0036580483, %v4898_v25  ;;  %v4938_v60 = vmul.f32 %v4937_v51, %v13120_v58  ;;  %v4816_v48 = vmul.f32 2.1237322e-06, %v13156_v53  ;;  %vm13213_vm2 = vmor %vm4762_vm12, %vm4763_vm15 }
0x1339   : > { %v15282_v34 = vperm.slane %v13168_v0, 2  ;;  %v4678_v52 = vmul.f32 %v13193_v46, %v13151_v13  ;;  %v4714_v16 = vadd.f32 0.4994258, %v4713_v44  ;;  %v13208_v41 = vadd.f32 1.0, %v4915_v24 }
0x133a   : > { %v4829_v20 = vmul.f32 %v4828_v14, %v13156_v53  ;;  %v4801_v25 = vadd.f32 %v13137_v27, %v4800_v55  ;;  %vm4803_vm3 = vweird.f32 %v13137_v27  ;;  %vm13219_vm4 = vcmp.eq.f32.partialorder %v4806_v63, 8.507059e+37 }
0x133b   : > { %v13204_v22 = vadd.f32 %v5152_v38, %v15282_v34  ;;  %v4665_v34 = vadd.f32 1.1283791, %v4664_v7  ;;  %v4704_v44 = vmul.f32 %v4703_v28, %v13086_v47  ;;  %v4765_v24 = vsel %vm13213_vm2, %v13129_v50, %v4761_v40  ;;  %vm13247_vm5 = vmor %vm4802_vm13, %vm4803_vm3 }
0x133c   : > { %v4952_v26 = vadd.f32 0.112945676, %v4951_v57  ;;  %v15287_v14 = vperm.slane %v13019_v1, 1  ;;  %v15289_v55 = vperm.slane %v13168_v0, 3  ;;  %v4900_v63 = vmul.f32 %v4899_v4, %v13080_v31 }
0x133d   : > { %v4939_v39 = vadd.f32 0.0036580483, %v4938_v60  ;;  %v4817_v2 = vadd.f32 0.00028619796, %v4816_v48  ;;  %v13237_v7 = vmul.f32 0.70710677, %v13204_v22  ;;  %v4715_v51 = vmul.f32 %v4714_v16, %v13086_v47 }
0x133e   : > { %v13229_v59 = vadd.f32 %v4607_v5, %v15287_v14  ;;  %v13233_v33 = vadd.f32 %v5166_v61, %v15289_v55  ;;  %v4679_v28 = vsub.f32 1.0, %v4678_v52  ;;  %9966 = vrcp.f32 %v13208_v41 }
0x133f   : > { %v4830_v50 = vadd.f32 0.014752088, %v4829_v20  ;;  %v4770_v57 = vsel %vm13185_vm14, %v4769_v10, %v4765_v24  ;;  %v13252_v1 = vmul.f32 %v4665_v34, %v13048_v19  ;;  %v13255_v4 = vmul.f32 0.5, %v13090_v42 }
0x1340   : > { %15288 = vst [vmem:[#allocation133_spill] sm:$0xff] %v13229_v59  ;;  %v5267_v47 = vmul.f32 %v13237_v7, %v13237_v7  ;;  %v4805_v18 = vsel %vm13247_vm5, %v13137_v27, %v4801_v25  ;;  %vm4682_vm6 = vweird.f32 %v13151_v13  ;;  %v4953_v9 = vmul.f32 %v4952_v26, %v13120_v58 }
0x1341   : > { %15292 = vst [vmem:[#allocation134_spill] sm:$0xff] %v13255_v4  ;;  %v13265_v10 = vmul.f32 0.70710677, %v13229_v59  ;;  %v13268_v19 = vmul.f32 0.70710677, %v13233_v33  ;;  %v4940_v42 = vmul.f32 %v4939_v39, %v13120_v58  ;;  %v4818_v48 = vmul.f32 %v4817_v2, %v13156_v53 }
0x1342   : > { %v4901_v60 = vadd.f32 0.05243302, %v4900_v63  ;;  %v13272_v5 = vmin.f32 %v5267_v47, 16.0  ;;  %v4680_v61 = vmul.f32 %v13193_v46, %v4679_v28  ;;  %v4686_v27 = vand.u32 2147483647, %v13151_v13 }
0x1343   : > { %15293 = vst [vmem:[#allocation135_spill] sm:$0xff] %v13265_v10  ;;  %v13276_v52 = vadd.f32 1.0, %v4715_v51  ;;  %v4831_v16 = vmul.f32 %v4830_v50, %v13156_v53  ;;  %v4771_v20 = vmul.f32 %v4770_v57, %v13173_v30  ;;  %v4688_v25 = vand.u32 2147483648, %v13151_v13 }
0x1344   : > { %v13281_v34 = vadd.f32 1.1283791, %v4704_v44  ;;  %v5280_v39 = vmul.f32 3.8918573e-05, %v13272_v5  ;;  %v13284_v24 = vpop.eup %9966  ;;  %v4810_v2 = vsel %vm13219_vm4, %v4809_v56, %v4805_v18  ;;  %v4954_v26 = vadd.f32 0.4994258, %v4953_v9 }
0x1345   : > { %v4854_v14 = vmul.f32 %v13265_v10, %v13265_v10  ;;  %v5307_v55 = vmul.f32 %v13268_v19, %v13268_v19  ;;  %v4902_v30 = vmul.f32 %v4901_v60, %v13080_v31  ;;  %v4941_v63 = vadd.f32 0.05243302, %v4940_v42 }
0x1346   : > { %15294 = vst [vmem:[#allocation136_spill] sm:$0xff] %v13281_v34  ;;  %v4819_v28 = vadd.f32 0.0036580483, %v4818_v48  ;;  %v5281_v44 = vadd.f32 0.001143296, %v5280_v39  ;;  %v4681_v51 = vadd.f32 %v13193_v46, %v4680_v61  ;;  %vm4683_vm7 = vweird.f32 %v13193_v46 }
0x1347   : > { %9968 = vrcp.f32 %v13276_v52  ;;  %v4832_v38 = vadd.f32 0.112945676, %v4831_v16  ;;  %v4811_v56 = vmul.f32 %v4810_v2, %v13180_v62  ;;  %v4918_v50 = vmul.f32 %v13284_v24, %v13208_v41  ;;  %vm13311_vm9 = vmor %vm4682_vm6, %vm4683_vm7 }
0x1348   : > { %v5282_v57 = vmul.f32 %v5281_v44, %v13272_v5  ;;  %v13300_v40 = vmin.f32 %v5307_v55, 16.0  ;;  %v8673_v47 = vclamps-f32 %v4771_v20, 1.0  ;;  %vm13302_vm8 = vcmp.eq.f32.partialorder %v4686_v27, 8.507059e+37 }
0x1349   : > { %v4955_v9 = vmul.f32 %v4954_v26, %v13120_v58  ;;  %v13307_v60 = vmin.f32 %v4854_v14, 16.0  ;;  %v4903_v42 = vadd.f32 0.18741608, %v4902_v30  ;;  %v4942_v48 = vmul.f32 %v4941_v63, %v13120_v58  ;;  %v5124_v30 = vpop.f32.mrf.mxu2 }
0x134a   : > { %v4820_v61 = vmul.f32 %v4819_v28, %v13156_v53  ;;  %v5283_v16 = vadd.f32 0.014752088, %v5282_v57  ;;  %v4685_v27 = vsel %vm13311_vm9, %v13193_v46, %v4681_v51  ;;  %v4689_v20 = vor.u32 1.1754944e-38, %v4688_v25 }
0x134b   : > { %15297 = vst [vmem:[#allocation137_spill] sm:$0xff] %v13307_v60  ;;  %v4833_v39 = vmul.f32 %v4832_v38, %v13156_v53  ;;  %v14906_v2 = vperm.slane %v13168_v0, 0  ;;  %v8674_v13 = vclamps-f32 %v4811_v56, 1.0  ;;  %v4919_v26 = vsub.f32 1.0, %v4918_v50 }
0x134c   : > { %v13323_v14 = vmul.f32 0.5, %v13114_v43  ;;  %v5320_v55 = vmul.f32 3.8918573e-05, %v13300_v40  ;;  %v4976_v28 = vadd.f32 1.0, %v8673_v47  ;;  %v13328_v44 = vadd.f32 1.0, %v4955_v9 }
0x134d   : > { %v13326_v63 = vpop.eup %9968  ;;  %v4867_v46 = vmul.f32 3.8918573e-05, %v13307_v60  ;;  %v5284_v25 = vmul.f32 %v5283_v16, %v13272_v5  ;;  %v4690_v51 = vsel %vm13302_vm8, %v4689_v20, %v4685_v27  ;;  %v4904_v38 = vmul.f32 %v4903_v42, %v13080_v31 }
0x134e   : > { %15300 = vst [vmem:[#allocation138_spill] sm:$0xff] %v13323_v14  ;;  %v4943_v56 = vadd.f32 0.18741608, %v4942_v48  ;;  %v4821_v43 = vadd.f32 0.05243302, %v4820_v61  ;;  %v13338_v47 = vadd.f32 %v5124_v30, %v14906_v2  ;;  %v13340_v9 = vadd.f32 1.0, %v8674_v13  ;;  %v5138_v30 = vpop.f32.mrf.mxu3 }
0x134f   : > { %15301 = vst [vmem:[#allocation139_spill] sm:$0xff] %v13326_v63  ;;  %v4834_v50 = vadd.f32 0.4994258, %v4833_v39  ;;  %v5269_v57 = vmul.f32 2.1237322e-06, %v13272_v5  ;;  %v13344_v16 = vmul.f32 %v13326_v63, %v13276_v52  ;;  %v4920_v18 = vmul.f32 %v13284_v24, %v4919_v26  ;;  %v9561_v14 = vld [vmem:[%s15311_s14 + $0x1e0] sm:$0xff] }
0x1350   : > { %v5285_v62 = vadd.f32 0.112945676, %v5284_v25  ;;  %15302 = vst [vmem:[#allocation140_spill] sm:$0xff] %v13340_v9  ;;  %v5321_v27 = vadd.f32 0.001143296, %v5320_v55  ;;  %9970 = vrcp.f32 %v13328_v44  ;;  %v14905_v48 = vperm.slane %v13168_v0, 1 }
0x1351   : > { %v4868_v31 = vadd.f32 0.001143296, %v4867_v46  ;;  %v13351_v61 = vmul.f32 %v4976_v28, %v13140_v45  ;;  %v13354_v20 = vmul.f32 %v4690_v51, %v13252_v1  ;;  %v4905_v39 = vadd.f32 1.1283791, %v4904_v38 }
0x1352   : > { %v5286_v42 = vmul.f32 %v5285_v62, %v13272_v5  ;;  %v4822_v13 = vmul.f32 %v4821_v43, %v13156_v53  ;;  %v4944_v26 = vmul.f32 %v4943_v56, %v13120_v58  ;;  %v4835_v55 = vmul.f32 %v4834_v50, %v13156_v53 }
0x1353   : > { %v5270_v25 = vadd.f32 0.00028619796, %v5269_v57  ;;  %v13360_v46 = vmul.f32 0.70710677, %v13338_v47  ;;  %vm4922_vm10 = vweird.f32 %v13208_v41  ;;  %v4926_v45 = vand.u32 2147483647, %v13208_v41 }
0x1354   : > { %v5287_v28 = vadd.f32 0.4994258, %v5286_v42  ;;  %v5322_v1 = vmul.f32 %v5321_v27, %v13300_v40  ;;  %v4921_v51 = vadd.f32 %v13284_v24, %v4920_v18  ;;  %vm4923_vm11 = vweird.f32 %v13284_v24 }
0x1355   : > { %v4869_v38 = vmul.f32 %v4868_v31, %v13307_v60  ;;  %v13370_v58 = vadd.f32 %v5138_v30, %v14905_v48  ;;  %v4928_v56 = vand.u32 2147483648, %v13208_v41  ;;  %v4823_v43 = vadd.f32 0.18741608, %v4822_v13  ;;  %vm13385_vm12 = vmor %vm4922_vm10, %vm4923_vm11 }
0x1356   : > { %v5309_v50 = vmul.f32 2.1237322e-06, %v13300_v40  ;;  %v5187_v57 = vmul.f32 %v13360_v46, %v13360_v46  ;;  %v13376_v62 = vpop.eup %9970  ;;  %v4945_v27 = vadd.f32 1.1283791, %v4944_v26  ;;  %v13378_v18 = vadd.f32 1.0, %v4835_v55 }
0x1357   : > { %15303 = vst [vmem:[#allocation141_spill] sm:$0xff] %v13370_v58  ;;  %v4856_v42 = vmul.f32 2.1237322e-06, %v13307_v60  ;;  %v5271_v31 = vmul.f32 %v5270_v25, %v13272_v5  ;;  %v4906_v30 = vmul.f32 %v4905_v39, %v13066_v21  ;;  %v5288_v48 = vmul.f32 %v5287_v28, %v13272_v5 }
0x1358   : > { %v5323_v2 = vadd.f32 0.014752088, %v5322_v1  ;;  %v13390_v6 = vmin.f32 %v5187_v57, 16.0  ;;  %v4925_v26 = vsel %vm13385_vm12, %v13284_v24, %v4921_v51  ;;  %vm4927_vm14 = vcmp.eq.f32.partialorder %v4926_v45, 8.507059e+37 }
0x1359   : > { %v4870_v55 = vadd.f32 0.014752088, %v4869_v38  ;;  %v13396_v25 = vmul.f32 0.70710677, %v13370_v58  ;;  %v4929_v21 = vor.u32 1.1754944e-38, %v4928_v56  ;;  %v4958_v41 = vmul.f32 %v13376_v62, %v13328_v44  ;;  %v5154_v56 = vpop.f32.mrf.mxu0 }
0x135a   : > { %v4824_v39 = vmul.f32 %v4823_v43, %v13156_v53  ;;  %v5310_v12 = vadd.f32 0.00028619796, %v5309_v50  ;;  %v13402_v28 = vmul.f32 %v4945_v27, %v13099_v32  ;;  %9972 = vrcp.f32 %v13378_v18 }
0x135b   : > { %v4857_v1 = vadd.f32 0.00028619796, %v4856_v42  ;;  %v5272_v57 = vadd.f32 0.0036580483, %v5271_v31  ;;  %v4930_v24 = vsel %vm4927_vm14, %v4929_v21, %v4925_v26  ;;  %v13405_v45 = vadd.f32 1.0, %v5288_v48 }
0x135c   : > { %v5324_v51 = vmul.f32 %v5323_v2, %v13300_v40  ;;  %v5200_v38 = vmul.f32 3.8918573e-05, %v13390_v6  ;;  %v4966_v13 = vand.u32 2147483647, %v13328_v44  ;;  %v4968_v53 = vand.u32 2147483648, %v13328_v44 }
0x135d   : > { %v4871_v43 = vmul.f32 %v4870_v55, %v13307_v60  ;;  %v5227_v32 = vmul.f32 %v13396_v25, %v13396_v25  ;;  %v4959_v50 = vsub.f32 1.0, %v4958_v41  ;;  %v4825_v27 = vadd.f32 1.1283791, %v4824_v39 }
0x135e   : > { %v5311_v42 = vmul.f32 %v5310_v12, %v13300_v40  ;;  %v5201_v48 = vadd.f32 0.001143296, %v5200_v38  ;;  %v4931_v31 = vmul.f32 %v4930_v24, %v4906_v30  ;;  %v4858_v2 = vmul.f32 %v4857_v1, %v13307_v60 }
0x135f   : > { %v5273_v26 = vmul.f32 %v5272_v57, %v13272_v5  ;;  %v15306_v21 = vperm.slane %v13168_v0, 2  ;;  %9974 = vrcp.f32 %v13405_v45  ;;  %v5325_v55 = vadd.f32 0.112945676, %v5324_v51 }
0x1360   : > { %v5189_v54 = vmul.f32 2.1237322e-06, %v13390_v6  ;;  %v5202_v41 = vmul.f32 %v5201_v48, %v13390_v6  ;;  %v13424_v39 = vpop.eup %9972  ;;  %vm4962_vm13 = vweird.f32 %v13328_v44  ;;  %v4872_v12 = vadd.f32 0.112945676, %v4871_v43 }
0x1361   : > { %v13419_v29 = vadd.f32 %v5154_v56, %v15306_v21  ;;  %v13428_v30 = vmul.f32 0.5, %v13204_v22  ;;  %v13430_v1 = vmin.f32 %v5227_v32, 16.0  ;;  %v4960_v57 = vmul.f32 %v13376_v62, %v4959_v50 }
0x1362   : > { %v4969_v24 = vor.u32 1.1754944e-38, %v4968_v53  ;;  %v5312_v38 = vadd.f32 0.0036580483, %v5311_v42  ;;  %v5203_v56 = vadd.f32 0.014752088, %v5202_v41  ;;  %v8677_v51 = vclamps-f32 %v4931_v31, 1.0 }
0x1363   : > { %v13434_v21 = vmul.f32 %v4825_v27, %v13126_v49  ;;  %v4859_v48 = vadd.f32 0.0036580483, %v4858_v2  ;;  %v5274_v8 = vadd.f32 0.05243302, %v5273_v26  ;;  %vm13436_vm15 = vcmp.eq.f32.partialorder %v4966_v13, 8.507059e+37 }
0x1364   : > { %v4838_v22 = vmul.f32 %v13424_v39, %v13378_v18  ;;  %v5326_v43 = vmul.f32 %v5325_v55, %v13300_v40  ;;  %v5190_v32 = vadd.f32 0.00028619796, %v5189_v54  ;;  %v13444_v53 = vmul.f32 0.70710677, %v13419_v29 }
0x1365   : > { %v4848_v49 = vand.u32 2147483648, %v13378_v18  ;;  %v4873_v27 = vmul.f32 %v4872_v12, %v13307_v60  ;;  %v5240_v13 = vmul.f32 3.8918573e-05, %v13430_v1  ;;  %v13450_v42 = vpop.eup %9974  ;;  %v4961_v31 = vadd.f32 %v13376_v62, %v4960_v57 }
0x1366   : > { %vm4963_vm2 = vweird.f32 %v13376_v62  ;;  %v5313_v2 = vmul.f32 %v5312_v38, %v13300_v40  ;;  %v5204_v54 = vmul.f32 %v5203_v56, %v13390_v6  ;;  %v4980_v26 = vadd.f32 1.0, %v8677_v51 }
0x1367   : > { %v4860_v55 = vmul.f32 %v4859_v48, %v13307_v60  ;;  %v5275_v41 = vmul.f32 %v5274_v8, %v13272_v5  ;;  %v5229_v50 = vmul.f32 2.1237322e-06, %v13430_v1  ;;  %v4839_v12 = vsub.f32 1.0, %v4838_v22  ;;  %vm13464_vm3 = vmor %vm4962_vm13, %vm4963_vm2 }
0x1368   : > { %v5327_v15 = vadd.f32 0.4994258, %v5326_v43  ;;  %v5191_v11 = vmul.f32 %v5190_v32, %v13390_v6  ;;  %v5427_v57 = vmul.f32 %v13444_v53, %v13444_v53  ;;  %v4874_v56 = vadd.f32 0.4994258, %v4873_v27 }
0x1369   : > { %v5291_v51 = vmul.f32 %v13450_v42, %v13405_v45  ;;  %v13471_v8 = vmul.f32 0.5, %v13233_v33  ;;  %v5241_v48 = vadd.f32 0.001143296, %v5240_v13  ;;  %v4965_v22 = vsel %vm13464_vm3, %v13376_v62, %v4961_v31 }
0x136a   : > { %v13476_v43 = vor.u32 1.1754944e-38, %v4848_v49  ;;  %v5314_v32 = vadd.f32 0.05243302, %v5313_v2  ;;  %v5205_v44 = vadd.f32 0.112945676, %v5204_v54  ;;  %v13479_v59 = vmul.f32 %v4980_v26, %v13161_v37 }
0x136b   : > { %v4861_v34 = vadd.f32 0.05243302, %v4860_v55  ;;  %v5276_v27 = vadd.f32 0.18741608, %v5275_v41  ;;  %v5230_v35 = vadd.f32 0.00028619796, %v5229_v50  ;;  %v4840_v17 = vmul.f32 %v13424_v39, %v4839_v12  ;;  %v5168_v55 = vpop.f32.mrf.mxu1 }
0x136c   : > { %v5328_v33 = vmul.f32 %v5327_v15, %v13300_v40  ;;  %v5192_v10 = vadd.f32 0.0036580483, %v5191_v11  ;;  %v13483_v13 = vmin.f32 %v5427_v57, 16.0  ;;  %v4970_v62 = vsel %vm13436_vm15, %v4969_v24, %v4965_v22  ;;  %v9556_v41 = vld [vmem:[%s15311_s14 + $0x1b8] sm:$0xff] }
0x136d   : > { %v4875_v49 = vmul.f32 %v4874_v56, %v13307_v60  ;;  %v5292_v31 = vsub.f32 1.0, %v5291_v51  ;;  %v5242_v37 = vmul.f32 %v5241_v48, %v13430_v1  ;;  %v5315_v2 = vmul.f32 %v5314_v32, %v13300_v40  ;;  %v9564_v12 = vld [vmem:[%s15311_s14 + $0x1f8] sm:$0xff]  ;;  %v5126_v48 = vpop.f32.mrf.mxu2  ;;  %5811 = vmatpush.bf16.msrb.mxu0 %v9556_v41 }
0x136e   : > { %v5206_v50 = vmul.f32 %v5205_v44, %v13390_v6  ;;  %v5429_v54 = vmul.f32 2.1237322e-06, %v13483_v13  ;;  %v5440_v15 = vmul.f32 3.8918573e-05, %v13483_v13  ;;  %vm4843_vm4 = vweird.f32 %v13424_v39  ;;  %5825 = vmatpush.bf16.msrb.mxu1 %v9564_v12  ;;  %v9540_v12 = vld [vmem:[%s15311_s14 + $0x138] sm:$0xff] }
0x136f   : > { %v13497_v3 = vmul.f32 %v4861_v34, %v13307_v60  ;;  %v5277_v24 = vmul.f32 %v5276_v27, %v13272_v5  ;;  %v5231_v26 = vmul.f32 %v5230_v35, %v13430_v1  ;;  %v13503_v57 = vadd.f32 1.0, %v5328_v33  ;;  %5783 = vmatpush.bf16.msrb.mxu2 %v9540_v12  ;;  %v9544_v60 = vld [vmem:[%s15311_s14 + $0x158] sm:$0xff] }
0x1370   : > { %v5193_v38 = vmul.f32 %v5192_v10, %v13390_v6  ;;  %v5430_v56 = vadd.f32 0.00028619796, %v5429_v54  ;;  %v5441_v51 = vadd.f32 0.001143296, %v5440_v15  ;;  %v13507_v22 = vmul.f32 %v4970_v62, %v13402_v28  ;;  %v9563_v15 = vld [vmem:[%s15311_s14 + $0x1f0] sm:$0xff] }
0x1371   : > { %v13510_v34 = vadd.f32 %v13424_v39, %v4840_v17  ;;  %vm4842_vm5 = vweird.f32 %v13378_v18  ;;  %v5293_v35 = vmul.f32 %v13450_v42, %v5292_v31  ;;  %v5243_v5 = vadd.f32 0.014752088, %v5242_v37  ;;  %v9555_v37 = vld [vmem:[%s15311_s14 + $0x1b0] sm:$0xff] }
0x1372   : > { %v13514_v32 = vadd.f32 1.0, %v4875_v49  ;;  %v5316_v10 = vadd.f32 0.18741608, %v5315_v2  ;;  %v5207_v44 = vadd.f32 0.4994258, %v5206_v50  ;;  %v15312_v27 = vperm.slane %v13168_v0, 3  ;;  %5812 = vmatpush.bf16.msrb.mxu0 %v9555_v37  ;;  %5826 = vmatpush.bf16.msrb.mxu1 %v9563_v15  ;;  %vm13577_vm9 = vmor %vm4842_vm5, %vm4843_vm4 }
0x1373   : > { %v5232_v28 = vadd.f32 0.0036580483, %v5231_v26  ;;  %v5431_v17 = vmul.f32 %v5430_v56, %v13483_v13  ;;  %v5442_v62 = vmul.f32 %v5441_v51, %v13483_v13  ;;  %v15313_v54 = vperm.slane %v13168_v0, 0 }
0x1374   : > { %v13518_v33 = vadd.f32 %v5168_v55, %v15312_v27  ;;  %v13528_v49 = vadd.f32 1.1283791, %v5277_v24  ;;  %v5301_v2 = vand.u32 2147483648, %v13405_v45  ;;  %9976 = vrcp.f32 %v13503_v57 }
0x1375   : > { %v13524_v31 = vadd.f32 %v5126_v48, %v15313_v54  ;;  %v5194_v50 = vadd.f32 0.05243302, %v5193_v38  ;;  %v5294_v26 = vadd.f32 %v13450_v42, %v5293_v35  ;;  %vm5296_vm6 = vweird.f32 %v13450_v42 }
0x1376   : > { %v5244_v55 = vmul.f32 %v5243_v5, %v13430_v1  ;;  %v5432_v41 = vadd.f32 0.0036580483, %v5431_v17  ;;  %v5317_v24 = vmul.f32 %v5316_v10, %v13300_v40  ;;  %v5208_v56 = vmul.f32 %v5207_v44, %v13390_v6  ;;  %v9548_v40 = vld [vmem:[%s15311_s14 + $0x178] sm:$0xff]  ;;  %v9554_v10 = vld [vmem:[%s15311_s14 + $0x1a8] sm:$0xff] }
0x1377   : > { %v5443_v51 = vadd.f32 0.014752088, %v5442_v62  ;;  %v13539_v38 = vmul.f32 0.70710677, %v13518_v33  ;;  %vm5295_vm7 = vweird.f32 %v13405_v45  ;;  %v5299_v48 = vand.u32 2147483647, %v13405_v45  ;;  %5797 = vmatpush.bf16.msrb.mxu3 %v9548_v40  ;;  %5813 = vmatpush.bf16.msrb.mxu0 %v9554_v10 }
0x1378   : > { %v5233_v35 = vmul.f32 %v5232_v28, %v13430_v1  ;;  %v13545_v5 = vmul.f32 0.70710677, %v13524_v31  ;;  %vm13551_vm8 = vmor %vm5295_vm7, %vm5296_vm6  ;;  %v5195_v27 = vmul.f32 %v5194_v50, %v13390_v6  ;;  %v13557_v45 = vmul.f32 0.5, %v13419_v29  ;;  %v9562_v62 = vld [vmem:[%s15311_s14 + $0x1e8] sm:$0xff]  ;;  %v9539_v29 = vld [vmem:[%s15311_s14 + $0x130] sm:$0xff] }
0x1379   : > { %v5433_v28 = vmul.f32 %v5432_v41, %v13483_v13  ;;  %v5444_v17 = vmul.f32 %v5443_v51, %v13483_v13  ;;  %v5298_v54 = vsel %vm13551_vm8, %v13450_v42, %v5294_v26  ;;  %v5245_v37 = vadd.f32 0.112945676, %v5244_v55  ;;  %v9547_v50 = vld [vmem:[%s15311_s14 + $0x170] sm:$0xff]  ;;  %5827 = vmatpush.bf16.msrb.mxu1 %v9562_v62  ;;  %5784 = vmatpush.bf16.msrb.mxu2 %v9539_v29 }
0x137a   : > { %v5467_v15 = vmul.f32 %v13539_v38, %v13539_v38  ;;  %v5347_v12 = vmul.f32 %v13545_v5, %v13545_v5  ;;  %v13571_v41 = vpop.eup %9976  ;;  %v5302_v26 = vor.u32 1.1754944e-38, %v5301_v2  ;;  %v5318_v55 = vadd.f32 1.1283791, %v5317_v24 }
0x137b   : > { %v13581_v51 = vadd.f32 1.0, %v5208_v56  ;;  %v5445_v40 = vadd.f32 0.112945676, %v5444_v17  ;;  %vm5300_vm10 = vcmp.eq.f32.partialorder %v5299_v48, 8.507059e+37  ;;  %v5234_v44 = vadd.f32 0.05243302, %v5233_v35  ;;  %5798 = vmatpush.bf16.msrb.mxu3 %v9547_v50  ;;  %5814 = vmatpush.bf16.msrb.mxu0 %v9553_v36 }
0x137c   : > { %v13587_v11 = vmin.f32 %v5467_v15, 16.0  ;;  %v5303_v58 = vsel %vm5300_vm10, %v5302_v26, %v5298_v54  ;;  %v5434_v2 = vadd.f32 0.05243302, %v5433_v28  ;;  %v13592_v56 = vmin.f32 %v5347_v12, 16.0  ;;  %v9538_v15 = vld [vmem:[%s15311_s14 + $0x128] sm:$0xff]  ;;  %v9552_v50 = vld [vmem:[%s15311_s14 + $0x198] sm:$0xff] }
0x137d   : > { %v5446_v24 = vmul.f32 %v5445_v40, %v13483_v13  ;;  %v5331_v17 = vmul.f32 %v13571_v41, %v13503_v57  ;;  %v5196_v62 = vadd.f32 0.18741608, %v5195_v27  ;;  %v5246_v48 = vmul.f32 %v5245_v37, %v13430_v1  ;;  %5828 = vmatpush.bf16.msrb.mxu1 %v9561_v14  ;;  %5785 = vmatpush.bf16.msrb.mxu2 %v9538_v15  ;;  %v9546_v36 = vld [vmem:[%s15311_s14 + $0x168] sm:$0xff]  ;;  %v9560_v14 = vld [vmem:[%s15311_s14 + $0x1d8] sm:$0xff]  ;;  %v9545_v15 = vld [vmem:[%s15311_s14 + $0x160] sm:$0xff] }
0x137e   : > { %v5469_v35 = vmul.f32 2.1237322e-06, %v13587_v11  ;;  %9978 = vrcp.f32 %v13581_v51  ;;  %v5480_v54 = vmul.f32 3.8918573e-05, %v13587_v11  ;;  %v5349_v12 = vmul.f32 2.1237322e-06, %v13592_v56 }
0x137f   : > { %v5447_v28 = vadd.f32 0.4994258, %v5446_v24  ;;  %9980 = vrcp.f32 %v13514_v32  ;;  %v5279_v27 = vmul.f32 %v13528_v49, %v13237_v7  ;;  %v5360_v29 = vmul.f32 3.8918573e-05, %v13592_v56  ;;  %5799 = vmatpush.bf16.msrb.mxu3 %v9546_v36  ;;  %5815 = vmatpush.bf16.msrb.mxu0 %v9552_v50 }
0x1380   : > { %v5470_v37 = vadd.f32 0.00028619796, %v5469_v35  ;;  %v5435_v26 = vmul.f32 %v5434_v2, %v13483_v13  ;;  %v5481_v24 = vadd.f32 0.001143296, %v5480_v54  ;;  %v5350_v10 = vadd.f32 0.00028619796, %v5349_v12 }
0x1381   : > { %v5448_v40 = vmul.f32 %v5447_v28, %v13483_v13  ;;  %v5304_v9 = vmul.f32 %v5303_v58, %v5279_v27  ;;  %v13612_v23 = vmul.f32 %v5318_v55, %v13268_v19  ;;  %v5332_v7 = vsub.f32 1.0, %v5331_v17  ;;  %v9537_v35 = vld [vmem:[%s15311_s14 + $0x120] sm:$0xff]  ;;  %v5140_v58 = vpop.f32.mrf.mxu3  ;;  %5829 = vmatpush.bf16.msrb.mxu1 %v9560_v14  ;;  %v9559_v12 = vld [vmem:[%s15311_s14 + $0x1d0] sm:$0xff] }
0x1382   : > { %v5247_v49 = vadd.f32 0.4994258, %v5246_v48  ;;  %v5341_v4 = vand.u32 2147483648, %v13503_v57  ;;  %v5235_v2 = vmul.f32 %v5234_v44, %v13430_v1  ;;  %v5482_v54 = vmul.f32 %v5481_v24, %v13587_v11  ;;  %5786 = vmatpush.bf16.msrb.mxu2 %v9537_v35  ;;  %v9551_v48 = vld [vmem:[%s15311_s14 + $0x190] sm:$0xff]  ;;  %v9536_v35 = vld [vmem:[%s15311_s14 + $0x118] sm:$0xff] }
0x1383   : > { %v13618_v28 = vadd.f32 1.0, %v5448_v40  ;;  %vm5335_vm11 = vweird.f32 %v13503_v57  ;;  %v5471_v19 = vmul.f32 %v5470_v37, %v13587_v11  ;;  %v5351_v55 = vmul.f32 %v5350_v10, %v13592_v56  ;;  %5800 = vmatpush.bf16.msrb.mxu3 %v9545_v15  ;;  %5816 = vmatpush.bf16.msrb.mxu0 %v9551_v48  ;;  %v9550_v15 = vld [vmem:[%s15311_s14 + $0x188] sm:$0xff] }
0x1384   : > { %v5361_v17 = vadd.f32 0.001143296, %v5360_v29  ;;  %v13626_v27 = vpop.eup %9978  ;;  %v5339_v44 = vand.u32 2147483647, %v13503_v57  ;;  %v5197_v36 = vmul.f32 %v5196_v62, %v13390_v6  ;;  %v5436_v50 = vadd.f32 0.18741608, %v5435_v26 }
0x1385   : > { %9982 = vrcp.f32 %v13618_v28  ;;  %v13631_v40 = vpop.eup %9980  ;;  %v8717_v37 = vclamps-f32 %v5304_v9, 1.0  ;;  %v5333_v10 = vmul.f32 %v13571_v41, %v5332_v7  ;;  %v5248_v29 = vmul.f32 %v5247_v49, %v13430_v1  ;;  %5830 = vmatpush.bf16.msrb.mxu1 %v9559_v12 }
0x1386   : > { %v15318_v24 = vperm.slane %v13168_v0, 1  ;;  %v13641_v6 = vor.u32 1.1754944e-38, %v5341_v4  ;;  %v5236_v62 = vadd.f32 0.18741608, %v5235_v2  ;;  %v5483_v26 = vadd.f32 0.014752088, %v5482_v54  ;;  %5787 = vmatpush.bf16.msrb.mxu2 %v9536_v35 }
0x1387   : > { %v5362_v9 = vmul.f32 %v5361_v17, %v13592_v56  ;;  %vm5336_vm12 = vweird.f32 %v13571_v41  ;;  %v5211_v0 = vmul.f32 %v13626_v27, %v13581_v51  ;;  %v5472_v7 = vadd.f32 0.0036580483, %v5471_v19  ;;  %v9558_v17 = vld [vmem:[%s15311_s14 + $0x1c8] sm:$0xff]  ;;  %5801 = vmatpush.bf16.msrb.mxu3 %v9544_v60  ;;  %5817 = vmatpush.bf16.msrb.mxu0 %v9550_v15 }
0x1388   : > { %v13637_v14 = vadd.f32 %v5140_v58, %v15318_v24  ;;  %v5352_v49 = vadd.f32 0.0036580483, %v5351_v55  ;;  %v13648_v58 = vadd.f32 1.1283791, %v5197_v36  ;;  %v5437_v4 = vmul.f32 %v5436_v50, %v13483_v13  ;;  %v9535_v55 = vld [vmem:[%s15311_s14 + $0x110] sm:$0xff]  ;;  %vm13686_vm13 = vmor %vm5335_vm11, %vm5336_vm12 }
0x1389   : > { %v5484_v2 = vmul.f32 %v5483_v26, %v13587_v11  ;;  %v5363_v54 = vadd.f32 0.014752088, %v5362_v9  ;;  %v13653_v48 = vadd.f32 1.0, %v8717_v37  ;;  %v13656_v12 = vadd.f32 %v13571_v41, %v5333_v10  ;;  %v9543_v13 = vld [vmem:[%s15311_s14 + $0x150] sm:$0xff]  ;;  %5831 = vmatpush.bf16.msrb.mxu1 %v9558_v17  ;;  %v9524_v17 = vld [vmem:[%s15311_s14 + $0xf8] sm:$0xff] }
0x138a   : > { %15319 = vst [vmem:[#allocation142_spill] sm:$0xff] %v13637_v14  ;;  %v13658_v24 = vadd.f32 1.0, %v5248_v29  ;;  %v13661_v19 = vmul.f32 0.70710677, %v13637_v14  ;;  %v13669_v37 = vmul.f32 %v5236_v62, %v13430_v1  ;;  %vm13672_vm14 = vcmp.eq.f32.partialorder %v5339_v44, 8.507059e+37  ;;  %5788 = vmatpush.bf16.msrb.mxu2 %v9535_v55  ;;  %v9549_v1 = vld [vmem:[%s15311_s14 + $0x180] sm:$0xff] }
0x138b   : > { %v13665_v36 = vpop.eup %9982  ;;  %v5485_v10 = vadd.f32 0.112945676, %v5484_v2  ;;  %v5364_v29 = vmul.f32 %v5363_v54, %v13592_v56  ;;  %v5212_v35 = vsub.f32 1.0, %v5211_v0  ;;  %v5473_v9 = vmul.f32 %v5472_v7, %v13587_v11  ;;  %v9557_v62 = vld [vmem:[%s15311_s14 + $0x1c0] sm:$0xff]  ;;  %5802 = vmatpush.bf16.msrb.mxu3 %v9543_v13  ;;  %5818 = vmatpush.bf16.msrb.mxu0 %v9549_v1 }
0x138c   : > { %15320 = vst [vmem:[#allocation143_spill] sm:$0xff] %v13661_v19  ;;  %v5451_v26 = vmul.f32 %v13665_v36, %v13618_v28  ;;  %v5353_v15 = vmul.f32 %v5352_v49, %v13592_v56  ;;  %v5438_v0 = vadd.f32 1.1283791, %v5437_v4  ;;  %v5387_v7 = vmul.f32 %v13661_v19, %v13661_v19  ;;  %v9516_v49 = vld [vmem:[%s15311_s14 + $0xb8] sm:$0xff]  ;;  %v9534_v4 = vld [vmem:[%s15311_s14 + $0x108] sm:$0xff] }
0x138d   : > { %v5486_v2 = vmul.f32 %v5485_v10, %v13587_v11  ;;  %v5365_v54 = vadd.f32 0.112945676, %v5364_v29  ;;  %v5338_v55 = vsel %vm13686_vm13, %v13571_v41, %v13656_v12  ;;  %9984 = vrcp.f32 %v13658_v24  ;;  %v9542_v10 = vld [vmem:[%s15311_s14 + $0x148] sm:$0xff]  ;;  %5832 = vmatpush.bf16.msrb.mxu1 %v9557_v62  ;;  %v9515_v62 = vld [vmem:[%s15311_s14 + $0xb0] sm:$0xff] }
0x138e   : > { %v5452_v57 = vsub.f32 1.0, %v5451_v26  ;;  %v5459_v50 = vand.u32 2147483647, %v13618_v28  ;;  %v5461_v29 = vand.u32 2147483648, %v13618_v28  ;;  %v13705_v63 = vmin.f32 %v5387_v7, 16.0  ;;  %5789 = vmatpush.bf16.msrb.mxu2 %v9534_v4 }
0x138f   : > { %v5487_v14 = vadd.f32 0.4994258, %v5486_v2  ;;  %v5366_v19 = vmul.f32 %v5365_v54, %v13592_v56  ;;  %6059 = vmatpush.bf16.msra.mxu0 %v9516_v49  ;;  %vm5456_vm15 = vweird.f32 %v13665_v36  ;;  %v5474_v12 = vadd.f32 0.05243302, %v5473_v9  ;;  %v9523_v54 = vld [vmem:[%s15311_s14 + $0xf0] sm:$0xff]  ;;  %5803 = vmatpush.bf16.msrb.mxu3 %v9542_v10 }
0x1390   : > { %v5453_v41 = vmul.f32 %v13665_v36, %v5452_v57  ;;  %v5354_v13 = vadd.f32 0.05243302, %v5353_v15  ;;  %v5213_v26 = vmul.f32 %v13626_v27, %v5212_v35  ;;  %v5389_v2 = vmul.f32 2.1237322e-06, %v13705_v63  ;;  %v9533_v15 = vld [vmem:[%s15311_s14 + $0x100] sm:$0xff] }
0x1391   : > { %6073 = vmatpush.bf16.msra.mxu1 %v9524_v17  ;;  %v5488_v1 = vmul.f32 %v5487_v14, %v13587_v11  ;;  %v5367_v44 = vadd.f32 0.4994258, %v5366_v19  ;;  %v5439_v7 = vmul.f32 %v5438_v0, %v13444_v53  ;;  %vm5455_vm2 = vweird.f32 %v13618_v28  ;;  %v9541_v35 = vld [vmem:[%s15311_s14 + $0x140] sm:$0xff]  ;;  %v9500_v28 = vld [vmem:[%s15311_s14 + $0x38] sm:$0xff] }
0x1392   : > { %v5454_v49 = vadd.f32 %v13665_v36, %v5453_v41  ;;  %v5400_v9 = vmul.f32 3.8918573e-05, %v13705_v63  ;;  %vm13722_vm3 = vmor %vm5455_vm2, %vm5456_vm15  ;;  %v5462_v19 = vor.u32 1.1754944e-38, %v5461_v29  ;;  %v5390_v0 = vadd.f32 0.00028619796, %v5389_v2  ;;  %5790 = vmatpush.bf16.msrb.mxu2 %v9533_v15  ;;  %v9508_v29 = vld [vmem:[%s15311_s14 + $0x78] sm:$0xff] }
0x1393   : > { %v13726_v17 = vadd.f32 1.0, %v5488_v1  ;;  %v5368_v53 = vmul.f32 %v5367_v44, %v13592_v56  ;;  %6060 = vmatpush.bf16.msra.mxu0 %v9515_v62  ;;  %v13730_v57 = vpop.eup %9984  ;;  %vm5460_vm4 = vcmp.eq.f32.partialorder %v5459_v50, 8.507059e+37  ;;  %v5475_v10 = vmul.f32 %v5474_v12, %v13587_v11  ;;  %v9522_v50 = vld [vmem:[%s15311_s14 + $0xe8] sm:$0xff]  ;;  %5804 = vmatpush.bf16.msrb.mxu3 %v9541_v35 }
0x1394   : > { %v5458_v4 = vsel %vm13722_vm3, %v13665_v36, %v5454_v49  ;;  %v5401_v41 = vadd.f32 0.001143296, %v5400_v9  ;;  %v5343_v1 = vsel %vm13672_vm14, %v13641_v6, %v5338_v55  ;;  %v5355_v2 = vmul.f32 %v5354_v13, %v13592_v56  ;;  %v9514_v36 = vld [vmem:[%s15311_s14 + $0xa8] sm:$0xff]  ;;  %v9499_v49 = vld [vmem:[%s15311_s14 + $0x30] sm:$0xff] }
0x1395   : > { %6074 = vmatpush.bf16.msra.mxu1 %v9523_v54  ;;  %v5463_v44 = vsel %vm5460_vm4, %v5462_v19, %v5458_v4  ;;  %9986 = vrcp.f32 %v13726_v17  ;;  %v5214_v12 = vadd.f32 %v13626_v27, %v5213_v26  ;;  %vm5216_vm5 = vweird.f32 %v13626_v27  ;;  %v9507_v26 = vld [vmem:[%s15311_s14 + $0x70] sm:$0xff] }
0x1396   : > { %6031 = vmatpush.bf16.msra.mxu2 %v9500_v28  ;;  %v5464_v62 = vmul.f32 %v5463_v44, %v5439_v7  ;;  %v13746_v54 = vadd.f32 1.0, %v5368_v53  ;;  %v5221_v6 = vand.u32 2147483648, %v13581_v51  ;;  %v5251_v60 = vmul.f32 %v13730_v57, %v13658_v24  ;;  %v9505_v53 = vld [vmem:[%s15311_s14 + $0x60] sm:$0xff] }
0x1397   : > { %v5391_v55 = vmul.f32 %v5390_v0, %v13705_v63  ;;  %v5402_v13 = vmul.f32 %v5401_v41, %v13705_v63  ;;  %6045 = vmatpush.bf16.msra.mxu3 %v9508_v29  ;;  %6061 = vmatpush.bf16.msra.mxu0 %v9514_v36  ;;  %vm5215_vm6 = vweird.f32 %v13581_v51  ;;  %v5476_v9 = vadd.f32 0.18741608, %v5475_v10  ;;  %v9521_v10 = vld [vmem:[%s15311_s14 + $0xe0] sm:$0xff]  ;;  %v9506_v36 = vld [vmem:[%s15311_s14 + $0x68] sm:$0xff] }
0x1398   : > { %v8721_v7 = vclamps-f32 %v5464_v62, 1.0  ;;  %9988 = vrcp.f32 %v13746_v54  ;;  %v13758_v15 = vmul.f32 %v5343_v1, %v13612_v23  ;;  %v5199_v35 = vmul.f32 %v13648_v58, %v13360_v46  ;;  %vm13764_vm7 = vmor %vm5215_vm6, %vm5216_vm5  ;;  %v9513_v23 = vld [vmem:[%s15311_s14 + $0xa0] sm:$0xff] }
0x1399   : > { %6075 = vmatpush.bf16.msra.mxu1 %v9522_v50  ;;  %v15329_v19 = vand.u32 2147483647, %v13581_v51  ;;  %v5356_v0 = vadd.f32 0.18741608, %v5355_v2  ;;  %v5218_v46 = vsel %vm13764_vm7, %v13626_v27, %v5214_v12  ;;  %v5392_v28 = vadd.f32 0.0036580483, %v5391_v55 }
0x139a   : > { %6032 = vmatpush.bf16.msra.mxu2 %v9499_v49  ;;  %v5513_v58 = vadd.f32 1.0, %v8721_v7  ;;  %v5403_v4 = vadd.f32 0.014752088, %v5402_v13  ;;  %v5517_v51 = vmul.f32 %v13653_v48, %v13428_v30  ;;  %v5222_v29 = vor.u32 1.1754944e-38, %v5221_v6  ;;  %v9498_v2 = vld [vmem:[%s15311_s14 + $0x28] sm:$0xff] }
0x139b   : > { %vm13770_vm8 = vcmp.eq.f32.partialorder %v15329_v19, 8.507059e+37  ;;  %v13779_v41 = vpop.eup %9986  ;;  %v5252_v1 = vsub.f32 1.0, %v5251_v60  ;;  %v5259_v44 = vand.u32 2147483647, %v13658_v24  ;;  %6046 = vmatpush.bf16.msra.mxu3 %v9507_v26  ;;  %6062 = vmatpush.bf16.msra.mxu0 %v9513_v23  ;;  %v5477_v50 = vmul.f32 %v5476_v9, %v13587_v11  ;;  %v9520_v11 = vld [vmem:[%s15311_s14 + $0xd8] sm:$0xff]  ;;  %v9497_v19 = vld [vmem:[%s15311_s14 + $0x20] sm:$0xff] }
0x139c   : > { %v5521_v27 = vmul.f32 %v5513_v58, %v13557_v45  ;;  %v5491_v12 = vmul.f32 %v13779_v41, %v13726_v17  ;;  %v5404_v62 = vmul.f32 %v5403_v4, %v13705_v63  ;;  %v8718_v30 = vclamps-f32 %v13758_v15, 1.0  ;;  %v9512_v45 = vld [vmem:[%s15311_s14 + $0x98] sm:$0xff] }
0x139d   : > { %6076 = vmatpush.bf16.msra.mxu1 %v9521_v10  ;;  %v5223_v48 = vsel %vm13770_vm8, %v5222_v29, %v5218_v46  ;;  %v5261_v6 = vand.u32 2147483648, %v13658_v24  ;;  %v5357_v60 = vmul.f32 %v5356_v0, %v13592_v56  ;;  %vm5256_vm10 = vweird.f32 %v13730_v57  ;;  %v9511_v29 = vld [vmem:[%s15311_s14 + $0x90] sm:$0xff] }
0x139e   : > { %6033 = vmatpush.bf16.msra.mxu2 %v9498_v2  ;;  %v13798_v55 = vpop.eup %9988  ;;  %v5525_v13 = vpack.c.bf16 %v5521_v27, %v5517_v51  ;;  %v5492_v49 = vsub.f32 1.0, %v5491_v12  ;;  %v5393_v26 = vmul.f32 %v5392_v28, %v13705_v63  ;;  %v5405_v7 = vadd.f32 0.112945676, %v5404_v62 }
0x139f   : > { %v5253_v9 = vmul.f32 %v13730_v57, %v5252_v1  ;;  %vm5496_vm11 = vweird.f32 %v13779_v41  ;;  %v5501_v56 = vand.u32 2147483648, %v13726_v17  ;;  %v5371_v14 = vmul.f32 %v13798_v55, %v13746_v54  ;;  %6047 = vmatpush.bf16.msra.mxu3 %v9506_v36  ;;  %6063 = vmatpush.bf16.msra.mxu0 %v9512_v45  ;;  %v9519_v1 = vld [vmem:[%s15311_s14 + $0xd0] sm:$0xff]  ;;  %v9510_v45 = vld [vmem:[%s15311_s14 + $0x88] sm:$0xff] }
0x13a0   : > { %v15332_v0 = vand.u32 2147483647, %v13378_v18  ;;  %vm5255_vm14 = vweird.f32 %v13658_v24  ;;  %v5478_v46 = vadd.f32 1.1283791, %v5477_v50  ;;  %v5493_v58 = vmul.f32 %v13779_v41, %v5492_v49  ;;  %5819 = vmatmul.bf16.vlgmr.msrb.gmra.mxu0 %v5525_v13 }
0x13a1   : > { %v5499_v28 = vand.u32 2147483647, %v13726_v17  ;;  %v5406_v4 = vmul.f32 %v5405_v7, %v13705_v63  ;;  %6077 = vmatpush.bf16.msra.mxu1 %v9520_v11  ;;  %v13819_v10 = vmul.f32 %v5223_v48, %v5199_v35  ;;  %vm5495_vm13 = vweird.f32 %v13726_v17  ;;  %v9496_v48 = vld [vmem:[%s15311_s14 + $0x18] sm:$0xff]  ;;  %vm13876_vm7 = vmor %vm5255_vm14, %vm5256_vm10 }
0x13a2   : > { %vm13811_vm12 = vcmp.eq.f32.partialorder %v15332_v0, 8.507059e+37  ;;  %v5358_v18 = vadd.f32 1.1283791, %v5357_v60  ;;  %v5372_v51 = vsub.f32 1.0, %v5371_v14  ;;  %6034 = vmatpush.bf16.msra.mxu2 %v9497_v19  ;;  %v5494_v2 = vadd.f32 %v13779_v41, %v5493_v58  ;;  %vm13827_vm15 = vmor %vm5495_vm13, %vm5496_vm11  ;;  %v9504_v60 = vld [vmem:[%s15311_s14 + $0x58] sm:$0xff] }
0x13a3   : > { %v5381_v35 = vand.u32 2147483648, %v13746_v54  ;;  %v5394_v27 = vadd.f32 0.05243302, %v5393_v26  ;;  %v5407_v17 = vadd.f32 0.4994258, %v5406_v4  ;;  %v5502_v50 = vor.u32 1.1754944e-38, %v5501_v56  ;;  %6048 = vmatpush.bf16.msra.mxu3 %v9505_v53  ;;  %6064 = vmatpush.bf16.msra.mxu0 %v9511_v29 }
0x13a4   : > { %v5373_v12 = vmul.f32 %v13798_v55, %v5372_v51  ;;  %vm5376_vm2 = vweird.f32 %v13798_v55  ;;  %v5379_v62 = vand.u32 2147483647, %v13746_v54  ;;  %v5479_v11 = vmul.f32 %v5478_v46, %v13539_v38  ;;  %v9518_v26 = vld [vmem:[%s15311_s14 + $0xc8] sm:$0xff]  ;;  %v9495_v38 = vld [vmem:[%s15311_s14 + $0x10] sm:$0xff] }
0x13a5   : > { %v5498_v13 = vsel %vm13827_vm15, %v13779_v41, %v5494_v2  ;;  %vm5500_vm3 = vcmp.eq.f32.partialorder %v5499_v28, 8.507059e+37  ;;  %v5408_v49 = vmul.f32 %v5407_v17, %v13705_v63  ;;  %6078 = vmatpush.bf16.msra.mxu1 %v9519_v1  ;;  %v5254_v7 = vadd.f32 %v13730_v57, %v5253_v9  ;;  %v9509_v28 = vld [vmem:[%s15311_s14 + $0x80] sm:$0xff] }
0x13a6   : > { %v5503_v56 = vsel %vm5500_vm3, %v5502_v50, %v5498_v13  ;;  %v5374_v14 = vadd.f32 %v13798_v55, %v5373_v12  ;;  %vm5375_vm4 = vweird.f32 %v13746_v54  ;;  %6035 = vmatpush.bf16.msra.mxu2 %v9496_v48  ;;  %v5382_v41 = vor.u32 1.1754944e-38, %v5381_v35  ;;  %v9503_v54 = vld [vmem:[%s15311_s14 + $0x50] sm:$0xff]  ;;  %v9517_v1 = vld [vmem:[%s15311_s14 + $0xc0] sm:$0xff] }
0x13a7   : > { %v5504_v19 = vmul.f32 %v5503_v56, %v5479_v11  ;;  %vm5377_vm5 = vmor %vm5375_vm4, %vm5376_vm2  ;;  %v5395_v53 = vmul.f32 %v5394_v27, %v13705_v63  ;;  %v13851_v0 = vadd.f32 1.0, %v5408_v49  ;;  %v8715_v9 = vclamps-f32 %v13819_v10, 1.0  ;;  %6049 = vmatpush.bf16.msra.mxu3 %v9504_v60  ;;  %6065 = vmatpush.bf16.msra.mxu0 %v9510_v45 }
0x13a8   : > { %v5359_v46 = vmul.f32 %v5358_v18, %v13545_v5  ;;  %v5378_v58 = vsel %vm5377_vm5, %v13798_v55, %v5374_v14  ;;  %vm5380_vm6 = vcmp.eq.f32.partialorder %v5379_v62, 8.507059e+37  ;;  %v5510_v4 = vadd.f32 1.0, %v8718_v30  ;;  %v9493_v62 = vld [vmem:[%s15311_s14] sm:$0xff] }
0x13a9   : > { %v8722_v51 = vclamps-f32 %v5504_v19, 1.0  ;;  %v5383_v29 = vsel %vm5380_vm6, %v5382_v41, %v5378_v58  ;;  %9990 = vrcp.f32 %v13851_v0  ;;  %6079 = vmatpush.bf16.msra.mxu1 %v9518_v26  ;;  %v15337_v5 = vsel %vm13577_vm9, %v13424_v39, %v13510_v34  ;;  %v9494_v39 = vld [vmem:[%s15311_s14 + $0x8] sm:$0xff]  ;;  %v8997_v19 = vld [vmem:[%s15268_s3 + $0xa0] sm:$0xf] }
0x13aa   : > { %v4850_v55 = vsel %vm13811_vm12, %v13476_v43, %v15337_v5  ;;  %v4878_v10 = vmul.f32 %v13631_v40, %v13514_v32  ;;  %v5178_v42 = vmul.f32 0.5, %v13518_v33  ;;  %v5384_v30 = vmul.f32 %v5383_v29, %v5359_v46  ;;  %6036 = vmatpush.bf16.msra.mxu2 %v9495_v38  ;;  %v9502_v33 = vld [vmem:[%s15311_s14 + $0x48] sm:$0xff]  ;;  %v9571_v41 = vld [vmem:[%s15268_s3 + $0xdc] sm:$0xf0] }
0x13ab   : > { %v5238_v34 = vadd.f32 1.1283791, %v13669_v37  ;;  %v5258_v43 = vsel %vm13876_vm7, %v13730_v57, %v5254_v7  ;;  %v5514_v23 = vadd.f32 1.0, %v8722_v51  ;;  %v5396_v18 = vadd.f32 0.18741608, %v5395_v53  ;;  %6050 = vmatpush.bf16.msra.mxu3 %v9503_v54  ;;  %6066 = vmatpush.bf16.msra.mxu0 %v9509_v28  ;;  %v15343_v28 = vld [vmem:[#allocation139_spill] sm:$0xff] }
0x13ac   : > { %v8678_v2 = vclamps-f32 %v13507_v22, 1.0  ;;  %v5507_v36 = vadd.f32 1.0, %v8715_v9  ;;  %v5262_v35 = vor.u32 1.1754944e-38, %v5261_v6  ;;  %v8719_v27 = vclamps-f32 %v5384_v30, 1.0  ;;  %v9005_v58 = vld [vmem:[%s15268_s3 + $0xa8] sm:$0xf] }
0x13ad   : > { %v13891_v17 = vmul.f32 %v4850_v55, %v13434_v21  ;;  %v5518_v37 = vmul.f32 %v5510_v4, %v13471_v8  ;;  %vm5260_vm9 = vcmp.eq.f32.partialorder %v5259_v44, 8.507059e+37  ;;  %v5522_v57 = vmul.f32 %v5514_v23, %v5178_v42  ;;  %6080 = vmatpush.bf16.msra.mxu1 %v9517_v1  ;;  %v9572_v54 = vld [vmem:[%s15268_s3 + $0xe4] sm:$0xf0]  ;;  %v9570_v1 = vld [vmem:[%s15268_s3 + $0xac] sm:$0xf]  ;;  %v15345_v23 = vld [vmem:[#allocation143_spill] sm:$0xff] }
0x13ae   : > { %v5171_v22 = vmul.f32 0.5, %v13338_v47  ;;  %v5263_v50 = vsel %vm5260_vm9, %v5262_v35, %v5258_v43  ;;  %v5175_v6 = vmul.f32 0.5, %v13524_v31  ;;  %v5511_v12 = vadd.f32 1.0, %v8719_v27  ;;  %6037 = vmatpush.bf16.msra.mxu2 %v9494_v39  ;;  %v9501_v31 = vld [vmem:[%s15311_s14 + $0x40] sm:$0xff]  ;;  %v9007_v5 = vld [vmem:[%s15268_s3 + $0xe8] sm:$0xf0] }
0x13af   : > { %v13899_v48 = vpop.eup %9990  ;;  %v4879_v21 = vsub.f32 1.0, %v4878_v10  ;;  %v5239_v60 = vmul.f32 %v5238_v34, %v13396_v25  ;;  %v5526_v8 = vpack.c.bf16 %v5522_v57, %v5518_v37  ;;  %v5397_v24 = vmul.f32 %v5396_v18, %v13705_v63  ;;  %6051 = vmatpush.bf16.msra.mxu3 %v9502_v33  ;;  %v8989_v55 = vld [vmem:[%s15268_s3 + $0x28] sm:$0xf]  ;;  %v9566_v34 = vld [vmem:[%s15268_s3 + $0x2c] sm:$0xf] }
0x13b0   : > { %v4719_v44 = vsub.f32 1.0, %v13344_v16  ;;  %v5515_v45 = vmul.f32 %v5507_v36, %v5171_v22  ;;  %v5519_v11 = vmul.f32 %v5511_v12, %v5175_v6  ;;  %v5411_v47 = vmul.f32 %v13899_v48, %v13851_v0  ;;  %v15344_v10 = vld [vmem:[#allocation137_spill] sm:$0xff]  ;;  %v8981_v35 = vld [vmem:[%s15268_s3 + $0x20] sm:$0xf] }
0x13b1   : > { %v8671_v13 = vclamps-f32 %v13354_v20, 1.0  ;;  %v4863_v49 = vadd.f32 0.18741608, %v13497_v3  ;;  %v13909_v26 = vmul.f32 %v5263_v50, %v5239_v60  ;;  %v5421_v25 = vand.u32 2147483648, %v13851_v0  ;;  %5833 = vmatmul.bf16.vlgmr.msrb.gmra.mxu1 %v5526_v8  ;;  %v9568_v39 = vld [vmem:[%s15268_s3 + $0x64] sm:$0xf0] }
0x13b2   : > { %v15340_v63 = vpack.c.bf16 %v13479_v59, %v13351_v61  ;;  %v4981_v16 = vadd.f32 1.0, %v8678_v2  ;;  %v5523_v7 = vpack.c.bf16 %v5519_v11, %v5515_v45  ;;  %v5412_v56 = vsub.f32 1.0, %v5411_v47  ;;  %6038 = vmatpush.bf16.msra.mxu2 %v9493_v62  ;;  %v8991_v43 = vld [vmem:[%s15268_s3 + $0x68] sm:$0xf0]  ;;  %v9567_v27 = vld [vmem:[%s15268_s3 + $0x5c] sm:$0xf0] }
0x13b3   : > { %vm5416_vm8 = vweird.f32 %v13899_v48  ;;  %v8675_v20 = vclamps-f32 %v13891_v17, 1.0  ;;  %v4880_v3 = vmul.f32 %v13631_v40, %v4879_v21  ;;  %v4886_v14 = vand.u32 2147483647, %v13514_v32  ;;  %6052 = vmatpush.bf16.msra.mxu3 %v9501_v31  ;;  %v15346_v21 = vld [vmem:[#allocation134_spill] sm:$0xff]  ;;  %v15349_v11 = vld [vmem:[#allocation131_spill] sm:$0xff]  ;;  %v15350_v47 = vld [vmem:[#allocation140_spill] sm:$0xff] }
0x13b4   : > { %6067 = vmatmul.bf16.vlgmr.msra.gmra.mxu0 %v15340_v63  ;;  %v5398_v38 = vadd.f32 1.1283791, %v5397_v24  ;;  %v5413_v59 = vmul.f32 %v13899_v48, %v5412_v56  ;;  %vm5415_vm10 = vweird.f32 %v13851_v0  ;;  %v5419_v61 = vand.u32 2147483647, %v13851_v0  ;;  %5791 = vmatmul.bf16.vlgmr.msrb.gmra.mxu2 %v5523_v7  ;;  %v15354_v63 = vld [vmem:[#allocation138_spill] sm:$0xff] }
0x13b5   : > { %vm4722_vm11 = vweird.f32 %v13276_v52  ;;  %v8716_v53 = vclamps-f32 %v13909_v26, 1.0  ;;  %vm13928_vm12 = vmor %vm5415_vm10, %vm5416_vm8  ;;  %v5422_v46 = vor.u32 1.1754944e-38, %v5421_v25  ;;  %v8998_v0 = vor.u32 %v9571_v41, %v8997_v19  ;;  %v15353_v26 = vld [vmem:[#allocation141_spill] sm:$0xff]  ;;  %v15355_v7 = vld [vmem:[#allocation142_spill] sm:$0xff] }
0x13b6   : > { %v4720_v4 = vmul.f32 %v15343_v28, %v4719_v44  ;;  %vm4723_vm14 = vweird.f32 %v15343_v28  ;;  %v5414_v51 = vadd.f32 %v13899_v48, %v5413_v59  ;;  %v9006_v29 = vor.u32 %v9572_v54, %v9005_v58  ;;  %v15357_v41 = vld [vmem:[#allocation135_spill] sm:$0xff]  ;;  %v15358_v54 = vld [vmem:[#allocation128_spill] sm:$0xff] }
0x13b7   : > { %v4864_v15 = vmul.f32 %v4863_v49, %v15344_v10  ;;  %v4881_v42 = vadd.f32 %v13631_v40, %v4880_v3  ;;  %vm4883_vm13 = vweird.f32 %v13631_v40  ;;  %6150 = vmatpush.bf16.msrb.mxu2 %v8998_v0  ;;  %v9010_v30 = vor.u32 %v9570_v1, %v9007_v5  ;;  %vm13973_vm4 = vmor %vm4722_vm11, %vm4723_vm14  ;;  %v9569_v3 = vld [vmem:[%s15268_s3 + $0xa4] sm:$0xf] }
0x13b8   : > { %v5399_v18 = vmul.f32 %v5398_v38, %v15345_v23  ;;  %v5418_v2 = vsel %vm13928_vm12, %v13899_v48, %v5414_v51  ;;  %vm5420_vm15 = vcmp.eq.f32.partialorder %v5419_v61, 8.507059e+37  ;;  %6178 = vmatpush.bf16.msrb.mxu0 %v9006_v29  ;;  %v8990_v36 = vor.u32 %v9568_v39, %v8989_v55  ;;  %v15356_v61 = vld [vmem:[#allocation132_spill] sm:$0xff]  ;;  %v15361_v23 = vld [vmem:[#allocation133_spill] sm:$0xff] }
0x13b9   : > { %v4888_v33 = vand.u32 2147483648, %v13514_v32  ;;  %v5423_v17 = vsel %vm5420_vm15, %v5422_v46, %v5418_v2  ;;  %6192 = vmatpush.bf16.msrb.mxu1 %v9010_v30  ;;  %v8994_v37 = vor.u32 %v9566_v34, %v8991_v43  ;;  %v8982_v57 = vor.u32 %v9567_v27, %v8981_v35  ;;  %v9565_v55 = vld [vmem:[%s15268_s3 + $0x24] sm:$0xf]  ;;  %v15362_v2 = vld [vmem:[#allocation129_spill] sm:$0xff] }
0x13ba   : > { %v4721_v22 = vadd.f32 %v15343_v28, %v4720_v4  ;;  %v4978_v50 = vadd.f32 1.0, %v8675_v20  ;;  %vm4882_vm2 = vweird.f32 %v13514_v32  ;;  %v5424_v6 = vmul.f32 %v5423_v17, %v5399_v18  ;;  %v15360_v4 = vld [vmem:[#allocation136_spill] sm:$0xff] }
0x13bb   : > { %v4974_v12 = vadd.f32 1.0, %v8671_v13  ;;  %v4726_v62 = vand.u32 2147483647, %v13276_v52  ;;  %v4728_v48 = vand.u32 2147483648, %v13276_v52  ;;  %v4989_v60 = vmul.f32 %v4981_v16, %v15346_v21  ;;  %vm13960_vm3 = vmor %vm4882_vm2, %vm4883_vm13  ;;  %6151 = vmatpush.bf16.msrb.mxu2 %v8982_v57  ;;  %v8999_v52 = vld [vmem:[%s15268_s3 + $0xe0] sm:$0xf0] }
0x13bc   : > { %v4865_v24 = vadd.f32 1.1283791, %v4864_v15  ;;  %v4885_v32 = vsel %vm13960_vm3, %v13631_v40, %v4881_v42  ;;  %v5508_v44 = vadd.f32 1.0, %v8716_v53  ;;  %v8720_v45 = vclamps-f32 %v5424_v6, 1.0  ;;  %6179 = vmatpush.bf16.msrb.mxu0 %v8990_v36  ;;  %v8983_v10 = vld [vmem:[%s15268_s3 + $0x60] sm:$0xf0] }
0x13bd   : > { %v4985_v31 = vmul.f32 %v15350_v47, %v15349_v11  ;;  %vm4887_vm5 = vcmp.eq.f32.partialorder %v4886_v14, 8.507059e+37  ;;  %v4889_v49 = vor.u32 1.1754944e-38, %v4888_v33  ;;  %v5172_v25 = vmul.f32 0.5, %v15353_v26  ;;  %6193 = vmatpush.bf16.msrb.mxu1 %v8994_v37 }
0x13be   : > { %v4725_v40 = vsel %vm13973_vm4, %v15343_v28, %v4721_v22  ;;  %v4986_v16 = vmul.f32 %v4978_v50, %v15354_v63  ;;  %v5176_v56 = vmul.f32 0.5, %v15355_v7  ;;  %v5512_v20 = vadd.f32 1.0, %v8720_v45  ;;  %v15359_v28 = vld [vmem:[#allocation130_spill] sm:$0xff] }
0x13bf   : > { %vm4727_vm6 = vcmp.eq.f32.partialorder %v4726_v62, 8.507059e+37  ;;  %v4729_v38 = vor.u32 1.1754944e-38, %v4728_v48  ;;  %v4993_v14 = vpack.c.bf16 %v4989_v60, %v4985_v31  ;;  %v4890_v59 = vsel %vm4887_vm5, %v4889_v49, %v4885_v32  ;;  %v14006_v62 = vld [vmem:[%s15271_s8 + $0x8] sm:$0xff] }
0x13c0   : > { %v4982_v19 = vmul.f32 %v4974_v12, %v15356_v61  ;;  %v4866_v53 = vmul.f32 %v4865_v24, %v15357_v41  ;;  %v5516_v9 = vmul.f32 %v5508_v44, %v5172_v25  ;;  %v5520_v46 = vmul.f32 %v5512_v20, %v5176_v56 }
0x13c1   : > { %v4730_v0 = vsel %vm4727_vm6, %v4729_v38, %v4725_v40  ;;  %6081 = vmatmul.bf16.vlgmr.msra.gmra.mxu1 %v4993_v14  ;;  %v9002_v58 = vor.u32 %v9569_v3, %v8999_v52  ;;  %v4706_v51 = vmul.f32 %v15360_v4, %v15359_v28  ;;  %v8986_v42 = vor.u32 %v9565_v55, %v8983_v10 }
0x13c2   : > { %v4990_v29 = vpack.c.bf16 %v4986_v16, %v4982_v19  ;;  %v4891_v1 = vmul.f32 %v4890_v59, %v4866_v53  ;;  %v5524_v5 = vpack.c.bf16 %v5520_v46, %v5516_v9  ;;  %v4643_v18 = vmul.f32 0.5, %v15361_v23 }
0x13c3   : > { %v4731_v15 = vmul.f32 %v4730_v0, %v4706_v51  ;;  %v4639_v36 = vmul.f32 0.5, %v15362_v2  ;;  %v6098_v48 = vperm.slane %v14006_v62, 2  ;;  %v6099_v3 = vperm.slane %v14006_v62, 3 }
0x13c4   : > { %9013 = vmatmul.msk.bf16.vlgmr.msrb.gmra.mxu0 %vm318_vm0, %v15358_v54  ;;  %5805 = vmatmul.bf16.vlgmr.msrb.gmra.mxu3 %v5524_v5  ;;  %v8676_v30 = vclamps-f32 %v4891_v1, 1.0 }
0x13c5   : > { %6039 = vmatmul.bf16.vlgmr.msra.gmra.mxu2 %v4990_v29  ;;  %6164 = vmatpush.bf16.msrb.mxu3 %v9002_v58  ;;  %v8672_v39 = vclamps-f32 %v4731_v15, 1.0 }
0x13c6   : > { %v4979_v34 = vadd.f32 1.0, %v8676_v30 }
0x13c7   : > { %v4975_v43 = vadd.f32 1.0, %v8672_v39 }
0x13c8   : > { %v4987_v35 = vmul.f32 %v4979_v34, %v4643_v18 }
0x13c9   : > { %6165 = vmatpush.bf16.msrb.mxu3 %v8986_v42  ;;  %v4983_v27 = vmul.f32 %v4975_v43, %v4639_v36 }
0x13cb   : > { %v4991_v33 = vpack.c.bf16 %v4987_v35, %v4983_v27 }
0x13d1   : > { %9014 = vmatmul.msk.bf16.vlgmr.msrb.gmra.mxu1 %vm318_vm0, %v15358_v54 }
0x13d4   : > { %6053 = vmatmul.bf16.vlgmr.msra.gmra.mxu3 %v4991_v33 }
0x13d5   : > { %9011 = vmatmul.msk.bf16.vlgmr.msrb.gmra.mxu2 %vm318_vm0, %v15358_v54 }
0x13e4   : > { %9012 = vmatmul.msk.bf16.vlgmr.msrb.gmra.mxu3 %vm318_vm0, %v15358_v54 }
0x141d   : > { %v5820_v17 = vpop.f32.mrf.mxu0 }
0x1425   : > { %v5822_v37 = vpop.f32.mrf.mxu0 }
0x142e   : > { %v5834_v57 = vpop.f32.mrf.mxu1 }
0x1431   : > { %v14001_v22 = vpop.f32.mrf.mxu0 }
0x1436   : > { %v5836_v50 = vpop.f32.mrf.mxu1 }
0x1437   : > { %v5792_v12 = vpop.f32.mrf.mxu2 }
0x1439   : > { %v14003_v6 = vpop.f32.mrf.mxu0 }
0x143e   : > { %v14009_v21 = vpop.f32.mrf.mxu1 }
0x143f   : > { %v5794_v8 = vpop.f32.mrf.mxu2 }
0x1441   : > { %v6181_v60 = vpop.f32.mrf.mxu0 }
0x1442   : > { %v14011_v24 = vadd.f32 %v6181_v60, %v6098_v48 }
0x1444   : > { %v14014_v32 = vmul.f32 0.70710677, %v14011_v24 }
0x1446   : > { %v6296_v44 = vmul.f32 %v14014_v32, %v14014_v32  ;;  %v14020_v11 = vpop.f32.mrf.mxu1 }
0x1447   : > { %v5806_v31 = vpop.f32.mrf.mxu3 }
0x1448   : > { %v14018_v45 = vmin.f32 %v6296_v44, 16.0  ;;  %v5807_v25 = vadd.f32 %v5806_v31, %v5792_v12  ;;  %v6040_v40 = vpop.f32.mrf.mxu2 }
0x1449   : > { %v6183_v47 = vpop.f32.mrf.mxu0 }
0x144a   : > { %v6298_v13 = vmul.f32 2.1237322e-06, %v14018_v45  ;;  %v6309_v49 = vmul.f32 3.8918573e-05, %v14018_v45  ;;  %v14024_v26 = vadd.f32 %v6183_v47, %v6098_v48  ;;  %v5821_v16 = vadd.f32 %v5820_v17, %v5807_v25 }
0x144c   : > { %v6310_v63 = vadd.f32 0.001143296, %v6309_v49  ;;  %v6299_v7 = vadd.f32 0.00028619796, %v6298_v13  ;;  %v14027_v56 = vmul.f32 0.70710677, %v14024_v26  ;;  %v5835_v52 = vadd.f32 %v5834_v57, %v5821_v16 }
0x144e   : > { %v6311_v20 = vmul.f32 %v6310_v63, %v14018_v45  ;;  %v6456_v38 = vmul.f32 %v14027_v56, %v14027_v56  ;;  %v6041_v59 = vadd.f32 %v6040_v40, %v5835_v52  ;;  %v6300_v61 = vmul.f32 %v6299_v7, %v14018_v45  ;;  %v6195_v19 = vpop.f32.mrf.mxu1 }
0x144f   : > { %v5808_v53 = vpop.f32.mrf.mxu3  ;;  %v14037_v46 = vadd.f32 %v6195_v19, %v6099_v3  ;;  %v6096_v63 = vperm.slane %v14006_v62, 0 }
0x1450   : > { %v6312_v14 = vadd.f32 0.014752088, %v6311_v20  ;;  %v14034_v41 = vmin.f32 %v6456_v38, 16.0  ;;  %v5809_v0 = vadd.f32 %v5808_v53, %v5794_v8  ;;  %v6301_v29 = vadd.f32 0.0036580483, %v6300_v61  ;;  %v6042_v10 = vpop.f32.mrf.mxu2 }
0x1451   : > { %v14042_v1 = vmul.f32 0.70710677, %v14037_v46 }
0x1452   : > { %v6313_v9 = vmul.f32 %v6312_v14, %v14018_v45  ;;  %v6458_v58 = vmul.f32 2.1237322e-06, %v14034_v41  ;;  %v6469_v28 = vmul.f32 3.8918573e-05, %v14034_v41  ;;  %v5823_v51 = vadd.f32 %v5822_v37, %v5809_v0 }
0x1453   : > { %v6336_v42 = vmul.f32 %v14042_v1, %v14042_v1  ;;  %v6302_v43 = vmul.f32 %v6301_v29, %v14018_v45 }
0x1454   : > { %v6314_v4 = vadd.f32 0.112945676, %v6313_v9  ;;  %v6470_v5 = vadd.f32 0.001143296, %v6469_v28  ;;  %v6459_v15 = vadd.f32 0.00028619796, %v6458_v58  ;;  %v5837_v30 = vadd.f32 %v5836_v50, %v5823_v51 }
0x1455   : > { %v14049_v23 = vmin.f32 %v6336_v42, 16.0  ;;  %v6303_v8 = vadd.f32 0.05243302, %v6302_v43 }
0x1456   : > { %v6315_v55 = vmul.f32 %v6314_v4, %v14018_v45  ;;  %v6471_v39 = vmul.f32 %v6470_v5, %v14034_v41  ;;  %v6043_v18 = vadd.f32 %v6042_v10, %v5837_v30  ;;  %v6197_v36 = vpop.f32.mrf.mxu1  ;;  %v6460_v33 = vmul.f32 %v6459_v15, %v14034_v41 }
0x1457   : > { %v6054_v35 = vpop.f32.mrf.mxu3  ;;  %v6338_v37 = vmul.f32 2.1237322e-06, %v14049_v23  ;;  %v6349_v57 = vmul.f32 3.8918573e-05, %v14049_v23  ;;  %v14058_v48 = vadd.f32 %v6197_v36, %v6099_v3  ;;  %v6304_v16 = vmul.f32 %v6303_v8, %v14018_v45 }
0x1458   : > { %v6316_v34 = vadd.f32 0.4994258, %v6315_v55  ;;  %v6472_v2 = vadd.f32 0.014752088, %v6471_v39  ;;  %v6055_v17 = vadd.f32 %v6054_v35, %v6041_v59  ;;  %v6461_v31 = vadd.f32 0.0036580483, %v6460_v33  ;;  %v6153_v20 = vpop.f32.mrf.mxu2 }
0x1459   : > { %v6339_v44 = vadd.f32 0.00028619796, %v6338_v37  ;;  %v6350_v47 = vadd.f32 0.001143296, %v6349_v57  ;;  %v14067_v40 = vmul.f32 0.70710677, %v14058_v48  ;;  %v14083_v9 = vadd.f32 %v6153_v20, %v6096_v63 }
0x145a   : > { %v6317_v27 = vmul.f32 %v6316_v34, %v14018_v45  ;;  %v6473_v12 = vmul.f32 %v6472_v2, %v14034_v41  ;;  %v6069_v60 = vadd.f32 %v14001_v22, %v6055_v17  ;;  %v6462_v52 = vmul.f32 %v6461_v31, %v14034_v41 }
0x145b   : > { %v6351_v49 = vmul.f32 %v6350_v47, %v14049_v23  ;;  %v6340_v22 = vmul.f32 %v6339_v44, %v14049_v23  ;;  %v6496_v38 = vmul.f32 %v14067_v40, %v14067_v40  ;;  %v6305_v0 = vadd.f32 0.18741608, %v6304_v16 }
0x145c   : > { %v14055_v50 = vadd.f32 1.0, %v6317_v27  ;;  %v14063_v13 = vadd.f32 %v14009_v21, %v6069_v60  ;;  %v6474_v25 = vadd.f32 0.112945676, %v6473_v12  ;;  %v6463_v29 = vadd.f32 0.05243302, %v6462_v52 }
0x145d   : > { %v6352_v7 = vadd.f32 0.014752088, %v6351_v49  ;;  %v14079_v53 = vmin.f32 %v6496_v38, 16.0  ;;  %v6341_v28 = vadd.f32 0.0036580483, %v6340_v22  ;;  %v6306_v36 = vmul.f32 %v6305_v0, %v14018_v45 }
0x145e   : > { %9992 = vrcp.f32 %v14055_v50  ;;  %v6475_v21 = vmul.f32 %v6474_v25, %v14034_v41  ;;  %v14098_v34 = vmul.f32 0.70710677, %v14083_v9  ;;  %v6464_v35 = vmul.f32 %v6463_v29, %v14034_v41 }
0x145f   : > { %v6056_v3 = vpop.f32.mrf.mxu3  ;;  %v6353_v14 = vmul.f32 %v6352_v7, %v14049_v23  ;;  %v6498_v55 = vmul.f32 2.1237322e-06, %v14079_v53  ;;  %v6509_v15 = vmul.f32 3.8918573e-05, %v14079_v53  ;;  %v6097_v37 = vperm.slane %v14006_v62, 1 }
0x1460   : > { %v6057_v59 = vadd.f32 %v6056_v3, %v6043_v18  ;;  %v6476_v19 = vadd.f32 0.4994258, %v6475_v21  ;;  %v6216_v17 = vmul.f32 %v14098_v34, %v14098_v34  ;;  %v6307_v44 = vadd.f32 1.1283791, %v6306_v36  ;;  %v9604_v36 = vld [vmem:[%s15311_s14 + $0x2f8] sm:$0xff] }
0x1461   : > { %v6354_v4 = vadd.f32 0.112945676, %v6353_v14  ;;  %v6499_v39 = vadd.f32 0.00028619796, %v6498_v55  ;;  %v6510_v2 = vadd.f32 0.001143296, %v6509_v15  ;;  %vm6324_vm9 = vweird.f32 %v14055_v50  ;;  %6854 = vmatpush.bf16.msra.mxu1 %v9604_v36 }
0x1462   : > { %v6071_v51 = vadd.f32 %v14003_v6, %v6057_v59  ;;  %v6477_v5 = vmul.f32 %v6476_v19, %v14034_v41  ;;  %v6342_v6 = vmul.f32 %v6341_v28, %v14049_v23  ;;  %v6465_v47 = vadd.f32 0.18741608, %v6464_v35 }
0x1463   : > { %v6355_v10 = vmul.f32 %v6354_v4, %v14049_v23  ;;  %v6500_v27 = vmul.f32 %v6499_v39, %v14079_v53  ;;  %v6511_v33 = vmul.f32 %v6510_v2, %v14079_v53  ;;  %v14114_v49 = vmul.f32 0.5, %v14011_v24  ;;  %v9596_v2 = vld [vmem:[%s15311_s14 + $0x2b8] sm:$0xff] }
0x1464   : > { %v14077_v61 = vpop.eup %9992  ;;  %v14093_v42 = vadd.f32 %v14020_v11, %v6071_v51  ;;  %v14095_v30 = vadd.f32 1.0, %v6477_v5  ;;  %v6343_v12 = vadd.f32 0.05243302, %v6342_v6  ;;  %v6328_v25 = vand.u32 2147483647, %v14055_v50  ;;  %6840 = vmatpush.bf16.msra.mxu0 %v9596_v2 }
0x1465   : > { %v6320_v58 = vmul.f32 %v14077_v61, %v14055_v50  ;;  %v6356_v18 = vadd.f32 0.4994258, %v6355_v10  ;;  %v6501_v45 = vadd.f32 0.0036580483, %v6500_v27  ;;  %v6512_v31 = vadd.f32 0.014752088, %v6511_v33 }
0x1466   : > { %9994 = vrcp.f32 %v14095_v30  ;;  %v14118_v16 = vmin.f32 %v6216_v17, 16.0  ;;  %v6330_v7 = vand.u32 2147483648, %v14055_v50  ;;  %vm6325_vm7 = vweird.f32 %v14077_v61 }
0x1467   : > { %v6321_v43 = vsub.f32 1.0, %v6320_v58  ;;  %v6357_v11 = vmul.f32 %v6356_v18, %v14049_v23  ;;  %v6167_v8 = vpop.f32.mrf.mxu3  ;;  %v6502_v20 = vmul.f32 %v6501_v45, %v14079_v53  ;;  %v6513_v3 = vmul.f32 %v6512_v31, %v14079_v53  ;;  %vm14142_vm8 = vmor %vm6324_vm9, %vm6325_vm7 }
0x1468   : > { %v14127_v52 = vadd.f32 %v6167_v8, %v6097_v37  ;;  %v6344_v21 = vmul.f32 %v6343_v12, %v14049_v23  ;;  %v6308_v14 = vmul.f32 %v6307_v44, %v14014_v32  ;;  %v14136_v59 = vmul.f32 0.5, %v14024_v26 }
0x1469   : > { %v6322_v57 = vmul.f32 %v14077_v61, %v6321_v43  ;;  %v14111_v60 = vadd.f32 1.0, %v6357_v11  ;;  %v6466_v19 = vmul.f32 %v6465_v47, %v14034_v41  ;;  %v6514_v0 = vadd.f32 0.112945676, %v6513_v3  ;;  %v9603_v3 = vld [vmem:[%s15311_s14 + $0x2f0] sm:$0xff] }
0x146a   : > { %v6218_v28 = vmul.f32 2.1237322e-06, %v14118_v16  ;;  %v6229_v4 = vmul.f32 3.8918573e-05, %v14118_v16  ;;  %vm14146_vm10 = vcmp.eq.f32.partialorder %v6328_v25, 8.507059e+37  ;;  %v6331_v55 = vor.u32 1.1754944e-38, %v6330_v7  ;;  %v6155_v7 = vpop.f32.mrf.mxu2  ;;  %6855 = vmatpush.bf16.msra.mxu1 %v9603_v3 }
0x146b   : > { %9996 = vrcp.f32 %v14111_v60  ;;  %v6323_v24 = vadd.f32 %v14077_v61, %v6322_v57  ;;  %v6503_v26 = vadd.f32 0.05243302, %v6502_v20  ;;  %v6515_v41 = vmul.f32 %v6514_v0, %v14079_v53  ;;  %v9595_v20 = vld [vmem:[%s15311_s14 + $0x2b0] sm:$0xff] }
0x146c   : > { %v14120_v22 = vpop.eup %9994  ;;  %v14152_v50 = vmul.f32 0.70710677, %v14127_v52  ;;  %v6345_v10 = vadd.f32 0.18741608, %v6344_v21  ;;  %v6230_v15 = vadd.f32 0.001143296, %v6229_v4  ;;  %vm6484_vm11 = vweird.f32 %v14095_v30  ;;  %6841 = vmatpush.bf16.msra.mxu0 %v9595_v20 }
0x146d   : > { %v6480_v38 = vmul.f32 %v14120_v22, %v14095_v30  ;;  %v6327_v5 = vsel %vm14142_vm8, %v14077_v61, %v6323_v24  ;;  %v6467_v43 = vadd.f32 1.1283791, %v6466_v19  ;;  %v6516_v18 = vadd.f32 0.4994258, %v6515_v41 }
0x146e   : > { %v6219_v35 = vadd.f32 0.00028619796, %v6218_v28  ;;  %v6231_v11 = vmul.f32 %v6230_v15, %v14118_v16  ;;  %v6256_v61 = vmul.f32 %v14152_v50, %v14152_v50  ;;  %v6332_v27 = vsel %vm14146_vm10, %v6331_v55, %v6327_v5  ;;  %v9602_v15 = vld [vmem:[%s15311_s14 + $0x2e8] sm:$0xff]  ;;  %v9592_v28 = vld [vmem:[%s15311_s14 + $0x298] sm:$0xff] }
0x146f   : > { %v6481_v58 = vsub.f32 1.0, %v6480_v38  ;;  %v6504_v17 = vmul.f32 %v6503_v26, %v14079_v53  ;;  %v6517_v57 = vmul.f32 %v6516_v18, %v14079_v53  ;;  %v6346_v12 = vmul.f32 %v6345_v10, %v14049_v23  ;;  %6856 = vmatpush.bf16.msra.mxu1 %v9602_v15  ;;  %v9600_v5 = vld [vmem:[%s15311_s14 + $0x2d8] sm:$0xff] }
0x1470   : > { %vm6485_vm12 = vweird.f32 %v14120_v22  ;;  %v6488_v45 = vand.u32 2147483647, %v14095_v30  ;;  %v6232_v8 = vadd.f32 0.014752088, %v6231_v11  ;;  %v14179_v25 = vmin.f32 %v6256_v61, 16.0  ;;  %v9580_v11 = vld [vmem:[%s15311_s14 + $0x238] sm:$0xff] }
0x1471   : > { %v14154_v29 = vpop.eup %9996  ;;  %v6482_v6 = vmul.f32 %v14120_v22, %v6481_v58  ;;  %v14177_v31 = vadd.f32 1.0, %v6517_v57  ;;  %v14183_v24 = vmul.f32 %v6332_v27, %v6308_v14  ;;  %v6490_v23 = vand.u32 2147483648, %v14095_v30  ;;  %vm14197_vm15 = vmor %vm6484_vm11, %vm6485_vm12  ;;  %v6169_v57 = vpop.f32.mrf.mxu3  ;;  %6812 = vmatpush.bf16.msra.mxu2 %v9580_v11 }
0x1472   : > { %v6360_v39 = vmul.f32 %v14154_v29, %v14111_v60  ;;  %v6220_v21 = vmul.f32 %v6219_v35, %v14118_v16  ;;  %v6233_v38 = vmul.f32 %v6232_v8, %v14118_v16  ;;  %vm6365_vm14 = vweird.f32 %v14154_v29  ;;  %v9601_v8 = vld [vmem:[%s15311_s14 + $0x2e0] sm:$0xff] }
0x1473   : > { %v6483_v47 = vadd.f32 %v14120_v22, %v6482_v6  ;;  %v6505_v0 = vadd.f32 0.18741608, %v6504_v17  ;;  %9998 = vrcp.f32 %v14177_v31  ;;  %v6347_v58 = vadd.f32 1.1283791, %v6346_v12  ;;  %v9588_v12 = vld [vmem:[%s15311_s14 + $0x278] sm:$0xff]  ;;  %6857 = vmatpush.bf16.msra.mxu1 %v9601_v8 }
0x1474   : > { %v6361_v33 = vsub.f32 1.0, %v6360_v39  ;;  %vm6364_vm13 = vweird.f32 %v14111_v60  ;;  %v6370_v14 = vand.u32 2147483648, %v14111_v60  ;;  %v14203_v4 = vadd.f32 %v6155_v7, %v6096_v63  ;;  %v9594_v63 = vld [vmem:[%s15311_s14 + $0x2a8] sm:$0xff]  ;;  %6826 = vmatpush.bf16.msra.mxu3 %v9588_v12 }
0x1475   : > { %v6368_v51 = vand.u32 2147483647, %v14111_v60  ;;  %v6487_v32 = vsel %vm14197_vm15, %v14120_v22, %v6483_v47  ;;  %v6234_v26 = vadd.f32 0.112945676, %v6233_v38  ;;  %v6269_v41 = vmul.f32 3.8918573e-05, %v14179_v25  ;;  %vm14210_vm2 = vmor %vm6364_vm13, %vm6365_vm14  ;;  %6842 = vmatpush.bf16.msra.mxu0 %v9594_v63 }
0x1476   : > { %v6362_v44 = vmul.f32 %v14154_v29, %v6361_v33  ;;  %v6468_v30 = vmul.f32 %v6467_v43, %v14027_v56  ;;  %vm6489_vm3 = vcmp.eq.f32.partialorder %v6488_v45, 8.507059e+37  ;;  %v6491_v55 = vor.u32 1.1754944e-38, %v6490_v23  ;;  %v9593_v45 = vld [vmem:[%s15311_s14 + $0x2a0] sm:$0xff] }
0x1477   : > { %v6221_v10 = vadd.f32 0.0036580483, %v6220_v21  ;;  %v9017_v60 = vclamps-f32 %v14183_v24, 1.0  ;;  %v6506_v39 = vmul.f32 %v6505_v0, %v14079_v53  ;;  %v6235_v6 = vmul.f32 %v6234_v26, %v14118_v16  ;;  %6858 = vmatpush.bf16.msra.mxu1 %v9600_v5 }
0x1478   : > { %v6363_v19 = vadd.f32 %v14154_v29, %v6362_v44  ;;  %v6371_v18 = vor.u32 1.1754944e-38, %v6370_v14  ;;  %v6492_v2 = vsel %vm6489_vm3, %v6491_v55, %v6487_v32  ;;  %v6270_v56 = vadd.f32 0.001143296, %v6269_v41  ;;  %v9587_v14 = vld [vmem:[%s15311_s14 + $0x270] sm:$0xff] }
0x1479   : > { %v14224_v43 = vmul.f32 0.70710677, %v14203_v4  ;;  %v14226_v36 = vpop.eup %9998  ;;  %v6348_v35 = vmul.f32 %v6347_v58, %v14042_v1  ;;  %vm6369_vm4 = vcmp.eq.f32.partialorder %v6368_v51, 8.507059e+37  ;;  %v6258_v53 = vmul.f32 2.1237322e-06, %v14179_v25  ;;  %6843 = vmatpush.bf16.msra.mxu0 %v9593_v45  ;;  %v9579_v58 = vld [vmem:[%s15311_s14 + $0x230] sm:$0xff]  ;;  %6827 = vmatpush.bf16.msra.mxu3 %v9587_v14 }
0x147a   : > { %v6367_v22 = vsel %vm14210_vm2, %v14154_v29, %v6363_v19  ;;  %v6236_v29 = vadd.f32 0.4994258, %v6235_v6  ;;  %v6520_v27 = vmul.f32 %v14226_v36, %v14177_v31  ;;  %v6222_v33 = vmul.f32 %v6221_v10, %v14118_v16  ;;  %6813 = vmatpush.bf16.msra.mxu2 %v9579_v58  ;;  %v9598_v58 = vld [vmem:[%s15311_s14 + $0x2c8] sm:$0xff] }
0x147b   : > { %v6372_v61 = vsel %vm6369_vm4, %v6371_v18, %v6367_v22  ;;  %v6271_v17 = vmul.f32 %v6270_v56, %v14179_v25  ;;  %v6493_v44 = vmul.f32 %v6492_v2, %v6468_v30  ;;  %v6507_v1 = vadd.f32 1.1283791, %v6506_v39 }
0x147c   : > { %v6528_v47 = vand.u32 2147483647, %v14177_v31  ;;  %v6237_v7 = vmul.f32 %v6236_v29, %v14118_v16  ;;  %v6521_v20 = vsub.f32 1.0, %v6520_v27  ;;  %v6530_v3 = vand.u32 2147483648, %v14177_v31  ;;  %v9586_v29 = vld [vmem:[%s15311_s14 + $0x268] sm:$0xff] }
0x147d   : > { %v6272_v23 = vadd.f32 0.014752088, %v6271_v17  ;;  %v6376_v21 = vmul.f32 %v14224_v43, %v14224_v43  ;;  %v6373_v38 = vmul.f32 %v6372_v61, %v6348_v35  ;;  %vm6525_vm5 = vweird.f32 %v14226_v36  ;;  %6844 = vmatpush.bf16.msra.mxu0 %v9592_v28  ;;  %v9578_v35 = vld [vmem:[%s15311_s14 + $0x228] sm:$0xff]  ;;  %v9591_v17 = vld [vmem:[%s15311_s14 + $0x290] sm:$0xff]  ;;  %6828 = vmatpush.bf16.msra.mxu3 %v9586_v29 }
0x147e   : > { %v6259_v19 = vadd.f32 0.00028619796, %v6258_v53  ;;  %v14246_v0 = vadd.f32 %v6169_v57, %v6097_v37  ;;  %v6522_v51 = vmul.f32 %v14226_v36, %v6521_v20  ;;  %v14252_v32 = vadd.f32 1.0, %v6237_v7  ;;  %6814 = vmatpush.bf16.msra.mxu2 %v9578_v35  ;;  %v9577_v7 = vld [vmem:[%s15311_s14 + $0x220] sm:$0xff] }
0x147f   : > { %v6273_v26 = vmul.f32 %v6272_v23, %v14179_v25  ;;  %v14255_v41 = vmin.f32 %v6376_v21, 16.0  ;;  %v9021_v30 = vclamps-f32 %v6493_v44, 1.0  ;;  %v6508_v55 = vmul.f32 %v6507_v1, %v14067_v40  ;;  %v9585_v20 = vld [vmem:[%s15311_s14 + $0x260] sm:$0xff] }
0x1480   : > { %vm6524_vm6 = vweird.f32 %v14177_v31  ;;  %vm14260_vm7 = vcmp.eq.f32.partialorder %v6528_v47, 8.507059e+37  ;;  %v6523_v10 = vadd.f32 %v14226_v36, %v6522_v51  ;;  %v6531_v63 = vor.u32 1.1754944e-38, %v6530_v3  ;;  %v9590_v3 = vld [vmem:[%s15311_s14 + $0x288] sm:$0xff] }
0x1481   : > { %v6274_v15 = vadd.f32 0.112945676, %v6273_v26  ;;  %v6378_v22 = vmul.f32 2.1237322e-06, %v14255_v41  ;;  %v9018_v39 = vclamps-f32 %v6373_v38, 1.0  ;;  %vm6526_vm9 = vmor %vm6524_vm6, %vm6525_vm5  ;;  %v6260_v40 = vmul.f32 %v6259_v19, %v14179_v25  ;;  %6845 = vmatpush.bf16.msra.mxu0 %v9591_v17  ;;  %6829 = vmatpush.bf16.msra.mxu3 %v9585_v20  ;;  %v9583_v17 = vld [vmem:[%s15311_s14 + $0x250] sm:$0xff] }
0x1482   : > { %v6389_v31 = vmul.f32 3.8918573e-05, %v14255_v41  ;;  %v14271_v6 = vmul.f32 0.70710677, %v14246_v0  ;;  %v6527_v18 = vsel %vm6526_vm9, %v14226_v36, %v6523_v10  ;;  %10000 = vrcp.f32 %v14252_v32  ;;  %v9599_v36 = vld [vmem:[%s15311_s14 + $0x2d0] sm:$0xff]  ;;  %6815 = vmatpush.bf16.msra.mxu2 %v9577_v7 }
0x1483   : > { %v6275_v2 = vmul.f32 %v6274_v15, %v14179_v25  ;;  %v6379_v56 = vadd.f32 0.00028619796, %v6378_v22  ;;  %v6532_v53 = vsel %vm14260_vm7, %v6531_v63, %v6527_v18  ;;  %v6223_v11 = vadd.f32 0.05243302, %v6222_v33  ;;  %6859 = vmatpush.bf16.msra.mxu1 %v9599_v36  ;;  %v9576_v63 = vld [vmem:[%s15311_s14 + $0x218] sm:$0xff]  ;;  %v9589_v22 = vld [vmem:[%s15311_s14 + $0x280] sm:$0xff] }
0x1484   : > { %v6390_v61 = vadd.f32 0.001143296, %v6389_v31  ;;  %v6416_v27 = vmul.f32 %v14271_v6, %v14271_v6  ;;  %v6542_v57 = vadd.f32 1.0, %v9021_v30  ;;  %v6533_v12 = vmul.f32 %v6532_v53, %v6508_v55  ;;  %v9584_v15 = vld [vmem:[%s15311_s14 + $0x258] sm:$0xff]  ;;  %v9597_v18 = vld [vmem:[%s15311_s14 + $0x2c0] sm:$0xff] }
0x1485   : > { %v6276_v45 = vadd.f32 0.4994258, %v6275_v2  ;;  %v6380_v8 = vmul.f32 %v6379_v56, %v14255_v41  ;;  %v6538_v33 = vadd.f32 1.0, %v9017_v60  ;;  %v6203_v44 = vmul.f32 0.5, %v14037_v46  ;;  %6846 = vmatpush.bf16.msra.mxu0 %v9590_v3  ;;  %6830 = vmatpush.bf16.msra.mxu3 %v9584_v15  ;;  %v9574_v3 = vld [vmem:[%s15311_s14 + $0x208] sm:$0xff] }
0x1486   : > { %v6391_v1 = vmul.f32 %v6390_v61, %v14255_v41  ;;  %v14289_v47 = vmin.f32 %v6416_v27, 16.0  ;;  %v6539_v23 = vadd.f32 1.0, %v9018_v39  ;;  %v6207_v21 = vmul.f32 0.5, %v14058_v48  ;;  %6816 = vmatpush.bf16.msra.mxu2 %v9576_v63  ;;  %v9575_v27 = vld [vmem:[%s15311_s14 + $0x210] sm:$0xff]  ;;  %v9610_v15 = vld [vmem:[%s15268_s3 + $0xbc] sm:$0xf] }
0x1487   : > { %v9022_v38 = vclamps-f32 %v6533_v12, 1.0  ;;  %v6261_v19 = vadd.f32 0.0036580483, %v6260_v40  ;;  %v6224_v24 = vmul.f32 %v6223_v11, %v14118_v16  ;;  %v6277_v60 = vmul.f32 %v6276_v45, %v14179_v25  ;;  %6860 = vmatpush.bf16.msra.mxu1 %v9598_v58 }
0x1488   : > { %v6392_v46 = vadd.f32 0.014752088, %v6391_v1  ;;  %v6418_v14 = vmul.f32 2.1237322e-06, %v14289_v47  ;;  %v14299_v28 = vpop.eup %10000  ;;  %v6550_v51 = vmul.f32 %v6542_v57, %v14136_v59  ;;  %v6381_v5 = vadd.f32 0.0036580483, %v6380_v8 }
0x1489   : > { %v6543_v26 = vadd.f32 1.0, %v9022_v38  ;;  %v6429_v48 = vmul.f32 3.8918573e-05, %v14289_v47  ;;  %v6546_v30 = vmul.f32 %v6538_v33, %v14114_v49  ;;  %v14304_v55 = vadd.f32 1.0, %v6277_v60  ;;  %6847 = vmatpush.bf16.msra.mxu0 %v9589_v22  ;;  %6831 = vmatpush.bf16.msra.mxu3 %v9583_v17  ;;  %v9179_v22 = vld [vmem:[%s15268_s3 + $0xf8] sm:$0xf0] }
0x148a   : > { %v6393_v37 = vmul.f32 %v6392_v46, %v14255_v41  ;;  %v6419_v10 = vadd.f32 0.00028619796, %v6418_v14  ;;  %v6547_v59 = vmul.f32 %v6539_v23, %v6203_v44  ;;  %v6262_v40 = vmul.f32 %v6261_v19, %v14179_v25  ;;  %6817 = vmatpush.bf16.msra.mxu2 %v9575_v27  ;;  %v9582_v23 = vld [vmem:[%s15311_s14 + $0x248] sm:$0xff]  ;;  %v9177_v14 = vld [vmem:[%s15268_s3 + $0xb8] sm:$0xf] }
0x148b   : > { %v6551_v39 = vmul.f32 %v6543_v26, %v6207_v21  ;;  %v6430_v31 = vadd.f32 0.001143296, %v6429_v48  ;;  %v6225_v2 = vadd.f32 0.18741608, %v6224_v24  ;;  %v6240_v49 = vmul.f32 %v14299_v28, %v14252_v32  ;;  %6861 = vmatpush.bf16.msra.mxu1 %v9597_v18  ;;  %v9573_v48 = vld [vmem:[%s15311_s14 + $0x200] sm:$0xff] }
0x148c   : > { %10002 = vrcp.f32 %v14304_v55  ;;  %v6554_v56 = vpack.c.bf16 %v6550_v51, %v6546_v30  ;;  %v6382_v29 = vmul.f32 %v6381_v5, %v14255_v41  ;;  %v6394_v53 = vadd.f32 0.112945676, %v6393_v37  ;;  %v9581_v30 = vld [vmem:[%s15311_s14 + $0x240] sm:$0xff]  ;;  %v9612_v37 = vld [vmem:[%s15268_s3 + $0xf4] sm:$0xf0] }
0x148d   : > { %v6555_v35 = vpack.c.bf16 %v6551_v39, %v6547_v59  ;;  %v6420_v11 = vmul.f32 %v6419_v10, %v14289_v47  ;;  %v6431_v61 = vmul.f32 %v6430_v31, %v14289_v47  ;;  %v6263_v36 = vadd.f32 0.05243302, %v6262_v40  ;;  %6832 = vmatpush.bf16.msra.mxu3 %v9582_v23  ;;  %v9609_v27 = vld [vmem:[%s15268_s3 + $0xb4] sm:$0xf] }
0x148e   : > { %v6395_v57 = vmul.f32 %v6394_v53, %v14255_v41  ;;  %v6241_v12 = vsub.f32 1.0, %v6240_v49  ;;  %v6226_v8 = vmul.f32 %v6225_v2, %v14118_v16  ;;  %v6383_v33 = vadd.f32 0.05243302, %v6382_v29  ;;  %6848 = vmatmul.bf16.vlgmr.msra.gmra.mxu0 %v6554_v56  ;;  %6818 = vmatpush.bf16.msra.mxu2 %v9574_v3  ;;  %v9161_v49 = vld [vmem:[%s15268_s3 + $0x38] sm:$0xf] }
0x148f   : > { %v6432_v45 = vadd.f32 0.014752088, %v6431_v61  ;;  %6862 = vmatmul.bf16.vlgmr.msra.gmra.mxu1 %v6555_v35  ;;  %v6421_v7 = vadd.f32 0.0036580483, %v6420_v11  ;;  %v6264_v21 = vmul.f32 %v6263_v36, %v14179_v25  ;;  %v6248_v60 = vand.u32 2147483647, %v14252_v32 }
0x1490   : > { %v6396_v44 = vadd.f32 0.4994258, %v6395_v57  ;;  %v6242_v16 = vmul.f32 %v14299_v28, %v6241_v12  ;;  %v6227_v24 = vadd.f32 1.1283791, %v6226_v8  ;;  %v6384_v46 = vmul.f32 %v6383_v33, %v14255_v41  ;;  %v9608_v29 = vld [vmem:[%s15268_s3 + $0x74] sm:$0xf0] }
0x1491   : > { %v6433_v20 = vmul.f32 %v6432_v45, %v14289_v47  ;;  %v6422_v26 = vmul.f32 %v6421_v7, %v14289_v47  ;;  %vm6245_vm8 = vweird.f32 %v14299_v28  ;;  %v6250_v10 = vand.u32 2147483648, %v14252_v32  ;;  %6833 = vmatpush.bf16.msra.mxu3 %v9581_v30  ;;  %v9169_v11 = vld [vmem:[%s15268_s3 + $0xb0] sm:$0xf]  ;;  %v9171_v45 = vld [vmem:[%s15268_s3 + $0xf0] sm:$0xf0] }
0x1492   : > { %v14322_v1 = vpop.eup %10002  ;;  %v6397_v19 = vmul.f32 %v6396_v44, %v14255_v41  ;;  %v9178_v63 = vor.u32 %v9612_v37, %v9177_v14  ;;  %v6243_v59 = vadd.f32 %v14299_v28, %v6242_v16  ;;  %v6265_v39 = vadd.f32 0.18741608, %v6264_v21  ;;  %6819 = vmatpush.bf16.msra.mxu2 %v9573_v48  ;;  %v9611_v61 = vld [vmem:[%s15268_s3 + $0xec] sm:$0xf0]  ;;  %v9163_v8 = vld [vmem:[%s15268_s3 + $0x78] sm:$0xf0] }
0x1493   : > { %v6280_v38 = vmul.f32 %v14322_v1, %v14304_v55  ;;  %v6434_v58 = vadd.f32 0.112945676, %v6433_v20  ;;  %vm6244_vm10 = vweird.f32 %v14252_v32  ;;  %v6385_v31 = vadd.f32 0.18741608, %v6384_v46  ;;  %v9606_v32 = vld [vmem:[%s15268_s3 + $0x3c] sm:$0xf] }
0x1494   : > { %v14335_v51 = vadd.f32 1.0, %v6397_v19  ;;  %6961 = vmatpush.bf16.msrb.mxu0 %v9178_v63  ;;  %v9182_v2 = vor.u32 %v9610_v15, %v9179_v22  ;;  %vm14352_vm11 = vmor %vm6244_vm10, %vm6245_vm8  ;;  %v6423_v35 = vadd.f32 0.05243302, %v6422_v26  ;;  %v9162_v17 = vor.u32 %v9608_v29, %v9161_v49  ;;  %v9153_v33 = vld [vmem:[%s15268_s3 + $0x30] sm:$0xf] }
0x1495   : > { %v6435_v5 = vmul.f32 %v6434_v58, %v14289_v47  ;;  %v6281_v40 = vsub.f32 1.0, %v6280_v38  ;;  %v6247_v36 = vsel %vm14352_vm11, %v14299_v28, %v6243_v59  ;;  %v9170_v12 = vor.u32 %v9611_v61, %v9169_v11  ;;  %v9607_v3 = vld [vmem:[%s15268_s3 + $0x6c] sm:$0xf0]  ;;  %v9605_v19 = vld [vmem:[%s15268_s3 + $0x34] sm:$0xf] }
0x1496   : > { %10004 = vrcp.f32 %v14335_v51  ;;  %6975 = vmatpush.bf16.msrb.mxu1 %v9182_v2  ;;  %vm6249_vm12 = vcmp.eq.f32.partialorder %v6248_v60, 8.507059e+37  ;;  %v6251_v44 = vor.u32 1.1754944e-38, %v6250_v10  ;;  %v9174_v20 = vor.u32 %v9609_v27, %v9171_v45  ;;  %v9155_v58 = vld [vmem:[%s15268_s3 + $0x70] sm:$0xf0] }
0x1497   : > { %v6436_v18 = vadd.f32 0.4994258, %v6435_v5  ;;  %v6282_v57 = vmul.f32 %v14322_v1, %v6281_v40  ;;  %v6386_v21 = vmul.f32 %v6385_v31, %v14255_v41  ;;  %v6424_v28 = vmul.f32 %v6423_v35, %v14289_v47  ;;  %6933 = vmatpush.bf16.msrb.mxu2 %v9170_v12 }
0x1498   : > { %6962 = vmatpush.bf16.msrb.mxu0 %v9162_v17  ;;  %v9166_v16 = vor.u32 %v9606_v32, %v9163_v8  ;;  %v9154_v38 = vor.u32 %v9607_v3, %v9153_v33  ;;  %v6228_v46 = vmul.f32 %v6227_v24, %v14098_v34  ;;  %v6252_v14 = vsel %vm6249_vm12, %v6251_v44, %v6247_v36 }
0x1499   : > { %v6437_v53 = vmul.f32 %v6436_v18, %v14289_v47  ;;  %v6266_v60 = vmul.f32 %v6265_v39, %v14179_v25  ;;  %6947 = vmatpush.bf16.msrb.mxu3 %v9174_v20  ;;  %v6283_v5 = vadd.f32 %v14322_v1, %v6282_v57  ;;  %vm6284_vm14 = vweird.f32 %v14304_v55 }
0x149a   : > { %vm6285_vm13 = vweird.f32 %v14322_v1  ;;  %6976 = vmatpush.bf16.msrb.mxu1 %v9166_v16  ;;  %v6288_v41 = vand.u32 2147483647, %v14304_v55  ;;  %v6290_v48 = vand.u32 2147483648, %v14304_v55  ;;  %v9158_v25 = vor.u32 %v9605_v19, %v9155_v58 }
0x149b   : > { %v14369_v7 = vadd.f32 1.0, %v6437_v53  ;;  %v6253_v24 = vmul.f32 %v6252_v14, %v6228_v46  ;;  %v6387_v30 = vadd.f32 1.1283791, %v6386_v21  ;;  %v6410_v37 = vand.u32 2147483648, %v14335_v51  ;;  %6934 = vmatpush.bf16.msrb.mxu2 %v9154_v38  ;;  %vm14388_vm15 = vmor %vm6284_vm14, %vm6285_vm13 }
0x149c   : > { %v10005_v23 = vpop.eup %10004  ;;  %v6425_v10 = vadd.f32 0.18741608, %v6424_v28  ;;  %v6408_v22 = vand.u32 2147483647, %v14335_v51  ;;  %v6267_v55 = vadd.f32 1.1283791, %v6266_v60  ;;  %v6287_v59 = vsel %vm14388_vm15, %v14322_v1, %v6283_v5 }
0x149d   : > { %v6400_v26 = vmul.f32 %v10005_v23, %v14335_v51  ;;  %10006 = vrcp.f32 %v14369_v7  ;;  %vm6405_vm2 = vweird.f32 %v10005_v23  ;;  %6948 = vmatpush.bf16.msrb.mxu3 %v9158_v25  ;;  %vm6289_vm3 = vcmp.eq.f32.partialorder %v6288_v41, 8.507059e+37 }
0x149e   : > { %9185 = vmatmul.msk.bf16.vlgmr.msrb.gmra.mxu0 %vm318_vm0, %v15358_v54  ;;  %v6291_v39 = vor.u32 1.1754944e-38, %v6290_v48  ;;  %vm6404_vm4 = vweird.f32 %v14335_v51  ;;  %v9015_v18 = vclamps-f32 %v6253_v24, 1.0  ;;  %v6388_v2 = vmul.f32 %v6387_v30, %v14224_v43 }
0x149f   : > { %v6401_v34 = vsub.f32 1.0, %v6400_v26  ;;  %9186 = vmatmul.msk.bf16.vlgmr.msrb.gmra.mxu1 %vm318_vm0, %v15358_v54  ;;  %vm6406_vm5 = vmor %vm6404_vm4, %vm6405_vm2  ;;  %v6411_v49 = vor.u32 1.1754944e-38, %v6410_v37  ;;  %v6426_v56 = vmul.f32 %v6425_v10, %v14289_v47  ;;  %vm6409_vm6 = vcmp.eq.f32.partialorder %v6408_v22, 8.507059e+37 }
0x14a0   : > { %v6292_v35 = vsel %vm6289_vm3, %v6291_v39, %v6287_v59  ;;  %v6268_v1 = vmul.f32 %v6267_v55, %v14152_v50  ;;  %v6536_v27 = vadd.f32 1.0, %v9015_v18  ;;  %v6450_v36 = vand.u32 2147483648, %v14369_v7 }
0x14a1   : > { %v6402_v15 = vmul.f32 %v10005_v23, %v6401_v34  ;;  %v6427_v17 = vadd.f32 1.1283791, %v6426_v56  ;;  %v6448_v47 = vand.u32 2147483647, %v14369_v7  ;;  %v6200_v12 = vmul.f32 0.5, %v14083_v9 }
0x14a2   : > { %v6293_v51 = vmul.f32 %v6292_v35, %v6268_v1  ;;  %v6204_v45 = vmul.f32 0.5, %v14203_v4  ;;  %vm6444_vm9 = vweird.f32 %v14369_v7  ;;  %v6451_v20 = vor.u32 1.1754944e-38, %v6450_v36 }
0x14a3   : > { %v6403_v40 = vadd.f32 %v10005_v23, %v6402_v15  ;;  %v10007_v31 = vpop.eup %10006  ;;  %v6544_v50 = vmul.f32 %v6536_v27, %v6200_v12  ;;  %vm6449_vm10 = vcmp.eq.f32.partialorder %v6448_v47, 8.507059e+37  ;;  %v6201_v4 = vmul.f32 0.5, %v14127_v52 }
0x14a4   : > { %v6440_v32 = vmul.f32 %v10007_v31, %v14369_v7  ;;  %vm6445_vm7 = vweird.f32 %v10007_v31  ;;  %v9016_v44 = vclamps-f32 %v6293_v51, 1.0  ;;  %v6205_v58 = vmul.f32 0.5, %v14246_v0 }
0x14a5   : > { %v6407_v29 = vsel %vm6406_vm5, %v10005_v23, %v6403_v40  ;;  %vm6446_vm8 = vmor %vm6444_vm9, %vm6445_vm7  ;;  %v6428_v23 = vmul.f32 %v6427_v17, %v14271_v6  ;;  %v14424_v0 = vrot.slane %v14006_v62, 4 }
0x14a6   : > { %v6412_v53 = vsel %vm6409_vm6, %v6411_v49, %v6407_v29  ;;  %v6441_v61 = vsub.f32 1.0, %v6440_v32  ;;  %v6537_v19 = vadd.f32 1.0, %v9016_v44 }
0x14a7   : > { %v6413_v11 = vmul.f32 %v6412_v53, %v6388_v2  ;;  %v6881_v41 = vperm.slane %v14424_v0, 2  ;;  %v6882_v48 = vperm.slane %v14424_v0, 3 }
0x14a8   : > { %v6442_v57 = vmul.f32 %v10007_v31, %v6441_v61  ;;  %v6545_v46 = vmul.f32 %v6537_v19, %v6201_v4 }
0x14a9   : > { %v9019_v43 = vclamps-f32 %v6413_v11, 1.0 }
0x14aa   : > { %v6443_v33 = vadd.f32 %v10007_v31, %v6442_v57 }
0x14ab   : > { %v6540_v8 = vadd.f32 1.0, %v9019_v43 }
0x14ac   : > { %v6447_v21 = vsel %vm6446_vm8, %v10007_v31, %v6443_v33 }
0x14ad   : > { %v6548_v3 = vmul.f32 %v6540_v8, %v6204_v45  ;;  %v6452_v28 = vsel %vm6449_vm10, %v6451_v20, %v6447_v21 }
0x14ae   : > { %v6453_v38 = vmul.f32 %v6452_v28, %v6428_v23 }
0x14af   : > { %v6552_v16 = vpack.c.bf16 %v6548_v3, %v6544_v50 }
0x14b0   : > { %v9020_v9 = vclamps-f32 %v6453_v38, 1.0 }
0x14b1   : > { %6820 = vmatmul.bf16.vlgmr.msra.gmra.mxu2 %v6552_v16 }
0x14b2   : > { %v6541_v7 = vadd.f32 1.0, %v9020_v9 }
0x14b4   : > { %v6549_v14 = vmul.f32 %v6541_v7, %v6205_v58 }
0x14b6   : > { %v6553_v60 = vpack.c.bf16 %v6549_v14, %v6545_v46 }
0x14b8   : > { %6834 = vmatmul.bf16.vlgmr.msra.gmra.mxu3 %v6553_v60 }
0x14c1   : > { %9183 = vmatmul.msk.bf16.vlgmr.msrb.gmra.mxu2 %vm318_vm0, %v15358_v54 }
0x14c8   : > { %9184 = vmatmul.msk.bf16.vlgmr.msrb.gmra.mxu3 %vm318_vm0, %v15358_v54 }
0x150b   : > { %v14415_v6 = vpop.f32.mrf.mxu0 }
0x150c   : > { %v14417_v26 = vpop.f32.mrf.mxu1 }
0x1513   : > { %v14419_v5 = vpop.f32.mrf.mxu0 }
0x1514   : > { %v14421_v52 = vpop.f32.mrf.mxu1 }
0x151b   : > { %v6964_v34 = vpop.f32.mrf.mxu0 }
0x151c   : > { %v14428_v25 = vadd.f32 %v6964_v34, %v6881_v41  ;;  %v6978_v24 = vpop.f32.mrf.mxu1 }
0x151d   : > { %v14433_v30 = vadd.f32 %v6978_v24, %v6882_v48 }
0x151e   : > { %v14431_v54 = vmul.f32 0.70710677, %v14428_v25 }
0x151f   : > { %v14438_v10 = vmul.f32 0.70710677, %v14433_v30 }
0x1520   : > { %v7079_v37 = vmul.f32 %v14431_v54, %v14431_v54 }
0x1521   : > { %v7119_v63 = vmul.f32 %v14438_v10, %v14438_v10 }
0x1522   : > { %v14440_v62 = vmin.f32 %v7079_v37, 16.0 }
0x1523   : > { %v6966_v15 = vpop.f32.mrf.mxu0  ;;  %v14446_v59 = vmin.f32 %v7119_v63, 16.0 }
0x1524   : > { %v7081_v22 = vmul.f32 2.1237322e-06, %v14440_v62  ;;  %v7092_v55 = vmul.f32 3.8918573e-05, %v14440_v62  ;;  %v14448_v39 = vadd.f32 %v6966_v15, %v6881_v41  ;;  %v6980_v40 = vpop.f32.mrf.mxu1 }
0x1525   : > { %v7121_v2 = vmul.f32 2.1237322e-06, %v14446_v59  ;;  %v14451_v49 = vadd.f32 %v6980_v40, %v6882_v48  ;;  %v7132_v56 = vmul.f32 3.8918573e-05, %v14446_v59 }
0x1526   : > { %v7082_v31 = vadd.f32 0.00028619796, %v7081_v22  ;;  %v7093_v18 = vadd.f32 0.001143296, %v7092_v55  ;;  %v14455_v35 = vmul.f32 0.70710677, %v14448_v39 }
0x1527   : > { %v7122_v1 = vadd.f32 0.00028619796, %v7121_v2  ;;  %v7133_v53 = vadd.f32 0.001143296, %v7132_v56  ;;  %v14462_v61 = vmul.f32 0.70710677, %v14451_v49 }
0x1528   : > { %v7083_v29 = vmul.f32 %v7082_v31, %v14440_v62  ;;  %v7094_v32 = vmul.f32 %v7093_v18, %v14440_v62  ;;  %v7239_v11 = vmul.f32 %v14455_v35, %v14455_v35 }
0x1529   : > { %v7123_v17 = vmul.f32 %v7122_v1, %v14446_v59  ;;  %v7134_v36 = vmul.f32 %v7133_v53, %v14446_v59  ;;  %v7279_v57 = vmul.f32 %v14462_v61, %v14462_v61 }
0x152a   : > { %v7084_v27 = vadd.f32 0.0036580483, %v7083_v29  ;;  %v7095_v51 = vadd.f32 0.014752088, %v7094_v32  ;;  %v14466_v43 = vmin.f32 %v7239_v11, 16.0 }
0x152b   : > { %v7124_v45 = vadd.f32 0.0036580483, %v7123_v17  ;;  %v7135_v8 = vadd.f32 0.014752088, %v7134_v36  ;;  %v14474_v3 = vmin.f32 %v7279_v57, 16.0 }
0x152c   : > { %v7085_v47 = vmul.f32 %v7084_v27, %v14440_v62  ;;  %v7096_v12 = vmul.f32 %v7095_v51, %v14440_v62  ;;  %v7241_v33 = vmul.f32 2.1237322e-06, %v14466_v43  ;;  %v7252_v50 = vmul.f32 3.8918573e-05, %v14466_v43 }
0x152d   : > { %v7136_v23 = vmul.f32 %v7135_v8, %v14446_v59  ;;  %v7125_v38 = vmul.f32 %v7124_v45, %v14446_v59  ;;  %v7281_v19 = vmul.f32 2.1237322e-06, %v14474_v3  ;;  %v7292_v7 = vmul.f32 3.8918573e-05, %v14474_v3 }
0x152e   : > { %v7086_v44 = vadd.f32 0.05243302, %v7085_v47  ;;  %v7097_v20 = vadd.f32 0.112945676, %v7096_v12  ;;  %v7242_v21 = vadd.f32 0.00028619796, %v7241_v33 }
0x152f   : > { %v7253_v28 = vadd.f32 0.001143296, %v7252_v50  ;;  %v7137_v9 = vadd.f32 0.112945676, %v7136_v23  ;;  %v7282_v60 = vadd.f32 0.00028619796, %v7281_v19 }
0x1530   : > { %v7098_v16 = vmul.f32 %v7097_v20, %v14440_v62  ;;  %v7243_v4 = vmul.f32 %v7242_v21, %v14466_v43  ;;  %v7087_v46 = vmul.f32 %v7086_v44, %v14440_v62  ;;  %v7293_v37 = vadd.f32 0.001143296, %v7292_v7 }
0x1531   : > { %v7254_v58 = vmul.f32 %v7253_v28, %v14466_v43  ;;  %v7138_v41 = vmul.f32 %v7137_v9, %v14446_v59  ;;  %v7126_v15 = vadd.f32 0.05243302, %v7125_v38  ;;  %v7283_v22 = vmul.f32 %v7282_v60, %v14474_v3 }
0x1532   : > { %v7099_v14 = vadd.f32 0.4994258, %v7098_v16  ;;  %v7244_v34 = vadd.f32 0.0036580483, %v7243_v4  ;;  %v7294_v18 = vmul.f32 %v7293_v37, %v14474_v3  ;;  %v7088_v2 = vadd.f32 0.18741608, %v7087_v46 }
0x1533   : > { %v7255_v24 = vadd.f32 0.014752088, %v7254_v58  ;;  %v7139_v55 = vadd.f32 0.4994258, %v7138_v41  ;;  %v7127_v53 = vmul.f32 %v7126_v15, %v14446_v59  ;;  %v7284_v51 = vadd.f32 0.0036580483, %v7283_v22 }
0x1534   : > { %v6821_v48 = vpop.f32.mrf.mxu2  ;;  %v7100_v63 = vmul.f32 %v7099_v14, %v14440_v62  ;;  %v7245_v40 = vmul.f32 %v7244_v34, %v14466_v43  ;;  %v7295_v1 = vadd.f32 0.014752088, %v7294_v18  ;;  %v7089_v17 = vmul.f32 %v7088_v2, %v14440_v62 }
0x1535   : > { %v7256_v31 = vmul.f32 %v7255_v24, %v14466_v43  ;;  %v7140_v29 = vmul.f32 %v7139_v55, %v14446_v59  ;;  %v7128_v45 = vadd.f32 0.18741608, %v7127_v53  ;;  %v7285_v44 = vmul.f32 %v7284_v51, %v14474_v3  ;;  %v9644_v51 = vld [vmem:[%s15311_s14 + $0x3f8] sm:$0xff] }
0x1536   : > { %v14490_v56 = vadd.f32 1.0, %v7100_v63  ;;  %v7246_v27 = vadd.f32 0.05243302, %v7245_v40  ;;  %v7296_v57 = vmul.f32 %v7295_v1, %v14474_v3  ;;  %v14506_v62 = vmul.f32 0.5, %v14428_v25  ;;  %7637 = vmatpush.bf16.msra.mxu1 %v9644_v51  ;;  %v9641_v51 = vld [vmem:[%s15311_s14 + $0x3e0] sm:$0xff] }
0x1537   : > { %v7257_v32 = vadd.f32 0.112945676, %v7256_v31  ;;  %v14495_v11 = vadd.f32 1.0, %v7140_v29  ;;  %v7090_v21 = vadd.f32 1.1283791, %v7089_v17  ;;  %v14512_v38 = vmul.f32 0.5, %v14448_v39 }
0x1538   : > { %10008 = vrcp.f32 %v14490_v56  ;;  %v7247_v33 = vmul.f32 %v7246_v27, %v14466_v43  ;;  %v7297_v20 = vadd.f32 0.112945676, %v7296_v57  ;;  %v14516_v9 = vmul.f32 0.5, %v14451_v49  ;;  %v9636_v27 = vld [vmem:[%s15311_s14 + $0x3b8] sm:$0xff] }
0x1539   : > { %v7258_v36 = vmul.f32 %v7257_v32, %v14466_v43  ;;  %10010 = vrcp.f32 %v14495_v11  ;;  %v7129_v4 = vmul.f32 %v7128_v45, %v14446_v59  ;;  %v6879_v7 = vperm.slane %v14424_v0, 0  ;;  %7623 = vmatpush.bf16.msra.mxu0 %v9636_v27  ;;  %v9633_v27 = vld [vmem:[%s15311_s14 + $0x3a0] sm:$0xff] }
0x153a   : > { %v7298_v25 = vmul.f32 %v7297_v20, %v14474_v3  ;;  %v7248_v14 = vadd.f32 0.18741608, %v7247_v33  ;;  %v7286_v39 = vadd.f32 0.05243302, %v7285_v44  ;;  %v14527_v41 = vmul.f32 %v7090_v21, %v14431_v54 }
0x153b   : > { %v6835_v47 = vpop.f32.mrf.mxu3  ;;  %v7259_v50 = vadd.f32 0.4994258, %v7258_v36  ;;  %vm7107_vm11 = vweird.f32 %v14490_v56  ;;  %v7111_v34 = vand.u32 2147483647, %v14490_v56  ;;  %v7113_v54 = vand.u32 2147483648, %v14490_v56 }
0x153c   : > { %v6823_v12 = vpop.f32.mrf.mxu2  ;;  %v6836_v8 = vadd.f32 %v6835_v47, %v6821_v48  ;;  %v7130_v63 = vadd.f32 1.1283791, %v7129_v4  ;;  %v7249_v22 = vmul.f32 %v7248_v14, %v14466_v43  ;;  %v7287_v55 = vmul.f32 %v7286_v39, %v14474_v3 }
0x153d   : > { %v7260_v19 = vmul.f32 %v7259_v50, %v14466_v43  ;;  %v7151_v18 = vand.u32 2147483647, %v14495_v11  ;;  %v7153_v2 = vand.u32 2147483648, %v14495_v11  ;;  %vm14558_vm14 = vcmp.eq.f32.partialorder %v7111_v34, 8.507059e+37 }
0x153e   : > { %v14503_v23 = vpop.eup %10008  ;;  %v6850_v28 = vadd.f32 %v14415_v6, %v6836_v8  ;;  %v7114_v36 = vor.u32 1.1754944e-38, %v7113_v54  ;;  %v14563_v57 = vmul.f32 %v7130_v63, %v14438_v10  ;;  %v7250_v45 = vadd.f32 1.1283791, %v7249_v22 }
0x153f   : > { %v7103_v16 = vmul.f32 %v14503_v23, %v14490_v56  ;;  %v14522_v6 = vpop.eup %10010  ;;  %v14524_v60 = vadd.f32 1.0, %v7260_v19  ;;  %vm7108_vm12 = vweird.f32 %v14503_v23  ;;  %v7288_v8 = vadd.f32 0.18741608, %v7287_v55  ;;  %v9643_v19 = vld [vmem:[%s15311_s14 + $0x3f0] sm:$0xff] }
0x1540   : > { %v6864_v58 = vadd.f32 %v14417_v26, %v6850_v28  ;;  %v7143_v49 = vmul.f32 %v14522_v6, %v14495_v11  ;;  %v6880_v26 = vperm.slane %v14424_v0, 1  ;;  %vm14574_vm13 = vmor %vm7107_vm11, %vm7108_vm12  ;;  %vm7147_vm15 = vweird.f32 %v14495_v11  ;;  %7638 = vmatpush.bf16.msra.mxu1 %v9643_v19  ;;  %v9640_v19 = vld [vmem:[%s15311_s14 + $0x3d8] sm:$0xff] }
0x1541   : > { %v7104_v46 = vsub.f32 1.0, %v7103_v16  ;;  %10012 = vrcp.f32 %v14524_v60  ;;  %vm14579_vm2 = vcmp.eq.f32.partialorder %v7151_v18, 8.507059e+37  ;;  %vm7148_vm3 = vweird.f32 %v14522_v6  ;;  %v9635_v16 = vld [vmem:[%s15311_s14 + $0x3b0] sm:$0xff] }
0x1542   : > { %v14532_v59 = vadd.f32 %v6864_v58, %v14063_v13  ;;  %v7144_v15 = vsub.f32 1.0, %v7143_v49  ;;  %v7299_v13 = vadd.f32 0.4994258, %v7298_v25  ;;  %v7154_v20 = vor.u32 1.1754944e-38, %v7153_v2  ;;  %7624 = vmatpush.bf16.msra.mxu0 %v9635_v16  ;;  %vm14611_vm4 = vmor %vm7147_vm15, %vm7148_vm3  ;;  %v9632_v16 = vld [vmem:[%s15311_s14 + $0x398] sm:$0xff] }
0x1543   : > { %v7105_v48 = vmul.f32 %v14503_v23, %v7104_v46  ;;  %v6837_v24 = vpop.f32.mrf.mxu3  ;;  %v7271_v58 = vand.u32 2147483647, %v14524_v60  ;;  %v7273_v25 = vand.u32 2147483648, %v14524_v60  ;;  %v7289_v14 = vmul.f32 %v7288_v8, %v14474_v3 }
0x1544   : > { %v6936_v37 = vpop.f32.mrf.mxu2  ;;  %v6838_v40 = vadd.f32 %v6837_v24, %v6823_v12  ;;  %v7300_v29 = vmul.f32 %v7299_v13, %v14474_v3  ;;  %v7145_v1 = vmul.f32 %v14522_v6, %v7144_v15  ;;  %vm7267_vm6 = vweird.f32 %v14524_v60 }
0x1545   : > { %v14544_v31 = vadd.f32 %v6936_v37, %v6879_v7  ;;  %v7106_v32 = vadd.f32 %v14503_v23, %v7105_v48  ;;  %v9634_v37 = vld [vmem:[%s15311_s14 + $0x3a8] sm:$0xff]  ;;  %vm7272_vm7 = vcmp.eq.f32.partialorder %v7271_v58, 8.507059e+37  ;;  %v7274_v15 = vor.u32 1.1754944e-38, %v7273_v25 }
0x1546   : > { %v6852_v43 = vadd.f32 %v14419_v5, %v6838_v40  ;;  %v14565_v47 = vadd.f32 1.0, %v7300_v29  ;;  %v7146_v56 = vadd.f32 %v14522_v6, %v7145_v1  ;;  %7625 = vmatpush.bf16.msra.mxu0 %v9634_v37 }
0x1547   : > { %v14554_v53 = vmul.f32 0.70710677, %v14544_v31  ;;  %v10013_v12 = vpop.eup %10012  ;;  %v7110_v44 = vsel %vm14574_vm13, %v14503_v23, %v7106_v32  ;;  %v7251_v23 = vmul.f32 %v7250_v45, %v14455_v35 }
0x1548   : > { %v6866_v5 = vadd.f32 %v14421_v52, %v6852_v43  ;;  %v7263_v52 = vmul.f32 %v10013_v12, %v14524_v60  ;;  %10014 = vrcp.f32 %v14565_v47  ;;  %v7115_v48 = vsel %vm14558_vm14, %v7114_v36, %v7110_v44 }
0x1549   : > { %v6999_v33 = vmul.f32 %v14554_v53, %v14554_v53  ;;  %vm7268_vm5 = vweird.f32 %v10013_v12  ;;  %v7150_v34 = vsel %vm14611_vm4, %v14522_v6, %v7146_v56  ;;  %v14631_v22 = vmul.f32 %v7115_v48, %v14527_v41 }
0x154a   : > { %v7264_v4 = vsub.f32 1.0, %v7263_v52  ;;  %v14595_v46 = vadd.f32 %v6866_v5, %v14093_v42  ;;  %vm7269_vm9 = vmor %vm7267_vm6, %vm7268_vm5  ;;  %v7290_v6 = vadd.f32 1.1283791, %v7289_v14  ;;  %v7155_v40 = vsel %vm14579_vm2, %v7154_v20, %v7150_v34  ;;  %7626 = vmatpush.bf16.msra.mxu0 %v9633_v27  ;;  %v9620_v34 = vld [vmem:[%s15311_s14 + $0x338] sm:$0xff] }
0x154b   : > { %v6950_v21 = vpop.f32.mrf.mxu3  ;;  %v14599_v39 = vmin.f32 %v6999_v33, 16.0  ;;  %v7311_v17 = vand.u32 2147483647, %v14565_v47  ;;  %v7313_v36 = vand.u32 2147483648, %v14565_v47  ;;  %v7156_v10 = vmul.f32 %v7155_v40, %v14563_v57  ;;  %7595 = vmatpush.bf16.msra.mxu2 %v9620_v34 }
0x154c   : > { %v6938_v28 = vpop.f32.mrf.mxu2  ;;  %v14603_v49 = vadd.f32 %v6950_v21, %v6880_v26  ;;  %v7265_v35 = vmul.f32 %v10013_v12, %v7264_v4  ;;  %v7291_v50 = vmul.f32 %v7290_v6, %v14462_v61  ;;  %vm7307_vm10 = vweird.f32 %v14565_v47 }
0x154d   : > { %v14617_v3 = vadd.f32 %v6938_v28, %v6879_v7  ;;  %v7001_v24 = vmul.f32 2.1237322e-06, %v14599_v39  ;;  %v7012_v11 = vmul.f32 3.8918573e-05, %v14599_v39  ;;  %v9642_v7 = vld [vmem:[%s15311_s14 + $0x3e8] sm:$0xff]  ;;  %v9189_v57 = vclamps-f32 %v14631_v22, 1.0 }
0x154e   : > { %v10015_v54 = vpop.eup %10014  ;;  %v7266_v63 = vadd.f32 %v10013_v12, %v7265_v35  ;;  %v14627_v13 = vmul.f32 0.70710677, %v14603_v49  ;;  %7639 = vmatpush.bf16.msra.mxu1 %v9642_v7  ;;  %vm7312_vm12 = vcmp.eq.f32.partialorder %v7311_v17, 8.507059e+37  ;;  %v7314_v61 = vor.u32 1.1754944e-38, %v7313_v36  ;;  %7627 = vmatpush.bf16.msra.mxu0 %v9632_v16  ;;  %v9639_v7 = vld [vmem:[%s15311_s14 + $0x3d0] sm:$0xff]  ;;  %v9626_v16 = vld [vmem:[%s15311_s14 + $0x368] sm:$0xff] }
0x154f   : > { %v7303_v60 = vmul.f32 %v10015_v54, %v14565_v47  ;;  %v7013_v55 = vadd.f32 0.001143296, %v7012_v11  ;;  %v14639_v29 = vmul.f32 0.70710677, %v14617_v3  ;;  %v7002_v1 = vadd.f32 0.00028619796, %v7001_v24 }
0x1550   : > { %v7270_v18 = vsel %vm7269_vm9, %v10013_v12, %v7266_v63  ;;  %v7039_v2 = vmul.f32 %v14627_v13, %v14627_v13  ;;  %vm7308_vm8 = vweird.f32 %v10015_v54  ;;  %v9190_v14 = vclamps-f32 %v7156_v10, 1.0  ;;  %v9628_v24 = vld [vmem:[%s15311_s14 + $0x378] sm:$0xff] }
0x1551   : > { %v7275_v41 = vsel %vm7272_vm7, %v7274_v15, %v7270_v18  ;;  %v7304_v32 = vsub.f32 1.0, %v7303_v60  ;;  %v7014_v43 = vmul.f32 %v7013_v55, %v14599_v39  ;;  %v7159_v12 = vmul.f32 %v14639_v29, %v14639_v29  ;;  %vm7309_vm11 = vmor %vm7307_vm10, %vm7308_vm8  ;;  %v9631_v15 = vld [vmem:[%s15311_s14 + $0x390] sm:$0xff]  ;;  %7609 = vmatpush.bf16.msra.mxu3 %v9628_v24 }
0x1552   : > { %v14646_v45 = vmin.f32 %v7039_v2, 16.0  ;;  %v7276_v8 = vmul.f32 %v7275_v41, %v7251_v23  ;;  %7640 = vmatpush.bf16.msra.mxu1 %v9641_v51  ;;  %v7003_v20 = vmul.f32 %v7002_v1, %v14599_v39  ;;  %v7321_v0 = vadd.f32 1.0, %v9189_v57  ;;  %7628 = vmatpush.bf16.msra.mxu0 %v9631_v15  ;;  %v9619_v18 = vld [vmem:[%s15311_s14 + $0x330] sm:$0xff] }
0x1553   : > { %v7305_v5 = vmul.f32 %v10015_v54, %v7304_v32  ;;  %v7015_v33 = vadd.f32 0.014752088, %v7014_v43  ;;  %v14653_v44 = vmin.f32 %v7159_v12, 16.0  ;;  %v6952_v28 = vpop.f32.mrf.mxu3  ;;  %v9627_v43 = vld [vmem:[%s15311_s14 + $0x370] sm:$0xff]  ;;  %v7322_v27 = vadd.f32 1.0, %v9190_v14  ;;  %v9630_v12 = vld [vmem:[%s15311_s14 + $0x388] sm:$0xff]  ;;  %7596 = vmatpush.bf16.msra.mxu2 %v9619_v18 }
0x1554   : > { %v7052_v52 = vmul.f32 3.8918573e-05, %v14646_v45  ;;  %v9193_v58 = vclamps-f32 %v7276_v8, 1.0  ;;  %v14666_v35 = vadd.f32 %v6952_v28, %v6880_v26  ;;  %v7004_v37 = vadd.f32 0.0036580483, %v7003_v20  ;;  %v9638_v8 = vld [vmem:[%s15311_s14 + $0x3c8] sm:$0xff] }
0x1555   : > { %v7306_v56 = vadd.f32 %v10015_v54, %v7305_v5  ;;  %v7016_v21 = vmul.f32 %v7015_v33, %v14599_v39  ;;  %v7161_v23 = vmul.f32 2.1237322e-06, %v14653_v44  ;;  %v7041_v22 = vmul.f32 2.1237322e-06, %v14646_v45  ;;  %7610 = vmatpush.bf16.msra.mxu3 %v9627_v43  ;;  %v9618_v28 = vld [vmem:[%s15311_s14 + $0x328] sm:$0xff] }
0x1556   : > { %v7053_v4 = vadd.f32 0.001143296, %v7052_v52  ;;  %7641 = vmatpush.bf16.msra.mxu1 %v9640_v19  ;;  %v7172_v60 = vmul.f32 3.8918573e-05, %v14653_v44  ;;  %v7325_v26 = vadd.f32 1.0, %v9193_v58  ;;  %v7005_v17 = vmul.f32 %v7004_v37, %v14599_v39  ;;  %7629 = vmatpush.bf16.msra.mxu0 %v9630_v12  ;;  %v9625_v37 = vld [vmem:[%s15311_s14 + $0x360] sm:$0xff] }
0x1557   : > { %v7310_v25 = vsel %vm7309_vm11, %v10015_v54, %v7306_v56  ;;  %v7017_v47 = vadd.f32 0.112945676, %v7016_v21  ;;  %v7162_v63 = vadd.f32 0.00028619796, %v7161_v23  ;;  %v14679_v1 = vmul.f32 0.70710677, %v14666_v35  ;;  %7597 = vmatpush.bf16.msra.mxu2 %v9618_v28 }
0x1558   : > { %v7315_v48 = vsel %vm7312_vm12, %v7314_v61, %v7310_v25  ;;  %v7054_v42 = vmul.f32 %v7053_v4, %v14646_v45  ;;  %v7173_v32 = vadd.f32 0.001143296, %v7172_v60  ;;  %v7042_v5 = vadd.f32 0.00028619796, %v7041_v22  ;;  %v9615_v12 = vld [vmem:[%s15311_s14 + $0x310] sm:$0xff] }
0x1559   : > { %v7316_v11 = vmul.f32 %v7315_v48, %v7291_v50  ;;  %v7018_v54 = vmul.f32 %v7017_v47, %v14599_v39  ;;  %v7163_v41 = vmul.f32 %v7162_v63, %v14653_v44  ;;  %v7199_v50 = vmul.f32 %v14679_v1, %v14679_v1  ;;  %7611 = vmatpush.bf16.msra.mxu3 %v9626_v16 }
0x155a   : > { %v7055_v6 = vadd.f32 0.014752088, %v7054_v42  ;;  %7642 = vmatpush.bf16.msra.mxu1 %v9639_v7  ;;  %v7174_v10 = vmul.f32 %v7173_v32, %v14653_v44  ;;  %v6986_v52 = vmul.f32 0.5, %v14433_v30  ;;  %v7333_v56 = vmul.f32 %v7325_v26, %v14512_v38  ;;  %v9629_v38 = vld [vmem:[%s15311_s14 + $0x380] sm:$0xff] }
0x155b   : > { %v9194_v55 = vclamps-f32 %v7316_v11, 1.0  ;;  %v7019_v40 = vadd.f32 0.4994258, %v7018_v54  ;;  %v7164_v57 = vadd.f32 0.0036580483, %v7163_v41  ;;  %v14697_v4 = vmin.f32 %v7199_v50, 16.0  ;;  %7630 = vmatpush.bf16.msra.mxu0 %v9629_v38 }
0x155c   : > { %v7056_v2 = vmul.f32 %v7055_v6, %v14646_v45  ;;  %v7175_v61 = vadd.f32 0.014752088, %v7174_v10  ;;  %v7329_v58 = vmul.f32 %v7321_v0, %v14506_v62  ;;  %v7330_v30 = vmul.f32 %v7322_v27, %v6986_v52  ;;  %v9617_v11 = vld [vmem:[%s15311_s14 + $0x320] sm:$0xff]  ;;  %v9624_v41 = vld [vmem:[%s15311_s14 + $0x358] sm:$0xff] }
0x155d   : > { %v7326_v51 = vadd.f32 1.0, %v9194_v55  ;;  %v7020_v36 = vmul.f32 %v7019_v40, %v14599_v39  ;;  %v7006_v25 = vadd.f32 0.05243302, %v7005_v17  ;;  %v7043_v47 = vmul.f32 %v7042_v5, %v14646_v45  ;;  %7598 = vmatpush.bf16.msra.mxu2 %v9617_v11  ;;  %7612 = vmatpush.bf16.msra.mxu3 %v9625_v37  ;;  %v9616_v55 = vld [vmem:[%s15311_s14 + $0x318] sm:$0xff] }
0x155e   : > { %v7057_v33 = vadd.f32 0.112945676, %v7056_v2  ;;  %7643 = vmatpush.bf16.msra.mxu1 %v9638_v8  ;;  %v7176_v23 = vmul.f32 %v7175_v61, %v14653_v44  ;;  %v7337_v14 = vpack.c.bf16 %v7333_v56, %v7329_v58  ;;  %v7201_v34 = vmul.f32 2.1237322e-06, %v14697_v4  ;;  %v9623_v8 = vld [vmem:[%s15311_s14 + $0x350] sm:$0xff] }
0x155f   : > { %v7334_v20 = vmul.f32 %v7326_v51, %v14516_v9  ;;  %v14692_v21 = vadd.f32 1.0, %v7020_v36  ;;  %v9637_v9 = vld [vmem:[%s15311_s14 + $0x3c0] sm:$0xff]  ;;  %v7165_v62 = vmul.f32 %v7164_v57, %v14653_v44  ;;  %v7212_v63 = vmul.f32 3.8918573e-05, %v14697_v4  ;;  %v9614_v57 = vld [vmem:[%s15311_s14 + $0x308] sm:$0xff] }
0x1560   : > { %v7058_v19 = vmul.f32 %v7057_v33, %v14646_v45  ;;  %v7177_v24 = vadd.f32 0.112945676, %v7176_v23  ;;  %v7007_v15 = vmul.f32 %v7006_v25, %v14599_v39  ;;  %v7202_v22 = vadd.f32 0.00028619796, %v7201_v34  ;;  %7631 = vmatmul.bf16.vlgmr.msra.gmra.mxu0 %v7337_v14  ;;  %v9621_v34 = vld [vmem:[%s15311_s14 + $0x340] sm:$0xff] }
0x1561   : > { %10016 = vrcp.f32 %v14692_v21  ;;  %v7338_v48 = vpack.c.bf16 %v7334_v20, %v7330_v30  ;;  %v7044_v60 = vadd.f32 0.0036580483, %v7043_v47  ;;  %v7213_v26 = vadd.f32 0.001143296, %v7212_v63  ;;  %7599 = vmatpush.bf16.msra.mxu2 %v9616_v55  ;;  %7613 = vmatpush.bf16.msra.mxu3 %v9624_v41  ;;  %v9622_v30 = vld [vmem:[%s15311_s14 + $0x348] sm:$0xff] }
0x1562   : > { %v7059_v42 = vadd.f32 0.4994258, %v7058_v19  ;;  %7644 = vmatpush.bf16.msra.mxu1 %v9637_v9  ;;  %v7178_v7 = vmul.f32 %v7177_v24, %v14653_v44  ;;  %v7166_v18 = vadd.f32 0.05243302, %v7165_v62  ;;  %v7008_v32 = vadd.f32 0.18741608, %v7007_v15 }
0x1563   : > { %v7203_v51 = vmul.f32 %v7202_v22, %v14697_v4  ;;  %v7045_v17 = vmul.f32 %v7044_v60, %v14646_v45  ;;  %v7214_v36 = vmul.f32 %v7213_v26, %v14697_v4  ;;  %v7033_v61 = vand.u32 2147483648, %v14692_v21 }
0x1564   : > { %v7060_v54 = vmul.f32 %v7059_v42, %v14646_v45  ;;  %v7179_v2 = vadd.f32 0.4994258, %v7178_v7  ;;  %v7167_v33 = vmul.f32 %v7166_v18, %v14653_v44  ;;  %v7009_v52 = vmul.f32 %v7008_v32, %v14599_v39  ;;  %v9613_v42 = vld [vmem:[%s15311_s14 + $0x300] sm:$0xff] }
0x1565   : > { %7645 = vmatmul.bf16.vlgmr.msra.gmra.mxu1 %v7338_v48  ;;  %v7215_v50 = vadd.f32 0.014752088, %v7214_v36  ;;  %v7204_v56 = vadd.f32 0.0036580483, %v7203_v51  ;;  %7600 = vmatpush.bf16.msra.mxu2 %v9615_v12  ;;  %v7046_v16 = vadd.f32 0.05243302, %v7045_v17  ;;  %vm7027_vm13 = vweird.f32 %v14692_v21 }
0x1566   : > { %v14713_v0 = vadd.f32 1.0, %v7060_v54  ;;  %v7180_v27 = vmul.f32 %v7179_v2, %v14653_v44  ;;  %7614 = vmatpush.bf16.msra.mxu3 %v9623_v8  ;;  %v7168_v58 = vadd.f32 0.18741608, %v7167_v33  ;;  %v7031_v38 = vand.u32 2147483647, %v14692_v21 }
0x1567   : > { %v10017_v6 = vpop.eup %10016  ;;  %v7216_v19 = vmul.f32 %v7215_v50, %v14697_v4  ;;  %v7205_v25 = vmul.f32 %v7204_v56, %v14697_v4  ;;  %v7010_v23 = vadd.f32 1.1283791, %v7009_v52  ;;  %v7047_v48 = vmul.f32 %v7046_v16, %v14646_v45 }
0x1568   : > { %v7023_v40 = vmul.f32 %v10017_v6, %v14692_v21  ;;  %10018 = vrcp.f32 %v14713_v0  ;;  %v14726_v10 = vadd.f32 1.0, %v7180_v27  ;;  %vm7028_vm14 = vweird.f32 %v10017_v6 }
0x1569   : > { %vm14740_vm15 = vmor %vm7027_vm13, %vm7028_vm14  ;;  %v7217_v47 = vadd.f32 0.112945676, %v7216_v19  ;;  %7601 = vmatpush.bf16.msra.mxu2 %v9614_v57  ;;  %v7034_v24 = vor.u32 1.1754944e-38, %v7033_v61  ;;  %v7169_v11 = vmul.f32 %v7168_v58, %v14653_v44  ;;  %vm7032_vm2 = vcmp.eq.f32.partialorder %v7031_v38, 8.507059e+37 }
0x156a   : > { %v7024_v43 = vsub.f32 1.0, %v7023_v40  ;;  %10020 = vrcp.f32 %v14726_v10  ;;  %7615 = vmatpush.bf16.msra.mxu3 %v9622_v30  ;;  %v7206_v15 = vadd.f32 0.05243302, %v7205_v25  ;;  %v7011_v22 = vmul.f32 %v7010_v23, %v14554_v53 }
0x156b   : > { %v7218_v37 = vmul.f32 %v7217_v47, %v14697_v4  ;;  %v7170_v55 = vadd.f32 1.1283791, %v7169_v11  ;;  %v7193_v40 = vand.u32 2147483648, %v14726_v10  ;;  %v7191_v41 = vand.u32 2147483647, %v14726_v10 }
0x156c   : > { %v7025_v5 = vmul.f32 %v10017_v6, %v7024_v43  ;;  %v7207_v32 = vmul.f32 %v7206_v15, %v14697_v4  ;;  %v7073_v53 = vand.u32 2147483648, %v14713_v0  ;;  %vm7187_vm4 = vweird.f32 %v14726_v10 }
0x156d   : > { %v7219_v7 = vadd.f32 0.4994258, %v7218_v37  ;;  %7602 = vmatpush.bf16.msra.mxu2 %v9613_v42  ;;  %v7194_v36 = vor.u32 1.1754944e-38, %v7193_v40  ;;  %v7171_v8 = vmul.f32 %v7170_v55, %v14639_v29  ;;  %vm7192_vm7 = vcmp.eq.f32.partialorder %v7191_v41, 8.507059e+37  ;;  %v15389_v55 = vld [vmem:[#allocation125_spill] sm:$0xff] }
0x156e   : > { %v14730_v20 = vpop.eup %10018  ;;  %v7026_v28 = vadd.f32 %v10017_v6, %v7025_v5  ;;  %7616 = vmatpush.bf16.msra.mxu3 %v9621_v34  ;;  %vm7067_vm9 = vweird.f32 %v14713_v0  ;;  %v7208_v50 = vadd.f32 0.18741608, %v7207_v32  ;;  %v7074_v16 = vor.u32 1.1754944e-38, %v7073_v53 }
0x156f   : > { %v7063_v39 = vmul.f32 %v14730_v20, %v14713_v0  ;;  %v7220_v44 = vmul.f32 %v7219_v7, %v14697_v4  ;;  %vm7068_vm5 = vweird.f32 %v14730_v20  ;;  %v6983_v61 = vmul.f32 0.5, %v14544_v31 }
0x1570   : > { %v7030_v14 = vsel %vm14740_vm15, %v10017_v6, %v7026_v28  ;;  %v10021_v62 = vpop.eup %10020  ;;  %v7048_v6 = vadd.f32 0.18741608, %v7047_v48  ;;  %vm7069_vm8 = vmor %vm7067_vm9, %vm7068_vm5  ;;  %v7209_v29 = vmul.f32 %v7208_v50, %v14697_v4  ;;  %v6987_v58 = vmul.f32 0.5, %v14617_v3 }
0x1571   : > { %v7064_v21 = vsub.f32 1.0, %v7063_v39  ;;  %v7183_v54 = vmul.f32 %v10021_v62, %v14726_v10  ;;  %v7035_v63 = vsel %vm7032_vm2, %v7034_v24, %v7030_v14  ;;  %vm7188_vm3 = vweird.f32 %v10021_v62 }
0x1572   : > { %v7036_v18 = vmul.f32 %v7035_v63, %v7011_v22  ;;  %v7221_v43 = vadd.f32 1.0, %v7220_v44  ;;  %v7049_v27 = vmul.f32 %v7048_v6, %v14646_v45  ;;  %vm7189_vm6 = vmor %vm7187_vm4, %vm7188_vm3  ;;  %v7071_v45 = vand.u32 2147483647, %v14713_v0 }
0x1573   : > { %v7184_v60 = vsub.f32 1.0, %v7183_v54  ;;  %v7065_v26 = vmul.f32 %v14730_v20, %v7064_v21  ;;  %v7210_v23 = vadd.f32 1.1283791, %v7209_v29  ;;  %v6984_v54 = vmul.f32 0.5, %v14603_v49 }
0x1574   : > { %10022 = vrcp.f32 %v7221_v43  ;;  %v9187_v12 = vclamps-f32 %v7036_v18, 1.0  ;;  %v7050_v52 = vadd.f32 1.1283791, %v7049_v27  ;;  %vm7072_vm10 = vcmp.eq.f32.partialorder %v7071_v45, 8.507059e+37 }
0x1575   : > { %v7185_v2 = vmul.f32 %v10021_v62, %v7184_v60  ;;  %v7066_v17 = vadd.f32 %v14730_v20, %v7065_v26  ;;  %v7233_v14 = vand.u32 2147483648, %v7221_v43  ;;  %v7231_v31 = vand.u32 2147483647, %v7221_v43  ;;  %v15388_v60 = vld [vmem:[#allocation112_spill] sm:$0xff] }
0x1576   : > { %v7319_v28 = vadd.f32 1.0, %v9187_v12  ;;  %v7051_v38 = vmul.f32 %v7050_v52, %v14627_v13  ;;  %vm7227_vm12 = vweird.f32 %v7221_v43  ;;  %v6988_v63 = vmul.f32 0.5, %v14666_v35 }
0x1577   : > { %v7186_v51 = vadd.f32 %v10021_v62, %v7185_v2  ;;  %v7070_v56 = vsel %vm7069_vm8, %v14730_v20, %v7066_v17  ;;  %v7234_v4 = vor.u32 1.1754944e-38, %v7233_v14  ;;  %vm7232_vm13 = vcmp.eq.f32.partialorder %v7231_v31, 8.507059e+37 }
0x1578   : > { %v7075_v39 = vsel %vm7072_vm10, %v7074_v16, %v7070_v56  ;;  %v7327_v9 = vmul.f32 %v7319_v28, %v6983_v61  ;;  %v3944_v26 = vperm.slane %v15388_v60, 0  ;;  %v15391_v56 = vld [vmem:[#allocation124_spill] sm:$0xff]  ;;  %v10326_v29 = vmov 0  }
0x1579   : > { %v7190_v5 = vsel %vm7189_vm6, %v10021_v62, %v7186_v51  ;;  %v7076_v20 = vmul.f32 %v7075_v39, %v7051_v38  ;;  %v7211_v62 = vmul.f32 %v7210_v23, %v14679_v1  ;;  %9933 = vset.pattern.permute.xlu2 %v10326_v29  ;;  %9932 = vset.pattern.permute.xlu1 %v10326_v29 }
0x157a   : > { %v7195_v33 = vsel %vm7192_vm7, %v7194_v36, %v7190_v5  ;;  %v10023_v57 = vpop.eup %10022  ;;  %v3946_v1 = vmul.f32 %v3944_v26, %v15389_v55  ;;  %v15390_v5 = vld [vmem:[#allocation126_spill] sm:$0xff]  ;;  %v3947_v28 = vmul.f32 %v3944_v26, %v15391_v56  ;;  %9934 = vset.pattern.permute.xlu0 %v10326_v29 }
0x157b   : > { %v7196_v10 = vmul.f32 %v7195_v33, %v7171_v8  ;;  %v7223_v30 = vmul.f32 %v10023_v57, %v7221_v43  ;;  %vm7228_vm11 = vweird.f32 %v10023_v57  ;;  %v9188_v3 = vclamps-f32 %v7076_v20, 1.0  ;;  %v9935_v43 = vld [vmem:[%s15387_s19] ss:$0 sm:$0xff]  ;;  %v15395_v20 = vld [vmem:[#allocation83_spill] sm:$0xff] }
0x157c   : > { %vm7229_vm14 = vmor %vm7227_vm12, %vm7228_vm11  ;;  %v3948_v40 = vsel %vm318_vm0, %v3946_v1, 0.0 }
0x157d   : > { %v9191_v19 = vclamps-f32 %v7196_v10, 1.0  ;;  %v7224_v47 = vsub.f32 1.0, %v7223_v30  ;;  %v7320_v11 = vadd.f32 1.0, %v9188_v3  ;;  %3949 = vadd.xlane.f32.xlu0 %v3948_v40  ;;  %v15394_v30 = vld [vmem:[#allocation120_spill] sm:$0xff] }
0x157e   : > { %vm3940_vm15 = vcmp.lt.f32.partialorder %v15394_v30, 0.8 }
0x157f   : > { %v7323_v0 = vadd.f32 1.0, %v9191_v19  ;;  %v7225_v42 = vmul.f32 %v10023_v57, %v7224_v47  ;;  %v7328_v7 = vmul.f32 %v7320_v11, %v6984_v54 }
0x1581   : > { %v7331_v25 = vmul.f32 %v7323_v0, %v6987_v58  ;;  %v7226_v34 = vadd.f32 %v10023_v57, %v7225_v42  ;;  %v15393_v58 = vld [vmem:[#allocation113_spill] sm:$0xff] }
0x1582   : > { %v3955_v0 = vperm.slane %v15393_v58, 0 }
0x1583   : > { %v7335_v48 = vpack.c.bf16 %v7331_v25, %v7327_v9  ;;  %v7230_v24 = vsel %vm7229_vm14, %v10023_v57, %v7226_v34  ;;  %v3951_v57 = vsel %vm318_vm0, %v3947_v28, 0.0  ;;  %v10327_v25 = vmov 0.0  }
0x1584   : > { %v7235_v13 = vsel %vm7232_vm13, %v7234_v4, %v7230_v24  ;;  %v3942_v47 = vsel %vm3940_vm15, 1.0, %v10327_v25 }
0x1585   : > { %7603 = vmatmul.bf16.vlgmr.msra.gmra.mxu2 %v7335_v48  ;;  %v7236_v21 = vmul.f32 %v7235_v13, %v7211_v62  ;;  %v15396_v48 = vld [vmem:[#allocation121_spill] sm:$0xff] }
0x1586   : > { %vm3939_vm2 = vcmp.lt.f32.partialorder %v15396_v48, 0.8 }
0x1587   : > { %v9192_v37 = vclamps-f32 %v7236_v21, 1.0  ;;  %v3941_v4 = vsel %vm3939_vm2, 1.0, %v10327_v25 }
0x1589   : > { %v7324_v15 = vadd.f32 1.0, %v9192_v37 }
0x158b   : > { %v7332_v22 = vmul.f32 %v7324_v15, %v6988_v63 }
0x158d   : > { %v7336_v6 = vpack.c.bf16 %v7332_v22, %v7328_v7  ;;  %v15397_v22 = vld [vmem:[#allocation118_spill] sm:$0xff] }
0x158f   : > { %7617 = vmatmul.bf16.vlgmr.msra.gmra.mxu3 %v7336_v6 }
0x15dd   : > { %v7632_v18 = vpop.f32.mrf.mxu0 }
0x15e2   : > { %v7646_v49 = vpop.f32.mrf.mxu1 }
0x15e5   : > { %v7634_v12 = vpop.f32.mrf.mxu0 }
0x15ea   : > { %v7648_v33 = vpop.f32.mrf.mxu1 }
0x1608   : > { %v7604_v44 = vpop.f32.mrf.mxu2 }
0x1610   : > { %v7606_v27 = vpop.f32.mrf.mxu2 }
0x1612   : > { %v7618_v2 = vpop.f32.mrf.mxu3 }
0x1613   : > { %v7619_v41 = vadd.f32 %v7618_v2, %v7604_v44 }
0x1615   : > { %v7633_v32 = vadd.f32 %v7632_v18, %v7619_v41  ;;  %v15398_v41 = vld [vmem:[#allocation119_spill] sm:$0xff] }
0x1617   : > { %v7647_v35 = vadd.f32 %v7646_v49, %v7633_v32 }
0x1619   : > { %v7651_v53 = vadd.f32 %v7647_v35, %v14532_v59  ;;  %v15392_v59 = vld [vmem:[#allocation127_spill] sm:$0xff] }
0x161a   : > { %v7620_v51 = vpop.f32.mrf.mxu3 }
0x161b   : > { %v7621_v17 = vadd.f32 %v7620_v51, %v7606_v27  ;;  %v7657_v36 = vadd.f32 %v9935_v43, %v7651_v53 }
0x161d   : > { %v7635_v8 = vadd.f32 %v7634_v12, %v7621_v17  ;;  %v14781_v45 = vadd.f32 %v7657_v36, %v15390_v5 }
0x161f   : > { %v7649_v50 = vadd.f32 %v7648_v33, %v7635_v8  ;;  %v7661_v10 = vsel %vm318_vm0, %v14781_v45, 0.0 }
0x1620   : > { %7662 = vadd.xlane.f32.xlu1 %v7661_v10 }
0x1621   : > { %v7652_v52 = vadd.f32 %v7649_v50, %v14595_v46  ;;  %v3950_v46 = vpop.xlane.xlu0 %3949 }
0x1622   : > { %v3957_v34 = vadd.f32 %v3955_v0, %v3950_v46 }
0x1623   : > { %v7658_v16 = vadd.f32 %v9935_v43, %v7652_v52 }
0x1624   : > { %v3959_v13 = vmul.f32 %v3957_v34, %v3941_v4 }
0x1625   : > { %v7660_v19 = vadd.f32 %v7658_v16, %v15392_v59 }
0x1626   : > { %v3961_v54 = vadd.f32 %v15396_v48, %v3959_v13 }
0x1627   : > { %v7664_v61 = vsel %vm318_vm0, %v7660_v19, 0.0 }
0x1628   : > { %7665 = vadd.xlane.f32.xlu2 %v7664_v61  ;;  %3952 = vadd.xlane.f32.xlu1 %v3951_v57  ;;  %vm3967_vm5 = vcmp.le.f32.partialorder %v3961_v54, 0.8  ;;  %vm3963_vm6 = vcmp.gt.f32.partialorder %v3961_v54, 0.8  ;;  %v15399_v57 = vld [vmem:[#allocation110_spill] sm:$0xff] }
0x1629   : > { %v3969_v6 = vsel %vm3967_vm5, 1.0, %v10327_v25  ;;  %v3965_v18 = vsel %vm3963_vm6, 1.0, %v10327_v25  ;;  %v7706_v61 = vperm.slane %v15399_v57, 0 }
0x162a   : > { %v3971_v1 = vmul.f32 %v3969_v6, %v3957_v34 }
0x162c   : > { %v3973_v40 = vadd.f32 %v15396_v48, %v3971_v1 }
0x162e   : > { %v3975_v44 = vsub.f32 1.0, %v3973_v40 }
0x1630   : > { %v3977_v2 = vmul.f32 %v3975_v44, %v3965_v18 }
0x1693   : > { %v7663_v39 = vpop.xlane.xlu1 %7662 }
0x1694   : > { %v7667_v27 = vmul.f32 %v7663_v39, %v15395_v20 }
0x1696   : > { %v7669_v53 = vsub.f32 %v14781_v45, %v7667_v27 }
0x1698   : > { %v7671_v51 = vmul.f32 %v7669_v53, %v7669_v53 }
0x169a   : > { %v7673_v17 = vsel %vm318_vm0, %v7671_v51, 0.0 }
0x169b   : > { %v7666_v38 = vpop.xlane.xlu2 %7665  ;;  %v3953_v9 = vpop.xlane.xlu1 %3952 }
0x169c   : > { %v7668_v23 = vmul.f32 %v7666_v38, %v15395_v20  ;;  %v3958_v14 = vadd.f32 %v3955_v0, %v3953_v9  ;;  %v15400_v0 = vld [vmem:[#allocation111_spill] sm:$0xff] }
0x169e   : > { %v7670_v42 = vsub.f32 %v7660_v19, %v7668_v23  ;;  %v3960_v31 = vmul.f32 %v3958_v14, %v3942_v47 }
0x16a0   : > { %v3962_v3 = vadd.f32 %v15394_v30, %v3960_v31  ;;  %v7672_v62 = vmul.f32 %v7670_v42, %v7670_v42 }
0x16a2   : > { %vm3968_vm3 = vcmp.le.f32.partialorder %v3962_v3, 0.8  ;;  %v7676_v24 = vsel %vm318_vm0, %v7672_v62, 0.0  ;;  %vm3964_vm4 = vcmp.gt.f32.partialorder %v3962_v3, 0.8 }
0x16a3   : > { %v3970_v21 = vsel %vm3968_vm3, 1.0, %v10327_v25  ;;  %7677 = vadd.xlane.f32.xlu0 %v7676_v24  ;;  %v3966_v15 = vsel %vm3964_vm4, 1.0, %v10327_v25  ;;  %v15401_v25 = vld [vmem:[#allocation122_spill] sm:$0xff] }
0x16a4   : > { %v3972_v11 = vmul.f32 %v3970_v21, %v3958_v14 }
0x16a6   : > { %v3974_v37 = vadd.f32 %v15394_v30, %v3972_v11  ;;  %v7711_v30 = vperm.slane %v15400_v0, 0 }
0x16a8   : > { %v3976_v63 = vsub.f32 1.0, %v3974_v37 }
0x16aa   : > { %v3978_v7 = vmul.f32 %v3976_v63, %v3966_v15  ;;  %v7746_v63 = vld [vmem:[%s10587_s27 + $0x18] sm:$0xff] (%p3921_p7) }
0x16ab   :  { %7769 = vmatpush.msra.mxu0 (%p3921_p7), %v7746_v63  ;;  %9669 = vmatpush.msra.mxu1 (%p3921_p7), %v7746_v63 }
0x16ac   : > { %v14799_v33 = vadd.f32 %v15397_v22, %v3978_v7   ;;  %v3979_v22 = vadd.f32 %v15398_v41, %v3977_v2   ;;  %v7744_v7 = vld [vmem:[%s10587_s27 + $0x8] sm:$0xff] (%p3921_p7) }
0x16ae   : > { %v3982_v60 = vmul.f32 %v14799_v33, %v3966_v15  ;;  %v3981_v49 = vmul.f32 %v3979_v22, %v3965_v18  ;;  %v7745_v15 = vld [vmem:[%s10587_s27 + $0x10] sm:$0xff] (%p3921_p7)  ;;  %v10028_v33 = vld [vmem:[#allocation9] ss:$0 sm:$0xff] (%p3921_p7) }
0x16af   :  { %7770 = vmatpush.msra.mxu0 (%p3921_p7), %v7745_v15  ;;  %9670 = vmatpush.msra.mxu1 (%p3921_p7), %v7745_v15 }
0x16b0   : > { %v3986_v26 = vadd.f32 %v3982_v60, %v3972_v11  ;;  %v14802_v55 = vadd.f32 %v3982_v60, %v3974_v37   ;;  %v3985_v32 = vadd.f32 %v3981_v49, %v3971_v1  ;;  %v3983_v35 = vadd.f32 %v3981_v49, %v3973_v40   ;;  %v15402_v11 = vld [vmem:[#allocation123_spill] sm:$0xff] }
0x16b1   :  { %v7743_v60 = vld [vmem:[%s10587_s27] sm:$0xff] (%p3921_p7)  ;;  %7771 = vmatpush.msra.mxu0 (%p3921_p7), %v7744_v7  ;;  %9671 = vmatpush.msra.mxu1 (%p3921_p7), %v7744_v7  ;;  %s10137_s27 = sshra.s32 (%p3921_p7), %s7790_s6, 4  ;;  %s10138_s27 = int_to_ptr.hbm [resolvable:$true] %s10137_s27 }
0x16b2   : > { %7722 = vperm.xlu2 %9933, %v3986_v26   ;;  %7717 = vperm.xlu1 %9932, %v3985_v32   ;;  %v7727_v43 = vsub.f32 1.0, %v3985_v32  ;;  %v7728_v36 = vsub.f32 1.0, %v3986_v26  ;;  %v15403_v6 = vmov %v14802_v55  ;;  %s10139_s16 = scalar_lea.hbm (%p3921_p7), %s10138_s27, 16  ;;  %p10142_p9 = scmp.lt.s32.totalorder (%p3921_p7), %s10138_s27, %s10597_s12 }
0x16b3   :  { %7772 = vmatpush.msra.mxu0 (%p3921_p7), %v7743_v60  ;;  %9672 = vmatpush.msra.mxu1 (%p3921_p7), %v7743_v60  ;;  %p10140_p8 = scmp.ne.s32.totalorder (%p3921_p7), %s10138_s27, %s10139_s16  ;;  %p10143_p10 = scmp.lt.s32.totalorder (%p3921_p7), %s10141_s15, %s10139_s16 }
0x16b5   :  { %p10144_p11 = por (%p3921_p7), %p10143_p10, %p10142_p9 }
0x16b7   : > { %7731 = vperm.xlu0 %9934, %v7727_v43   ;;  %p10145_p12 = pnand (%p3921_p7), %p10144_p11, %p10140_p8 }
0x16db   : > { %7674 = vadd.xlane.f32.xlu2 %v7673_v17 }
0x16f3   : > { %7736 = vperm.xlu2 %9933, %v7728_v36  }
0x170c   : > { %v7723_v59 = vpop.permute.xlu2 %7722 }
0x1716   : > { %v7678_v12 = vpop.xlane.xlu0 %7677 }
0x1717   : > { %v7680_v8 = vmul.f32 %v7678_v12, %v15395_v20 }
0x1719   : > { %v7682_v5 = vadd.f32 1e-05, %v7680_v8 }
0x171b   : > { %10024 = vrsqrt.f32 %v7682_v5  ;;  %vm7699_vm9 = vweird.f32 %v7682_v5 }
0x1721   : > { %v10025_v50 = vpop.eup %10024 }
0x1722   : > { %v7694_v10 = vmul.f32 %v10025_v50, %v7682_v5  ;;  %vm7700_vm7 = vweird.f32 %v10025_v50 }
0x1723   : > { %vm7701_vm8 = vmor %vm7699_vm9, %vm7700_vm7 }
0x1724   : > { %v7695_v52 = vmul.f32 %v10025_v50, %v7694_v10  ;;  %v7718_v13 = vpop.permute.xlu1 %7717 }
0x1726   : > { %v7696_v56 = vmul.f32 0.5, %v7695_v52 }
0x1728   : > { %v7697_v28 = vsub.f32 1.5, %v7696_v56 }
0x1729   : > { %v7732_v24 = vpop.permute.xlu0 %7731 }
0x172a   : > { %v7698_v16 = vmul.f32 %v10025_v50, %v7697_v28  ;;  %v7739_v37 = vmul.f32 %v15402_v11, %v7732_v24 }
0x172c   : > { %v7702_v45 = vsel %vm7701_vm8, %v10025_v50, %v7698_v16 }
0x172d   : > { %v7704_v19 = vmul.f32 %v7702_v45, %v7670_v42 }
0x172f   : > { %v7709_v58 = vmul.f32 %v7706_v61, %v7704_v19 }
0x1731   : > { %v7714_v41 = vadd.f32 %v7711_v30, %v7709_v58  }
0x1733   : > { %v7726_v9 = vmul.f32 %v7723_v59, %v7714_v41 }
0x174e   : > { %v7675_v29 = vpop.xlane.xlu2 %7674 }
0x174f   : > { %v7679_v39 = vmul.f32 %v7675_v29, %v15395_v20 }
0x1751   : > { %v7681_v46 = vadd.f32 1e-05, %v7679_v39  ;;  %v15404_v39 = vmov %v3983_v35 }
0x1753   : > { %10026 = vrsqrt.f32 %v7681_v46  ;;  %vm7689_vm11 = vweird.f32 %v7681_v46 }
0x1756   : > { %v7737_v38 = vpop.permute.xlu2 %7736 }
0x1757   : > { %v7740_v47 = vmul.f32 %v15401_v25, %v7737_v38 }
0x1759   : > { %v10027_v23 = vpop.eup %10026  ;;  %v7742_v14 = vadd.f32 %v7740_v47, %v7726_v9  }
0x175a   : > { %v7684_v48 = vmul.f32 %v10027_v23, %v7681_v46  ;;  %vm7690_vm10 = vweird.f32 %v10027_v23 }
0x175b   : > { %vm7691_vm12 = vmor %vm7689_vm11, %vm7690_vm10  ;;  %v15405_v46 = vmov %v7742_v14  ;;  %9324 = vmatmul.msk.f32.vlgmr.msra.gmra.mxu1 (%p3921_p7), %vm318_vm0, %v7742_v14 }
0x175c   : > { %v7685_v31 = vmul.f32 %v10027_v23, %v7684_v48 }
0x175e   : > { %v7686_v42 = vmul.f32 0.5, %v7685_v31 }
0x1760   : > { %v7687_v34 = vsub.f32 1.5, %v7686_v42 }
0x1762   : > { %v7688_v4 = vmul.f32 %v10027_v23, %v7687_v34 }
0x1764   : > { %v7692_v20 = vsel %vm7691_vm12, %v10027_v23, %v7688_v4 }
0x1765   : > { %v7703_v3 = vmul.f32 %v7692_v20, %v7669_v53 }
0x1767   : > { %v7708_v62 = vmul.f32 %v7706_v61, %v7703_v3 }
0x1769   : > { %v7713_v44 = vadd.f32 %v7711_v30, %v7708_v62  }
0x176b   : > { %v7725_v21 = vmul.f32 %v7718_v13, %v7713_v44  ;;  %3923 = sbr.rel (!%p3921_p7) target bundleno = 2605 (0xa2d), region = 322 }
0x176d   : > { %v7741_v54 = vadd.f32 %v7739_v37, %v7725_v21  }
0x176f   : > { %v15406_v51 = vmov %v7741_v54  ;;  %9323 = vmatmul.msk.f32.vlgmr.msra.gmra.mxu0 (%p3921_p7), %vm318_vm0, %v7741_v54 }
0x17d8   :  { %v7777_v6 = vpop.f32.mrf.mxu1 }
0x17d9   :  { %v7778_v55 = vadd.f32 %v10028_v33, %v7777_v6 }
0x17db   :  { %7782 = vst.msk [vmem:[#allocation11 + $0x8] sm:$0xff] %vm439_vm1, %v7778_v55 }
0x17ec   :  { %v7774_v22 = vpop.f32.mrf.mxu0 }
0x17ed   :  { %v7775_v26 = vadd.f32 %v10028_v33, %v7774_v22 }
0x17ef   :  { %7781 = vst.msk [vmem:[#allocation11] sm:$0xff] %vm439_vm1, %v7775_v26 }
0x17f0   :  { %10148 = shalt.err (!%p10145_p12)
}
0x17f1   :  { %s10329_s18 = smov 128   ;;  %s10330_s23 = smov 8  }
0x17f2   :  { %7795 = dma.vmem_to_hbm [thread:$0]  %s7788_s30, 256, %s7790_s6, [#allocation5], %s10329_s18, %s10329_s18, %s10330_s23  }
0x17f3   :  { %10211 = dma.done.wait [#allocation5], 256  }
0x17f4   :  { %10212 = vsyncadd [#allocation5], 4294967040 }
0x17f5   :  { %7800 = vsyncpa [#allocation4], 1 }
0x17f6   :  { %7801 = vsyncpa [#allocation7], 1 }
0x17f7   :  { %7802 = vsyncpa [#allocation10], 1 }
0x17f8   :  { %7803 = vsyncpa [#allocation5], 1 }

</bundles_post_ra>
